<compile_context>
chip_gen: v7x
topology: tpu7x:2x2x1
jax: 0.10.0
libtpu: 0.0.40
codegen_flags: <defaults>
</compile_context>

<pallas_src>
import jax
import jax.numpy as jnp
from jax import lax
from jax.experimental import pallas as pl
from jax.experimental.pallas import tpu as pltpu

# Scaled-down hyper-parameters (original: chip_size=conv_size=300, fc in = 3_375_000).
IN_CHANNELS = 3
CONV_SIZE = 8          # stands in for conv_size=300
KERNEL_SIZE = 5
NUM_CLASSES = 10       # stands in for len(labels)
BN_EPS = 1e-5
LANES = 128            # all channel/class dims are padded to the 128-lane width
MXU_K = 256            # target contraction depth (v6e/v7x MXU)


# ---------------- Pallas kernels ----------------

def _make_conv_kernel(TH, W, Cin, taps, group, ho, out_pad, o_dtype):
    """Fused conv(SAME) + folded-BN + ReLU + 2x2 maxpool for one (batch, row-tile) block."""
    tho, wo = TH // 2, W // 2
    G = len(taps) // group

    def kernel(x_ref, w_ref, b_ref, o_ref):
        # x_ref: (1, Hp, Wp, Cin)       full padded image, bf16 (resident across row tiles)
        # w_ref: (G, group*Cin, 128)    BN-scale-folded weights, bf16, cout padded to 128 lanes
        # b_ref: (1, 128)               BN-shift-folded bias, f32
        # o_ref: (1, tho, out_w, 128)   pooled (and, for conv1, zero-bordered) output, bf16
        r = pl.program_id(1)
        row0 = r * TH                       # conv-row window start inside the padded input block

        # conv as a few deep MXU matmuls: im2col windows are concatenated in VMEM, never in HBM.
        acc = jnp.zeros((TH * W, LANES), jnp.float32)
        for g in range(G):
            parts = [x_ref[0, pl.ds(row0 + di, TH), dj:dj + W, :].reshape(TH * W, Cin)
                     for (di, dj) in taps[g * group:(g + 1) * group]]
            lhs = parts[0] if group == 1 else jnp.concatenate(parts, axis=-1)
            acc = acc + jnp.dot(lhs, w_ref[g], preferred_element_type=jnp.float32)

        y = jnp.maximum(acc + b_ref[...], 0.0).reshape(TH, W, LANES)
        yr = jnp.max(y.reshape(tho, 2, W, LANES), axis=1)          # 2x1 row pool (paired slabs)
        pooled = jnp.max(yr.reshape(tho, wo, 2, LANES), axis=2)    # 1x2 col pool (paired sublanes)

        if out_pad == 0:
            o_ref[0] = pooled.astype(o_dtype)
        else:
            # conv1 writes the next layer's halo itself: pad rows masked to zero, zero column
            # strips concatenated in VMEM -> no jnp.pad HBM round trip between the conv layers.
            idx = r * tho + lax.broadcasted_iota(jnp.int32, (tho, 1, 1), 0)
            valid = (idx >= out_pad) & (idx < out_pad + ho)
            interior = jnp.where(valid, pooled, 0.0)
            strip = jnp.zeros((tho, out_pad, LANES), jnp.float32)
            o_ref[0] = jnp.concatenate([strip, interior, strip], axis=1).astype(o_dtype)

    return kernel


def _fc_kernel(x_ref, w_ref, b_ref, o_ref):
    """K-tiled x @ W + b, accumulating directly into the resident f32 output block."""
    @pl.when(pl.program_id(0) == 0)
    def _init():
        o_ref[...] = jnp.zeros_like(o_ref)

    o_ref[...] += jnp.dot(x_ref[...], w_ref[...], preferred_element_type=jnp.float32)

    @pl.when(pl.program_id(0) == pl.num_programs(0) - 1)
    def _fin():
        o_ref[...] += b_ref[...]


# ---------------- wrappers ----------------

def conv_bn_relu_pool(x_pad, w_grp, b_row, *, k=KERNEL_SIZE, out_pad=0, row_tile=4):
    """x_pad: (N, H + (k-1) + 4*out_pad, W + (k-1), Cin) bf16 (rows over-padded by 2*out_pad per
    side so pad output rows can be produced in-kernel).  Returns (N, H/2 + 2*out_pad,
    W/2 + 2*out_pad, 128) bf16 pooled activations, zero-bordered by `out_pad` on each side."""
    n, hp, wp, cin = x_pad.shape
    w = wp - (k - 1)
    h = hp - (k - 1) - 4 * out_pad
    ho, wo = h // 2, w // 2
    out_h, out_w = ho + 2 * out_pad, wo + 2 * out_pad
    G, gk, _ = w_grp.shape
    group = gk // cin
    taps = [(di, dj) for di in range(k) for dj in range(k)]
    taps += [(0, 0)] * ((-len(taps)) % group)          # dummy taps carry zero weights

    # pooled-output rows per grid step (largest divisor of out_h <= row_tile)
    tho = max(d for d in range(1, out_h + 1) if out_h % d == 0 and d <= row_tile)
    R = out_h // tho
    kernel = _make_conv_kernel(2 * tho, w, cin, taps, group, ho, out_pad, jnp.bfloat16)

    return pl.pallas_call(
        kernel,
        out_shape=jax.ShapeDtypeStruct((n, out_h, out_w, LANES), jnp.bfloat16),
        grid_spec=pltpu.PrefetchScalarGridSpec(
            num_scalar_prefetch=0,
            grid=(n, R),
            in_specs=[
                # full padded image per batch element: block index ignores r -> stays resident
                pl.BlockSpec((1, hp, wp, cin), lambda b, r: (b, 0, 0, 0)),
                pl.BlockSpec((G, gk, LANES), lambda b, r: (0, 0, 0)),
                pl.BlockSpec((1, LANES), lambda b, r: (0, 0)),
            ],
            out_specs=pl.BlockSpec((1, tho, out_w, LANES), lambda b, r: (b, r, 0, 0)),
        ),
        compiler_params=pltpu.CompilerParams(
            dimension_semantics=("parallel", "parallel"),
            vmem_limit_bytes=32 * 1024 * 1024,
        ),
    )(x_pad, w_grp, b_row)


def fc(x_flat, w_pad, b_row):
    """x_flat: (N, feat) bf16; w_pad: (feat, 128) bf16; returns (N, 128) f32 lane-padded logits."""
    n, feat = x_flat.shape
    tk = next((t for t in (16384, 8192, 4096, 2048, 1024, 512, 256, 128) if feat % t == 0), feat)
    return pl.pallas_call(
        _fc_kernel,
        out_shape=jax.ShapeDtypeStruct((n, LANES), jnp.float32),
        grid_spec=pltpu.PrefetchScalarGridSpec(
            num_scalar_prefetch=0,
            grid=(feat // tk,),
            in_specs=[pl.BlockSpec((n, tk), lambda kk: (0, kk)),
                      pl.BlockSpec((tk, LANES), lambda kk: (kk, 0)),
                      pl.BlockSpec((1, LANES), lambda kk: (0, 0))],
            out_specs=pl.BlockSpec((n, LANES), lambda kk: (0, 0)),
        ),
        compiler_params=pltpu.CompilerParams(
            dimension_semantics=("arbitrary",),
            vmem_limit_bytes=32 * 1024 * 1024,
        ),
    )(x_flat, w_pad, b_row)


# ---------------- one-time parameter preparation (outside the forward path) ----------------

def _fold_conv_bn(w_oihw, conv_b, gamma, beta, mean, var, cin_pad, group):
    cout, cin, k, _ = w_oihw.shape
    scale = gamma / jnp.sqrt(var + BN_EPS)
    shift = beta + scale * (conv_b - mean)
    wf = w_oihw * scale[:, None, None, None]                       # fold BN scale into weights
    w_taps = jnp.transpose(wf, (2, 3, 1, 0)).reshape(k * k, cin, cout)   # (tap, cin, cout)
    w_taps = jnp.pad(w_taps, ((0, (-k * k) % group),               # dummy taps -> zero weights
                              (0, cin_pad - cin),                  # lane-padded input channels
                              (0, LANES - cout)))                  # lane-padded output channels
    G = w_taps.shape[0] // group
    w_grp = w_taps.reshape(G, group * cin_pad, LANES).astype(jnp.bfloat16)
    b_row = jnp.pad(shift, (0, LANES - cout)).reshape(1, LANES).astype(jnp.float32)
    return w_grp, b_row


def prepare_params(params, h_out, w_out, k=KERNEL_SIZE):
    """Fold BN, pad channels/classes to 128 lanes, group taps per conv for deep MXU contractions,
    and fold PyTorch's NCHW .view() flatten order into wfc."""
    c2 = params['w2'].shape[0]
    g1 = max(1, min(k * k, MXU_K // IN_CHANNELS))      # conv1: fuse all 25 taps -> K = 75
    g2 = max(1, min(k * k, MXU_K // LANES))            # conv2: pair taps        -> K = 256
    w1, b1 = _fold_conv_bn(params['w1'], params['b1'], params['g1'], params['be1'],
                           params['m1'], params['v1'], cin_pad=IN_CHANNELS, group=g1)
    w2, b2 = _fold_conv_bn(params['w2'], params['b2'], params['g2'], params['be2'],
                           params['m2'], params['v2'], cin_pad=LANES, group=g2)
    ncls = params['wfc'].shape[0]
    wfc = params['wfc'].reshape(ncls, c2, h_out, w_out)            # (cls, c, h, w): PyTorch order
    wfc = jnp.transpose(wfc, (2, 3, 1, 0))                         # (h, w, c, cls): our NHWC order
    wfc = jnp.pad(wfc, ((0, 0), (0, 0), (0, LANES - c2), (0, LANES - ncls)))
    wfc = wfc.reshape(h_out * w_out * LANES, LANES).astype(jnp.bfloat16)
    bfc = jnp.pad(params['bfc'], (0, LANES - ncls)).reshape(1, LANES).astype(jnp.float32)
    return {'w1': w1, 'b1': b1, 'w2': w2, 'b2': b2, 'wfc': wfc, 'bfc': bfc}


# ---------------- forward ----------------

def cnn_forward(prep, x_nchw, k=KERNEL_SIZE):
    p = k // 2
    x = jnp.transpose(x_nchw, (0, 2, 3, 1)).astype(jnp.bfloat16)   # NCHW -> NHWC (3-ch input only)
    # conv1 writes a p-padded output (conv2's halo), so its input needs p + 2p rows of padding.
    x = jnp.pad(x, ((0, 0), (3 * p, 3 * p), (p, p), (0, 0)))
    h1 = conv_bn_relu_pool(x, prep['w1'], prep['b1'], k=k, out_pad=p)   # (N, H/2+2p, W/2+2p, 128)
    h2 = conv_bn_relu_pool(h1, prep['w2'], prep['b2'], k=k, out_pad=0)  # (N, H/4,    W/4,    128)
    flat = h2.reshape(h2.shape[0], -1)           # no transpose: flatten order is folded into wfc
    logits = fc(flat, prep['wfc'], prep['bfc'])                         # (N, 128)
    return logits[:, :NUM_CLASSES]


# ---------------- pure-JAX reference (for correctness check) ----------------

def cnn_reference(params, x_nchw):
    p = KERNEL_SIZE // 2

    def conv(x, w, b):
        y = lax.conv_general_dilated(
            x, w, window_strides=(1, 1), padding=((p, p), (p, p)),
            dimension_numbers=('NCHW', 'OIHW', 'NCHW'))
        return y + b.reshape(1, -1, 1, 1)

    def bn(x, g, be, m, v):
        return ((x - m.reshape(1, -1, 1, 1))
                / jnp.sqrt(v.reshape(1, -1, 1, 1) + BN_EPS)
                * g.reshape(1, -1, 1, 1) + be.reshape(1, -1, 1, 1))

    def pool(x):
        return lax.reduce_window(x, -jnp.inf, lax.max,
                                 (1, 1, 2, 2), (1, 1, 2, 2), 'VALID')

    y = pool(jax.nn.relu(bn(conv(x_nchw, params['w1'], params['b1']),
                            params['g1'], params['be1'], params['m1'], params['v1'])))
    y = pool(jax.nn.relu(bn(conv(y, params['w2'], params['b2']),
                            params['g2'], params['be2'], params['m2'], params['v2'])))
    flat = y.reshape(y.shape[0], -1)
    return flat @ params['wfc'].T + params['bfc']


if __name__ == "__main__":
    key = jax.random.PRNGKey(0)
    keys = jax.random.split(key, 16)
    c1, c2, k = CONV_SIZE, CONV_SIZE * 2, KERNEL_SIZE
    H = W = 16
    feat = c2 * (H // 4) * (W // 4)

    params = {
        'w1': 0.1 * jax.random.normal(keys[0], (c1, IN_CHANNELS, k, k), jnp.float32),
        'b1': 0.1 * jax.random.normal(keys[1], (c1,), jnp.float32),
        'g1': 1.0 + 0.1 * jax.random.normal(keys[2], (c1,), jnp.float32),
        'be1': 0.1 * jax.random.normal(keys[3], (c1,), jnp.float32),
        'm1': 0.1 * jax.random.normal(keys[4], (c1,), jnp.float32),
        'v1': 0.5 + jnp.abs(jax.random.normal(keys[5], (c1,), jnp.float32)),
        'w2': 0.1 * jax.random.normal(keys[6], (c2, c1, k, k), jnp.float32),
        'b2': 0.1 * jax.random.normal(keys[7], (c2,), jnp.float32),
        'g2': 1.0 + 0.1 * jax.random.normal(keys[8], (c2,), jnp.float32),
        'be2': 0.1 * jax.random.normal(keys[9], (c2,), jnp.float32),
        'm2': 0.1 * jax.random.normal(keys[10], (c2,), jnp.float32),
        'v2': 0.5 + jnp.abs(jax.random.normal(keys[11], (c2,), jnp.float32)),
        'wfc': 0.05 * jax.random.normal(keys[12], (NUM_CLASSES, feat), jnp.float32),
        'bfc': 0.05 * jax.random.normal(keys[13], (NUM_CLASSES,), jnp.float32),
    }

    x = jax.random.normal(keys[14], (2, IN_CHANNELS, H, W), jnp.float32)

    prep = prepare_params(params, H // 4, W // 4)       # one-time host prep (not in forward path)
    out = jax.jit(cnn_forward)(prep, x)
    out = jax.block_until_ready(out)

    ref = cnn_reference(params, x)
    assert out.shape == (2, NUM_CLASSES)
    # bf16 MXU operands (f32 accumulation) -> looser tolerance than the previous all-f32 check.
    assert jnp.allclose(out, ref, atol=1e-1, rtol=1e-1), \
        float(jnp.max(jnp.abs(out - ref)))
    print("KERNEL_OK")
</pallas_src>

<mosaic_0001>
module attributes {stable_mosaic.version = 11 : i64} {
  func.func @kernel(%arg0: i32, %arg1: i32, %arg2: memref<1x28x20x3xbf16, #tpu.memory_space<vmem>>, %arg3: memref<1x75x128xbf16, #tpu.memory_space<vmem>>, %arg4: memref<1x128xf32, #tpu.memory_space<vmem>>, %arg5: memref<1x4x12x128xbf16, #tpu.memory_space<vmem>>) attributes {dimension_semantics = [#tpu.dimension_semantics<parallel>, #tpu.dimension_semantics<parallel>], iteration_bounds = array<i64: 2, 3>, scalar_prefetch = 0 : i64, scratch_operands = 0 : i64, tpu.core_type = #tpu.core_type<tc>, window_params = [{transform_indices = @transform_0, window_bounds = array<i64: 1, 28, 20, 3>}, {pipeline_mode = #tpu.pipeline_mode<synchronous>, transform_indices = @transform_1, window_bounds = array<i64: 1, 75, 128>}, {pipeline_mode = #tpu.pipeline_mode<synchronous>, transform_indices = @transform_2, window_bounds = array<i64: 1, 128>}, {transform_indices = @transform_3, window_bounds = array<i64: 1, 4, 12, 128>}]} {
    %c8_i32 = arith.constant 8 : i32
    %0 = arith.muli %arg1, %c8_i32 : i32
    %cst = arith.constant 0.000000e+00 : f32
    %1 = vector.broadcast %cst : f32 to vector<128x128xf32>
    %c0_i32 = arith.constant 0 : i32
    %2 = arith.addi %0, %c0_i32 : i32
    %c0 = arith.constant 0 : index
    %3 = arith.index_cast %2 : i32 to index
    %c0_0 = arith.constant 0 : index
    %c0_1 = arith.constant 0 : index
    %4 = vector.load %arg2[%c0, %3, %c0_0, %c0_1] : memref<1x28x20x3xbf16, #tpu.memory_space<vmem>>, vector<1x8x16x3xbf16>
    %5 = vector.shape_cast %4 : vector<1x8x16x3xbf16> to vector<8x16x3xbf16>
    %6 = vector.shape_cast %5 : vector<8x16x3xbf16> to vector<128x3xbf16>
    %c0_i32_2 = arith.constant 0 : i32
    %7 = arith.addi %0, %c0_i32_2 : i32
    %c0_3 = arith.constant 0 : index
    %8 = arith.index_cast %7 : i32 to index
    %c1 = arith.constant 1 : index
    %c0_4 = arith.constant 0 : index
    %9 = vector.load %arg2[%c0_3, %8, %c1, %c0_4] : memref<1x28x20x3xbf16, #tpu.memory_space<vmem>>, vector<1x8x16x3xbf16>
    %10 = vector.shape_cast %9 : vector<1x8x16x3xbf16> to vector<8x16x3xbf16>
    %11 = vector.shape_cast %10 : vector<8x16x3xbf16> to vector<128x3xbf16>
    %c0_i32_5 = arith.constant 0 : i32
    %12 = arith.addi %0, %c0_i32_5 : i32
    %c0_6 = arith.constant 0 : index
    %13 = arith.index_cast %12 : i32 to index
    %c2 = arith.constant 2 : index
    %c0_7 = arith.constant 0 : index
    %14 = vector.load %arg2[%c0_6, %13, %c2, %c0_7] : memref<1x28x20x3xbf16, #tpu.memory_space<vmem>>, vector<1x8x16x3xbf16>
    %15 = vector.shape_cast %14 : vector<1x8x16x3xbf16> to vector<8x16x3xbf16>
    %16 = vector.shape_cast %15 : vector<8x16x3xbf16> to vector<128x3xbf16>
    %c0_i32_8 = arith.constant 0 : i32
    %17 = arith.addi %0, %c0_i32_8 : i32
    %c0_9 = arith.constant 0 : index
    %18 = arith.index_cast %17 : i32 to index
    %c3 = arith.constant 3 : index
    %c0_10 = arith.constant 0 : index
    %19 = vector.load %arg2[%c0_9, %18, %c3, %c0_10] : memref<1x28x20x3xbf16, #tpu.memory_space<vmem>>, vector<1x8x16x3xbf16>
    %20 = vector.shape_cast %19 : vector<1x8x16x3xbf16> to vector<8x16x3xbf16>
    %21 = vector.shape_cast %20 : vector<8x16x3xbf16> to vector<128x3xbf16>
    %c0_i32_11 = arith.constant 0 : i32
    %22 = arith.addi %0, %c0_i32_11 : i32
    %c0_12 = arith.constant 0 : index
    %23 = arith.index_cast %22 : i32 to index
    %c4 = arith.constant 4 : index
    %c0_13 = arith.constant 0 : index
    %24 = vector.load %arg2[%c0_12, %23, %c4, %c0_13] : memref<1x28x20x3xbf16, #tpu.memory_space<vmem>>, vector<1x8x16x3xbf16>
    %25 = vector.shape_cast %24 : vector<1x8x16x3xbf16> to vector<8x16x3xbf16>
    %26 = vector.shape_cast %25 : vector<8x16x3xbf16> to vector<128x3xbf16>
    %c1_i32 = arith.constant 1 : i32
    %27 = arith.addi %0, %c1_i32 : i32
    %c0_14 = arith.constant 0 : index
    %28 = arith.index_cast %27 : i32 to index
    %c0_15 = arith.constant 0 : index
    %c0_16 = arith.constant 0 : index
    %29 = vector.load %arg2[%c0_14, %28, %c0_15, %c0_16] : memref<1x28x20x3xbf16, #tpu.memory_space<vmem>>, vector<1x8x16x3xbf16>
    %30 = vector.shape_cast %29 : vector<1x8x16x3xbf16> to vector<8x16x3xbf16>
    %31 = vector.shape_cast %30 : vector<8x16x3xbf16> to vector<128x3xbf16>
    %c1_i32_17 = arith.constant 1 : i32
    %32 = arith.addi %0, %c1_i32_17 : i32
    %c0_18 = arith.constant 0 : index
    %33 = arith.index_cast %32 : i32 to index
    %c1_19 = arith.constant 1 : index
    %c0_20 = arith.constant 0 : index
    %34 = vector.load %arg2[%c0_18, %33, %c1_19, %c0_20] : memref<1x28x20x3xbf16, #tpu.memory_space<vmem>>, vector<1x8x16x3xbf16>
    %35 = vector.shape_cast %34 : vector<1x8x16x3xbf16> to vector<8x16x3xbf16>
    %36 = vector.shape_cast %35 : vector<8x16x3xbf16> to vector<128x3xbf16>
    %c1_i32_21 = arith.constant 1 : i32
    %37 = arith.addi %0, %c1_i32_21 : i32
    %c0_22 = arith.constant 0 : index
    %38 = arith.index_cast %37 : i32 to index
    %c2_23 = arith.constant 2 : index
    %c0_24 = arith.constant 0 : index
    %39 = vector.load %arg2[%c0_22, %38, %c2_23, %c0_24] : memref<1x28x20x3xbf16, #tpu.memory_space<vmem>>, vector<1x8x16x3xbf16>
    %40 = vector.shape_cast %39 : vector<1x8x16x3xbf16> to vector<8x16x3xbf16>
    %41 = vector.shape_cast %40 : vector<8x16x3xbf16> to vector<128x3xbf16>
    %c1_i32_25 = arith.constant 1 : i32
    %42 = arith.addi %0, %c1_i32_25 : i32
    %c0_26 = arith.constant 0 : index
    %43 = arith.index_cast %42 : i32 to index
    %c3_27 = arith.constant 3 : index
    %c0_28 = arith.constant 0 : index
    %44 = vector.load %arg2[%c0_26, %43, %c3_27, %c0_28] : memref<1x28x20x3xbf16, #tpu.memory_space<vmem>>, vector<1x8x16x3xbf16>
    %45 = vector.shape_cast %44 : vector<1x8x16x3xbf16> to vector<8x16x3xbf16>
    %46 = vector.shape_cast %45 : vector<8x16x3xbf16> to vector<128x3xbf16>
    %c1_i32_29 = arith.constant 1 : i32
    %47 = arith.addi %0, %c1_i32_29 : i32
    %c0_30 = arith.constant 0 : index
    %48 = arith.index_cast %47 : i32 to index
    %c4_31 = arith.constant 4 : index
    %c0_32 = arith.constant 0 : index
    %49 = vector.load %arg2[%c0_30, %48, %c4_31, %c0_32] : memref<1x28x20x3xbf16, #tpu.memory_space<vmem>>, vector<1x8x16x3xbf16>
    %50 = vector.shape_cast %49 : vector<1x8x16x3xbf16> to vector<8x16x3xbf16>
    %51 = vector.shape_cast %50 : vector<8x16x3xbf16> to vector<128x3xbf16>
    %c2_i32 = arith.constant 2 : i32
    %52 = arith.addi %0, %c2_i32 : i32
    %c0_33 = arith.constant 0 : index
    %53 = arith.index_cast %52 : i32 to index
    %c0_34 = arith.constant 0 : index
    %c0_35 = arith.constant 0 : index
    %54 = vector.load %arg2[%c0_33, %53, %c0_34, %c0_35] : memref<1x28x20x3xbf16, #tpu.memory_space<vmem>>, vector<1x8x16x3xbf16>
    %55 = vector.shape_cast %54 : vector<1x8x16x3xbf16> to vector<8x16x3xbf16>
    %56 = vector.shape_cast %55 : vector<8x16x3xbf16> to vector<128x3xbf16>
    %c2_i32_36 = arith.constant 2 : i32
    %57 = arith.addi %0, %c2_i32_36 : i32
    %c0_37 = arith.constant 0 : index
    %58 = arith.index_cast %57 : i32 to index
    %c1_38 = arith.constant 1 : index
    %c0_39 = arith.constant 0 : index
    %59 = vector.load %arg2[%c0_37, %58, %c1_38, %c0_39] : memref<1x28x20x3xbf16, #tpu.memory_space<vmem>>, vector<1x8x16x3xbf16>
    %60 = vector.shape_cast %59 : vector<1x8x16x3xbf16> to vector<8x16x3xbf16>
    %61 = vector.shape_cast %60 : vector<8x16x3xbf16> to vector<128x3xbf16>
    %c2_i32_40 = arith.constant 2 : i32
    %62 = arith.addi %0, %c2_i32_40 : i32
    %c0_41 = arith.constant 0 : index
    %63 = arith.index_cast %62 : i32 to index
    %c2_42 = arith.constant 2 : index
    %c0_43 = arith.constant 0 : index
    %64 = vector.load %arg2[%c0_41, %63, %c2_42, %c0_43] : memref<1x28x20x3xbf16, #tpu.memory_space<vmem>>, vector<1x8x16x3xbf16>
    %65 = vector.shape_cast %64 : vector<1x8x16x3xbf16> to vector<8x16x3xbf16>
    %66 = vector.shape_cast %65 : vector<8x16x3xbf16> to vector<128x3xbf16>
    %c2_i32_44 = arith.constant 2 : i32
    %67 = arith.addi %0, %c2_i32_44 : i32
    %c0_45 = arith.constant 0 : index
    %68 = arith.index_cast %67 : i32 to index
    %c3_46 = arith.constant 3 : index
    %c0_47 = arith.constant 0 : index
    %69 = vector.load %arg2[%c0_45, %68, %c3_46, %c0_47] : memref<1x28x20x3xbf16, #tpu.memory_space<vmem>>, vector<1x8x16x3xbf16>
    %70 = vector.shape_cast %69 : vector<1x8x16x3xbf16> to vector<8x16x3xbf16>
    %71 = vector.shape_cast %70 : vector<8x16x3xbf16> to vector<128x3xbf16>
    %c2_i32_48 = arith.constant 2 : i32
    %72 = arith.addi %0, %c2_i32_48 : i32
    %c0_49 = arith.constant 0 : index
    %73 = arith.index_cast %72 : i32 to index
    %c4_50 = arith.constant 4 : index
    %c0_51 = arith.constant 0 : index
    %74 = vector.load %arg2[%c0_49, %73, %c4_50, %c0_51] : memref<1x28x20x3xbf16, #tpu.memory_space<vmem>>, vector<1x8x16x3xbf16>
    %75 = vector.shape_cast %74 : vector<1x8x16x3xbf16> to vector<8x16x3xbf16>
    %76 = vector.shape_cast %75 : vector<8x16x3xbf16> to vector<128x3xbf16>
    %c3_i32 = arith.constant 3 : i32
    %77 = arith.addi %0, %c3_i32 : i32
    %c0_52 = arith.constant 0 : index
    %78 = arith.index_cast %77 : i32 to index
    %c0_53 = arith.constant 0 : index
    %c0_54 = arith.constant 0 : index
    %79 = vector.load %arg2[%c0_52, %78, %c0_53, %c0_54] : memref<1x28x20x3xbf16, #tpu.memory_space<vmem>>, vector<1x8x16x3xbf16>
    %80 = vector.shape_cast %79 : vector<1x8x16x3xbf16> to vector<8x16x3xbf16>
    %81 = vector.shape_cast %80 : vector<8x16x3xbf16> to vector<128x3xbf16>
    %c3_i32_55 = arith.constant 3 : i32
    %82 = arith.addi %0, %c3_i32_55 : i32
    %c0_56 = arith.constant 0 : index
    %83 = arith.index_cast %82 : i32 to index
    %c1_57 = arith.constant 1 : index
    %c0_58 = arith.constant 0 : index
    %84 = vector.load %arg2[%c0_56, %83, %c1_57, %c0_58] : memref<1x28x20x3xbf16, #tpu.memory_space<vmem>>, vector<1x8x16x3xbf16>
    %85 = vector.shape_cast %84 : vector<1x8x16x3xbf16> to vector<8x16x3xbf16>
    %86 = vector.shape_cast %85 : vector<8x16x3xbf16> to vector<128x3xbf16>
    %c3_i32_59 = arith.constant 3 : i32
    %87 = arith.addi %0, %c3_i32_59 : i32
    %c0_60 = arith.constant 0 : index
    %88 = arith.index_cast %87 : i32 to index
    %c2_61 = arith.constant 2 : index
    %c0_62 = arith.constant 0 : index
    %89 = vector.load %arg2[%c0_60, %88, %c2_61, %c0_62] : memref<1x28x20x3xbf16, #tpu.memory_space<vmem>>, vector<1x8x16x3xbf16>
    %90 = vector.shape_cast %89 : vector<1x8x16x3xbf16> to vector<8x16x3xbf16>
    %91 = vector.shape_cast %90 : vector<8x16x3xbf16> to vector<128x3xbf16>
    %c3_i32_63 = arith.constant 3 : i32
    %92 = arith.addi %0, %c3_i32_63 : i32
    %c0_64 = arith.constant 0 : index
    %93 = arith.index_cast %92 : i32 to index
    %c3_65 = arith.constant 3 : index
    %c0_66 = arith.constant 0 : index
    %94 = vector.load %arg2[%c0_64, %93, %c3_65, %c0_66] : memref<1x28x20x3xbf16, #tpu.memory_space<vmem>>, vector<1x8x16x3xbf16>
    %95 = vector.shape_cast %94 : vector<1x8x16x3xbf16> to vector<8x16x3xbf16>
    %96 = vector.shape_cast %95 : vector<8x16x3xbf16> to vector<128x3xbf16>
    %c3_i32_67 = arith.constant 3 : i32
    %97 = arith.addi %0, %c3_i32_67 : i32
    %c0_68 = arith.constant 0 : index
    %98 = arith.index_cast %97 : i32 to index
    %c4_69 = arith.constant 4 : index
    %c0_70 = arith.constant 0 : index
    %99 = vector.load %arg2[%c0_68, %98, %c4_69, %c0_70] : memref<1x28x20x3xbf16, #tpu.memory_space<vmem>>, vector<1x8x16x3xbf16>
    %100 = vector.shape_cast %99 : vector<1x8x16x3xbf16> to vector<8x16x3xbf16>
    %101 = vector.shape_cast %100 : vector<8x16x3xbf16> to vector<128x3xbf16>
    %c4_i32 = arith.constant 4 : i32
    %102 = arith.addi %0, %c4_i32 : i32
    %c0_71 = arith.constant 0 : index
    %103 = arith.index_cast %102 : i32 to index
    %c0_72 = arith.constant 0 : index
    %c0_73 = arith.constant 0 : index
    %104 = vector.load %arg2[%c0_71, %103, %c0_72, %c0_73] : memref<1x28x20x3xbf16, #tpu.memory_space<vmem>>, vector<1x8x16x3xbf16>
    %105 = vector.shape_cast %104 : vector<1x8x16x3xbf16> to vector<8x16x3xbf16>
    %106 = vector.shape_cast %105 : vector<8x16x3xbf16> to vector<128x3xbf16>
    %c4_i32_74 = arith.constant 4 : i32
    %107 = arith.addi %0, %c4_i32_74 : i32
    %c0_75 = arith.constant 0 : index
    %108 = arith.index_cast %107 : i32 to index
    %c1_76 = arith.constant 1 : index
    %c0_77 = arith.constant 0 : index
    %109 = vector.load %arg2[%c0_75, %108, %c1_76, %c0_77] : memref<1x28x20x3xbf16, #tpu.memory_space<vmem>>, vector<1x8x16x3xbf16>
    %110 = vector.shape_cast %109 : vector<1x8x16x3xbf16> to vector<8x16x3xbf16>
    %111 = vector.shape_cast %110 : vector<8x16x3xbf16> to vector<128x3xbf16>
    %c4_i32_78 = arith.constant 4 : i32
    %112 = arith.addi %0, %c4_i32_78 : i32
    %c0_79 = arith.constant 0 : index
    %113 = arith.index_cast %112 : i32 to index
    %c2_80 = arith.constant 2 : index
    %c0_81 = arith.constant 0 : index
    %114 = vector.load %arg2[%c0_79, %113, %c2_80, %c0_81] : memref<1x28x20x3xbf16, #tpu.memory_space<vmem>>, vector<1x8x16x3xbf16>
    %115 = vector.shape_cast %114 : vector<1x8x16x3xbf16> to vector<8x16x3xbf16>
    %116 = vector.shape_cast %115 : vector<8x16x3xbf16> to vector<128x3xbf16>
    %c4_i32_82 = arith.constant 4 : i32
    %117 = arith.addi %0, %c4_i32_82 : i32
    %c0_83 = arith.constant 0 : index
    %118 = arith.index_cast %117 : i32 to index
    %c3_84 = arith.constant 3 : index
    %c0_85 = arith.constant 0 : index
    %119 = vector.load %arg2[%c0_83, %118, %c3_84, %c0_85] : memref<1x28x20x3xbf16, #tpu.memory_space<vmem>>, vector<1x8x16x3xbf16>
    %120 = vector.shape_cast %119 : vector<1x8x16x3xbf16> to vector<8x16x3xbf16>
    %121 = vector.shape_cast %120 : vector<8x16x3xbf16> to vector<128x3xbf16>
    %c4_i32_86 = arith.constant 4 : i32
    %122 = arith.addi %0, %c4_i32_86 : i32
    %c0_87 = arith.constant 0 : index
    %123 = arith.index_cast %122 : i32 to index
    %c4_88 = arith.constant 4 : index
    %c0_89 = arith.constant 0 : index
    %124 = vector.load %arg2[%c0_87, %123, %c4_88, %c0_89] : memref<1x28x20x3xbf16, #tpu.memory_space<vmem>>, vector<1x8x16x3xbf16>
    %125 = vector.shape_cast %124 : vector<1x8x16x3xbf16> to vector<8x16x3xbf16>
    %126 = vector.shape_cast %125 : vector<8x16x3xbf16> to vector<128x3xbf16>
    %127 = tpu.concatenate %6, %11, %16, %21, %26, %31, %36, %41, %46, %51, %56, %61, %66, %71, %76, %81 in 1 : vector<128x3xbf16>, vector<128x3xbf16>, vector<128x3xbf16>, vector<128x3xbf16>, vector<128x3xbf16>, vector<128x3xbf16>, vector<128x3xbf16>, vector<128x3xbf16>, vector<128x3xbf16>, vector<128x3xbf16>, vector<128x3xbf16>, vector<128x3xbf16>, vector<128x3xbf16>, vector<128x3xbf16>, vector<128x3xbf16>, vector<128x3xbf16> -> vector<128x48xbf16>
    %128 = tpu.concatenate %86, %91, %96, %101, %106, %111, %116, %121, %126 in 1 : vector<128x3xbf16>, vector<128x3xbf16>, vector<128x3xbf16>, vector<128x3xbf16>, vector<128x3xbf16>, vector<128x3xbf16>, vector<128x3xbf16>, vector<128x3xbf16>, vector<128x3xbf16> -> vector<128x27xbf16>
    %129 = tpu.concatenate %127, %128 in 1 : vector<128x48xbf16>, vector<128x27xbf16> -> vector<128x75xbf16>
    %c0_90 = arith.constant 0 : index
    %c0_91 = arith.constant 0 : index
    %c0_92 = arith.constant 0 : index
    %130 = vector.load %arg3[%c0_90, %c0_91, %c0_92] : memref<1x75x128xbf16, #tpu.memory_space<vmem>>, vector<1x75x128xbf16>
    %131 = vector.shape_cast %130 : vector<1x75x128xbf16> to vector<75x128xbf16>
    %cst_93 = arith.constant dense<0.000000e+00> : vector<128x128xf32>
    %132 = tpu.matmul %129, %131, %cst_93 {dimension_numbers = #tpu.dot_dimension_numbers<[1], [0], [0], [1], [0, 0, 1, 1], [], []>} : vector<128x75xbf16>, vector<75x128xbf16>, vector<128x128xf32> -> vector<128x128xf32>
    %133 = arith.addf %1, %132 : vector<128x128xf32>
    %c0_94 = arith.constant 0 : index
    %c0_95 = arith.constant 0 : index
    %134 = vector.load %arg4[%c0_94, %c0_95] : memref<1x128xf32, #tpu.memory_space<vmem>>, vector<1x128xf32>
    %135 = vector.broadcast %134 : vector<1x128xf32> to vector<128x128xf32>
    %136 = arith.addf %133, %135 : vector<128x128xf32>
    %cst_96 = arith.constant 0.000000e+00 : f32
    %137 = vector.broadcast %cst_96 : f32 to vector<128x128xf32>
    %138 = arith.maximumf %136, %137 : vector<128x128xf32>
    %139 = vector.shape_cast %138 : vector<128x128xf32> to vector<8x16x128xf32>
    %140 = vector.shape_cast %139 : vector<8x16x128xf32> to vector<4x2x16x128xf32>
    %cst_97 = arith.constant dense<0xFF800000> : vector<4x16x128xf32>
    %141 = vector.multi_reduction <maximumf>, %140, %cst_97 [1] : vector<4x2x16x128xf32> to vector<4x16x128xf32>
    %142 = vector.shape_cast %141 : vector<4x16x128xf32> to vector<4x8x2x128xf32>
    %cst_98 = arith.constant dense<0xFF800000> : vector<4x8x128xf32>
    %143 = vector.multi_reduction <maximumf>, %142, %cst_98 [2] : vector<4x8x2x128xf32> to vector<4x8x128xf32>
    %c4_i32_99 = arith.constant 4 : i32
    %144 = arith.muli %arg1, %c4_i32_99 : i32
    %145 = tpu.iota {dimensions = array<i32: 0>} : vector<4x1x1xi32>
    %146 = vector.broadcast %144 : i32 to vector<4x1x1xi32>
    %147 = arith.addi %146, %145 : vector<4x1x1xi32>
    %c2_i32_100 = arith.constant 2 : i32
    %148 = vector.broadcast %c2_i32_100 : i32 to vector<4x1x1xi32>
    %149 = arith.cmpi sge, %147, %148 : vector<4x1x1xi32>
    %c10_i32 = arith.constant 10 : i32
    %150 = vector.broadcast %c10_i32 : i32 to vector<4x1x1xi32>
    %151 = arith.cmpi slt, %147, %150 : vector<4x1x1xi32>
    %152 = arith.andi %149, %151 : vector<4x1x1xi1>
    %cst_101 = arith.constant 0.000000e+00 : f32
    %153 = vector.shape_cast %152 : vector<4x1x1xi1> to vector<4x1x1xi1>
    %154 = vector.broadcast %153 : vector<4x1x1xi1> to vector<4x8x128xi1>
    %155 = vector.broadcast %cst_101 : f32 to vector<4x8x128xf32>
    %156 = arith.select %154, %143, %155 : vector<4x8x128xi1>, vector<4x8x128xf32>
    %cst_102 = arith.constant 0.000000e+00 : f32
    %157 = vector.broadcast %cst_102 : f32 to vector<4x2x128xf32>
    %158 = tpu.concatenate %157, %156, %157 in 1 : vector<4x2x128xf32>, vector<4x8x128xf32>, vector<4x2x128xf32> -> vector<4x12x128xf32>
    %159 = arith.truncf %158 : vector<4x12x128xf32> to vector<4x12x128xbf16>
    %c0_103 = arith.constant 0 : index
    %c0_104 = arith.constant 0 : index
    %c0_105 = arith.constant 0 : index
    %c0_106 = arith.constant 0 : index
    %160 = vector.load %arg5[%c0_103, %c0_104, %c0_105, %c0_106] : memref<1x4x12x128xbf16, #tpu.memory_space<vmem>>, vector<1x4x12x128xbf16>
    %161 = vector.shape_cast %160 : vector<1x4x12x128xbf16> to vector<4x12x128xbf16>
    %162 = vector.shape_cast %159 : vector<4x12x128xbf16> to vector<1x4x12x128xbf16>
    tpu.vector_store %arg5[%c0_103, %c0_104, %c0_105, %c0_106], %162 {strides = array<i32>} : memref<1x4x12x128xbf16, #tpu.memory_space<vmem>>, vector<1x4x12x128xbf16>,
    return
  }
  func.func @transform_0(%arg0: i32, %arg1: i32) -> (i32, i32, i32, i32) {
    %c0_i32 = arith.constant 0 : i32
    %c0_i32_0 = arith.constant 0 : i32
    %c0_i32_1 = arith.constant 0 : i32
    %c0_i32_2 = arith.constant 0 : i32
    return %arg0, %c0_i32, %c0_i32_0, %c0_i32_1 : i32, i32, i32, i32
  }
  func.func @transform_1(%arg0: i32, %arg1: i32) -> (i32, i32, i32) {
    %c0_i32 = arith.constant 0 : i32
    %c0_i32_0 = arith.constant 0 : i32
    %c0_i32_1 = arith.constant 0 : i32
    %c0_i32_2 = arith.constant 0 : i32
    return %c0_i32, %c0_i32_0, %c0_i32_1 : i32, i32, i32
  }
  func.func @transform_2(%arg0: i32, %arg1: i32) -> (i32, i32) {
    %c0_i32 = arith.constant 0 : i32
    %c0_i32_0 = arith.constant 0 : i32
    %c0_i32_1 = arith.constant 0 : i32
    return %c0_i32, %c0_i32_0 : i32, i32
  }
  func.func @transform_3(%arg0: i32, %arg1: i32) -> (i32, i32, i32, i32) {
    %c0_i32 = arith.constant 0 : i32
    %c0_i32_0 = arith.constant 0 : i32
    %c0_i32_1 = arith.constant 0 : i32
    return %arg0, %arg1, %c0_i32, %c0_i32_0 : i32, i32, i32, i32
  }
}

module attributes {stable_mosaic.version = 11 : i64} {
  func.func @kernel(%arg0: i32, %arg1: i32, %arg2: memref<1x12x12x128xbf16, #tpu.memory_space<vmem>>, %arg3: memref<13x256x128xbf16, #tpu.memory_space<vmem>>, %arg4: memref<1x128xf32, #tpu.memory_space<vmem>>, %arg5: memref<1x4x4x128xbf16, #tpu.memory_space<vmem>>) attributes {dimension_semantics = [#tpu.dimension_semantics<parallel>, #tpu.dimension_semantics<parallel>], iteration_bounds = array<i64: 2, 1>, scalar_prefetch = 0 : i64, scratch_operands = 0 : i64, tpu.core_type = #tpu.core_type<tc>, window_params = [{transform_indices = @transform_0, window_bounds = array<i64: 1, 12, 12, 128>}, {pipeline_mode = #tpu.pipeline_mode<synchronous>, transform_indices = @transform_1, window_bounds = array<i64: 13, 256, 128>}, {pipeline_mode = #tpu.pipeline_mode<synchronous>, transform_indices = @transform_2, window_bounds = array<i64: 1, 128>}, {transform_indices = @transform_3, window_bounds = array<i64: 1, 4, 4, 128>}]} {
    %c8_i32 = arith.constant 8 : i32
    %0 = arith.muli %arg1, %c8_i32 : i32
    %cst = arith.constant 0.000000e+00 : f32
    %1 = vector.broadcast %cst : f32 to vector<64x128xf32>
    %c0_i32 = arith.constant 0 : i32
    %2 = arith.addi %0, %c0_i32 : i32
    %c0 = arith.constant 0 : index
    %3 = arith.index_cast %2 : i32 to index
    %c0_0 = arith.constant 0 : index
    %c0_1 = arith.constant 0 : index
    %4 = vector.load %arg2[%c0, %3, %c0_0, %c0_1] : memref<1x12x12x128xbf16, #tpu.memory_space<vmem>>, vector<1x8x8x128xbf16>
    %5 = vector.shape_cast %4 : vector<1x8x8x128xbf16> to vector<8x8x128xbf16>
    %6 = vector.shape_cast %5 : vector<8x8x128xbf16> to vector<64x128xbf16>
    %c0_i32_2 = arith.constant 0 : i32
    %7 = arith.addi %0, %c0_i32_2 : i32
    %c0_3 = arith.constant 0 : index
    %8 = arith.index_cast %7 : i32 to index
    %c1 = arith.constant 1 : index
    %c0_4 = arith.constant 0 : index
    %9 = vector.load %arg2[%c0_3, %8, %c1, %c0_4] : memref<1x12x12x128xbf16, #tpu.memory_space<vmem>>, vector<1x8x8x128xbf16>
    %10 = vector.shape_cast %9 : vector<1x8x8x128xbf16> to vector<8x8x128xbf16>
    %11 = vector.shape_cast %10 : vector<8x8x128xbf16> to vector<64x128xbf16>
    %12 = tpu.concatenate %6, %11 in 1 : vector<64x128xbf16>, vector<64x128xbf16> -> vector<64x256xbf16>
    %c0_5 = arith.constant 0 : index
    %c0_6 = arith.constant 0 : index
    %c0_7 = arith.constant 0 : index
    %13 = vector.load %arg3[%c0_5, %c0_6, %c0_7] : memref<13x256x128xbf16, #tpu.memory_space<vmem>>, vector<1x256x128xbf16>
    %14 = vector.shape_cast %13 : vector<1x256x128xbf16> to vector<256x128xbf16>
    %cst_8 = arith.constant dense<0.000000e+00> : vector<64x128xf32>
    %15 = tpu.matmul %12, %14, %cst_8 {dimension_numbers = #tpu.dot_dimension_numbers<[1], [0], [0], [1], [0, 0, 1, 1], [], []>} : vector<64x256xbf16>, vector<256x128xbf16>, vector<64x128xf32> -> vector<64x128xf32>
    %16 = arith.addf %1, %15 : vector<64x128xf32>
    %c0_i32_9 = arith.constant 0 : i32
    %17 = arith.addi %0, %c0_i32_9 : i32
    %c0_10 = arith.constant 0 : index
    %18 = arith.index_cast %17 : i32 to index
    %c2 = arith.constant 2 : index
    %c0_11 = arith.constant 0 : index
    %19 = vector.load %arg2[%c0_10, %18, %c2, %c0_11] : memref<1x12x12x128xbf16, #tpu.memory_space<vmem>>, vector<1x8x8x128xbf16>
    %20 = vector.shape_cast %19 : vector<1x8x8x128xbf16> to vector<8x8x128xbf16>
    %21 = vector.shape_cast %20 : vector<8x8x128xbf16> to vector<64x128xbf16>
    %c0_i32_12 = arith.constant 0 : i32
    %22 = arith.addi %0, %c0_i32_12 : i32
    %c0_13 = arith.constant 0 : index
    %23 = arith.index_cast %22 : i32 to index
    %c3 = arith.constant 3 : index
    %c0_14 = arith.constant 0 : index
    %24 = vector.load %arg2[%c0_13, %23, %c3, %c0_14] : memref<1x12x12x128xbf16, #tpu.memory_space<vmem>>, vector<1x8x8x128xbf16>
    %25 = vector.shape_cast %24 : vector<1x8x8x128xbf16> to vector<8x8x128xbf16>
    %26 = vector.shape_cast %25 : vector<8x8x128xbf16> to vector<64x128xbf16>
    %27 = tpu.concatenate %21, %26 in 1 : vector<64x128xbf16>, vector<64x128xbf16> -> vector<64x256xbf16>
    %c1_15 = arith.constant 1 : index
    %c0_16 = arith.constant 0 : index
    %c0_17 = arith.constant 0 : index
    %28 = vector.load %arg3[%c1_15, %c0_16, %c0_17] : memref<13x256x128xbf16, #tpu.memory_space<vmem>>, vector<1x256x128xbf16>
    %29 = vector.shape_cast %28 : vector<1x256x128xbf16> to vector<256x128xbf16>
    %cst_18 = arith.constant dense<0.000000e+00> : vector<64x128xf32>
    %30 = tpu.matmul %27, %29, %cst_18 {dimension_numbers = #tpu.dot_dimension_numbers<[1], [0], [0], [1], [0, 0, 1, 1], [], []>} : vector<64x256xbf16>, vector<256x128xbf16>, vector<64x128xf32> -> vector<64x128xf32>
    %31 = arith.addf %16, %30 : vector<64x128xf32>
    %c0_i32_19 = arith.constant 0 : i32
    %32 = arith.addi %0, %c0_i32_19 : i32
    %c0_20 = arith.constant 0 : index
    %33 = arith.index_cast %32 : i32 to index
    %c4 = arith.constant 4 : index
    %c0_21 = arith.constant 0 : index
    %34 = vector.load %arg2[%c0_20, %33, %c4, %c0_21] : memref<1x12x12x128xbf16, #tpu.memory_space<vmem>>, vector<1x8x8x128xbf16>
    %35 = vector.shape_cast %34 : vector<1x8x8x128xbf16> to vector<8x8x128xbf16>
    %36 = vector.shape_cast %35 : vector<8x8x128xbf16> to vector<64x128xbf16>
    %c1_i32 = arith.constant 1 : i32
    %37 = arith.addi %0, %c1_i32 : i32
    %c0_22 = arith.constant 0 : index
    %38 = arith.index_cast %37 : i32 to index
    %c0_23 = arith.constant 0 : index
    %c0_24 = arith.constant 0 : index
    %39 = vector.load %arg2[%c0_22, %38, %c0_23, %c0_24] : memref<1x12x12x128xbf16, #tpu.memory_space<vmem>>, vector<1x8x8x128xbf16>
    %40 = vector.shape_cast %39 : vector<1x8x8x128xbf16> to vector<8x8x128xbf16>
    %41 = vector.shape_cast %40 : vector<8x8x128xbf16> to vector<64x128xbf16>
    %42 = tpu.concatenate %36, %41 in 1 : vector<64x128xbf16>, vector<64x128xbf16> -> vector<64x256xbf16>
    %c2_25 = arith.constant 2 : index
    %c0_26 = arith.constant 0 : index
    %c0_27 = arith.constant 0 : index
    %43 = vector.load %arg3[%c2_25, %c0_26, %c0_27] : memref<13x256x128xbf16, #tpu.memory_space<vmem>>, vector<1x256x128xbf16>
    %44 = vector.shape_cast %43 : vector<1x256x128xbf16> to vector<256x128xbf16>
    %cst_28 = arith.constant dense<0.000000e+00> : vector<64x128xf32>
    %45 = tpu.matmul %42, %44, %cst_28 {dimension_numbers = #tpu.dot_dimension_numbers<[1], [0], [0], [1], [0, 0, 1, 1], [], []>} : vector<64x256xbf16>, vector<256x128xbf16>, vector<64x128xf32> -> vector<64x128xf32>
    %46 = arith.addf %31, %45 : vector<64x128xf32>
    %c1_i32_29 = arith.constant 1 : i32
    %47 = arith.addi %0, %c1_i32_29 : i32
    %c0_30 = arith.constant 0 : index
    %48 = arith.index_cast %47 : i32 to index
    %c1_31 = arith.constant 1 : index
    %c0_32 = arith.constant 0 : index
    %49 = vector.load %arg2[%c0_30, %48, %c1_31, %c0_32] : memref<1x12x12x128xbf16, #tpu.memory_space<vmem>>, vector<1x8x8x128xbf16>
    %50 = vector.shape_cast %49 : vector<1x8x8x128xbf16> to vector<8x8x128xbf16>
    %51 = vector.shape_cast %50 : vector<8x8x128xbf16> to vector<64x128xbf16>
    %c1_i32_33 = arith.constant 1 : i32
    %52 = arith.addi %0, %c1_i32_33 : i32
    %c0_34 = arith.constant 0 : index
    %53 = arith.index_cast %52 : i32 to index
    %c2_35 = arith.constant 2 : index
    %c0_36 = arith.constant 0 : index
    %54 = vector.load %arg2[%c0_34, %53, %c2_35, %c0_36] : memref<1x12x12x128xbf16, #tpu.memory_space<vmem>>, vector<1x8x8x128xbf16>
    %55 = vector.shape_cast %54 : vector<1x8x8x128xbf16> to vector<8x8x128xbf16>
    %56 = vector.shape_cast %55 : vector<8x8x128xbf16> to vector<64x128xbf16>
    %57 = tpu.concatenate %51, %56 in 1 : vector<64x128xbf16>, vector<64x128xbf16> -> vector<64x256xbf16>
    %c3_37 = arith.constant 3 : index
    %c0_38 = arith.constant 0 : index
    %c0_39 = arith.constant 0 : index
    %58 = vector.load %arg3[%c3_37, %c0_38, %c0_39] : memref<13x256x128xbf16, #tpu.memory_space<vmem>>, vector<1x256x128xbf16>
    %59 = vector.shape_cast %58 : vector<1x256x128xbf16> to vector<256x128xbf16>
    %cst_40 = arith.constant dense<0.000000e+00> : vector<64x128xf32>
    %60 = tpu.matmul %57, %59, %cst_40 {dimension_numbers = #tpu.dot_dimension_numbers<[1], [0], [0], [1], [0, 0, 1, 1], [], []>} : vector<64x256xbf16>, vector<256x128xbf16>, vector<64x128xf32> -> vector<64x128xf32>
    %61 = arith.addf %46, %60 : vector<64x128xf32>
    %c1_i32_41 = arith.constant 1 : i32
    %62 = arith.addi %0, %c1_i32_41 : i32
    %c0_42 = arith.constant 0 : index
    %63 = arith.index_cast %62 : i32 to index
    %c3_43 = arith.constant 3 : index
    %c0_44 = arith.constant 0 : index
    %64 = vector.load %arg2[%c0_42, %63, %c3_43, %c0_44] : memref<1x12x12x128xbf16, #tpu.memory_space<vmem>>, vector<1x8x8x128xbf16>
    %65 = vector.shape_cast %64 : vector<1x8x8x128xbf16> to vector<8x8x128xbf16>
    %66 = vector.shape_cast %65 : vector<8x8x128xbf16> to vector<64x128xbf16>
    %c1_i32_45 = arith.constant 1 : i32
    %67 = arith.addi %0, %c1_i32_45 : i32
    %c0_46 = arith.constant 0 : index
    %68 = arith.index_cast %67 : i32 to index
    %c4_47 = arith.constant 4 : index
    %c0_48 = arith.constant 0 : index
    %69 = vector.load %arg2[%c0_46, %68, %c4_47, %c0_48] : memref<1x12x12x128xbf16, #tpu.memory_space<vmem>>, vector<1x8x8x128xbf16>
    %70 = vector.shape_cast %69 : vector<1x8x8x128xbf16> to vector<8x8x128xbf16>
    %71 = vector.shape_cast %70 : vector<8x8x128xbf16> to vector<64x128xbf16>
    %72 = tpu.concatenate %66, %71 in 1 : vector<64x128xbf16>, vector<64x128xbf16> -> vector<64x256xbf16>
    %c4_49 = arith.constant 4 : index
    %c0_50 = arith.constant 0 : index
    %c0_51 = arith.constant 0 : index
    %73 = vector.load %arg3[%c4_49, %c0_50, %c0_51] : memref<13x256x128xbf16, #tpu.memory_space<vmem>>, vector<1x256x128xbf16>
    %74 = vector.shape_cast %73 : vector<1x256x128xbf16> to vector<256x128xbf16>
    %cst_52 = arith.constant dense<0.000000e+00> : vector<64x128xf32>
    %75 = tpu.matmul %72, %74, %cst_52 {dimension_numbers = #tpu.dot_dimension_numbers<[1], [0], [0], [1], [0, 0, 1, 1], [], []>} : vector<64x256xbf16>, vector<256x128xbf16>, vector<64x128xf32> -> vector<64x128xf32>
    %76 = arith.addf %61, %75 : vector<64x128xf32>
    %c2_i32 = arith.constant 2 : i32
    %77 = arith.addi %0, %c2_i32 : i32
    %c0_53 = arith.constant 0 : index
    %78 = arith.index_cast %77 : i32 to index
    %c0_54 = arith.constant 0 : index
    %c0_55 = arith.constant 0 : index
    %79 = vector.load %arg2[%c0_53, %78, %c0_54, %c0_55] : memref<1x12x12x128xbf16, #tpu.memory_space<vmem>>, vector<1x8x8x128xbf16>
    %80 = vector.shape_cast %79 : vector<1x8x8x128xbf16> to vector<8x8x128xbf16>
    %81 = vector.shape_cast %80 : vector<8x8x128xbf16> to vector<64x128xbf16>
    %c2_i32_56 = arith.constant 2 : i32
    %82 = arith.addi %0, %c2_i32_56 : i32
    %c0_57 = arith.constant 0 : index
    %83 = arith.index_cast %82 : i32 to index
    %c1_58 = arith.constant 1 : index
    %c0_59 = arith.constant 0 : index
    %84 = vector.load %arg2[%c0_57, %83, %c1_58, %c0_59] : memref<1x12x12x128xbf16, #tpu.memory_space<vmem>>, vector<1x8x8x128xbf16>
    %85 = vector.shape_cast %84 : vector<1x8x8x128xbf16> to vector<8x8x128xbf16>
    %86 = vector.shape_cast %85 : vector<8x8x128xbf16> to vector<64x128xbf16>
    %87 = tpu.concatenate %81, %86 in 1 : vector<64x128xbf16>, vector<64x128xbf16> -> vector<64x256xbf16>
    %c5 = arith.constant 5 : index
    %c0_60 = arith.constant 0 : index
    %c0_61 = arith.constant 0 : index
    %88 = vector.load %arg3[%c5, %c0_60, %c0_61] : memref<13x256x128xbf16, #tpu.memory_space<vmem>>, vector<1x256x128xbf16>
    %89 = vector.shape_cast %88 : vector<1x256x128xbf16> to vector<256x128xbf16>
    %cst_62 = arith.constant dense<0.000000e+00> : vector<64x128xf32>
    %90 = tpu.matmul %87, %89, %cst_62 {dimension_numbers = #tpu.dot_dimension_numbers<[1], [0], [0], [1], [0, 0, 1, 1], [], []>} : vector<64x256xbf16>, vector<256x128xbf16>, vector<64x128xf32> -> vector<64x128xf32>
    %91 = arith.addf %76, %90 : vector<64x128xf32>
    %c2_i32_63 = arith.constant 2 : i32
    %92 = arith.addi %0, %c2_i32_63 : i32
    %c0_64 = arith.constant 0 : index
    %93 = arith.index_cast %92 : i32 to index
    %c2_65 = arith.constant 2 : index
    %c0_66 = arith.constant 0 : index
    %94 = vector.load %arg2[%c0_64, %93, %c2_65, %c0_66] : memref<1x12x12x128xbf16, #tpu.memory_space<vmem>>, vector<1x8x8x128xbf16>
    %95 = vector.shape_cast %94 : vector<1x8x8x128xbf16> to vector<8x8x128xbf16>
    %96 = vector.shape_cast %95 : vector<8x8x128xbf16> to vector<64x128xbf16>
    %c2_i32_67 = arith.constant 2 : i32
    %97 = arith.addi %0, %c2_i32_67 : i32
    %c0_68 = arith.constant 0 : index
    %98 = arith.index_cast %97 : i32 to index
    %c3_69 = arith.constant 3 : index
    %c0_70 = arith.constant 0 : index
    %99 = vector.load %arg2[%c0_68, %98, %c3_69, %c0_70] : memref<1x12x12x128xbf16, #tpu.memory_space<vmem>>, vector<1x8x8x128xbf16>
    %100 = vector.shape_cast %99 : vector<1x8x8x128xbf16> to vector<8x8x128xbf16>
    %101 = vector.shape_cast %100 : vector<8x8x128xbf16> to vector<64x128xbf16>
    %102 = tpu.concatenate %96, %101 in 1 : vector<64x128xbf16>, vector<64x128xbf16> -> vector<64x256xbf16>
    %c6 = arith.constant 6 : index
    %c0_71 = arith.constant 0 : index
    %c0_72 = arith.constant 0 : index
    %103 = vector.load %arg3[%c6, %c0_71, %c0_72] : memref<13x256x128xbf16, #tpu.memory_space<vmem>>, vector<1x256x128xbf16>
    %104 = vector.shape_cast %103 : vector<1x256x128xbf16> to vector<256x128xbf16>
    %cst_73 = arith.constant dense<0.000000e+00> : vector<64x128xf32>
    %105 = tpu.matmul %102, %104, %cst_73 {dimension_numbers = #tpu.dot_dimension_numbers<[1], [0], [0], [1], [0, 0, 1, 1], [], []>} : vector<64x256xbf16>, vector<256x128xbf16>, vector<64x128xf32> -> vector<64x128xf32>
    %106 = arith.addf %91, %105 : vector<64x128xf32>
    %c2_i32_74 = arith.constant 2 : i32
    %107 = arith.addi %0, %c2_i32_74 : i32
    %c0_75 = arith.constant 0 : index
    %108 = arith.index_cast %107 : i32 to index
    %c4_76 = arith.constant 4 : index
    %c0_77 = arith.constant 0 : index
    %109 = vector.load %arg2[%c0_75, %108, %c4_76, %c0_77] : memref<1x12x12x128xbf16, #tpu.memory_space<vmem>>, vector<1x8x8x128xbf16>
    %110 = vector.shape_cast %109 : vector<1x8x8x128xbf16> to vector<8x8x128xbf16>
    %111 = vector.shape_cast %110 : vector<8x8x128xbf16> to vector<64x128xbf16>
    %c3_i32 = arith.constant 3 : i32
    %112 = arith.addi %0, %c3_i32 : i32
    %c0_78 = arith.constant 0 : index
    %113 = arith.index_cast %112 : i32 to index
    %c0_79 = arith.constant 0 : index
    %c0_80 = arith.constant 0 : index
    %114 = vector.load %arg2[%c0_78, %113, %c0_79, %c0_80] : memref<1x12x12x128xbf16, #tpu.memory_space<vmem>>, vector<1x8x8x128xbf16>
    %115 = vector.shape_cast %114 : vector<1x8x8x128xbf16> to vector<8x8x128xbf16>
    %116 = vector.shape_cast %115 : vector<8x8x128xbf16> to vector<64x128xbf16>
    %117 = tpu.concatenate %111, %116 in 1 : vector<64x128xbf16>, vector<64x128xbf16> -> vector<64x256xbf16>
    %c7 = arith.constant 7 : index
    %c0_81 = arith.constant 0 : index
    %c0_82 = arith.constant 0 : index
    %118 = vector.load %arg3[%c7, %c0_81, %c0_82] : memref<13x256x128xbf16, #tpu.memory_space<vmem>>, vector<1x256x128xbf16>
    %119 = vector.shape_cast %118 : vector<1x256x128xbf16> to vector<256x128xbf16>
    %cst_83 = arith.constant dense<0.000000e+00> : vector<64x128xf32>
    %120 = tpu.matmul %117, %119, %cst_83 {dimension_numbers = #tpu.dot_dimension_numbers<[1], [0], [0], [1], [0, 0, 1, 1], [], []>} : vector<64x256xbf16>, vector<256x128xbf16>, vector<64x128xf32> -> vector<64x128xf32>
    %121 = arith.addf %106, %120 : vector<64x128xf32>
    %c3_i32_84 = arith.constant 3 : i32
    %122 = arith.addi %0, %c3_i32_84 : i32
    %c0_85 = arith.constant 0 : index
    %123 = arith.index_cast %122 : i32 to index
    %c1_86 = arith.constant 1 : index
    %c0_87 = arith.constant 0 : index
    %124 = vector.load %arg2[%c0_85, %123, %c1_86, %c0_87] : memref<1x12x12x128xbf16, #tpu.memory_space<vmem>>, vector<1x8x8x128xbf16>
    %125 = vector.shape_cast %124 : vector<1x8x8x128xbf16> to vector<8x8x128xbf16>
    %126 = vector.shape_cast %125 : vector<8x8x128xbf16> to vector<64x128xbf16>
    %c3_i32_88 = arith.constant 3 : i32
    %127 = arith.addi %0, %c3_i32_88 : i32
    %c0_89 = arith.constant 0 : index
    %128 = arith.index_cast %127 : i32 to index
    %c2_90 = arith.constant 2 : index
    %c0_91 = arith.constant 0 : index
    %129 = vector.load %arg2[%c0_89, %128, %c2_90, %c0_91] : memref<1x12x12x128xbf16, #tpu.memory_space<vmem>>, vector<1x8x8x128xbf16>
    %130 = vector.shape_cast %129 : vector<1x8x8x128xbf16> to vector<8x8x128xbf16>
    %131 = vector.shape_cast %130 : vector<8x8x128xbf16> to vector<64x128xbf16>
    %132 = tpu.concatenate %126, %131 in 1 : vector<64x128xbf16>, vector<64x128xbf16> -> vector<64x256xbf16>
    %c8 = arith.constant 8 : index
    %c0_92 = arith.constant 0 : index
    %c0_93 = arith.constant 0 : index
    %133 = vector.load %arg3[%c8, %c0_92, %c0_93] : memref<13x256x128xbf16, #tpu.memory_space<vmem>>, vector<1x256x128xbf16>
    %134 = vector.shape_cast %133 : vector<1x256x128xbf16> to vector<256x128xbf16>
    %cst_94 = arith.constant dense<0.000000e+00> : vector<64x128xf32>
    %135 = tpu.matmul %132, %134, %cst_94 {dimension_numbers = #tpu.dot_dimension_numbers<[1], [0], [0], [1], [0, 0, 1, 1], [], []>} : vector<64x256xbf16>, vector<256x128xbf16>, vector<64x128xf32> -> vector<64x128xf32>
    %136 = arith.addf %121, %135 : vector<64x128xf32>
    %c3_i32_95 = arith.constant 3 : i32
    %137 = arith.addi %0, %c3_i32_95 : i32
    %c0_96 = arith.constant 0 : index
    %138 = arith.index_cast %137 : i32 to index
    %c3_97 = arith.constant 3 : index
    %c0_98 = arith.constant 0 : index
    %139 = vector.load %arg2[%c0_96, %138, %c3_97, %c0_98] : memref<1x12x12x128xbf16, #tpu.memory_space<vmem>>, vector<1x8x8x128xbf16>
    %140 = vector.shape_cast %139 : vector<1x8x8x128xbf16> to vector<8x8x128xbf16>
    %141 = vector.shape_cast %140 : vector<8x8x128xbf16> to vector<64x128xbf16>
    %c3_i32_99 = arith.constant 3 : i32
    %142 = arith.addi %0, %c3_i32_99 : i32
    %c0_100 = arith.constant 0 : index
    %143 = arith.index_cast %142 : i32 to index
    %c4_101 = arith.constant 4 : index
    %c0_102 = arith.constant 0 : index
    %144 = vector.load %arg2[%c0_100, %143, %c4_101, %c0_102] : memref<1x12x12x128xbf16, #tpu.memory_space<vmem>>, vector<1x8x8x128xbf16>
    %145 = vector.shape_cast %144 : vector<1x8x8x128xbf16> to vector<8x8x128xbf16>
    %146 = vector.shape_cast %145 : vector<8x8x128xbf16> to vector<64x128xbf16>
    %147 = tpu.concatenate %141, %146 in 1 : vector<64x128xbf16>, vector<64x128xbf16> -> vector<64x256xbf16>
    %c9 = arith.constant 9 : index
    %c0_103 = arith.constant 0 : index
    %c0_104 = arith.constant 0 : index
    %148 = vector.load %arg3[%c9, %c0_103, %c0_104] : memref<13x256x128xbf16, #tpu.memory_space<vmem>>, vector<1x256x128xbf16>
    %149 = vector.shape_cast %148 : vector<1x256x128xbf16> to vector<256x128xbf16>
    %cst_105 = arith.constant dense<0.000000e+00> : vector<64x128xf32>
    %150 = tpu.matmul %147, %149, %cst_105 {dimension_numbers = #tpu.dot_dimension_numbers<[1], [0], [0], [1], [0, 0, 1, 1], [], []>} : vector<64x256xbf16>, vector<256x128xbf16>, vector<64x128xf32> -> vector<64x128xf32>
    %151 = arith.addf %136, %150 : vector<64x128xf32>
    %c4_i32 = arith.constant 4 : i32
    %152 = arith.addi %0, %c4_i32 : i32
    %c0_106 = arith.constant 0 : index
    %153 = arith.index_cast %152 : i32 to index
    %c0_107 = arith.constant 0 : index
    %c0_108 = arith.constant 0 : index
    %154 = vector.load %arg2[%c0_106, %153, %c0_107, %c0_108] : memref<1x12x12x128xbf16, #tpu.memory_space<vmem>>, vector<1x8x8x128xbf16>
    %155 = vector.shape_cast %154 : vector<1x8x8x128xbf16> to vector<8x8x128xbf16>
    %156 = vector.shape_cast %155 : vector<8x8x128xbf16> to vector<64x128xbf16>
    %c4_i32_109 = arith.constant 4 : i32
    %157 = arith.addi %0, %c4_i32_109 : i32
    %c0_110 = arith.constant 0 : index
    %158 = arith.index_cast %157 : i32 to index
    %c1_111 = arith.constant 1 : index
    %c0_112 = arith.constant 0 : index
    %159 = vector.load %arg2[%c0_110, %158, %c1_111, %c0_112] : memref<1x12x12x128xbf16, #tpu.memory_space<vmem>>, vector<1x8x8x128xbf16>
    %160 = vector.shape_cast %159 : vector<1x8x8x128xbf16> to vector<8x8x128xbf16>
    %161 = vector.shape_cast %160 : vector<8x8x128xbf16> to vector<64x128xbf16>
    %162 = tpu.concatenate %156, %161 in 1 : vector<64x128xbf16>, vector<64x128xbf16> -> vector<64x256xbf16>
    %c10 = arith.constant 10 : index
    %c0_113 = arith.constant 0 : index
    %c0_114 = arith.constant 0 : index
    %163 = vector.load %arg3[%c10, %c0_113, %c0_114] : memref<13x256x128xbf16, #tpu.memory_space<vmem>>, vector<1x256x128xbf16>
    %164 = vector.shape_cast %163 : vector<1x256x128xbf16> to vector<256x128xbf16>
    %cst_115 = arith.constant dense<0.000000e+00> : vector<64x128xf32>
    %165 = tpu.matmul %162, %164, %cst_115 {dimension_numbers = #tpu.dot_dimension_numbers<[1], [0], [0], [1], [0, 0, 1, 1], [], []>} : vector<64x256xbf16>, vector<256x128xbf16>, vector<64x128xf32> -> vector<64x128xf32>
    %166 = arith.addf %151, %165 : vector<64x128xf32>
    %c4_i32_116 = arith.constant 4 : i32
    %167 = arith.addi %0, %c4_i32_116 : i32
    %c0_117 = arith.constant 0 : index
    %168 = arith.index_cast %167 : i32 to index
    %c2_118 = arith.constant 2 : index
    %c0_119 = arith.constant 0 : index
    %169 = vector.load %arg2[%c0_117, %168, %c2_118, %c0_119] : memref<1x12x12x128xbf16, #tpu.memory_space<vmem>>, vector<1x8x8x128xbf16>
    %170 = vector.shape_cast %169 : vector<1x8x8x128xbf16> to vector<8x8x128xbf16>
    %171 = vector.shape_cast %170 : vector<8x8x128xbf16> to vector<64x128xbf16>
    %c4_i32_120 = arith.constant 4 : i32
    %172 = arith.addi %0, %c4_i32_120 : i32
    %c0_121 = arith.constant 0 : index
    %173 = arith.index_cast %172 : i32 to index
    %c3_122 = arith.constant 3 : index
    %c0_123 = arith.constant 0 : index
    %174 = vector.load %arg2[%c0_121, %173, %c3_122, %c0_123] : memref<1x12x12x128xbf16, #tpu.memory_space<vmem>>, vector<1x8x8x128xbf16>
    %175 = vector.shape_cast %174 : vector<1x8x8x128xbf16> to vector<8x8x128xbf16>
    %176 = vector.shape_cast %175 : vector<8x8x128xbf16> to vector<64x128xbf16>
    %177 = tpu.concatenate %171, %176 in 1 : vector<64x128xbf16>, vector<64x128xbf16> -> vector<64x256xbf16>
    %c11 = arith.constant 11 : index
    %c0_124 = arith.constant 0 : index
    %c0_125 = arith.constant 0 : index
    %178 = vector.load %arg3[%c11, %c0_124, %c0_125] : memref<13x256x128xbf16, #tpu.memory_space<vmem>>, vector<1x256x128xbf16>
    %179 = vector.shape_cast %178 : vector<1x256x128xbf16> to vector<256x128xbf16>
    %cst_126 = arith.constant dense<0.000000e+00> : vector<64x128xf32>
    %180 = tpu.matmul %177, %179, %cst_126 {dimension_numbers = #tpu.dot_dimension_numbers<[1], [0], [0], [1], [0, 0, 1, 1], [], []>} : vector<64x256xbf16>, vector<256x128xbf16>, vector<64x128xf32> -> vector<64x128xf32>
    %181 = arith.addf %166, %180 : vector<64x128xf32>
    %c4_i32_127 = arith.constant 4 : i32
    %182 = arith.addi %0, %c4_i32_127 : i32
    %c0_128 = arith.constant 0 : index
    %183 = arith.index_cast %182 : i32 to index
    %c4_129 = arith.constant 4 : index
    %c0_130 = arith.constant 0 : index
    %184 = vector.load %arg2[%c0_128, %183, %c4_129, %c0_130] : memref<1x12x12x128xbf16, #tpu.memory_space<vmem>>, vector<1x8x8x128xbf16>
    %185 = vector.shape_cast %184 : vector<1x8x8x128xbf16> to vector<8x8x128xbf16>
    %186 = vector.shape_cast %185 : vector<8x8x128xbf16> to vector<64x128xbf16>
    %c0_i32_131 = arith.constant 0 : i32
    %187 = arith.addi %0, %c0_i32_131 : i32
    %c0_132 = arith.constant 0 : index
    %188 = arith.index_cast %187 : i32 to index
    %c0_133 = arith.constant 0 : index
    %c0_134 = arith.constant 0 : index
    %189 = vector.load %arg2[%c0_132, %188, %c0_133, %c0_134] : memref<1x12x12x128xbf16, #tpu.memory_space<vmem>>, vector<1x8x8x128xbf16>
    %190 = vector.shape_cast %189 : vector<1x8x8x128xbf16> to vector<8x8x128xbf16>
    %191 = vector.shape_cast %190 : vector<8x8x128xbf16> to vector<64x128xbf16>
    %192 = tpu.concatenate %186, %191 in 1 : vector<64x128xbf16>, vector<64x128xbf16> -> vector<64x256xbf16>
    %c12 = arith.constant 12 : index
    %c0_135 = arith.constant 0 : index
    %c0_136 = arith.constant 0 : index
    %193 = vector.load %arg3[%c12, %c0_135, %c0_136] : memref<13x256x128xbf16, #tpu.memory_space<vmem>>, vector<1x256x128xbf16>
    %194 = vector.shape_cast %193 : vector<1x256x128xbf16> to vector<256x128xbf16>
    %cst_137 = arith.constant dense<0.000000e+00> : vector<64x128xf32>
    %195 = tpu.matmul %192, %194, %cst_137 {dimension_numbers = #tpu.dot_dimension_numbers<[1], [0], [0], [1], [0, 0, 1, 1], [], []>} : vector<64x256xbf16>, vector<256x128xbf16>, vector<64x128xf32> -> vector<64x128xf32>
    %196 = arith.addf %181, %195 : vector<64x128xf32>
    %c0_138 = arith.constant 0 : index
    %c0_139 = arith.constant 0 : index
    %197 = vector.load %arg4[%c0_138, %c0_139] : memref<1x128xf32, #tpu.memory_space<vmem>>, vector<1x128xf32>
    %198 = vector.broadcast %197 : vector<1x128xf32> to vector<64x128xf32>
    %199 = arith.addf %196, %198 : vector<64x128xf32>
    %cst_140 = arith.constant 0.000000e+00 : f32
    %200 = vector.broadcast %cst_140 : f32 to vector<64x128xf32>
    %201 = arith.maximumf %199, %200 : vector<64x128xf32>
    %202 = vector.shape_cast %201 : vector<64x128xf32> to vector<8x8x128xf32>
    %203 = vector.shape_cast %202 : vector<8x8x128xf32> to vector<4x2x8x128xf32>
    %cst_141 = arith.constant dense<0xFF800000> : vector<4x8x128xf32>
    %204 = vector.multi_reduction <maximumf>, %203, %cst_141 [1] : vector<4x2x8x128xf32> to vector<4x8x128xf32>
    %205 = vector.shape_cast %204 : vector<4x8x128xf32> to vector<4x4x2x128xf32>
    %cst_142 = arith.constant dense<0xFF800000> : vector<4x4x128xf32>
    %206 = vector.multi_reduction <maximumf>, %205, %cst_142 [2] : vector<4x4x2x128xf32> to vector<4x4x128xf32>
    %207 = arith.truncf %206 : vector<4x4x128xf32> to vector<4x4x128xbf16>
    %c0_143 = arith.constant 0 : index
    %c0_144 = arith.constant 0 : index
    %c0_145 = arith.constant 0 : index
    %c0_146 = arith.constant 0 : index
    %208 = vector.load %arg5[%c0_143, %c0_144, %c0_145, %c0_146] : memref<1x4x4x128xbf16, #tpu.memory_space<vmem>>, vector<1x4x4x128xbf16>
    %209 = vector.shape_cast %208 : vector<1x4x4x128xbf16> to vector<4x4x128xbf16>
    %210 = vector.shape_cast %207 : vector<4x4x128xbf16> to vector<1x4x4x128xbf16>
    tpu.vector_store %arg5[%c0_143, %c0_144, %c0_145, %c0_146], %210 {strides = array<i32>} : memref<1x4x4x128xbf16, #tpu.memory_space<vmem>>, vector<1x4x4x128xbf16>,
    return
  }
  func.func @transform_0(%arg0: i32, %arg1: i32) -> (i32, i32, i32, i32) {
    %c0_i32 = arith.constant 0 : i32
    %c0_i32_0 = arith.constant 0 : i32
    %c0_i32_1 = arith.constant 0 : i32
    %c0_i32_2 = arith.constant 0 : i32
    return %arg0, %c0_i32, %c0_i32_0, %c0_i32_1 : i32, i32, i32, i32
  }
  func.func @transform_1(%arg0: i32, %arg1: i32) -> (i32, i32, i32) {
    %c0_i32 = arith.constant 0 : i32
    %c0_i32_0 = arith.constant 0 : i32
    %c0_i32_1 = arith.constant 0 : i32
    %c0_i32_2 = arith.constant 0 : i32
    return %c0_i32, %c0_i32_0, %c0_i32_1 : i32, i32, i32
  }
  func.func @transform_2(%arg0: i32, %arg1: i32) -> (i32, i32) {
    %c0_i32 = arith.constant 0 : i32
    %c0_i32_0 = arith.constant 0 : i32
    %c0_i32_1 = arith.constant 0 : i32
    return %c0_i32, %c0_i32_0 : i32, i32
  }
  func.func @transform_3(%arg0: i32, %arg1: i32) -> (i32, i32, i32, i32) {
    %c0_i32 = arith.constant 0 : i32
    %c0_i32_0 = arith.constant 0 : i32
    %c0_i32_1 = arith.constant 0 : i32
    return %arg0, %arg1, %c0_i32, %c0_i32_0 : i32, i32, i32, i32
  }
}

module attributes {stable_mosaic.version = 11 : i64} {
  func.func @_fc_kernel(%arg0: i32, %arg1: memref<2x2048xbf16, #tpu.memory_space<vmem>>, %arg2: memref<2048x128xbf16, #tpu.memory_space<vmem>>, %arg3: memref<1x128xf32, #tpu.memory_space<vmem>>, %arg4: memref<2x128xf32, #tpu.memory_space<vmem>>) attributes {dimension_semantics = [#tpu.dimension_semantics<arbitrary>], iteration_bounds = array<i64: 1>, scalar_prefetch = 0 : i64, scratch_operands = 0 : i64, tpu.core_type = #tpu.core_type<tc>, window_params = [{transform_indices = @transform_0, window_bounds = array<i64: 2, 2048>}, {transform_indices = @transform_1, window_bounds = array<i64: 2048, 128>}, {pipeline_mode = #tpu.pipeline_mode<synchronous>, transform_indices = @transform_2, window_bounds = array<i64: 1, 128>}, {pipeline_mode = #tpu.pipeline_mode<synchronous>, transform_indices = @transform_3, window_bounds = array<i64: 2, 128>}]} {
    %c0_i32 = arith.constant 0 : i32
    %0 = arith.cmpi eq, %arg0, %c0_i32 : i32
    %1 = arith.extui %0 : i1 to i32
    %c0_i32_0 = arith.constant 0 : i32
    %2 = arith.cmpi ne, %1, %c0_i32_0 : i32
    scf.if %2 {
      %cst_10 = arith.constant 0.000000e+00 : f32
      %12 = vector.broadcast %cst_10 : f32 to vector<2x128xf32>
      %c0_11 = arith.constant 0 : index
      %c0_12 = arith.constant 0 : index
      %13 = vector.load %arg4[%c0_11, %c0_12] : memref<2x128xf32, #tpu.memory_space<vmem>>, vector<2x128xf32>
      tpu.vector_store %arg4[%c0_11, %c0_12], %12 {strides = array<i32>} : memref<2x128xf32, #tpu.memory_space<vmem>>, vector<2x128xf32>,
    } else {
    }
    %c0 = arith.constant 0 : index
    %c0_1 = arith.constant 0 : index
    %3 = vector.load %arg4[%c0, %c0_1] : memref<2x128xf32, #tpu.memory_space<vmem>>, vector<2x128xf32>
    %c0_2 = arith.constant 0 : index
    %c0_3 = arith.constant 0 : index
    %4 = vector.load %arg1[%c0_2, %c0_3] : memref<2x2048xbf16, #tpu.memory_space<vmem>>, vector<2x2048xbf16>
    %c0_4 = arith.constant 0 : index
    %c0_5 = arith.constant 0 : index
    %5 = vector.load %arg2[%c0_4, %c0_5] : memref<2048x128xbf16, #tpu.memory_space<vmem>>, vector<2048x128xbf16>
    %cst = arith.constant dense<0.000000e+00> : vector<2x128xf32>
    %6 = tpu.matmul %4, %5, %cst {dimension_numbers = #tpu.dot_dimension_numbers<[1], [0], [0], [1], [0, 0, 1, 1], [], []>} : vector<2x2048xbf16>, vector<2048x128xbf16>, vector<2x128xf32> -> vector<2x128xf32>
    %7 = arith.addf %3, %6 : vector<2x128xf32>
    %c0_6 = arith.constant 0 : index
    %c0_7 = arith.constant 0 : index
    %8 = vector.load %arg4[%c0_6, %c0_7] : memref<2x128xf32, #tpu.memory_space<vmem>>, vector<2x128xf32>
    tpu.vector_store %arg4[%c0_6, %c0_7], %7 {strides = array<i32>} : memref<2x128xf32, #tpu.memory_space<vmem>>, vector<2x128xf32>,
    %c0_i32_8 = arith.constant 0 : i32
    %9 = arith.cmpi eq, %arg0, %c0_i32_8 : i32
    %10 = arith.extui %9 : i1 to i32
    %c0_i32_9 = arith.constant 0 : i32
    %11 = arith.cmpi ne, %10, %c0_i32_9 : i32
    scf.if %11 {
      %c0_10 = arith.constant 0 : index
      %c0_11 = arith.constant 0 : index
      %12 = vector.load %arg4[%c0_10, %c0_11] : memref<2x128xf32, #tpu.memory_space<vmem>>, vector<2x128xf32>
      %c0_12 = arith.constant 0 : index
      %c0_13 = arith.constant 0 : index
      %13 = vector.load %arg3[%c0_12, %c0_13] : memref<1x128xf32, #tpu.memory_space<vmem>>, vector<1x128xf32>
      %14 = vector.broadcast %13 : vector<1x128xf32> to vector<2x128xf32>
      %15 = arith.addf %12, %14 : vector<2x128xf32>
      %c0_14 = arith.constant 0 : index
      %c0_15 = arith.constant 0 : index
      %16 = vector.load %arg4[%c0_14, %c0_15] : memref<2x128xf32, #tpu.memory_space<vmem>>, vector<2x128xf32>
      tpu.vector_store %arg4[%c0_14, %c0_15], %15 {strides = array<i32>} : memref<2x128xf32, #tpu.memory_space<vmem>>, vector<2x128xf32>,
    } else {
    }
    return
  }
  func.func @transform_0(%arg0: i32) -> (i32, i32) {
    %c0_i32 = arith.constant 0 : i32
    %c0_i32_0 = arith.constant 0 : i32
    return %c0_i32, %arg0 : i32, i32
  }
  func.func @transform_1(%arg0: i32) -> (i32, i32) {
    %c0_i32 = arith.constant 0 : i32
    %c0_i32_0 = arith.constant 0 : i32
    return %arg0, %c0_i32 : i32, i32
  }
  func.func @transform_2(%arg0: i32) -> (i32, i32) {
    %c0_i32 = arith.constant 0 : i32
    %c0_i32_0 = arith.constant 0 : i32
    %c0_i32_1 = arith.constant 0 : i32
    return %c0_i32, %c0_i32_0 : i32, i32
  }
  func.func @transform_3(%arg0: i32) -> (i32, i32) {
    %c0_i32 = arith.constant 0 : i32
    %c0_i32_0 = arith.constant 0 : i32
    %c0_i32_1 = arith.constant 0 : i32
    return %c0_i32, %c0_i32_0 : i32, i32
  }
}

</mosaic_0001>

<bundles_post_ra>
// kernel: cnn_forward.5
= control target key start
LH: loop header
LB: loop body
LE: loop exit
PB: predicated region body
PF: predicated region fallthrough
CT: control target
= control target key end

     0   :  { %v286_v28 = vlaneseq  ;;  %v1975_v36 = vmov 1966171168   ;;  %s2427_s0 = inlined_call_operand.vmem [shape: bf16[2,2048], index: 0, kind: input, shape index: {}]   ;;  %s2428_s1 = inlined_call_operand.vmem [shape: bf16[2048,128], index: 1, kind: input, shape index: {}]   ;;  %s2429_s2 = inlined_call_operand.vmem [shape: f32[1,128], index: 2, kind: input, shape index: {}]   ;;  %s2430_s3 = inlined_call_operand.hbm [shape: f32[2,128], index: 3, kind: output, shape index: {}]  }
   0x1   :  { %v1821_v0 = vld [vmem:[%s2428_s1 + $0x40] sm:$0xff]   ;;  %v1825_v4 = vld [vmem:[%s2428_s1 + $0x48] sm:$0xff]   ;;  %v1829_v8 = vld [vmem:[%s2428_s1 + $0x50] sm:$0xff]   ;;  %v284_v37 = vunpack.c.l.s4 %v1975_v36 }
   0x2   :  { %v1822_v1 = vld [vmem:[%s2428_s1 + $0xc0] sm:$0xff]   ;;  %1642 = vmatprep.subr.bf16.mxu0 %v1821_v0  ;;  %v1826_v5 = vld [vmem:[%s2428_s1 + $0xc8] sm:$0xff]   ;;  %v1830_v9 = vld [vmem:[%s2428_s1 + $0xd0] sm:$0xff]   ;;  %v287_v33 = vshrl.u32 %v286_v28, 7 }
   0x3   :  { %v1823_v2 = vld [vmem:[%s2428_s1] sm:$0xff]   ;;  %1664 = vmatprep.subr.bf16.mxu1 %v1822_v1  ;;  %v1827_v6 = vld [vmem:[%s2428_s1 + $0x8] sm:$0xff]   ;;  %v1831_v10 = vld [vmem:[%s2428_s1 + $0x10] sm:$0xff]   ;;  %v285_v40 = vunpack.c.0.s8 %v284_v37 }
   0x4   :  { %v1824_v3 = vld [vmem:[%s2428_s1 + $0x80] sm:$0xff]   ;;  %1643 = vmatpush3.bf16.msra.mxu0 %v1823_v2  ;;  %v1828_v7 = vld [vmem:[%s2428_s1 + $0x88] sm:$0xff]   ;;  %v1832_v11 = vld [vmem:[%s2428_s1 + $0x90] sm:$0xff]  }
   0x5   :  { %1665 = vmatpush3.bf16.msra.mxu1 %v1824_v3  ;;  %1644 = vmatprep.subr.bf16.mxu0 %v1825_v4  ;;  %v1833_v12 = vld [vmem:[%s2428_s1 + $0x58] sm:$0xff]   ;;  %v1837_v16 = vld [vmem:[%s2428_s1 + $0x60] sm:$0xff]   ;;  %v1841_v20 = vld [vmem:[%s2428_s1 + $0x68] sm:$0xff]   ;;  %v2103_v41 = vsub.s32 %v285_v40, %v287_v33 }
   0x6   :  { %1666 = vmatprep.subr.bf16.mxu1 %v1826_v5  ;;  %v1834_v13 = vld [vmem:[%s2428_s1 + $0xd8] sm:$0xff]   ;;  %v1838_v17 = vld [vmem:[%s2428_s1 + $0xe0] sm:$0xff]   ;;  %v1842_v21 = vld [vmem:[%s2428_s1 + $0xe8] sm:$0xff]  }
   0x7   :  { %v1835_v14 = vld [vmem:[%s2428_s1 + $0x18] sm:$0xff]   ;;  %v1839_v18 = vld [vmem:[%s2428_s1 + $0x20] sm:$0xff]   ;;  %v1843_v22 = vld [vmem:[%s2428_s1 + $0x28] sm:$0xff]  }
   0x8   :  { %1645 = vmatpush3.bf16.msra.mxu0 %v1827_v6  ;;  %v1836_v15 = vld [vmem:[%s2428_s1 + $0x98] sm:$0xff]   ;;  %v1840_v19 = vld [vmem:[%s2428_s1 + $0xa0] sm:$0xff]   ;;  %v1844_v23 = vld [vmem:[%s2428_s1 + $0xa8] sm:$0xff]  }
   0x9   :  { %1667 = vmatpush3.bf16.msra.mxu1 %v1828_v7  ;;  %1646 = vmatprep.subr.bf16.mxu0 %v1829_v8  ;;  %v1845_v24 = vld [vmem:[%s2428_s1 + $0x70] sm:$0xff]   ;;  %v1849_v29 = vld [vmem:[%s2428_s1 + $0x78] sm:$0xff]   ;;  %v22_v34 = vld [vmem:[%s2427_s0] sm:$0xff] }
   0xa   :  { %1668 = vmatprep.subr.bf16.mxu1 %v1830_v9  ;;  %v1846_v25 = vld [vmem:[%s2428_s1 + $0xf0] sm:$0xff]   ;;  %v1850_v30 = vld [vmem:[%s2428_s1 + $0xf8] sm:$0xff]   ;;  %v1854_v35 = vld [vmem:[%s2428_s1 + $0x140] sm:$0xff]   ;;  %v282_v39 = vcombine.high %v22_v34, %v22_v34  ;;  %v289_v42 = vrot.slane %v22_v34, %v2103_v41 }
   0xb   :  { %v1847_v26 = vld [vmem:[%s2428_s1 + $0x30] sm:$0xff]   ;;  %v1851_v31 = vld [vmem:[%s2428_s1 + $0x38] sm:$0xff]   ;;  %v1855_v38 = vld [vmem:[%s2428_s1 + $0x1c0] sm:$0xff]  }
   0xc   :  { %1647 = vmatpush3.bf16.msra.mxu0 %v1831_v10  ;;  %v1848_v27 = vld [vmem:[%s2428_s1 + $0xb0] sm:$0xff]   ;;  %v1852_v32 = vld [vmem:[%s2428_s1 + $0xb8] sm:$0xff]   ;;  %v2107_v43 = vrot.slane %v282_v39, %v2103_v41  ;;  %v297_v44 = vcombine.high %v289_v42, %v289_v42  ;;  %v305_v45 = vrot.slane %v289_v42, %v2103_v41  ;;  %v1856_v48 = vld [vmem:[%s2428_s1 + $0x100] sm:$0xff]  }
   0xd   :  { %1669 = vmatpush3.bf16.msra.mxu1 %v1832_v11  ;;  %1648 = vmatprep.subr.bf16.mxu0 %v1833_v12  ;;  %v1858_v51 = vld [vmem:[%s2428_s1 + $0x148] sm:$0xff]   ;;  %v1857_v53 = vld [vmem:[%s2428_s1 + $0x180] sm:$0xff]   ;;  %v1862_v57 = vld [vmem:[%s2428_s1 + $0x150] sm:$0xff]  }
   0xe   :  { %1670 = vmatprep.subr.bf16.mxu1 %v1834_v13  ;;  %v298_v46 = vcombine.high %v2107_v43, %v2107_v43  ;;  %v319_v47 = vrot.slane %v297_v44, %v2103_v41  ;;  %v327_v50 = vcombine.high %v305_v45, %v305_v45  ;;  %v1859_v54 = vld [vmem:[%s2428_s1 + $0x1c8] sm:$0xff]   ;;  %v1863_v59 = vld [vmem:[%s2428_s1 + $0x1d0] sm:$0xff]   ;;  %v1866_v61 = vld [vmem:[%s2428_s1 + $0x158] sm:$0xff]  }
   0xf   :  { %v1860_v56 = vld [vmem:[%s2428_s1 + $0x108] sm:$0xff]   ;;  %v1864_v60 = vld [vmem:[%s2428_s1 + $0x110] sm:$0xff]   ;;  %v1867_v63 = vld [vmem:[%s2428_s1 + $0x1d8] sm:$0xff]  }
  0x10   :  { %1649 = vmatpush3.bf16.msra.mxu0 %v1835_v14  ;;  %v326_v49 = vrot.slane %v298_v46, %v2103_v41  ;;  %1196 = vmatprep.mubr.bf16.mxu0 %v319_v47  ;;  %v329_v52 = vcombine.high %v319_v47, %v319_v47  ;;  %v1861_v58 = vld [vmem:[%s2428_s1 + $0x188] sm:$0xff]   ;;  %v1865_v62 = vld [vmem:[%s2428_s1 + $0x190] sm:$0xff]   ;;  %v1868_v0 = vld [vmem:[%s2428_s1 + $0x118] sm:$0xff]  }
  0x11   :  { %1671 = vmatpush3.bf16.msra.mxu1 %v1836_v15  ;;  %1650 = vmatprep.subr.bf16.mxu0 %v1837_v16  ;;  %v1870_v1 = vld [vmem:[%s2428_s1 + $0x160] sm:$0xff]   ;;  %v1869_v2 = vld [vmem:[%s2428_s1 + $0x198] sm:$0xff]   ;;  %v1874_v5 = vld [vmem:[%s2428_s1 + $0x168] sm:$0xff]  }
  0x12   :  { %1672 = vmatprep.subr.bf16.mxu1 %v1838_v17  ;;  %v330_v55 = vcombine.high %v326_v49, %v326_v49  ;;  %1236 = vmatprep.mubr.bf16.mxu1 %v329_v52  ;;  %v1871_v3 = vld [vmem:[%s2428_s1 + $0x1e0] sm:$0xff]   ;;  %v1875_v7 = vld [vmem:[%s2428_s1 + $0x1e8] sm:$0xff]   ;;  %v1878_v9 = vld [vmem:[%s2428_s1 + $0x170] sm:$0xff]   ;;  %v312_v17 = vrot.slane %v2107_v43, %v2103_v41 }
  0x13   :  { %v1872_v4 = vld [vmem:[%s2428_s1 + $0x120] sm:$0xff]   ;;  %v1876_v8 = vld [vmem:[%s2428_s1 + $0x128] sm:$0xff]   ;;  %v1879_v11 = vld [vmem:[%s2428_s1 + $0x1f0] sm:$0xff]  }
  0x14   :  { %1651 = vmatpush3.bf16.msra.mxu0 %v1839_v18  ;;  %v1873_v6 = vld [vmem:[%s2428_s1 + $0x1a0] sm:$0xff]   ;;  %v1877_v10 = vld [vmem:[%s2428_s1 + $0x1a8] sm:$0xff]   ;;  %v1880_v12 = vld [vmem:[%s2428_s1 + $0x130] sm:$0xff]  }
  0x15   :  { %1673 = vmatpush3.bf16.msra.mxu1 %v1840_v19  ;;  %1652 = vmatprep.subr.bf16.mxu0 %v1841_v20  ;;  %v1882_v13 = vld [vmem:[%s2428_s1 + $0x178] sm:$0xff]   ;;  %v1881_v14 = vld [vmem:[%s2428_s1 + $0x1b0] sm:$0xff]   ;;  %v1886_v18 = vld [vmem:[%s2428_s1 + $0x240] sm:$0xff]  }
  0x16   :  { %1674 = vmatprep.subr.bf16.mxu1 %v1842_v21  ;;  %v1883_v15 = vld [vmem:[%s2428_s1 + $0x1f8] sm:$0xff]   ;;  %v1887_v20 = vld [vmem:[%s2428_s1 + $0x2c0] sm:$0xff]   ;;  %v1893_v28 = vld [vmem:[%s2428_s1 + $0x288] sm:$0xff]  }
  0x17   :  { %v1884_v16 = vld [vmem:[%s2428_s1 + $0x138] sm:$0xff]   ;;  %v1888_v21 = vld [vmem:[%s2428_s1 + $0x200] sm:$0xff]   ;;  %v1906_v39 = vld [vmem:[%s2428_s1 + $0x268] sm:$0xff]  }
  0x18   :  { %1653 = vmatpush3.bf16.msra.mxu0 %v1843_v22  ;;  %v1885_v19 = vld [vmem:[%s2428_s1 + $0x1b8] sm:$0xff]   ;;  %v328_v22 = vcombine.high %v312_v17, %v312_v17  ;;  %v1903_v37 = vld [vmem:[%s2428_s1 + $0x2e0] sm:$0xff]   ;;  %v1907_v42 = vld [vmem:[%s2428_s1 + $0x2e8] sm:$0xff]  }
  0x19   :  { %1675 = vmatpush3.bf16.msra.mxu1 %v1844_v23  ;;  %1654 = vmatprep.subr.bf16.mxu0 %v1845_v24  ;;  %v1890_v23 = vld [vmem:[%s2428_s1 + $0x248] sm:$0xff]   ;;  %v1889_v24 = vld [vmem:[%s2428_s1 + $0x280] sm:$0xff]   ;;  %v1899_v33 = vld [vmem:[%s2428_s1 + $0x2d8] sm:$0xff]  }
  0x1a   :  { %1676 = vmatprep.subr.bf16.mxu1 %v1846_v25  ;;  %v1891_v25 = vld [vmem:[%s2428_s1 + $0x2c8] sm:$0xff]   ;;  %v1900_v34 = vld [vmem:[%s2428_s1 + $0x218] sm:$0xff]   ;;  %v1905_v40 = vld [vmem:[%s2428_s1 + $0x2a0] sm:$0xff]  }
  0x1b   :  { %v1901_v36 = vld [vmem:[%s2428_s1 + $0x298] sm:$0xff]   ;;  %v1908_v43 = vld [vmem:[%s2428_s1 + $0x228] sm:$0xff]   ;;  %v1910_v44 = vld [vmem:[%s2428_s1 + $0x270] sm:$0xff]  }
  0x1c   :  { %1655 = vmatpush3.bf16.msra.mxu0 %v1847_v26  ;;  %v1892_v26 = vld [vmem:[%s2428_s1 + $0x208] sm:$0xff]  }
  0x1d   :  { %1677 = vmatpush3.bf16.msra.mxu1 %v1848_v27  ;;  %1656 = vmatprep.subr.bf16.mxu0 %v1849_v29  ;;  %v1894_v27 = vld [vmem:[%s2428_s1 + $0x250] sm:$0xff]   ;;  %v1909_v46 = vld [vmem:[%s2428_s1 + $0x2a8] sm:$0xff]  }
  0x1e   :  { %1678 = vmatprep.subr.bf16.mxu1 %v1850_v30  ;;  %v1895_v29 = vld [vmem:[%s2428_s1 + $0x2d0] sm:$0xff]  }
  0x1f   :  { %v1896_v30 = vld [vmem:[%s2428_s1 + $0x210] sm:$0xff]  }
  0x20   :  { %1657 = vmatpush3.bf16.msra.mxu0 %v1851_v31  ;;  %v1898_v31 = vld [vmem:[%s2428_s1 + $0x258] sm:$0xff]  }
  0x21   :  { %1679 = vmatpush3.bf16.msra.mxu1 %v1852_v32  ;;  %1686 = vmatprep.subr.bf16.mxu0 %v1854_v35  ;;  %v1897_v32 = vld [vmem:[%s2428_s1 + $0x290] sm:$0xff]   ;;  %v1902_v35 = vld [vmem:[%s2428_s1 + $0x260] sm:$0xff]  }
  0x22   :  { %1708 = vmatprep.subr.bf16.mxu1 %v1855_v38  ;;  %v1904_v38 = vld [vmem:[%s2428_s1 + $0x220] sm:$0xff]  }
  0x23   :  { %1197 = vmatmul.mubr.bf16.vlgmr.msra.gmra.mrb[0].mxu0 %v305_v45  ;;  %v23_v45 = vld [vmem:[%s2427_s0 + $0x8] sm:$0xff] }
  0x24   :  { %1687 = vmatpush3.bf16.msra.mxu0 %v1856_v48  ;;  %1237 = vmatmul.mubr.bf16.vlgmr.msra.gmra.mrb[0].mxu1 %v327_v50  ;;  %v338_v47 = vrot.slane %v23_v45, %v2103_v41  ;;  %v331_v48 = vcombine.high %v23_v45, %v23_v45  ;;  %v1912_v50 = vld [vmem:[%s2428_s1 + $0x230] sm:$0xff]  }
  0x25   :  { %1688 = vmatprep.subr.bf16.mxu0 %v1858_v51  ;;  %1709 = vmatpush3.bf16.msra.mxu1 %v1857_v53  ;;  %v1914_v53 = vld [vmem:[%s2428_s1 + $0x278] sm:$0xff]  }
  0x26   :  { %1276 = vmatprep.mubr.bf16.mxu0 %v326_v49  ;;  %1710 = vmatprep.subr.bf16.mxu1 %v1859_v54  ;;  %v1911_v49 = vld [vmem:[%s2428_s1 + $0x2f0] sm:$0xff]   ;;  %v346_v51 = vcombine.high %v338_v47, %v338_v47  ;;  %v2292_v52 = vrot.slane %v331_v48, %v2103_v41 }
  0x27   :  { %1316 = vmatprep.mubr.bf16.mxu1 %v330_v55  ;;  %v1913_v54 = vld [vmem:[%s2428_s1 + $0x2b0] sm:$0xff]  }
  0x28   :  { %1689 = vmatpush3.bf16.msra.mxu0 %v1860_v56  ;;  %v368_v55 = vrot.slane %v346_v51, %v2103_v41  ;;  %v347_v56 = vcombine.high %v2292_v52, %v2292_v52 }
  0x29   :  { %1690 = vmatprep.subr.bf16.mxu0 %v1862_v57  ;;  %1711 = vmatpush3.bf16.msra.mxu1 %v1861_v58  ;;  %v1915_v57 = vld [vmem:[%s2428_s1 + $0x2f8] sm:$0xff]  }
  0x2a   :  { %1712 = vmatprep.subr.bf16.mxu1 %v1863_v59  ;;  %v1916_v58 = vld [vmem:[%s2428_s1 + $0x238] sm:$0xff]   ;;  %v378_v59 = vcombine.high %v368_v55, %v368_v55 }
  0x2c   :  { %1691 = vmatpush3.bf16.msra.mxu0 %v1864_v60  ;;  %v354_v60 = vrot.slane %v338_v47, %v2103_v41 }
  0x2d   :  { %1692 = vmatprep.subr.bf16.mxu0 %v1866_v61  ;;  %1713 = vmatpush3.bf16.msra.mxu1 %v1865_v62  ;;  %v1918_v61 = vld [vmem:[%s2428_s1 + $0x340] sm:$0xff]   ;;  %v1917_v62 = vld [vmem:[%s2428_s1 + $0x2b8] sm:$0xff]  }
  0x2e   :  { %1714 = vmatprep.subr.bf16.mxu1 %v1867_v63  ;;  %v375_v63 = vrot.slane %v347_v56, %v2103_v41 }
  0x30   :  { %1693 = vmatpush3.bf16.msra.mxu0 %v1868_v0  ;;  %v1919_v0 = vld [vmem:[%s2428_s1 + $0x3c0] sm:$0xff]  }
  0x31   :  { %1694 = vmatprep.subr.bf16.mxu0 %v1870_v1  ;;  %1715 = vmatpush3.bf16.msra.mxu1 %v1869_v2  ;;  %v1920_v1 = vld [vmem:[%s2428_s1 + $0x300] sm:$0xff]   ;;  %v376_v2 = vcombine.high %v354_v60, %v354_v60 }
  0x32   :  { %1716 = vmatprep.subr.bf16.mxu1 %v1871_v3  ;;  %v1922_v3 = vld [vmem:[%s2428_s1 + $0x348] sm:$0xff]  }
  0x34   :  { %1695 = vmatpush3.bf16.msra.mxu0 %v1872_v4  ;;  %v1921_v4 = vld [vmem:[%s2428_s1 + $0x380] sm:$0xff]  }
  0x35   :  { %1696 = vmatprep.subr.bf16.mxu0 %v1874_v5  ;;  %1717 = vmatpush3.bf16.msra.mxu1 %v1873_v6  ;;  %v379_v5 = vcombine.high %v375_v63, %v375_v63  ;;  %v1923_v6 = vld [vmem:[%s2428_s1 + $0x3c8] sm:$0xff]  }
  0x36   :  { %1718 = vmatprep.subr.bf16.mxu1 %v1875_v7  ;;  %v1924_v7 = vld [vmem:[%s2428_s1 + $0x308] sm:$0xff]  }
  0x38   :  { %1697 = vmatpush3.bf16.msra.mxu0 %v1876_v8  ;;  %v1926_v8 = vld [vmem:[%s2428_s1 + $0x350] sm:$0xff]  }
  0x39   :  { %1698 = vmatprep.subr.bf16.mxu0 %v1878_v9  ;;  %1719 = vmatpush3.bf16.msra.mxu1 %v1877_v10  ;;  %v1925_v9 = vld [vmem:[%s2428_s1 + $0x388] sm:$0xff]   ;;  %v1927_v10 = vld [vmem:[%s2428_s1 + $0x3d0] sm:$0xff]  }
  0x3a   :  { %1720 = vmatprep.subr.bf16.mxu1 %v1879_v11  ;;  %v1928_v11 = vld [vmem:[%s2428_s1 + $0x310] sm:$0xff]  }
  0x3c   :  { %1699 = vmatpush3.bf16.msra.mxu0 %v1880_v12  ;;  %v1930_v12 = vld [vmem:[%s2428_s1 + $0x358] sm:$0xff]  }
  0x3d   :  { %1700 = vmatprep.subr.bf16.mxu0 %v1882_v13  ;;  %1721 = vmatpush3.bf16.msra.mxu1 %v1881_v14  ;;  %v1929_v13 = vld [vmem:[%s2428_s1 + $0x390] sm:$0xff]   ;;  %v1931_v14 = vld [vmem:[%s2428_s1 + $0x3d8] sm:$0xff]  }
  0x3e   :  { %1722 = vmatprep.subr.bf16.mxu1 %v1883_v15  ;;  %v1932_v15 = vld [vmem:[%s2428_s1 + $0x318] sm:$0xff]  }
  0x40   :  { %1701 = vmatpush3.bf16.msra.mxu0 %v1884_v16  ;;  %v1934_v16 = vld [vmem:[%s2428_s1 + $0x360] sm:$0xff]  }
  0x41   :  { %1730 = vmatprep.subr.bf16.mxu0 %v1886_v18  ;;  %1723 = vmatpush3.bf16.msra.mxu1 %v1885_v19  ;;  %v1935_v18 = vld [vmem:[%s2428_s1 + $0x3e0] sm:$0xff]  }
  0x42   :  { %1752 = vmatprep.subr.bf16.mxu1 %v1887_v20  ;;  %v1936_v19 = vld [vmem:[%s2428_s1 + $0x320] sm:$0xff]   ;;  %v1938_v20 = vld [vmem:[%s2428_s1 + $0x368] sm:$0xff]  }
  0x43   :  { %1277 = vmatmul.mubr.bf16.vlgmr.msra.gmra.mrb[4].mxu0 %v312_v17  ;;  %v1933_v17 = vld [vmem:[%s2428_s1 + $0x398] sm:$0xff]  }
  0x44   :  { %1731 = vmatpush3.bf16.msra.mxu0 %v1888_v21  ;;  %1317 = vmatmul.mubr.bf16.vlgmr.msra.gmra.mrb[4].mxu1 %v328_v22  ;;  %v1937_v21 = vld [vmem:[%s2428_s1 + $0x3a0] sm:$0xff]   ;;  %v1939_v22 = vld [vmem:[%s2428_s1 + $0x3e8] sm:$0xff]  }
  0x45   :  { %1732 = vmatprep.subr.bf16.mxu0 %v1890_v23  ;;  %1753 = vmatpush3.bf16.msra.mxu1 %v1889_v24  ;;  %v1940_v23 = vld [vmem:[%s2428_s1 + $0x328] sm:$0xff]   ;;  %v1942_v24 = vld [vmem:[%s2428_s1 + $0x370] sm:$0xff]  }
  0x46   :  { %1754 = vmatprep.subr.bf16.mxu1 %v1891_v25  ;;  %1356 = vmatprep.mubr.bf16.mxu0 %v368_v55 }
  0x47   :  { %1396 = vmatprep.mubr.bf16.mxu1 %v378_v59 }
  0x48   :  { %1733 = vmatpush3.bf16.msra.mxu0 %v1892_v26 }
  0x49   :  { %1734 = vmatprep.subr.bf16.mxu0 %v1894_v27  ;;  %1755 = vmatpush3.bf16.msra.mxu1 %v1893_v28 }
  0x4a   :  { %1756 = vmatprep.subr.bf16.mxu1 %v1895_v29 }
  0x4c   :  { %1735 = vmatpush3.bf16.msra.mxu0 %v1896_v30 }
  0x4d   :  { %1736 = vmatprep.subr.bf16.mxu0 %v1898_v31  ;;  %1757 = vmatpush3.bf16.msra.mxu1 %v1897_v32 }
  0x4e   :  { %1758 = vmatprep.subr.bf16.mxu1 %v1899_v33 }
  0x50   :  { %1737 = vmatpush3.bf16.msra.mxu0 %v1900_v34 }
  0x51   :  { %1738 = vmatprep.subr.bf16.mxu0 %v1902_v35  ;;  %1759 = vmatpush3.bf16.msra.mxu1 %v1901_v36 }
  0x52   :  { %1760 = vmatprep.subr.bf16.mxu1 %v1903_v37 }
  0x54   :  { %1739 = vmatpush3.bf16.msra.mxu0 %v1904_v38 }
  0x55   :  { %1740 = vmatprep.subr.bf16.mxu0 %v1906_v39  ;;  %1761 = vmatpush3.bf16.msra.mxu1 %v1905_v40 }
  0x56   :  { %1762 = vmatprep.subr.bf16.mxu1 %v1907_v42 }
  0x58   :  { %1741 = vmatpush3.bf16.msra.mxu0 %v1908_v43 }
  0x59   :  { %1742 = vmatprep.subr.bf16.mxu0 %v1910_v44  ;;  %1763 = vmatpush3.bf16.msra.mxu1 %v1909_v46 }
  0x5a   :  { %1764 = vmatprep.subr.bf16.mxu1 %v1911_v49 }
  0x5c   :  { %1743 = vmatpush3.bf16.msra.mxu0 %v1912_v50 }
  0x5d   :  { %1744 = vmatprep.subr.bf16.mxu0 %v1914_v53  ;;  %1765 = vmatpush3.bf16.msra.mxu1 %v1913_v54 }
  0x5e   :  { %1766 = vmatprep.subr.bf16.mxu1 %v1915_v57 }
  0x60   :  { %1745 = vmatpush3.bf16.msra.mxu0 %v1916_v58 }
  0x61   :  { %1774 = vmatprep.subr.bf16.mxu0 %v1918_v61  ;;  %1767 = vmatpush3.bf16.msra.mxu1 %v1917_v62 }
  0x62   :  { %1796 = vmatprep.subr.bf16.mxu1 %v1919_v0 }
  0x63   :  { %1357 = vmatmul.mubr.bf16.vlgmr.msra.gmra.mrb[8].mxu0 %v354_v60 }
  0x64   :  { %1775 = vmatpush3.bf16.msra.mxu0 %v1920_v1  ;;  %1436 = vmatprep.mubr.bf16.mxu0 %v375_v63 }
  0x65   :  { %1397 = vmatmul.mubr.bf16.vlgmr.msra.gmra.mrb[8].mxu1 %v376_v2  ;;  %1776 = vmatprep.subr.bf16.mxu0 %v1922_v3 }
  0x66   :  { %1797 = vmatpush3.bf16.msra.mxu1 %v1921_v4  ;;  %1476 = vmatprep.mubr.bf16.mxu1 %v379_v5 }
  0x67   :  { %1798 = vmatprep.subr.bf16.mxu1 %v1923_v6 }
  0x68   :  { %1777 = vmatpush3.bf16.msra.mxu0 %v1924_v7 }
  0x69   :  { %1778 = vmatprep.subr.bf16.mxu0 %v1926_v8 }
  0x6a   :  { %1799 = vmatpush3.bf16.msra.mxu1 %v1925_v9 }
  0x6b   :  { %1800 = vmatprep.subr.bf16.mxu1 %v1927_v10 }
  0x6c   :  { %1779 = vmatpush3.bf16.msra.mxu0 %v1928_v11 }
  0x6d   :  { %1780 = vmatprep.subr.bf16.mxu0 %v1930_v12 }
  0x6e   :  { %1801 = vmatpush3.bf16.msra.mxu1 %v1929_v13 }
  0x6f   :  { %1802 = vmatprep.subr.bf16.mxu1 %v1931_v14 }
  0x70   :  { %1781 = vmatpush3.bf16.msra.mxu0 %v1932_v15 }
  0x71   :  { %1782 = vmatprep.subr.bf16.mxu0 %v1934_v16 }
  0x72   :  { %1803 = vmatpush3.bf16.msra.mxu1 %v1933_v17 }
  0x73   :  { %1804 = vmatprep.subr.bf16.mxu1 %v1935_v18 }
  0x74   :  { %1783 = vmatpush3.bf16.msra.mxu0 %v1936_v19 }
  0x75   :  { %1784 = vmatprep.subr.bf16.mxu0 %v1938_v20 }
  0x76   :  { %8 = vsyncpa [#allocation3], 0  ;;  %1805 = vmatpush3.bf16.msra.mxu1 %v1937_v21  ;;  %v1941_v25 = vld [vmem:[%s2428_s1 + $0x3a8] sm:$0xff]   ;;  %v1943_v26 = vld [vmem:[%s2428_s1 + $0x3f0] sm:$0xff]   ;;  %v361_v32 = vrot.slane %v2292_v52, %v2103_v41  ;;  %v1976_v35 = vmov 0.0   ;;  %s1977_s27 = smov [#allocation2]  }
  0x77   :  { %1806 = vmatprep.subr.bf16.mxu1 %v1939_v22  ;;  %v1944_v27 = vld [vmem:[%s2428_s1 + $0x330] sm:$0xff]   ;;  %v1946_v28 = vld [vmem:[%s2428_s1 + $0x378] sm:$0xff]   ;;  %20 = vst [vmem:[#allocation2] sm:$0x3] %v1976_v35  ;;  %v1641_v21 = vld [vmem:[%s2429_s2] ss:$0 sm:$0xff] }
  0x78   :  { %1785 = vmatpush3.bf16.msra.mxu0 %v1940_v23  ;;  %v1945_v29 = vld [vmem:[%s2428_s1 + $0x3b0] sm:$0xff]   ;;  %v1947_v30 = vld [vmem:[%s2428_s1 + $0x3f8] sm:$0xff]   ;;  %v377_v34 = vcombine.high %v361_v32, %v361_v32  ;;  %s1505_s28 = sshll.u32 %s1977_s27, 4  ;;  %s1506_s28 = int_to_ptr.vmem [resolvable:$true] %s1505_s28 }
  0x79   :  { %1786 = vmatprep.subr.bf16.mxu0 %v1942_v24  ;;  %v1948_v31 = vld [vmem:[%s2428_s1 + $0x338] sm:$0xff]   ;;  %s1951_s29 = scalar_lea.vmem %s1506_s28, 32  ;;  %p1956_p1 = scmp.lt.s32.totalorder %s1506_s28, %s1506_s28 }
  0x7a   :  { %1807 = vmatpush3.bf16.msra.mxu1 %v1941_v25  ;;  %v1949_v33 = vld [vmem:[%s2428_s1 + $0x3b8] sm:$0xff]   ;;  %p1952_p0 = scmp.ne.s32.totalorder %s1506_s28, %s1951_s29  ;;  %p1957_p2 = scmp.lt.s32.totalorder %s1951_s29, %s1951_s29 }
  0x7b   :  { %1808 = vmatprep.subr.bf16.mxu1 %v1943_v26 }
  0x7c   :  { %1787 = vmatpush3.bf16.msra.mxu0 %v1944_v27  ;;  %p1958_p3 = por %p1957_p2, %p1956_p1 }
  0x7d   :  { %1788 = vmatprep.subr.bf16.mxu0 %v1946_v28 }
  0x7e   :  { %1809 = vmatpush3.bf16.msra.mxu1 %v1945_v29  ;;  %v21_v17 = vld [vmem:[#allocation2] sm:$0x3]  ;;  %p1959_p4 = pnand %p1958_p3, %p1952_p0 }
  0x7f   :  { %1810 = vmatprep.subr.bf16.mxu1 %v1947_v30 }
  0x80   :  { %1789 = vmatpush3.bf16.msra.mxu0 %v1948_v31 }
  0x82   :  { %1811 = vmatpush3.bf16.msra.mxu1 %v1949_v33 }
  0x83   :  { %1437 = vmatmul.mubr.bf16.vlgmr.msra.gmra.mrb[12].mxu0 %v361_v32 }
  0x85   :  { %1477 = vmatmul.mubr.bf16.vlgmr.msra.gmra.mrb[12].mxu1 %v377_v34 }
  0xf6   :  { %v1658_v36 = vpop.f32.mrb[0].mxu0 }
  0xf7   :  { %v1659_v37 = vpop.f32.mrb[1].mxu0  ;;  %v1680_v38 = vpop.f32.mrb[0].mxu1 }
  0xf8   :  { %v1660_v39 = vadd.f32 %v1659_v37, %v1658_v36  ;;  %v1661_v40 = vpop.f32.mrb[2].mxu0  ;;  %v1681_v42 = vpop.f32.mrb[1].mxu1 }
  0xf9   :  { %v1662_v41 = vpop.f32.mrb[3].mxu0  ;;  %v1682_v43 = vadd.f32 %v1681_v42, %v1680_v38  ;;  %v1683_v44 = vpop.f32.mrb[2].mxu1 }
  0xfa   :  { %v1684_v45 = vpop.f32.mrb[3].mxu1 }
  0xfb   :  { %v1239_v46 = vadd.f32 %v1682_v43, %v1660_v39 }
 0x116   :  { %v1702_v47 = vpop.f32.mrb[4].mxu0 }
 0x117   :  { %v1703_v48 = vpop.f32.mrb[5].mxu0  ;;  %v1724_v49 = vpop.f32.mrb[4].mxu1 }
 0x118   :  { %v1704_v50 = vadd.f32 %v1703_v48, %v1702_v47  ;;  %v1705_v51 = vpop.f32.mrb[6].mxu0  ;;  %v1725_v52 = vpop.f32.mrb[5].mxu1 }
 0x119   :  { %v1706_v53 = vpop.f32.mrb[7].mxu0  ;;  %v1726_v55 = vadd.f32 %v1725_v52, %v1724_v49  ;;  %v1727_v56 = vpop.f32.mrb[6].mxu1 }
 0x11a   :  { %v1279_v54 = vadd.f32 %v1704_v50, %v1239_v46  ;;  %v1728_v57 = vpop.f32.mrb[7].mxu1 }
 0x11c   :  { %v1319_v58 = vadd.f32 %v1726_v55, %v1279_v54 }
 0x136   :  { %v1746_v59 = vpop.f32.mrb[8].mxu0 }
 0x137   :  { %v1747_v60 = vpop.f32.mrb[9].mxu0 }
 0x138   :  { %v1768_v61 = vpop.f32.mrb[8].mxu1  ;;  %v1748_v62 = vadd.f32 %v1747_v60, %v1746_v59  ;;  %v1749_v63 = vpop.f32.mrb[10].mxu0 }
 0x139   :  { %v1769_v0 = vpop.f32.mrb[9].mxu1  ;;  %v1750_v1 = vpop.f32.mrb[11].mxu0 }
 0x13a   :  { %v1359_v2 = vadd.f32 %v1748_v62, %v1319_v58  ;;  %v1770_v3 = vadd.f32 %v1769_v0, %v1768_v61  ;;  %v1771_v4 = vpop.f32.mrb[10].mxu1 }
 0x13b   :  { %v1772_v5 = vpop.f32.mrb[11].mxu1 }
 0x13c   :  { %v1399_v6 = vadd.f32 %v1770_v3, %v1359_v2 }
 0x156   :  { %v1790_v7 = vpop.f32.mrb[12].mxu0 }
 0x157   :  { %v1791_v8 = vpop.f32.mrb[13].mxu0 }
 0x158   :  { %v1812_v9 = vpop.f32.mrb[12].mxu1  ;;  %v1792_v10 = vadd.f32 %v1791_v8, %v1790_v7  ;;  %v1793_v11 = vpop.f32.mrb[14].mxu0 }
 0x159   :  { %v1813_v12 = vpop.f32.mrb[13].mxu1  ;;  %v1794_v13 = vpop.f32.mrb[15].mxu0 }
 0x15a   :  { %v1439_v14 = vadd.f32 %v1792_v10, %v1399_v6  ;;  %v1814_v15 = vadd.f32 %v1813_v12, %v1812_v9  ;;  %v1815_v16 = vpop.f32.mrb[14].mxu1 }
 0x15b   :  { %v1816_v18 = vpop.f32.mrb[15].mxu1 }
 0x15c   :  { %v1479_v19 = vadd.f32 %v1814_v15, %v1439_v14 }
 0x15e   :  { %v1484_v20 = vadd.f32 %v1479_v19, %v21_v17 }
 0x160   :  { %1485 = vst [vmem:[#allocation2] sm:$0x3] %v1484_v20 }
 0x167   :  { %v1489_v22 = vld [vmem:[#allocation2] sm:$0x3] }
 0x168   :  { %v1497_v23 = vadd.f32 %v1641_v21, %v1489_v22 }
 0x16a   :  { %1498 = vst [vmem:[#allocation2] sm:$0x3] %v1497_v23 }
 0x16b   :  { %1962 = shalt.err (!%p1959_p4)
}
 0x16c   :  { %s1963_s5 = scalar_lea.hbm %s2430_s3, 32 }
 0x16d   :  { %p1964_p5 = scmp.ne.s32.totalorder %s2430_s3, %s1963_s5  ;;  %p1967_p6 = scmp.lt.u32.totalorder %s1963_s5, %s2430_s3 }
 0x16f   :  { %p1969_p7 = pnand %p1967_p6, %p1964_p5 }
 0x171   :  { %1972 = shalt.err (!%p1969_p7)
}
 0x172   :  { %1508 = dma.vmem_to_hbm [thread:$0]  %s1506_s28, 32, %s2430_s3, [#allocation3]  }
 0x173   :  { %1973 = dma.done.wait [#allocation3], 32  }
 0x174   :  { %1974 = vsyncadd [#allocation3], 4294967264 }
 0x175   :  { %1512 = vsyncpa [#allocation3], 1 }

// kernel: cnn_forward.3
= control target key start
LH: loop header
LB: loop body
LE: loop exit
PB: predicated region body
PF: predicated region fallthrough
CT: control target
= control target key end

     0   :  { %8 = vsyncpa [#allocation3], 0  ;;  %s10173_s0 = inlined_call_operand.vmem [shape: bf16[2,28,20,3], index: 0, kind: input, shape index: {}]   ;;  %s10174_s1 = inlined_call_operand.hbm [shape: bf16[1,75,128], index: 1, kind: input, shape index: {}]   ;;  %s10175_s2 = inlined_call_operand.hbm [shape: f32[1,128], index: 2, kind: input, shape index: {}]   ;;  %s10176_s3 = inlined_call_operand.vmem [shape: bf16[2,12,12,128], index: 3, kind: output, shape index: {}]  }
   0x1   :  { %9 = vsyncpa [#allocation5], 0  ;;  %s6376_s12 = smov 0   ;;  %s6378_s13 = smov 0  }
   0x2   :  { %s6380_s14 = smov 0   ;;  %s6382_s15 = smov 0  }
   0x3   :  { %s6384_s16 = smov 0  }
   0x4 LB: > { %s5482_s17 = sadd.s32 4294967295, %s6332_s16   ;;  %s24_s18 = sadd.s32 1, %s6324_s14  ;;  %s6332_s16 = sphi %s6384_s16, %s15_s16   ;;  %s6328_s15 = sphi %s6382_s15, %s10536_s15   ;;  %s6324_s14 = sphi %s6380_s14, %s10535_s14   ;;  %s6320_s13 = sphi %s6378_s13, %s10534_s13   ;;  %s6316_s12 = sphi %s6376_s12, %s10533_s12  }
   0x5   : > { %p25_p0 = scmp.ge.s32.totalorder %s24_s18, 3  ;;  %s27_s19 = sadd.s32 1, %s6328_s15 }
   0x6   : > { %p5484_p1 = scmp.ge.s32.totalorder %s6332_s16, 1  ;;  %p128_p2 = scmp.lt.s32.totalorder %s6332_s16, 7 }
   0x7   : > { %s10538_s18 = smov (%p25_p0, %s24_s18), 0  ;;  %s10540_s19 = smov (!%p25_p0, %s27_s19), %s6328_s15 }
   0x8   : > { %p6409_p3 = pnand %p5484_p1, %p128_p2  ;;  %p29_p4 = scmp.ge.s32.totalorder %s10540_s19, 2 }
   0x9   : > { %p6413_p5 = scmp.eq.s32.totalorder %s5482_s17, 0  ;;  %s6334_s22 = smov [#allocation2]  }
   0xa   : > { %s10259_s20 = scalar_select %p6409_p3, 1, 0 }
   0xb   : > { %s10260_s21 = scalar_select %p6413_p5, 1, 0 }
   0xc   : > { %p6071_p6 = pneg %p6409_p3  ;;  %s10542_s19 = smov (%p29_p4, %s10540_s19), 0 }
   0xd   : > { %s140_s23 = sshll.u32 %s6334_s22, 4  ;;  %s6230_s27 = scalar_lea.hbm %s10174_s1, 640  ;;  %s141_s23 = int_to_ptr.vmem [resolvable:$true] %s140_s23 }
   0xe   : > { %p6423_p7 = pnand %p6413_p5, %p6071_p6  ;;  %p6231_p8 = scmp.ne.s32.totalorder %s10174_s1, %s6230_s27 }
   0xf   : > { %p6237_p12 = scmp.lt.u32.totalorder %s6230_s27, %s10174_s1 }
  0x10   : > { %p6232_p9 = pneg %p6423_p7 }
  0x12   : > { %p6233_p10 = pnand %p6232_p9, %p6231_p8 }
  0x14   : > { %p6234_p11 = pneg %p6233_p10 }
  0x16   : > { %p6239_p13 = pnand %p6237_p12, %p6234_p11 }
  0x18   : > { %6242 = shalt.err (!%p6239_p13)
}
  0x19   : > { %s6243_s5 = scalar_lea.vmem %s141_s23, 640  ;;  %p6251_p4 = scmp.lt.s32.totalorder %s141_s23, %s141_s23 }
  0x1a   : > { %p6244_p0 = scmp.ne.s32.totalorder %s141_s23, %s6243_s5  ;;  %p6252_p6 = scmp.lt.s32.totalorder %s6243_s5, %s6243_s5 }
  0x1c   : > { %p6246_p1 = pnand %p6244_p0, %p6232_p9  ;;  %p6253_p5 = por %p6252_p6, %p6251_p4 }
  0x1e   : > { %p6247_p2 = pneg %p6246_p1 }
  0x20   : > { %p6254_p3 = pnand %p6253_p5, %p6247_p2 }
  0x22   : > { %6257 = shalt.err (!%p6254_p3)
}
  0x23   : > { %s6335_s6 = smov 64   ;;  %s6336_s7 = smov 4  }
  0x24   : > { %6074 = dma.hbm_to_vmem [thread:$0]  (!%p6423_p7), %s10174_s1, 640, %s141_s23, [#allocation3], %s6335_s6, %s6335_s6, %s6336_s7  }
  0x25   : > { %s6337_s10 = smov [#allocation4]   ;;  %s6258_s25 = scalar_lea.hbm %s10175_s2, 16 }
  0x26   : > { %s154_s11 = sshll.u32 %s6337_s10, 4  ;;  %p6259_p3 = scmp.ne.s32.totalorder %s10175_s2, %s6258_s25  ;;  %s155_s11 = int_to_ptr.vmem [resolvable:$true] %s154_s11 }
  0x27   : > { %p6265_p10 = scmp.lt.u32.totalorder %s6258_s25, %s10175_s2 }
  0x28   : > { %p6261_p5 = pnand %p6259_p3, %p6232_p9 }
  0x2a   : > { %p6262_p8 = pneg %p6261_p5 }
  0x2c   : > { %p6267_p11 = pnand %p6265_p10, %p6262_p8 }
  0x2e   : > { %6270 = shalt.err (!%p6267_p11)
}
  0x2f   : > { %s6271_s23 = scalar_lea.vmem %s155_s11, 16  ;;  %s6278_s30 = scalar_lea.vmem %s155_s11, 32 }
  0x30   : > { %p6272_p12 = scmp.ne.s32.totalorder %s155_s11, %s6271_s23  ;;  %p6279_p1 = scmp.lt.s32.totalorder %s155_s11, %s155_s11 }
  0x31   : > { %p6280_p2 = scmp.lt.s32.totalorder %s6278_s30, %s6271_s23 }
  0x32   : > { %p6274_p13 = pnand %p6272_p12, %p6232_p9 }
  0x33   : > { %p6281_p4 = por %p6280_p2, %p6279_p1 }
  0x34   : > { %p6275_p0 = pneg %p6274_p13 }
  0x36   : > { %p6282_p6 = pnand %p6281_p4, %p6275_p0 }
  0x38   : > { %6285 = shalt.err (!%p6282_p6)
}
  0x39   : > { %6077 = dma.hbm_to_vmem [thread:$0]  (!%p6423_p7), %s10175_s2, 16, %s155_s11, [#allocation5]  }
  0x3a   : > { %p10262_p3 = scmp.ne.s32.totalorder %s10259_s20, 0 }
  0x3c   : > { %175 = sbr.rel (%p10262_p3) target bundleno = 1014 (0x3f6), region = 32 }
  0x43   : > { %p10263_p5 = scmp.ne.s32.totalorder %s10260_s21, 0 }
  0x45   : > { %6307 = dma.done.wait (%p10263_p5), [#allocation3], 640  }
  0x46   : > { %6309 = vsyncadd (%p10263_p5), [#allocation3], 4294966656 }
  0x47   : > { %6311 = dma.done.wait (%p10263_p5), [#allocation5], 16  }
  0x48   : > { %6313 = vsyncadd (%p10263_p5), [#allocation5], 4294967280  ;;  %p208_p9 = scmp.lt.s32.totalorder %s6320_s13, 1  ;;  %s6003_s20 = smul.u32 96, %s6316_s12  ;;  %vm480_vm0 = vcmask 1042432   ;;  %vm481_vm1 = vcmask 1046532  }
  0x49   : > { %vm6488_vm2 = vmor %vm480_vm0, %vm481_vm1  ;;  %vm758_vm3 = vcmask 1041408   ;;  %vm759_vm4 = vcmask 1045508   ;;  %vm253_vm5 = vsmask.f32 3328  ;;  %vm254_vm6 = vsmask.f32 7440 }
  0x4a   : > { %s10544_s13 = smov (!%p208_p9, %s6320_s13), 1  ;;  %s6338_s9 = smov 3   ;;  %vm6549_vm7 = vmor %vm758_vm3, %vm759_vm4  ;;  %v10266_v40 = vmov 0  ;;  %vm547_vm9 = vsmask.f32 2304  ;;  %vm3793_vm12 = vcmask 23552  }
  0x4b   : > { %s6061_s24 = smul.u32 336, %s10544_s13  ;;  %v10267_v40 = vsel %vm6549_vm7, 4294967295, %v10266_v40  ;;  %vm6586_vm8 = vmor %vm253_vm5, %vm254_vm6  ;;  %vm548_vm10 = vsmask.f32 6416  ;;  %s6339_s10 = smov 9   ;;  %vm3818_vm13 = vcmask 48128  }
  0x4c   : > { %10268 = vst [vmem:[#allocation8_spill] sm:$0xff] %v10267_v40  ;;  %vm6632_vm11 = vmor %vm547_vm9, %vm548_vm10  ;;  %s6340_s11 = smov 6   ;;  %s6341_s17 = smov 12   ;;  %vm3835_vm14 = vcmask 72704   ;;  %vm3852_vm15 = vcmask 97280   ;;  %vm3869_vm0 = vcmask 121856  }
  0x4d   : > { %s212_s8 = scalar_lea.vmem %s10173_s0, %s6061_s24  ;;  %s6342_s22 = smov 15   ;;  %vm3886_vm1 = vcmask 146432   ;;  %vm3903_vm4 = vcmask 171008   ;;  %vm3920_vm5 = vcmask 195584   ;;  %vm3937_vm6 = vcmask 220160  }
  0x4e   : > { %s6492_s21 = scalar_lea.vmem %s212_s8, %s6003_s20  ;;  %s6343_s25 = smov 18   ;;  %vm3954_vm9 = vcmask 244736   ;;  %vm3971_vm10 = vcmask 269312  }
  0x4f   : > { %v6495_v1 = vld [vmem:[%s6492_s21 + $0x58] sm:$0xf]  ;;  %v5668_v2 = vld [vmem:[%s6492_s21 + $0x5c] sm:$0x1]  ;;  %v6499_v3 = vld [vmem:[%s6492_s21 + $0x54] sm:$0xe] }
  0x50   : > { %v5684_v4 = vrot.slane %v6499_v3, 9  ;;  %v2259_v5 = vrot.slane %v6495_v1, 5  ;;  %v2262_v6 = vrot.slane %v5668_v2, 5  ;;  %v6504_v7 = vld [vmem:[%s6492_s21 + $0x28] sm:$0xf]  ;;  %v2386_v18 = vshrl.u32 %v6499_v3, 16 }
  0x51   : > { %v5664_v8 = vld [vmem:[%s6492_s21 + $0x2c] sm:$0x1]  ;;  %v6508_v9 = vld [vmem:[%s6492_s21 + $0x24] sm:$0xe]  ;;  %v2231_v14 = vrot.slane %v6504_v7, 5  ;;  %v2389_v26 = vshll.u32 %v6499_v3, 16 }
  0x52   : > { %v2260_v10 = vsel %vm6488_vm2, %v5684_v4, %v2259_v5  ;;  %v2261_v11 = vrot.slane %v2259_v5, 4  ;;  %v6513_v12 = vld [vmem:[%s6492_s21 + $0x64] sm:$0xf]  ;;  %v5680_v13 = vrot.slane %v6508_v9, 9  ;;  %v2234_v15 = vrot.slane %v5664_v8, 5  ;;  %s6344_s26 = smov 21  }
  0x53   : > { %v5669_v16 = vld [vmem:[%s6492_s21 + $0x68] sm:$0x1]  ;;  %v6522_v19 = vld [vmem:[%s6492_s21 + $0x60] sm:$0xe]  ;;  %v2233_v22 = vrot.slane %v2231_v14, 4  ;;  %v2266_v27 = vrot.slane %v6513_v12, 5 }
  0x54   : > { %v2263_v17 = vsel %vm6488_vm2, %v2261_v11, %v2262_v6  ;;  %v2232_v21 = vsel %vm6488_vm2, %v5680_v13, %v2231_v14  ;;  %v5685_v23 = vrot.slane %v6522_v19, 9  ;;  %v6528_v24 = vld [vmem:[%s6492_s21 + $0x34] sm:$0xf]  ;;  %v5665_v25 = vld [vmem:[%s6492_s21 + $0x38] sm:$0x1]  ;;  %v2269_v28 = vrot.slane %v5669_v16, 5 }
  0x55   : > { %v5918_v20 = vcombine.low %v2260_v10, %v2263_v17  ;;  %v6534_v29 = vld [vmem:[%s6492_s21 + $0x30] sm:$0xe]  ;;  %v2238_v30 = vrot.slane %v6528_v24, 5  ;;  %v2235_v31 = vsel %vm6488_vm2, %v2233_v22, %v2234_v15  ;;  %v2241_v33 = vrot.slane %v5665_v25, 5  ;;  %v6542_v34 = vld [vmem:[%s6492_s21 + $0x2c] sm:$0x3] }
  0x56   : > { %v5681_v32 = vrot.slane %v6534_v29, 9  ;;  %v5696_v35 = vld [vmem:[%s6492_s21 + $0x24] sm:$0xc]  ;;  %v5914_v36 = vcombine.low %v2232_v21, %v2235_v31  ;;  %v2267_v37 = vsel %vm6488_vm2, %v5685_v23, %v2266_v27  ;;  %v2268_v38 = vrot.slane %v2266_v27, 4  ;;  %v229_v41 = vld [vmem:[%s6492_s21] sm:$0xf] }
  0x57   : > { %4112 = vrot.lane.b32.xlu0 %v5918_v20, %s6338_s9  ;;  %v2240_v39 = vrot.slane %v2238_v30, 4  ;;  %v5704_v43 = vrot.slane %v5696_v35, 10  ;;  %v2503_v44 = vrot.slane %v6504_v7, 6  ;;  %v2506_v45 = vrot.slane %v6542_v34, 6  ;;  %v6559_v46 = vld [vmem:[%s6492_s21 + $0x4] sm:$0xf] }
  0x58   : > { %v2239_v42 = vsel %vm6488_vm2, %v5681_v32, %v2238_v30  ;;  %4104 = vrot.lane.b32.xlu1 %v5914_v36, %s6338_s9  ;;  %v2270_v47 = vsel %vm6488_vm2, %v2268_v38, %v2269_v28  ;;  %v245_v49 = vld [vmem:[%s6492_s21 + $0x8] sm:$0x1]  ;;  %v257_v50 = vshrl.u32 %v229_v41, 16  ;;  %v260_v51 = vshll.u32 %v229_v41, 16  ;;  %v233_v52 = vld [vmem:[%s6492_s21 + $0x18] sm:$0xf] }
  0x59   : > { %v2242_v48 = vsel %vm6488_vm2, %v2240_v39, %v2241_v33  ;;  %v5919_v53 = vcombine.low %v2267_v37, %v2270_v47  ;;  %v2504_v55 = vsel %vm6549_vm7, %v5704_v43, %v2503_v44  ;;  %v2505_v56 = vrot.slane %v2503_v44, 4  ;;  %v6573_v61 = vld [vmem:[%s6492_s21 + $0x1c] sm:$0xf]  ;;  %v247_v2 = vld [vmem:[%s6492_s21 + $0x20] sm:$0x1]  ;;  %s6345_s27 = smov 24  }
  0x5a   : > { %v5915_v54 = vcombine.low %v2239_v42, %v2242_v48  ;;  %v259_v57 = vrot.slane %v257_v50, 4  ;;  %v262_v58 = vrot.slane %v260_v51, 5  ;;  %v10193_v59 = vshll.u32 %v6559_v46, 16  ;;  %10269 = vst [vmem:[#allocation9_spill] sm:$0xff] %v6573_v61  ;;  %v231_v20 = vld [vmem:[%s6492_s21 + $0xc] sm:$0xf] }
  0x5b   : > { %v10194_v60 = vshrl.u32 %v6559_v46, 16  ;;  %4114 = vrot.lane.b32.xlu0 %v5919_v53, %s6338_s9  ;;  %v2507_v62 = vsel %vm6549_vm7, %v2505_v56, %v2506_v45  ;;  %v276_v63 = vshll.u32 %v245_v49, 16  ;;  %v305_v4 = vshrl.u32 %v233_v52, 16  ;;  %v6594_v27 = vld [vmem:[%s6492_s21 + $0x10] sm:$0xf]  ;;  %s6346_s28 = smov 27  }
  0x5c   : > { %v308_v5 = vshll.u32 %v233_v52, 16  ;;  %4106 = vrot.lane.b32.xlu1 %v5915_v54, %s6338_s9  ;;  %v5930_v6 = vcombine.low %v2504_v55, %v2507_v62  ;;  %v263_v8 = vor.u32 %v262_v58, %v259_v57  ;;  %v268_v10 = vrot.slane %v10193_v59, 5  ;;  %v246_v33 = vld [vmem:[%s6492_s21 + $0x14] sm:$0x1]  ;;  %v7205_v59 = vld [vmem:[%s6492_s21 + $0x8c] sm:$0x1] }
  0x5d   : > { %v272_v11 = vrot.slane %v10194_v60, 4  ;;  %v278_v14 = vrot.slane %v276_v63, 5  ;;  %v307_v15 = vrot.slane %v305_v4, 4  ;;  %v314_v17 = vshll.u32 %v6573_v61, 16  ;;  %s6347_s29 = smov 30   ;;  %s6348_s23 = smov 33  }
  0x5e   : > { %v310_v16 = vrot.slane %v308_v5, 5  ;;  %v264_v21 = vrot.slane %v263_v8, 4  ;;  %v10180_v23 = vshrl.u32 %v6573_v61, 16  ;;  %v324_v25 = vshll.u32 %v247_v2, 16  ;;  %s6349_s30 = smov 36   ;;  %s6350_s4 = smov 39  }
  0x5f   : > { %v273_v22 = vor.u32 %v272_v11, %v268_v10  ;;  %v2294_v28 = vshrl.u32 %v6508_v9, 16  ;;  %v2297_v30 = vshll.u32 %v6508_v9, 16  ;;  %v316_v32 = vrot.slane %v314_v17, 5  ;;  %s6351_s5 = smov 42   ;;  %s6352_s20 = smov 45  }
  0x60   : > { %v311_v31 = vor.u32 %v310_v16, %v307_v15  ;;  %4184 = vrot.lane.b32.xlu1 %v5930_v6, %s6339_s10  ;;  %v269_v35 = vsel %vm6586_vm8, %v264_v21, %v268_v10  ;;  %v320_v37 = vrot.slane %v10180_v23, 4  ;;  %v326_v38 = vrot.slane %v324_v25, 5  ;;  %s6353_s24 = smov 48   ;;  %s9871_s6 = sshll.u32 %s6316_s12, 2 }
  0x61   : > { %v274_v36 = vrot.slane %v273_v22, 4  ;;  %v281_v41 = vshrl.u32 %v231_v20, 16  ;;  %v284_v42 = vshll.u32 %v231_v20, 16  ;;  %v10191_v9 = vshll.u32 %v6594_v27, 16  ;;  %p216_p7 = scmp.lt.s32.totalorder %s9871_s6, 11  ;;  %s6062_s12 = smul.u32 24, %s10544_s13 }
  0x62   : > { %v312_v39 = vrot.slane %v311_v31, 4  ;;  %v321_v44 = vor.u32 %v320_v37, %v316_v32  ;;  %v10192_v45 = vshrl.u32 %v6594_v27, 16  ;;  %v300_v47 = vshll.u32 %v246_v33, 16  ;;  %v6639_v31 = vld [vmem:[%s6492_s21 + $0x5c] sm:$0x3] }
  0x63   : > { %v279_v43 = vsel %vm6586_vm8, %v274_v36, %v278_v14  ;;  %v283_v50 = vrot.slane %v281_v41, 4  ;;  %v286_v51 = vrot.slane %v284_v42, 5  ;;  %v292_v53 = vrot.slane %v10191_v9, 5 }
  0x64   : > { %v5786_v48 = vcombine.low %v269_v35, %v279_v43  ;;  %v317_v49 = vsel %vm6586_vm8, %v312_v39, %v316_v32  ;;  %v322_v52 = vrot.slane %v321_v44, 4  ;;  %v296_v54 = vrot.slane %v10192_v45, 4 }
  0x65   : > { %v302_v55 = vrot.slane %v300_v47, 5  ;;  %v287_v56 = vor.u32 %v286_v51, %v283_v50  ;;  %v2015_v57 = vshll.u32 %v6504_v7, 16  ;;  %v10199_v58 = vshrl.u32 %v6504_v7, 16  ;;  %v6661_v51 = vld [vmem:[%s6492_s21 + $0x38] sm:$0x3] }
  0x66   : > { %3193 = vrot.lane.b32.xlu0 %v5786_v48, %s6338_s9  ;;  %v2296_v62 = vrot.slane %v2294_v28, 5  ;;  %v327_v63 = vsel %vm6586_vm8, %v322_v52, %v326_v38  ;;  %v297_v2 = vor.u32 %v296_v54, %v292_v53  ;;  %v2299_v4 = vrot.slane %v2297_v30, 6 }
  0x67   : > { %v2308_v5 = vshrl.u32 %v6542_v34, 16  ;;  %v5788_v6 = vcombine.low %v317_v49, %v327_v63  ;;  %v288_v8 = vrot.slane %v287_v56, 4  ;;  %v2302_v10 = vrot.slane %v10199_v58, 5 }
  0x68   : > { %v2303_v11 = vrot.slane %v2015_v57, 6  ;;  %v298_v14 = vrot.slane %v297_v2, 4  ;;  %v2300_v15 = vor.u32 %v2299_v4, %v2296_v62  ;;  %v2311_v20 = vshll.u32 %v6542_v34, 16 }
  0x69   : > { %v2310_v16 = vrot.slane %v2308_v5, 5  ;;  %3197 = vrot.lane.b32.xlu1 %v5788_v6, %s6338_s9  ;;  %v293_v21 = vsel %vm6586_vm8, %v288_v8, %v292_v53  ;;  %v2111_v28 = vshll.u32 %v6495_v1, 16  ;;  %v2115_v30 = vshrl.u32 %v6495_v1, 16 }
  0x6a   : > { %v2304_v25 = vor.u32 %v2303_v11, %v2302_v10  ;;  %v303_v34 = vsel %vm6586_vm8, %v298_v14, %v302_v55  ;;  %v2301_v32 = vrot.slane %v2300_v15, 4  ;;  %v2313_v33 = vrot.slane %v2311_v20, 6 }
  0x6b   : > { %v2388_v35 = vrot.slane %v2386_v18, 5  ;;  %v5787_v36 = vcombine.low %v293_v21, %v303_v34  ;;  %v2391_v38 = vrot.slane %v2389_v26, 6  ;;  %v2394_v39 = vrot.slane %v2115_v30, 5 }
  0x6c   : > { %v2306_v37 = vrot.slane %v2304_v25, 4  ;;  %v2305_v41 = vsel %vm6632_vm11, %v2301_v32, %v2304_v25  ;;  %v2314_v42 = vor.u32 %v2313_v33, %v2310_v16  ;;  %v2395_v43 = vrot.slane %v2111_v28, 6  ;;  %v6679_v25 = vld [vmem:[%s6492_s21 + $0x68] sm:$0x3] }
  0x6d   : > { %v2400_v44 = vshrl.u32 %v6639_v31, 16  ;;  %3195 = vrot.lane.b32.xlu0 %v5787_v36, %s6338_s9  ;;  %v2392_v18 = vor.u32 %v2391_v38, %v2388_v35  ;;  %v2403_v47 = vshll.u32 %v6639_v31, 16  ;;  %v10190_v3 = vshll.u32 %v6528_v24, 16 }
  0x6e   : > { %v10189_v26 = vshrl.u32 %v6528_v24, 16  ;;  %v2315_v48 = vsel %vm6632_vm11, %v2306_v37, %v2314_v42  ;;  %v2396_v49 = vor.u32 %v2395_v43, %v2394_v39  ;;  %v2317_v52 = vshrl.u32 %v6534_v29, 16  ;;  %v5697_v37 = vld [vmem:[%s6492_s21 + $0x30] sm:$0xc] }
  0x6f   : > { %v2402_v50 = vrot.slane %v2400_v44, 5  ;;  %v5922_v53 = vcombine.low %v2305_v41, %v2315_v48  ;;  %v2393_v54 = vrot.slane %v2392_v18, 4  ;;  %v2405_v55 = vrot.slane %v2403_v47, 6 }
  0x70   : > { %v2320_v56 = vshll.u32 %v6534_v29, 16  ;;  %v2398_v62 = vrot.slane %v2396_v49, 4  ;;  %v2319_v63 = vrot.slane %v2317_v52, 5  ;;  %v2325_v2 = vrot.slane %v10189_v26, 5  ;;  %v5700_v52 = vld [vmem:[%s6492_s21 + $0x54] sm:$0xc] }
  0x71   : > { %v2326_v4 = vrot.slane %v10190_v3, 6  ;;  %4144 = vrot.lane.b32.xlu1 %v5922_v53, %s6340_s11  ;;  %v2397_v5 = vsel %vm6632_vm11, %v2393_v54, %v2396_v49  ;;  %v2406_v6 = vor.u32 %v2405_v55, %v2402_v50  ;;  %v2331_v29 = vshrl.u32 %v6661_v51, 16 }
  0x72   : > { %v2322_v8 = vrot.slane %v2320_v56, 6  ;;  %v2334_v11 = vshll.u32 %v6661_v51, 16  ;;  %v10196_v14 = vshll.u32 %v6513_v12, 16  ;;  %v10195_v15 = vshrl.u32 %v6513_v12, 16 }
  0x73   : > { %v2327_v10 = vor.u32 %v2326_v4, %v2325_v2  ;;  %v2407_v16 = vsel %vm6632_vm11, %v2398_v62, %v2406_v6  ;;  %v2333_v21 = vrot.slane %v2331_v29, 5  ;;  %v2409_v34 = vshrl.u32 %v6522_v19, 16  ;;  %v5714_v62 = vld [vmem:[%s6492_s21 + $0x30] sm:$0xf]  ;;  %v6701_v6 = vld [vmem:[%s6492_s21 + $0x34] sm:$0xf] }
  0x74   : > { %v2323_v20 = vor.u32 %v2322_v8, %v2319_v63  ;;  %v5926_v32 = vcombine.low %v2397_v5, %v2407_v16  ;;  %v2336_v35 = vrot.slane %v2334_v11, 6  ;;  %v2412_v36 = vshll.u32 %v6522_v19, 16 }
  0x75   : > { %v2329_v33 = vrot.slane %v2327_v10, 4  ;;  %v2411_v39 = vrot.slane %v2409_v34, 5  ;;  %v2417_v41 = vrot.slane %v10195_v15, 5  ;;  %v2418_v42 = vrot.slane %v10196_v14, 6 }
  0x76   : > { %v2324_v38 = vrot.slane %v2323_v20, 4  ;;  %4152 = vrot.lane.b32.xlu0 %v5926_v32, %s6340_s11  ;;  %v2337_v43 = vor.u32 %v2336_v35, %v2333_v21  ;;  %v2414_v44 = vrot.slane %v2412_v36, 6  ;;  %v2423_v18 = vshrl.u32 %v6679_v25, 16  ;;  %v5701_v32 = vld [vmem:[%s6492_s21 + $0x60] sm:$0xc] }
  0x77   : > { %v2426_v47 = vshll.u32 %v6679_v25, 16  ;;  %v2419_v48 = vor.u32 %v2418_v42, %v2417_v41  ;;  %v5705_v49 = vrot.slane %v5697_v37, 10  ;;  %v2510_v50 = vrot.slane %v6528_v24, 6  ;;  %v5716_v37 = vld [vmem:[%s6492_s21 + $0x3c] sm:$0xf] }
  0x78   : > { %v2328_v19 = vsel %vm6632_vm11, %v2324_v38, %v2327_v10  ;;  %v2338_v53 = vsel %vm6632_vm11, %v2329_v33, %v2337_v43  ;;  %v2415_v54 = vor.u32 %v2414_v44, %v2411_v39  ;;  %v2425_v55 = vrot.slane %v2423_v18, 5  ;;  %v6719_v42 = vld [vmem:[%s6492_s21 + $0x40] sm:$0xf] }
  0x79   : > { %v2428_v56 = vrot.slane %v2426_v47, 6  ;;  %v5923_v63 = vcombine.low %v2328_v19, %v2338_v53  ;;  %v2421_v2 = vrot.slane %v2419_v48, 4  ;;  %v2511_v4 = vsel %vm6549_vm7, %v5705_v49, %v2510_v50  ;;  %v6723_v19 = vld [vmem:[%s6492_s21 + $0x60] sm:$0xf]  ;;  %v6731_v53 = vld [vmem:[%s6492_s21 + $0x64] sm:$0xf] }
  0x7a   : > { %v2512_v5 = vrot.slane %v2510_v50, 4  ;;  %v2416_v8 = vrot.slane %v2415_v54, 4  ;;  %v2513_v10 = vrot.slane %v6661_v51, 6  ;;  %v5708_v11 = vrot.slane %v5700_v52, 10 }
  0x7b   : > { %v2429_v29 = vor.u32 %v2428_v56, %v2425_v55  ;;  %4146 = vrot.lane.b32.xlu1 %v5923_v63, %s6340_s11  ;;  %v2531_v16 = vrot.slane %v6495_v1, 6  ;;  %v2534_v20 = vrot.slane %v6639_v31, 6  ;;  %v2586_v21 = vshrl.u32 %v5714_v62, 16  ;;  %v6737_v63 = vld [vmem:[%s6492_s21 + $0x38] sm:$0x1] }
  0x7c   : > { %v2589_v34 = vshll.u32 %v5714_v62, 16  ;;  %v2420_v33 = vsel %vm6632_vm11, %v2416_v8, %v2419_v48  ;;  %v2514_v51 = vsel %vm6549_vm7, %v2512_v5, %v2513_v10  ;;  %v5938_v36 = vcombine.low %v5714_v62, %v6701_v6  ;;  %v6742_v8 = vld [vmem:[%s6492_s21 + $0x6c] sm:$0xf] }
  0x7d   : > { %v2430_v35 = vsel %vm6632_vm11, %v2421_v2, %v2429_v29  ;;  %v5931_v39 = vcombine.low %v2511_v4, %v2514_v51  ;;  %v2532_v31 = vsel %vm6549_vm7, %v5708_v11, %v2531_v16  ;;  %v2533_v41 = vrot.slane %v2531_v16, 4 }
  0x7e   : > { %v5927_v38 = vcombine.low %v2420_v33, %v2430_v35  ;;  %v2588_v43 = vrot.slane %v2586_v21, 4  ;;  %v2591_v44 = vrot.slane %v2589_v34, 5  ;;  %v5709_v18 = vrot.slane %v5701_v32, 10 }
  0x7f   : > { %v2538_v47 = vrot.slane %v6513_v12, 6  ;;  %4186 = vrot.lane.b32.xlu1 %v5931_v39, %s6339_s10  ;;  %v2535_v48 = vsel %vm6549_vm7, %v2533_v41, %v2534_v20  ;;  %v2541_v49 = vrot.slane %v6679_v25, 6  ;;  %v2610_v50 = vshrl.u32 %v5716_v37, 16  ;;  %v6750_v20 = vld [vmem:[%s6492_s21 + $0x70] sm:$0xf] }
  0x80   : > { %4154 = vrot.lane.b32.xlu0 %v5927_v38, %s6340_s11  ;;  %v2613_v52 = vshll.u32 %v5716_v37, 16  ;;  %v5934_v54 = vcombine.low %v2532_v31, %v2535_v48  ;;  %v5939_v62 = vcombine.low %v5716_v37, %v6719_v42  ;;  %v2682_v5 = vshrl.u32 %v6723_v19, 16  ;;  %v6765_v41 = vld [vmem:[%s6492_s21 + $0x44] sm:$0x1]  ;;  %v6771_v48 = vld [vmem:[%s6492_s21 + $0x68] sm:$0x1] }
  0x81   : > { %v2539_v55 = vsel %vm6549_vm7, %v5709_v18, %v2538_v47  ;;  %v2540_v56 = vrot.slane %v2538_v47, 4  ;;  %v2612_v2 = vrot.slane %v2610_v50, 4  ;;  %v2685_v25 = vshll.u32 %v6723_v19, 16 }
  0x82   : > { %v2615_v4 = vrot.slane %v2613_v52, 5  ;;  %v5942_v10 = vcombine.low %v6723_v19, %v6731_v53  ;;  %v2592_v11 = vor.u32 %v2591_v44, %v2588_v43  ;;  %v2595_v16 = vshll.u32 %v6701_v6, 16 }
  0x83   : > { %v2542_v29 = vsel %vm6549_vm7, %v2540_v56, %v2541_v49  ;;  %4232 = vrot.lane.b32.xlu1 %v5938_v36, %s6341_s17  ;;  %v2684_v34 = vrot.slane %v2682_v5, 4  ;;  %v2687_v32 = vrot.slane %v2685_v25, 5  ;;  %v2599_v33 = vshrl.u32 %v6701_v6, 16 }
  0x84   : > { %4192 = vrot.lane.b32.xlu0 %v5934_v54, %s6339_s10  ;;  %v5935_v21 = vcombine.low %v2539_v55, %v2542_v29  ;;  %v2593_v35 = vrot.slane %v2592_v11, 4  ;;  %v2597_v51 = vrot.slane %v2595_v16, 5  ;;  %v2605_v37 = vshll.u32 %v6737_v63, 16  ;;  %v6785_v29 = vld [vmem:[%s6492_s21 + $0x30] sm:$0xe] }
  0x85   : > { %v2706_v38 = vshrl.u32 %v6742_v8, 16  ;;  %v2601_v39 = vrot.slane %v2599_v33, 4  ;;  %v2709_v31 = vshll.u32 %v6742_v8, 16  ;;  %v5943_v36 = vcombine.low %v6742_v8, %v6750_v20 }
  0x86   : > { %v2616_v43 = vor.u32 %v2615_v4, %v2612_v2  ;;  %v2598_v44 = vsel %vm6586_vm8, %v2593_v35, %v2597_v51  ;;  %v2607_v18 = vrot.slane %v2605_v37, 5  ;;  %v2619_v19 = vshll.u32 %v6719_v42, 16 }
  0x87   : > { %v2708_v47 = vrot.slane %v2706_v38, 4  ;;  %4234 = vrot.lane.b32.xlu1 %v5939_v62, %s6341_s17  ;;  %v2602_v49 = vor.u32 %v2601_v39, %v2597_v51  ;;  %v2711_v50 = vrot.slane %v2709_v31, 5  ;;  %v2623_v54 = vshrl.u32 %v6719_v42, 16 }
  0x88   : > { %4194 = vrot.lane.b32.xlu0 %v5935_v21, %s6339_s10  ;;  %v2617_v52 = vrot.slane %v2616_v43, 4  ;;  %v2621_v55 = vrot.slane %v2619_v19, 5  ;;  %v2629_v56 = vshll.u32 %v6765_v41, 16  ;;  %v2688_v2 = vor.u32 %v2687_v32, %v2684_v34 }
  0x89   : > { %v2691_v4 = vshll.u32 %v6731_v53, 16  ;;  %v2603_v5 = vrot.slane %v2602_v49, 4  ;;  %v2625_v25 = vrot.slane %v2623_v54, 4  ;;  %v2695_v8 = vshrl.u32 %v6731_v53, 16 }
  0x8a   : > { %v2701_v62 = vshll.u32 %v6771_v48, 16  ;;  %v2622_v11 = vsel %vm6586_vm8, %v2617_v52, %v2621_v55  ;;  %v2631_v21 = vrot.slane %v2629_v56, 5  ;;  %v2689_v35 = vrot.slane %v2688_v2, 4  ;;  %v6801_v52 = vld [vmem:[%s6492_s21 + $0x74] sm:$0x1] }
  0x8b   : > { %v2693_v34 = vrot.slane %v2691_v4, 5  ;;  %v2608_v32 = vsel %vm6586_vm8, %v2603_v5, %v2607_v18  ;;  %v2626_v51 = vor.u32 %v2625_v25, %v2621_v55  ;;  %v2697_v37 = vrot.slane %v2695_v8, 4 }
  0x8c   : > { %4240 = vrot.lane.b32.xlu0 %v5942_v10, %s6341_s17  ;;  %v2703_v38 = vrot.slane %v2701_v62, 5  ;;  %v5946_v39 = vcombine.low %v2598_v44, %v2608_v32  ;;  %v5746_v43 = vrot.slane %v6785_v29, 9  ;;  %v2811_v49 = vrot.slane %v6701_v6, 5  ;;  %v6810_v62 = vld [vmem:[%s6492_s21 + $0x3c] sm:$0xe] }
  0x8d   : > { %v2694_v31 = vsel %vm6586_vm8, %v2689_v35, %v2693_v34  ;;  %v2627_v10 = vrot.slane %v2626_v51, 4  ;;  %v2698_v56 = vor.u32 %v2697_v37, %v2693_v34  ;;  %v2814_v18 = vrot.slane %v6737_v63, 5 }
  0x8e   : > { %v2712_v55 = vor.u32 %v2711_v50, %v2708_v47  ;;  %4272 = vrot.lane.b32.xlu1 %v5946_v39, %s6342_s22  ;;  %v2812_v44 = vsel %vm6488_vm2, %v5746_v43, %v2811_v49  ;;  %v2813_v2 = vrot.slane %v2811_v49, 4  ;;  %v2715_v5 = vshll.u32 %v6750_v20, 16  ;;  %v6823_v39 = vld [vmem:[%s6492_s21 + $0x60] sm:$0xe] }
  0x8f   : > { %v2719_v25 = vshrl.u32 %v6750_v20, 16  ;;  %v2632_v63 = vsel %vm6586_vm8, %v2627_v10, %v2631_v21  ;;  %v2699_v47 = vrot.slane %v2698_v56, 4  ;;  %v2725_v35 = vshll.u32 %v6801_v52, 16 }
  0x90   : > { %4242 = vrot.lane.b32.xlu0 %v5943_v36, %s6341_s17  ;;  %v2713_v50 = vrot.slane %v2712_v55, 4  ;;  %v5947_v34 = vcombine.low %v2622_v11, %v2632_v63  ;;  %v2815_v32 = vsel %vm6488_vm2, %v2813_v2, %v2814_v18  ;;  %v2717_v51 = vrot.slane %v2715_v5, 5 }
  0x91   : > { %v2721_v37 = vrot.slane %v2719_v25, 4  ;;  %v2704_v36 = vsel %vm6586_vm8, %v2699_v47, %v2703_v38  ;;  %v5954_v21 = vcombine.low %v2812_v44, %v2815_v32  ;;  %v2727_v43 = vrot.slane %v2725_v35, 5 }
  0x92   : > { %v5747_v49 = vrot.slane %v6810_v62, 9  ;;  %4274 = vrot.lane.b32.xlu1 %v5947_v34, %s6342_s22  ;;  %v5950_v11 = vcombine.low %v2694_v31, %v2704_v36  ;;  %v2718_v10 = vsel %vm6586_vm8, %v2713_v50, %v2717_v51  ;;  %v2818_v18 = vrot.slane %v6719_v42, 5  ;;  %v6843_v34 = vld [vmem:[%s6492_s21 + $0x38] sm:$0x3] }
  0x93   : > { %v2722_v56 = vor.u32 %v2721_v37, %v2717_v51  ;;  %v2821_v55 = vrot.slane %v6765_v41, 5  ;;  %v5750_v2 = vrot.slane %v6823_v39, 9  ;;  %v2839_v38 = vrot.slane %v6731_v53, 5 }
  0x94   : > { %v2842_v44 = vrot.slane %v6771_v48, 5  ;;  %4280 = vrot.lane.b32.xlu0 %v5950_v11, %s6342_s22  ;;  %v2819_v31 = vsel %vm6488_vm2, %v5747_v49, %v2818_v18  ;;  %v2820_v47 = vrot.slane %v2818_v18, 4  ;;  %v2874_v50 = vshrl.u32 %v6785_v29, 16  ;;  %v6856_v11 = vld [vmem:[%s6492_s21 + $0x6c] sm:$0xe] }
  0x95   : > { %v2723_v63 = vrot.slane %v2722_v56, 4  ;;  %v2840_v35 = vsel %vm6488_vm2, %v5750_v2, %v2839_v38  ;;  %v2841_v41 = vrot.slane %v2839_v38, 4  ;;  %v2877_v32 = vshll.u32 %v6785_v29, 16 }
  0x96   : > { %v2882_v48 = vrot.slane %v2599_v33, 5  ;;  %4312 = vrot.lane.b32.xlu1 %v5954_v21, %s6343_s25  ;;  %v2822_v37 = vsel %vm6488_vm2, %v2820_v47, %v2821_v55  ;;  %v2876_v36 = vrot.slane %v2874_v50, 5  ;;  %v2883_v49 = vrot.slane %v2595_v16, 6  ;;  %v6868_v50 = vld [vmem:[%s6492_s21 + $0x44] sm:$0x3] }
  0x97   : > { %v2728_v51 = vsel %vm6586_vm8, %v2723_v63, %v2727_v43  ;;  %v5955_v29 = vcombine.low %v2819_v31, %v2822_v37  ;;  %v2843_v33 = vsel %vm6488_vm2, %v2841_v41, %v2842_v44  ;;  %v2879_v18 = vrot.slane %v2877_v32, 6 }
  0x98   : > { %v5951_v56 = vcombine.low %v2718_v10, %v2728_v51  ;;  %v5958_v21 = vcombine.low %v2840_v35, %v2843_v33  ;;  %v2884_v2 = vor.u32 %v2883_v49, %v2882_v48  ;;  %v2888_v43 = vshrl.u32 %v6843_v34, 16 }
  0x99   : > { %v2891_v38 = vshll.u32 %v6843_v34, 16  ;;  %v2880_v55 = vor.u32 %v2879_v18, %v2876_v36  ;;  %v5751_v16 = vrot.slane %v6856_v11, 9  ;;  %v2846_v63 = vrot.slane %v6750_v20, 5 }
  0x9a   : > { %4282 = vrot.lane.b32.xlu0 %v5951_v56, %s6342_s22  ;;  %v2849_v10 = vrot.slane %v6801_v52, 5  ;;  %4314 = vrot.lane.b32.xlu1 %v5955_v29, %s6343_s25  ;;  %v2886_v31 = vrot.slane %v2884_v2, 4  ;;  %v2890_v44 = vrot.slane %v2888_v43, 5  ;;  %v2897_v35 = vshrl.u32 %v6810_v62, 16 }
  0x9b   : > { %v2893_v47 = vrot.slane %v2891_v38, 6  ;;  %v2881_v41 = vrot.slane %v2880_v55, 4  ;;  %v2847_v32 = vsel %vm6488_vm2, %v5751_v16, %v2846_v63  ;;  %v2848_v48 = vrot.slane %v2846_v63, 4  ;;  %v6888_v55 = vld [vmem:[%s6492_s21 + $0x68] sm:$0x3] }
  0x9c   : > { %v2900_v51 = vshll.u32 %v6810_v62, 16  ;;  %v2899_v36 = vrot.slane %v2897_v35, 5  ;;  %v2905_v52 = vrot.slane %v2623_v54, 5  ;;  %v2906_v49 = vrot.slane %v2619_v19, 6  ;;  %v5762_v63 = vld [vmem:[%s6492_s21 + $0x30] sm:$0xc] }
  0x9d   : > { %v2894_v37 = vor.u32 %v2893_v47, %v2890_v44  ;;  %v2885_v56 = vsel %vm6632_vm11, %v2881_v41, %v2884_v2  ;;  %v2850_v29 = vsel %vm6488_vm2, %v2848_v48, %v2849_v10  ;;  %v2911_v62 = vshrl.u32 %v6868_v50, 16 }
  0x9e   : > { %4320 = vrot.lane.b32.xlu0 %v5958_v21, %s6343_s25  ;;  %v2902_v33 = vrot.slane %v2900_v51, 6  ;;  %v5959_v43 = vcombine.low %v2847_v32, %v2850_v29  ;;  %v2907_v54 = vor.u32 %v2906_v49, %v2905_v52  ;;  %v2914_v38 = vshll.u32 %v6868_v50, 16 }
  0x9f   : > { %v2895_v18 = vsel %vm6632_vm11, %v2886_v31, %v2894_v37  ;;  %v2913_v16 = vrot.slane %v2911_v62, 5  ;;  %v2966_v2 = vshrl.u32 %v6823_v39, 16  ;;  %v2969_v47 = vshll.u32 %v6823_v39, 16 }
  0xa0   : > { %v5962_v19 = vcombine.low %v2885_v56, %v2895_v18  ;;  %v2903_v21 = vor.u32 %v2902_v33, %v2899_v36  ;;  %v2909_v44 = vrot.slane %v2907_v54, 4  ;;  %v2916_v10 = vrot.slane %v2914_v38, 6  ;;  %v6908_v18 = vld [vmem:[%s6492_s21 + $0x74] sm:$0x3] }
  0xa1   : > { %v2974_v35 = vrot.slane %v2695_v8, 5  ;;  %v2968_v41 = vrot.slane %v2966_v2, 5  ;;  %v2975_v32 = vrot.slane %v2691_v4, 6  ;;  %v2980_v48 = vshrl.u32 %v6888_v55, 16 }
  0xa2   : > { %4352 = vrot.lane.b32.xlu1 %v5962_v19, %s6344_s26  ;;  %4322 = vrot.lane.b32.xlu0 %v5959_v43, %s6343_s25  ;;  %v2904_v31 = vrot.slane %v2903_v21, 4  ;;  %v2917_v51 = vor.u32 %v2916_v10, %v2913_v16  ;;  %v2971_v37 = vrot.slane %v2969_v47, 6  ;;  %v2983_v39 = vshll.u32 %v6888_v55, 16 }
  0xa3   : > { %v5770_v36 = vrot.slane %v5762_v63, 10  ;;  %v2976_v52 = vor.u32 %v2975_v32, %v2974_v35  ;;  %v2982_v49 = vrot.slane %v2980_v48, 5  ;;  %v3083_v56 = vrot.slane %v6701_v6, 6  ;;  %v6915_v63 = vld [vmem:[%s6492_s21 + $0x40] sm:$0xf] }
  0xa4   : > { %v2908_v8 = vsel %vm6632_vm11, %v2904_v31, %v2907_v54  ;;  %v2918_v29 = vsel %vm6632_vm11, %v2909_v44, %v2917_v51  ;;  %v2972_v33 = vor.u32 %v2971_v37, %v2968_v41  ;;  %v2985_v4 = vrot.slane %v2983_v39, 6  ;;  %10274 = vst [vmem:[#allocation10_spill] sm:$0xff] %v6915_v63  ;;  %v6926_v35 = vld [vmem:[%s6492_s21 + $0x3c] sm:$0xe]  ;;  %v6933_v48 = vld [vmem:[%s6492_s21 + $0x44] sm:$0x1] }
  0xa5   : > { %v3086_v62 = vrot.slane %v6843_v34, 6  ;;  %v5963_v43 = vcombine.low %v2908_v8, %v2918_v29  ;;  %v2978_v38 = vrot.slane %v2976_v52, 4  ;;  %v3084_v54 = vsel %vm6549_vm7, %v5770_v36, %v3083_v56  ;;  %10275 = vst [vmem:[#allocation11_spill] sm:$0xff] %v6933_v48  ;;  %v5766_v51 = vld [vmem:[%s6492_s21 + $0x60] sm:$0xc] }
  0xa6   : > { %v3085_v19 = vrot.slane %v3083_v56, 4  ;;  %v2973_v21 = vrot.slane %v2972_v33, 4  ;;  %v2986_v6 = vor.u32 %v2985_v4, %v2982_v49  ;;  %v2989_v16 = vshrl.u32 %v6856_v11, 16  ;;  %v5763_v56 = vld [vmem:[%s6492_s21 + $0x3c] sm:$0xc] }
  0xa7   : > { %v2992_v2 = vshll.u32 %v6856_v11, 16  ;;  %4354 = vrot.lane.b32.xlu1 %v5963_v43, %s6344_s26  ;;  %v2997_v44 = vrot.slane %v2719_v25, 5  ;;  %v2998_v10 = vrot.slane %v2715_v5, 6  ;;  %v3003_v47 = vshrl.u32 %v6908_v18, 16 }
  0xa8   : > { %v3087_v34 = vsel %vm6549_vm7, %v3085_v19, %v3086_v62  ;;  %v2977_v11 = vsel %vm6632_vm11, %v2973_v21, %v2976_v52  ;;  %v2987_v31 = vsel %vm6632_vm11, %v2978_v38, %v2986_v6  ;;  %v2991_v32 = vrot.slane %v2989_v16, 5 }
  0xa9   : > { %v5970_v41 = vcombine.low %v3084_v54, %v3087_v34  ;;  %v5966_v25 = vcombine.low %v2977_v11, %v2987_v31  ;;  %v2994_v37 = vrot.slane %v2992_v2, 6  ;;  %v2999_v39 = vor.u32 %v2998_v10, %v2997_v44  ;;  %v6951_v10 = vld [vmem:[%s6492_s21 + $0x70] sm:$0xf]  ;;  %v6961_v31 = vld [vmem:[%s6492_s21 + $0x74] sm:$0x1] }
  0xaa   : > { %v3005_v5 = vrot.slane %v3003_v47, 5  ;;  %v3006_v36 = vshll.u32 %v6908_v18, 16  ;;  %v5682_v8 = vrot.slane %v6926_v35, 9  ;;  %v2245_v49 = vrot.slane %v6915_v63, 5  ;;  %10276 = vst [vmem:[#allocation12_spill] sm:$0xff] %v6951_v10  ;;  %10277 = vst [vmem:[#allocation13_spill] sm:$0xff] %v6961_v31 }
  0xab   : > { %4360 = vrot.lane.b32.xlu0 %v5966_v25, %s6344_s26  ;;  %4392 = vrot.lane.b32.xlu1 %v5970_v41, %s6345_s27  ;;  %v2995_v52 = vor.u32 %v2994_v37, %v2991_v32  ;;  %v3001_v29 = vrot.slane %v2999_v39, 4  ;;  %v2248_v33 = vrot.slane %v6933_v48, 5  ;;  %v5774_v4 = vrot.slane %v5766_v51, 10  ;;  %v6954_v47 = vld [vmem:[%s6492_s21 + $0x6c] sm:$0xe] }
  0xac   : > { %v3008_v62 = vrot.slane %v3006_v36, 6  ;;  %v2246_v43 = vsel %vm6488_vm2, %v5682_v8, %v2245_v49  ;;  %v2247_v38 = vrot.slane %v2245_v49, 4  ;;  %v3111_v54 = vrot.slane %v6731_v53, 6  ;;  %v6964_v41 = vld [vmem:[%s6492_s21 + $0x48] sm:$0xe] }
  0xad   : > { %v2996_v19 = vrot.slane %v2995_v52, 4  ;;  %v3114_v21 = vrot.slane %v6888_v55, 6  ;;  %v5771_v6 = vrot.slane %v5763_v56, 10  ;;  %v3090_v16 = vrot.slane %v6719_v42, 6  ;;  %v5667_v49 = vld [vmem:[%s6492_s21 + $0x50] sm:$0x1] }
  0xae   : > { %v3009_v2 = vor.u32 %v3008_v62, %v3005_v5  ;;  %v2249_v34 = vsel %vm6488_vm2, %v2247_v38, %v2248_v33  ;;  %v3113_v44 = vrot.slane %v3111_v54, 4  ;;  %v3112_v55 = vsel %vm6549_vm7, %v5774_v4, %v3111_v54  ;;  %v5767_v56 = vld [vmem:[%s6492_s21 + $0x6c] sm:$0xc] }
  0xaf   : > { %v3000_v53 = vsel %vm6632_vm11, %v2996_v19, %v2999_v39  ;;  %v5916_v11 = vcombine.low %v2246_v43, %v2249_v34  ;;  %v3092_v42 = vrot.slane %v3090_v16, 4  ;;  %v3091_v25 = vsel %vm6549_vm7, %v5771_v6, %v3090_v16  ;;  %v6974_v39 = vld [vmem:[%s6492_s21 + $0x4c] sm:$0xf] }
  0xb0   : > { %v3010_v32 = vsel %vm6632_vm11, %v3001_v29, %v3009_v2  ;;  %v3115_v51 = vsel %vm6549_vm7, %v3113_v44, %v3114_v21  ;;  %v3093_v37 = vrot.slane %v6868_v50, 6  ;;  %10278 = vst [vmem:[#allocation14_spill] sm:$0xff] %v6974_v39  ;;  %v5686_v36 = vrot.slane %v6954_v47, 9 }
  0xb1   : > { %v5967_v5 = vcombine.low %v3000_v53, %v3010_v32  ;;  %4108 = vrot.lane.b32.xlu1 %v5916_v11, %s6338_s9  ;;  %v2273_v8 = vrot.slane %v6951_v10, 5  ;;  %v5974_v52 = vcombine.low %v3112_v55, %v3115_v51  ;;  %v2276_v33 = vrot.slane %v6961_v31, 5  ;;  %v6998_v53 = vld [vmem:[%s6492_s21 + $0x44] sm:$0x3] }
  0xb2   : > { %v3094_v29 = vsel %vm6549_vm7, %v3092_v42, %v3093_v37  ;;  %v5683_v50 = vrot.slane %v6964_v41, 9  ;;  %v2252_v38 = vrot.slane %v6974_v39, 5  ;;  %v2255_v54 = vrot.slane %v5667_v49, 5  ;;  %v7011_v37 = vld [vmem:[%s6492_s21 + $0x78] sm:$0xe] }
  0xb3   : > { %4362 = vrot.lane.b32.xlu0 %v5967_v5, %s6344_s26  ;;  %v5971_v4 = vcombine.low %v3091_v25, %v3094_v29  ;;  %v2274_v62 = vsel %vm6488_vm2, %v5686_v36, %v2273_v8  ;;  %v2275_v43 = vrot.slane %v2273_v8, 4  ;;  %v5775_v19 = vrot.slane %v5767_v56, 10  ;;  %v7019_v56 = vld [vmem:[%s6492_s21 + $0x7c] sm:$0xf] }
  0xb4   : > { %v3118_v21 = vrot.slane %v6750_v20, 6  ;;  %v3121_v6 = vrot.slane %v6908_v18, 6  ;;  %v2253_v2 = vsel %vm6488_vm2, %v5683_v50, %v2252_v38  ;;  %v2254_v34 = vrot.slane %v2252_v38, 4  ;;  %10279 = vst [vmem:[#allocation15_spill] sm:$0xff] %v7019_v56 }
  0xb5   : > { %4394 = vrot.lane.b32.xlu1 %v5971_v4, %s6345_s27  ;;  %v2277_v16 = vsel %vm6488_vm2, %v2275_v43, %v2276_v33  ;;  %v10188_v44 = vshll.u32 %v6915_v63, 16  ;;  %v10187_v55 = vshrl.u32 %v6915_v63, 16  ;;  %v2340_v32 = vshrl.u32 %v6926_v35, 16 }
  0xb6   : > { %v5920_v11 = vcombine.low %v2274_v62, %v2277_v16  ;;  %v3119_v20 = vsel %vm6549_vm7, %v5775_v19, %v3118_v21  ;;  %v3120_v18 = vrot.slane %v3118_v21, 4  ;;  %v2256_v42 = vsel %vm6488_vm2, %v2254_v34, %v2255_v54  ;;  %v7030_v34 = vld [vmem:[%s6492_s21 + $0x50] sm:$0x3] }
  0xb7   : > { %4400 = vrot.lane.b32.xlu0 %v5974_v52, %s6345_s27  ;;  %v2343_v51 = vshll.u32 %v6926_v35, 16  ;;  %v2349_v25 = vrot.slane %v10188_v44, 6  ;;  %v5917_v5 = vcombine.low %v2253_v2, %v2256_v42  ;;  %v2348_v8 = vrot.slane %v10187_v55, 5  ;;  %v5671_v52 = vld [vmem:[%s6492_s21 + $0x80] sm:$0x1] }
  0xb8   : > { %v3122_v36 = vsel %vm6549_vm7, %v3120_v18, %v3121_v6  ;;  %v2354_v49 = vshrl.u32 %v6998_v53, 16  ;;  %v2342_v29 = vrot.slane %v2340_v32, 5  ;;  %v2357_v33 = vshll.u32 %v6998_v53, 16 }
  0xb9   : > { %v2345_v35 = vrot.slane %v2343_v51, 6  ;;  %4110 = vrot.lane.b32.xlu1 %v5917_v5, %s6338_s9  ;;  %v5975_v50 = vcombine.low %v3119_v20, %v3122_v36  ;;  %v2350_v4 = vor.u32 %v2349_v25, %v2348_v8  ;;  %v5687_v43 = vrot.slane %v7011_v37, 9 }
  0xba   : > { %v2356_v62 = vrot.slane %v2354_v49, 5  ;;  %v2359_v54 = vrot.slane %v2357_v33, 6  ;;  %v2280_v19 = vrot.slane %v7019_v56, 5  ;;  %v2283_v21 = vrot.slane %v5671_v52, 5 }
  0xbb   : > { %4116 = vrot.lane.b32.xlu0 %v5920_v11, %s6338_s9  ;;  %v2346_v38 = vor.u32 %v2345_v35, %v2342_v29  ;;  %v2352_v6 = vrot.slane %v2350_v4, 4  ;;  %v10184_v16 = vshll.u32 %v6974_v39, 16  ;;  %v10183_v2 = vshrl.u32 %v6974_v39, 16 }
  0xbc   : > { %v2363_v20 = vshrl.u32 %v6964_v41, 16  ;;  %v2360_v42 = vor.u32 %v2359_v54, %v2356_v62  ;;  %v2281_v11 = vsel %vm6488_vm2, %v5687_v43, %v2280_v19  ;;  %v2282_v32 = vrot.slane %v2280_v19, 4  ;;  %v7049_v43 = vld [vmem:[%s6492_s21 + $0x74] sm:$0x3] }
  0xbd   : > { %v2347_v18 = vrot.slane %v2346_v38, 4  ;;  %v2366_v25 = vshll.u32 %v6964_v41, 16  ;;  %v2371_v5 = vrot.slane %v10183_v2, 5  ;;  %v2372_v36 = vrot.slane %v10184_v16, 6 }
  0xbe   : > { %v2365_v51 = vrot.slane %v2363_v20, 5  ;;  %v2361_v49 = vsel %vm6632_vm11, %v2352_v6, %v2360_v42  ;;  %v2284_v52 = vsel %vm6488_vm2, %v2282_v32, %v2283_v21  ;;  %v2377_v41 = vshrl.u32 %v7030_v34, 16 }
  0xbf   : > { %4402 = vrot.lane.b32.xlu0 %v5975_v50, %s6345_s27  ;;  %v2351_v8 = vsel %vm6632_vm11, %v2347_v18, %v2350_v4  ;;  %v5921_v35 = vcombine.low %v2281_v11, %v2284_v52  ;;  %v2368_v33 = vrot.slane %v2366_v25, 6  ;;  %v2373_v62 = vor.u32 %v2372_v36, %v2371_v5  ;;  %v5698_v18 = vld [vmem:[%s6492_s21 + $0x3c] sm:$0xc] }
  0xc0   : > { %v5924_v29 = vcombine.low %v2351_v8, %v2361_v49  ;;  %v2379_v38 = vrot.slane %v2377_v41, 5  ;;  %v2380_v50 = vshll.u32 %v7030_v34, 16  ;;  %v10186_v4 = vshll.u32 %v6951_v10, 16 }
  0xc1   : > { %v10185_v54 = vshrl.u32 %v6951_v10, 16  ;;  %v2369_v19 = vor.u32 %v2368_v33, %v2365_v51  ;;  %v2375_v21 = vrot.slane %v2373_v62, 4  ;;  %v2432_v6 = vshrl.u32 %v6954_v47, 16 }
  0xc2   : > { %4148 = vrot.lane.b32.xlu1 %v5924_v29, %s6340_s11  ;;  %v2435_v20 = vshll.u32 %v6954_v47, 16  ;;  %v2382_v42 = vrot.slane %v2380_v50, 6  ;;  %v2441_v32 = vrot.slane %v10186_v4, 6  ;;  %v2446_v25 = vshrl.u32 %v7049_v43, 16 }
  0xc3   : > { %4118 = vrot.lane.b32.xlu0 %v5921_v35, %s6338_s9  ;;  %v2440_v11 = vrot.slane %v10185_v54, 5  ;;  %v2370_v5 = vrot.slane %v2369_v19, 4  ;;  %v2434_v51 = vrot.slane %v2432_v6, 5  ;;  %v2449_v8 = vshll.u32 %v7049_v43, 16 }
  0xc4   : > { %v2437_v36 = vrot.slane %v2435_v20, 6  ;;  %v2383_v49 = vor.u32 %v2382_v42, %v2379_v38  ;;  %v2448_v52 = vrot.slane %v2446_v25, 5  ;;  %v5706_v41 = vrot.slane %v5698_v18, 10  ;;  %v7073_v38 = vld [vmem:[%s6492_s21 + $0x80] sm:$0x3] }
  0xc5   : > { %v2442_v47 = vor.u32 %v2441_v32, %v2440_v11  ;;  %v2374_v29 = vsel %vm6632_vm11, %v2370_v5, %v2373_v62  ;;  %v2451_v33 = vrot.slane %v2449_v8, 6  ;;  %v2517_v50 = vrot.slane %v6915_v63, 6  ;;  %v5699_v8 = vld [vmem:[%s6492_s21 + $0x48] sm:$0xc]  ;;  %v7391_v63 = vld [vmem:[%s6492_s21 + $0x8c] sm:$0x3] }
  0xc6   : > { %v2438_v35 = vor.u32 %v2437_v36, %v2434_v51  ;;  %v2384_v23 = vsel %vm6632_vm11, %v2375_v21, %v2383_v49  ;;  %v2520_v6 = vrot.slane %v6998_v53, 6  ;;  %v10182_v20 = vshll.u32 %v7019_v56, 16 }
  0xc7   : > { %v2444_v19 = vrot.slane %v2442_v47, 4  ;;  %v5925_v42 = vcombine.low %v2374_v29, %v2384_v23  ;;  %v2452_v11 = vor.u32 %v2451_v33, %v2448_v52  ;;  %v2518_v62 = vsel %vm6549_vm7, %v5706_v41, %v2517_v50  ;;  %v5702_v29 = vld [vmem:[%s6492_s21 + $0x6c] sm:$0xc] }
  0xc8   : > { %v2439_v18 = vrot.slane %v2438_v35, 4  ;;  %v2519_v32 = vrot.slane %v2517_v50, 4  ;;  %v10181_v25 = vshrl.u32 %v7019_v56, 16  ;;  %v2455_v21 = vshrl.u32 %v7011_v37, 16 }
  0xc9   : > { %v2458_v5 = vshll.u32 %v7011_v37, 16  ;;  %4150 = vrot.lane.b32.xlu1 %v5925_v42, %s6340_s11  ;;  %v2453_v23 = vsel %vm6632_vm11, %v2444_v19, %v2452_v11  ;;  %v2464_v51 = vrot.slane %v10182_v20, 6  ;;  %v2469_v36 = vshrl.u32 %v7073_v38, 16  ;;  %v7198_v3 = vpop.permute.xlu0 %4112 }
  0xca   : > { %v2443_v53 = vsel %vm6632_vm11, %v2439_v18, %v2442_v47  ;;  %v2521_v52 = vsel %vm6549_vm7, %v2519_v32, %v2520_v6  ;;  %v2457_v41 = vrot.slane %v2455_v21, 5  ;;  %v2463_v47 = vrot.slane %v10181_v25, 5  ;;  %v7147_v25 = vld [vmem:[%s6492_s21 + $0x88] sm:$0xf] }
  0xcb   : > { %v5928_v49 = vcombine.low %v2443_v53, %v2453_v23  ;;  %v2460_v37 = vrot.slane %v2458_v5, 6  ;;  %v5932_v35 = vcombine.low %v2518_v62, %v2521_v52  ;;  %v2471_v33 = vrot.slane %v2469_v36, 5  ;;  %v5718_v5 = vld [vmem:[%s6492_s21 + $0x48] sm:$0xf] }
  0xcc   : > { %v2472_v50 = vshll.u32 %v7073_v38, 16  ;;  %v5707_v42 = vrot.slane %v5699_v8, 10  ;;  %v2524_v18 = vrot.slane %v6974_v39, 6  ;;  %v2527_v6 = vrot.slane %v7030_v34, 6 }
  0xcd   : > { %4156 = vrot.lane.b32.xlu0 %v5928_v49, %s6340_s11  ;;  %v2461_v19 = vor.u32 %v2460_v37, %v2457_v41  ;;  %4188 = vrot.lane.b32.xlu1 %v5932_v35, %s6339_s10  ;;  %v2465_v11 = vor.u32 %v2464_v51, %v2463_v47  ;;  %v5710_v62 = vrot.slane %v5702_v29, 10  ;;  %v2545_v21 = vrot.slane %v6951_v10, 6  ;;  %v7105_v49 = vld [vmem:[%s6492_s21 + $0x4c] sm:$0xf] }
  0xce   : > { %v2474_v32 = vrot.slane %v2472_v50, 6  ;;  %v2525_v23 = vsel %vm6549_vm7, %v5707_v42, %v2524_v18  ;;  %v2526_v36 = vrot.slane %v2524_v18, 4  ;;  %v2548_v8 = vrot.slane %v7049_v43, 6  ;;  %v5703_v43 = vld [vmem:[%s6492_s21 + $0x78] sm:$0xc] }
  0xcf   : > { %v2462_v53 = vrot.slane %v2461_v19, 4  ;;  %v2467_v34 = vrot.slane %v2465_v11, 4  ;;  %v2546_v52 = vsel %vm6549_vm7, %v5710_v62, %v2545_v21  ;;  %v2547_v41 = vrot.slane %v2545_v21, 4  ;;  %v5720_v50 = vld [vmem:[%s6492_s21 + $0x54] sm:$0xf] }
  0xd0   : > { %v2475_v51 = vor.u32 %v2474_v32, %v2471_v33  ;;  %v2528_v29 = vsel %vm6549_vm7, %v2526_v36, %v2527_v6  ;;  %v2634_v35 = vshrl.u32 %v5718_v5, 16  ;;  %v2637_v47 = vshll.u32 %v5718_v5, 16  ;;  %v7121_v32 = vld [vmem:[%s6492_s21 + $0x58] sm:$0xf]  ;;  %v7127_v36 = vld [vmem:[%s6492_s21 + $0x7c] sm:$0xf] }
  0xd1   : > { %v2466_v37 = vsel %vm6632_vm11, %v2462_v53, %v2465_v11  ;;  %v5933_v42 = vcombine.low %v2525_v23, %v2528_v29  ;;  %v2549_v33 = vsel %vm6549_vm7, %v2547_v41, %v2548_v8  ;;  %v5940_v18 = vcombine.low %v5718_v5, %v7105_v49  ;;  %v7124_v11 = vld [vmem:[%s6492_s21 + $0x78] sm:$0xf]  ;;  %v7137_v29 = vld [vmem:[%s6492_s21 + $0x50] sm:$0x1] }
  0xd2   : > { %v2476_v19 = vsel %vm6632_vm11, %v2467_v34, %v2475_v51  ;;  %v5936_v6 = vcombine.low %v2546_v52, %v2549_v33  ;;  %v2636_v21 = vrot.slane %v2634_v35, 4  ;;  %v2639_v53 = vrot.slane %v2637_v47, 5 }
  0xd3   : > { %v5929_v62 = vcombine.low %v2466_v37, %v2476_v19  ;;  %4190 = vrot.lane.b32.xlu1 %v5933_v42, %s6339_s10  ;;  %v5711_v23 = vrot.slane %v5703_v43, 10  ;;  %v2552_v34 = vrot.slane %v7019_v56, 6  ;;  %v2555_v8 = vrot.slane %v7073_v38, 6  ;;  %v7144_v19 = vld [vmem:[%s6492_s21 + $0x84] sm:$0xf] }
  0xd4   : > { %v2658_v5 = vshrl.u32 %v5720_v50, 16  ;;  %v2661_v51 = vshll.u32 %v5720_v50, 16  ;;  %v5941_v41 = vcombine.low %v5720_v50, %v7121_v32  ;;  %v2730_v52 = vshrl.u32 %v7124_v11, 16 }
  0xd5   : > { %4158 = vrot.lane.b32.xlu0 %v5929_v62, %s6340_s11  ;;  %v2733_v37 = vshll.u32 %v7124_v11, 16  ;;  %v2553_v35 = vsel %vm6549_vm7, %v5711_v23, %v2552_v34  ;;  %v2554_v47 = vrot.slane %v2552_v34, 4  ;;  %v5944_v38 = vcombine.low %v7124_v11, %v7127_v36 }
  0xd6   : > { %v2660_v43 = vrot.slane %v2658_v5, 4  ;;  %v2663_v42 = vrot.slane %v2661_v51, 5  ;;  %v2732_v33 = vrot.slane %v2730_v52, 4  ;;  %v2640_v62 = vor.u32 %v2639_v53, %v2636_v21  ;;  %v7159_v53 = vld [vmem:[%s6492_s21 + $0x5c] sm:$0x1] }
  0xd7   : > { %v2735_v50 = vrot.slane %v2733_v37, 5  ;;  %4236 = vrot.lane.b32.xlu1 %v5940_v18, %s6341_s17  ;;  %v2556_v20 = vsel %vm6549_vm7, %v2554_v47, %v2555_v8  ;;  %v2643_v23 = vshll.u32 %v7105_v49, 16  ;;  %v2647_v34 = vshrl.u32 %v7105_v49, 16 }
  0xd8   : > { %v2653_v11 = vshll.u32 %v7137_v29, 16  ;;  %v5937_v5 = vcombine.low %v2553_v35, %v2556_v20  ;;  %v2641_v51 = vrot.slane %v2640_v62, 4  ;;  %v2754_v52 = vshrl.u32 %v7144_v19, 16 }
  0xd9   : > { %4196 = vrot.lane.b32.xlu0 %v5936_v6, %s6339_s10  ;;  %v2757_v21 = vshll.u32 %v7144_v19, 16  ;;  %v2645_v18 = vrot.slane %v2643_v23, 5  ;;  %v2649_v8 = vrot.slane %v2647_v34, 4  ;;  %v5945_v47 = vcombine.low %v7144_v19, %v7147_v25 }
  0xda   : > { %v2655_v37 = vrot.slane %v2653_v11, 5  ;;  %v2756_v20 = vrot.slane %v2754_v52, 4  ;;  %v2664_v35 = vor.u32 %v2663_v42, %v2660_v43  ;;  %v2667_v62 = vshll.u32 %v7121_v32, 16  ;;  %v7174_v11 = vld [vmem:[%s6492_s21 + $0x80] sm:$0x1] }
  0xdb   : > { %v2759_v6 = vrot.slane %v2757_v21, 5  ;;  %4238 = vrot.lane.b32.xlu1 %v5941_v41, %s6341_s17  ;;  %v2646_v2 = vsel %vm6586_vm8, %v2641_v51, %v2645_v18  ;;  %v2650_v16 = vor.u32 %v2649_v8, %v2645_v18  ;;  %v2671_v54 = vshrl.u32 %v7121_v32, 16  ;;  %v7181_v41 = vld [vmem:[%s6492_s21 + $0x48] sm:$0xe]  ;;  %v7183_v21 = vpop.permute.xlu1 %4104 }
  0xdc   : > { %v2677_v4 = vshll.u32 %v7159_v53, 16  ;;  %v2665_v19 = vrot.slane %v2664_v35, 4  ;;  %v2669_v43 = vrot.slane %v2667_v62, 5  ;;  %v2736_v42 = vor.u32 %v2735_v50, %v2732_v33 }
  0xdd   : > { %4198 = vrot.lane.b32.xlu0 %v5937_v5, %s6339_s10  ;;  %v10200_v52 = vshll.u32 %v7127_v36, 16  ;;  %v2651_v51 = vrot.slane %v2650_v16, 4  ;;  %v2673_v18 = vrot.slane %v2671_v54, 4  ;;  %v10201_v55 = vshrl.u32 %v7127_v36, 16 }
  0xde   : > { %v2679_v8 = vrot.slane %v2677_v4, 5  ;;  %v2670_v5 = vsel %vm6586_vm8, %v2665_v19, %v2669_v43  ;;  %v2737_v35 = vrot.slane %v2736_v42, 4  ;;  %v2749_v50 = vshll.u32 %v7174_v11, 16 }
  0xdf   : > { %v2741_v33 = vrot.slane %v10200_v52, 5  ;;  %v2656_v44 = vsel %vm6586_vm8, %v2651_v51, %v2655_v37  ;;  %v2674_v16 = vor.u32 %v2673_v18, %v2669_v43  ;;  %v2745_v26 = vrot.slane %v10201_v55, 4  ;;  %v7216_v60 = vpop.permute.xlu1 %4106  ;;  %v7356_v55 = vld [vmem:[%s6492_s21 + $0x80] sm:$0x3] }
  0xe0   : > { %v5748_v4 = vrot.slane %v7181_v41, 9  ;;  %v5948_v19 = vcombine.low %v2646_v2, %v2656_v44  ;;  %v2751_v9 = vrot.slane %v2749_v50, 5  ;;  %v2825_v45 = vrot.slane %v7105_v49, 5  ;;  %v7214_v50 = vld [vmem:[%s6492_s21 + $0x54] sm:$0xe] }
  0xe1   : > { %4244 = vrot.lane.b32.xlu0 %v5944_v38, %s6341_s17  ;;  %v2742_v42 = vsel %vm6586_vm8, %v2737_v35, %v2741_v33  ;;  %v2675_v37 = vrot.slane %v2674_v16, 4  ;;  %v2746_v43 = vor.u32 %v2745_v26, %v2741_v33  ;;  %v2828_v51 = vrot.slane %v7137_v29, 5 }
  0xe2   : > { %v2760_v18 = vor.u32 %v2759_v6, %v2756_v20  ;;  %4276 = vrot.lane.b32.xlu1 %v5948_v19, %s6342_s22  ;;  %v2826_v38 = vsel %vm6488_vm2, %v5748_v4, %v2825_v45  ;;  %v2827_v44 = vrot.slane %v2825_v45, 4  ;;  %v10197_v2 = vshll.u32 %v7147_v25, 16  ;;  %v7229_v19 = vld [vmem:[%s6492_s21 + $0x78] sm:$0xe] }
  0xe3   : > { %v10198_v35 = vshrl.u32 %v7147_v25, 16  ;;  %v2680_v26 = vsel %vm6586_vm8, %v2675_v37, %v2679_v8  ;;  %v2747_v29 = vrot.slane %v2746_v43, 4  ;;  %v2773_v6 = vshll.u32 %v7205_v59, 16 }
  0xe4   : > { %v2761_v20 = vrot.slane %v2760_v18, 4  ;;  %v5949_v33 = vcombine.low %v2670_v5, %v2680_v26  ;;  %v2829_v45 = vsel %vm6488_vm2, %v2827_v44, %v2828_v51  ;;  %v2765_v16 = vrot.slane %v10197_v2, 5  ;;  %v7234_v18 = vpop.permute.xlu0 %4114 }
  0xe5   : > { %4246 = vrot.lane.b32.xlu0 %v5945_v47, %s6341_s17  ;;  %v2769_v4 = vrot.slane %v10198_v35, 4  ;;  %v2752_v8 = vsel %vm6586_vm8, %v2747_v29, %v2751_v9  ;;  %v5956_v37 = vcombine.low %v2826_v38, %v2829_v45  ;;  %v5749_v43 = vrot.slane %v7214_v50, 9 }
  0xe6   : > { %4278 = vrot.lane.b32.xlu1 %v5949_v33, %s6342_s22  ;;  %v5952_v47 = vcombine.low %v2742_v42, %v2752_v8  ;;  %v2775_v51 = vrot.slane %v2773_v6, 5  ;;  %v2832_v44 = vrot.slane %v7121_v32, 5  ;;  %v2835_v26 = vrot.slane %v7159_v53, 5  ;;  %v7247_v33 = vpop.permute.xlu1 %4184 }
  0xe7   : > { %v2770_v5 = vor.u32 %v2769_v4, %v2765_v16  ;;  %v5752_v15 = vrot.slane %v7229_v19, 9  ;;  %v2853_v14 = vrot.slane %v7127_v36, 5  ;;  %v2856_v9 = vrot.slane %v7174_v11, 5  ;;  %10280 = vst [vmem:[#allocation16_spill] sm:$0xff] %v7247_v33 }
  0xe8   : > { %v2766_v38 = vsel %vm6586_vm8, %v2761_v20, %v2765_v16  ;;  %v2833_v42 = vsel %vm6488_vm2, %v5749_v43, %v2832_v44  ;;  %v2834_v6 = vrot.slane %v2832_v44, 4  ;;  %v7258_v43 = vpop.permute.xlu0 %3193  ;;  %v2928_v44 = vrot.slane %v2647_v34, 5 }
  0xe9   : > { %4284 = vrot.lane.b32.xlu0 %v5952_v47, %s6342_s22  ;;  %v2771_v29 = vrot.slane %v2770_v5, 4  ;;  %v2855_v53 = vrot.slane %v2853_v14, 4  ;;  %v2854_v20 = vsel %vm6488_vm2, %v5752_v15, %v2853_v14  ;;  %v2920_v47 = vshrl.u32 %v7181_v41, 16  ;;  %v7264_v5 = vld [vmem:[%s6492_s21 + $0x50] sm:$0x3] }
  0xea   : > { %4316 = vrot.lane.b32.xlu1 %v5956_v37, %s6343_s25  ;;  %v2836_v11 = vsel %vm6488_vm2, %v2834_v6, %v2835_v26  ;;  %v7267_v14 = vpop.permute.xlu1 %3197  ;;  %v3015_v56 = vshll.u32 %v7229_v19, 16  ;;  %v3029_v31 = vshll.u32 %v7356_v55, 16 }
  0xeb   : > { %v2776_v45 = vsel %vm6586_vm8, %v2771_v29, %v2775_v51  ;;  %v5957_v4 = vcombine.low %v2833_v42, %v2836_v11  ;;  %v2857_v8 = vsel %vm6488_vm2, %v2855_v53, %v2856_v9  ;;  %v2923_v51 = vshll.u32 %v7181_v41, 16 }
  0xec   : > { %v5953_v16 = vcombine.low %v2766_v38, %v2776_v45  ;;  %v5960_v37 = vcombine.low %v2854_v20, %v2857_v8  ;;  %v2922_v15 = vrot.slane %v2920_v47, 5  ;;  %v2929_v9 = vrot.slane %v2643_v23, 6  ;;  %v7274_v38 = vld [vmem:[%s6492_s21 + $0x84] sm:$0xe]  ;;  %v7279_v41 = vpop.permute.xlu0 %3195 }
  0xed   : > { %v2925_v26 = vrot.slane %v2923_v51, 6  ;;  %v2934_v29 = vshrl.u32 %v7264_v5, 16  ;;  %v2937_v42 = vshll.u32 %v7264_v5, 16  ;;  %v5753_v34 = vrot.slane %v7274_v38, 9  ;;  %v6189_v51 = vld [vmem:[%s6492_s21 + $0x5c] sm:$0x1] }
  0xee   : > { %4286 = vrot.lane.b32.xlu0 %v5953_v16, %s6342_s22  ;;  %4318 = vrot.lane.b32.xlu1 %v5957_v4, %s6343_s25  ;;  %v2930_v53 = vor.u32 %v2929_v9, %v2928_v44  ;;  %v2860_v16 = vrot.slane %v7147_v25, 5  ;;  %v7283_v4 = vpop.permute.xlu1 %4144  ;;  %v2863_v8 = vrot.slane %v7205_v59, 5  ;;  %v6190_v44 = vld [vmem:[%s6492_s21 + $0x2c] sm:$0x1]  ;;  %v5656_v59 = vld [vmem:[%s6492_s21 + $0x54] sm:$0xf] }
  0xef   : > { %v2926_v6 = vor.u32 %v2925_v26, %v2922_v15  ;;  %v2936_v45 = vrot.slane %v2934_v29, 5  ;;  %v2939_v20 = vrot.slane %v2937_v42, 6  ;;  %v2121_v15 = vshll.u32 %v6189_v51, 16 }
  0xf0   : > { %v2932_v23 = vrot.slane %v2930_v53, 4  ;;  %v2025_v26 = vshll.u32 %v6190_v44, 16  ;;  %v2861_v9 = vsel %vm6488_vm2, %v5753_v34, %v2860_v16  ;;  %v2862_v29 = vrot.slane %v2860_v16, 4  ;;  %v7292_v42 = vpop.permute.xlu0 %4152  ;;  %v7306_v34 = vld [vmem:[%s6492_s21 + $0x68] sm:$0x1] }
  0xf1   : > { %v2927_v11 = vrot.slane %v2926_v6, 4  ;;  %v2940_v47 = vor.u32 %v2939_v20, %v2936_v45  ;;  %v7301_v20 = vrot.slane %v2121_v15, 5  ;;  %v7310_v44 = vld [vmem:[%s6492_s21 + $0x38] sm:$0x1]  ;;  %v2943_v15 = vshrl.u32 %v7214_v50, 16 }
  0xf2   : > { %4324 = vrot.lane.b32.xlu0 %v5960_v37, %s6343_s25  ;;  %v7303_v51 = vrot.slane %v2025_v26, 5  ;;  %v2946_v26 = vshll.u32 %v7214_v50, 16  ;;  %v7338_v50 = vrot.slane %v314_v17, 6 }
  0xf3   : > { %v2931_v37 = vsel %vm6632_vm11, %v2927_v11, %v2930_v53  ;;  %v2941_v6 = vsel %vm6632_vm11, %v2932_v23, %v2940_v47  ;;  %v2864_v53 = vsel %vm6488_vm2, %v2862_v29, %v2863_v8  ;;  %v7299_v11 = vpop.permute.xlu1 %4146  ;;  %v2102_v8 = vshrl.u32 %v5656_v59, 16  ;;  %v7316_v47 = vld [vmem:[%s6492_s21 + $0x5c] sm:$0x3] }
  0xf4   : > { %v5964_v2 = vcombine.low %v2931_v37, %v2941_v6  ;;  %v5961_v45 = vcombine.low %v2861_v9, %v2864_v53  ;;  %v2105_v37 = vshll.u32 %v5656_v59, 16  ;;  %v7322_v9 = vrot.slane %v2111_v28, 5  ;;  %v7330_v59 = vpop.permute.xlu0 %4154  ;;  %v7333_v53 = vld [vmem:[%s6492_s21 + $0x20] sm:$0x1]  ;;  %10282 = vst [vmem:[#allocation18_spill] sm:$0xff] %v7338_v50 }
  0xf5   : > { %v2117_v29 = vrot.slane %v2115_v30, 4  ;;  %v2952_v6 = vrot.slane %v2667_v62, 6  ;;  %10281 = vst [vmem:[#allocation17_spill] sm:$0xff] %v7333_v53  ;;  %v7341_v28 = vld [vmem:[%s6492_s21 + $0x24] sm:$0xf]  ;;  %v2945_v1 = vrot.slane %v2943_v15, 5 }
  0xf6   : > { %4356 = vrot.lane.b32.xlu1 %v5964_v2, %s6344_s26  ;;  %4326 = vrot.lane.b32.xlu0 %v5961_v45, %s6343_s25  ;;  %v2951_v2 = vrot.slane %v2671_v54, 5  ;;  %v2948_v30 = vrot.slane %v2946_v26, 6  ;;  %v2957_v16 = vshrl.u32 %v7316_v47, 16  ;;  %v7346_v35 = vrot.slane %v2102_v8, 4 }
  0xf7   : > { %v7348_v58 = vrot.slane %v2105_v37, 5  ;;  %v2960_v17 = vshll.u32 %v7316_v47, 16  ;;  %v7351_v52 = vpop.permute.xlu1 %4186  ;;  %v2118_v15 = vor.u32 %v2117_v29, %v7322_v9  ;;  %v2006_v26 = vshrl.u32 %v7341_v28, 16 }
  0xf8   : > { %v2953_v62 = vor.u32 %v2952_v6, %v2951_v2  ;;  %v2949_v45 = vor.u32 %v2948_v30, %v2945_v1  ;;  %v2959_v54 = vrot.slane %v2957_v16, 5  ;;  %v3012_v2 = vshrl.u32 %v7229_v19, 16  ;;  %v5764_v16 = vld [vmem:[%s6492_s21 + $0x48] sm:$0xc]  ;;  %v7368_v61 = vpop.permute.xlu0 %4192 }
  0xf9   : > { %v2009_v8 = vshll.u32 %v7341_v28, 16  ;;  %v2962_v23 = vrot.slane %v2960_v17, 6  ;;  %v7362_v1 = vrot.slane %v2015_v57, 5  ;;  %v10283_v29 = vshrl.u32 %v7127_v36, 16  ;;  %10284 = vst [vmem:[#allocation19_spill] sm:$0xff] %v7368_v61 }
  0xfa   : > { %v2950_v6 = vrot.slane %v2949_v45, 4  ;;  %v2955_v37 = vrot.slane %v2953_v62, 4  ;;  %v3014_v30 = vrot.slane %v3012_v2, 5  ;;  %v10285_v45 = vshll.u32 %v7127_v36, 16  ;;  %v7612_v61 = vld [vmem:[%s6492_s21 + $0x14] sm:$0x3] }
  0xfb   : > { %v3020_v50 = vrot.slane %v10283_v29, 5  ;;  %v2963_v28 = vor.u32 %v2962_v23, %v2959_v54  ;;  %v3026_v53 = vshrl.u32 %v7356_v55, 16  ;;  %v2108_v57 = vor.u32 %v7348_v58, %v7346_v35 }
  0xfc   : > { %v2954_v39 = vsel %vm6632_vm11, %v2950_v6, %v2953_v62  ;;  %v3021_v17 = vrot.slane %v10285_v45, 6  ;;  %v10286_v19 = vshrl.u32 %v6504_v7, 16  ;;  %v3017_v29 = vrot.slane %v3015_v56, 6  ;;  %v7384_v45 = vpop.permute.xlu1 %4232 }
  0xfd   : > { %v2964_v62 = vsel %vm6632_vm11, %v2955_v37, %v2963_v28  ;;  %v3028_v54 = vrot.slane %v3026_v53, 5  ;;  %v5772_v6 = vrot.slane %v5764_v16, 10  ;;  %10287 = vst [vmem:[#allocation20_spill] sm:$0xff] %v7384_v45  ;;  %v7386_v10 = vrot.slane %v2118_v15, 4  ;;  %v5768_v45 = vld [vmem:[%s6492_s21 + $0x78] sm:$0xc] }
  0xfe   : > { %v7379_v2 = vrot.slane %v10286_v19, 4  ;;  %v3022_v23 = vor.u32 %v3021_v17, %v3020_v50  ;;  %v5965_v48 = vcombine.low %v2954_v39, %v2964_v62  ;;  %v3018_v58 = vor.u32 %v3017_v29, %v3014_v30 }
  0xff   : > { %v3031_v35 = vrot.slane %v3029_v31, 6  ;;  %v3097_v19 = vrot.slane %v7105_v49, 6  ;;  %v3100_v56 = vrot.slane %v7264_v5, 6  ;;  %v3035_v37 = vshrl.u32 %v7274_v38, 16  ;;  %v7398_v31 = vpop.permute.xlu0 %4194 }
 0x100   : > { %v3024_v7 = vrot.slane %v3022_v23, 4  ;;  %4358 = vrot.lane.b32.xlu1 %v5965_v48, %s6344_s26  ;;  %v3019_v53 = vrot.slane %v3018_v58, 4  ;;  %v3038_v15 = vshll.u32 %v7274_v38, 16  ;;  %v10288_v39 = vshrl.u32 %v7147_v25, 16  ;;  %10289 = vst [vmem:[#allocation21_spill] sm:$0xff] %v7398_v31 }
 0x101   : > { %v3032_v50 = vor.u32 %v3031_v35, %v3028_v54  ;;  %v3098_v49 = vsel %vm6549_vm7, %v5772_v6, %v3097_v19  ;;  %v3099_v5 = vrot.slane %v3097_v19, 4  ;;  %v3037_v16 = vrot.slane %v3035_v37, 5  ;;  %v5765_v54 = vld [vmem:[%s6492_s21 + $0x54] sm:$0xc]  ;;  %v7413_v37 = vpop.permute.xlu1 %4234 }
 0x102   : > { %v3043_v30 = vrot.slane %v10288_v39, 5  ;;  %v10290_v28 = vshll.u32 %v7147_v25, 16  ;;  %v3023_v48 = vsel %vm6632_vm11, %v3019_v53, %v3022_v23  ;;  %v3040_v29 = vrot.slane %v3038_v15, 6  ;;  %10291 = vst [vmem:[#allocation22_spill] sm:$0xff] %v7413_v37 }
 0x103   : > { %v3033_v38 = vsel %vm6632_vm11, %v3024_v7, %v3032_v50  ;;  %v3049_v62 = vshrl.u32 %v7391_v63, 16  ;;  %v3101_v6 = vsel %vm6549_vm7, %v3099_v5, %v3100_v56  ;;  %v3052_v19 = vshll.u32 %v7391_v63, 16 }
 0x104   : > { %v3044_v17 = vrot.slane %v10290_v28, 6  ;;  %v5968_v58 = vcombine.low %v3023_v48, %v3033_v38  ;;  %v7415_v39 = vrot.slane %v2006_v26, 4  ;;  %v5972_v28 = vcombine.low %v3098_v49, %v3101_v6  ;;  %v7449_v6 = vld [vmem:[%s6492_s21 + $0x38] sm:$0x1] }
 0x105   : > { %v3041_v23 = vor.u32 %v3040_v29, %v3037_v16  ;;  %v3051_v53 = vrot.slane %v3049_v62, 5  ;;  %v7418_v7 = vrot.slane %v2009_v8, 5  ;;  %v3054_v15 = vrot.slane %v3052_v19, 6  ;;  %v7426_v8 = vpop.permute.xlu0 %4240 }
 0x106   : > { %v3045_v35 = vor.u32 %v3044_v17, %v3043_v30  ;;  %4364 = vrot.lane.b32.xlu0 %v5968_v58, %s6344_s26  ;;  %v5773_v48 = vrot.slane %v5765_v54, 10  ;;  %v2022_v56 = vor.u32 %v7379_v2, %v7362_v1  ;;  %4396 = vrot.lane.b32.xlu1 %v5972_v28, %s6345_s27  ;;  %v3104_v26 = vrot.slane %v7121_v32, 6  ;;  %10292 = vst [vmem:[#allocation23_spill] sm:$0xff] %v7426_v8  ;;  %v7446_v58 = vld [vmem:[%s6492_s21 + $0x34] sm:$0xf] }
 0x107   : > { %v3042_v30 = vrot.slane %v3041_v23, 4  ;;  %v3107_v49 = vrot.slane %v7316_v47, 6  ;;  %v7428_v5 = vrot.slane %v2108_v57, 4  ;;  %v3055_v16 = vor.u32 %v3054_v15, %v3051_v53  ;;  %v237_v47 = vld [vmem:[%s6492_s21 + $0x30] sm:$0xf] }
 0x108   : > { %v3047_v50 = vrot.slane %v3045_v35, 4  ;;  %v5776_v17 = vrot.slane %v5768_v45, 10  ;;  %v3125_v38 = vrot.slane %v7127_v36, 6  ;;  %v3105_v29 = vsel %vm6549_vm7, %v5773_v48, %v3104_v26  ;;  %v5769_v53 = vld [vmem:[%s6492_s21 + $0x84] sm:$0xc] }
 0x109   : > { %v3046_v2 = vsel %vm6632_vm11, %v3042_v30, %v3045_v35  ;;  %v3106_v32 = vrot.slane %v3104_v26, 4  ;;  %v3128_v62 = vrot.slane %v7356_v55, 6  ;;  %v7451_v35 = vpop.permute.xlu1 %4272  ;;  %v2012_v55 = vor.u32 %v7418_v7, %v7415_v39  ;;  %v7463_v26 = vld [vmem:[%s6492_s21 + $0x60] sm:$0xf] }
 0x10a   : > { %v3056_v36 = vsel %vm6632_vm11, %v3047_v50, %v3055_v16  ;;  %v3126_v45 = vsel %vm6549_vm7, %v5776_v17, %v3125_v38  ;;  %v3127_v54 = vrot.slane %v3125_v38, 4  ;;  %10293 = vst [vmem:[#allocation24_spill] sm:$0xff] %v7451_v35  ;;  %v7455_v19 = vrot.slane %v2022_v56, 4  ;;  %v7469_v16 = vpop.permute.xlu0 %4242  ;;  %v7498_v57 = vld [vmem:[%s6492_s21 + $0x40] sm:$0xf] }
 0x10b   : > { %v5969_v28 = vcombine.low %v3046_v2, %v3056_v36  ;;  %v3108_v23 = vsel %vm6549_vm7, %v3106_v32, %v3107_v49  ;;  %v353_v48 = vshrl.u32 %v237_v47, 16  ;;  %v356_v30 = vshll.u32 %v237_v47, 16  ;;  %10294 = vst [vmem:[#allocation25_spill] sm:$0xff] %v7469_v16  ;;  %v7474_v32 = vld [vmem:[%s6492_s21] sm:$0xe] }
 0x10c   : > { %v5973_v50 = vcombine.low %v3105_v29, %v3108_v23  ;;  %v3129_v15 = vsel %vm6549_vm7, %v3127_v54, %v3128_v62  ;;  %v10214_v7 = vshll.u32 %v7446_v58, 16  ;;  %v10215_v56 = vshrl.u32 %v7446_v58, 16  ;;  %v239_v54 = vld [vmem:[%s6492_s21 + $0x3c] sm:$0xf]  ;;  %v7494_v62 = vld [vmem:[%s6492_s21 + $0x4] sm:$0xf] }
 0x10d   : > { %4366 = vrot.lane.b32.xlu0 %v5969_v28, %s6344_s26  ;;  %v5976_v39 = vcombine.low %v3126_v45, %v3129_v15  ;;  %v372_v49 = vshll.u32 %v7449_v6, 16  ;;  %v355_v17 = vrot.slane %v353_v48, 4  ;;  %v358_v38 = vrot.slane %v356_v30, 5 }
 0x10e   : > { %4398 = vrot.lane.b32.xlu1 %v5973_v50, %s6345_s27  ;;  %v5777_v2 = vrot.slane %v5769_v53, 10  ;;  %v3132_v29 = vrot.slane %v7147_v25, 6  ;;  %v364_v47 = vrot.slane %v10214_v7, 5  ;;  %v368_v36 = vrot.slane %v10215_v56, 4  ;;  %v7489_v50 = vpop.permute.xlu1 %4274  ;;  %v7504_v7 = vld [vmem:[%s6492_s21 + $0x44] sm:$0x1]  ;;  %v7508_v16 = vpop.permute.xlu0 %4280 }
 0x10f   : > { %v3135_v45 = vrot.slane %v7391_v63, 6  ;;  %v2126_v25 = vshrl.u32 %v7463_v26, 16  ;;  %v359_v28 = vor.u32 %v358_v38, %v355_v17  ;;  %10295 = vst [vmem:[#allocation26_spill] sm:$0xff] %v7489_v50  ;;  %v374_v48 = vrot.slane %v372_v49, 5  ;;  %10296 = vst [vmem:[#allocation27_spill] sm:$0xff] %v7508_v16 }
 0x110   : > { %v3133_v23 = vsel %vm6549_vm7, %v5777_v2, %v3132_v29  ;;  %v3134_v53 = vrot.slane %v3132_v29, 4  ;;  %v369_v15 = vor.u32 %v368_v36, %v364_v47  ;;  %v5498_v30 = vrot.slane %v7474_v32, 9  ;;  %v6195_v2 = vld [vmem:[%s6492_s21 + $0x8] sm:$0x1] }
 0x111   : > { %4404 = vrot.lane.b32.xlu0 %v5976_v39, %s6345_s27  ;;  %v485_v63 = vrot.slane %v7494_v62, 5  ;;  %v360_v17 = vrot.slane %v359_v28, 4  ;;  %v488_v29 = vrot.slane %v6195_v2, 5  ;;  %v377_v39 = vshrl.u32 %v239_v54, 16  ;;  %v7528_v2 = vld [vmem:[%s6492_s21 + $0x30] sm:$0xe] }
 0x112   : > { %v3136_v38 = vsel %vm6549_vm7, %v3134_v53, %v3135_v45  ;;  %v370_v36 = vrot.slane %v369_v15, 4  ;;  %v380_v8 = vshll.u32 %v239_v54, 16  ;;  %v10216_v45 = vshll.u32 %v7498_v57, 16  ;;  %v7514_v53 = vld [vmem:[%s6492_s21 + $0xc] sm:$0xe] }
 0x113   : > { %v5977_v49 = vcombine.low %v3133_v23, %v3136_v38  ;;  %v486_v56 = vsel %vm6488_vm2, %v5498_v30, %v485_v63  ;;  %v487_v50 = vrot.slane %v485_v63, 4  ;;  %v365_v28 = vsel %vm6586_vm8, %v360_v17, %v364_v47 }
 0x114   : > { %v379_v35 = vrot.slane %v377_v39, 4  ;;  %v375_v15 = vsel %vm6586_vm8, %v370_v36, %v374_v48  ;;  %v10217_v30 = vshrl.u32 %v7498_v57, 16  ;;  %v396_v63 = vshll.u32 %v7504_v7, 16  ;;  %v7530_v48 = vpop.permute.xlu1 %4312 }
 0x115   : > { %4406 = vrot.lane.b32.xlu0 %v5977_v49, %s6345_s27  ;;  %v489_v23 = vsel %vm6488_vm2, %v487_v50, %v488_v29  ;;  %v7523_v47 = vrot.slane %v2012_v55, 4  ;;  %v5790_v54 = vcombine.low %v365_v28, %v375_v15  ;;  %v382_v17 = vrot.slane %v380_v8, 5  ;;  %10297 = vst [vmem:[#allocation28_spill] sm:$0xff] %v7530_v48  ;;  %v7543_v28 = vld [vmem:[%s6492_s21 + $0x10] sm:$0xf] }
 0x116   : > { %v388_v38 = vrot.slane %v10216_v45, 5  ;;  %v7536_v29 = vrot.slane %v2126_v25, 4  ;;  %v392_v55 = vrot.slane %v10217_v30, 4  ;;  %v5499_v39 = vrot.slane %v7514_v53, 9  ;;  %v6197_v48 = vld [vmem:[%s6492_s21 + $0x14] sm:$0x1]  ;;  %v7549_v30 = vpop.permute.xlu0 %4282 }
 0x117   : > { %3201 = vrot.lane.b32.xlu1 %v5790_v54, %s6338_s9  ;;  %v5794_v8 = vcombine.low %v486_v56, %v489_v23  ;;  %v383_v36 = vor.u32 %v382_v17, %v379_v35  ;;  %v398_v49 = vrot.slane %v396_v63, 5  ;;  %v492_v15 = vrot.slane %v7543_v28, 5  ;;  %10298 = vst [vmem:[#allocation29_spill] sm:$0xff] %v7549_v30 }
 0x118   : > { %v393_v45 = vor.u32 %v392_v55, %v388_v38  ;;  %v495_v16 = vrot.slane %v6197_v48, 5  ;;  %v5502_v25 = vrot.slane %v7528_v2, 9  ;;  %v513_v50 = vrot.slane %v7446_v58, 5 }
 0x119   : > { %v384_v37 = vrot.slane %v383_v36, 4  ;;  %v493_v56 = vsel %vm6488_vm2, %v5499_v39, %v492_v15  ;;  %v494_v35 = vrot.slane %v492_v15, 4  ;;  %v516_v23 = vrot.slane %v7449_v6, 5 }
 0x11a   : > { %v2129_v63 = vshll.u32 %v7463_v26, 16  ;;  %v394_v54 = vrot.slane %v393_v45, 4  ;;  %v514_v17 = vsel %vm6488_vm2, %v5502_v25, %v513_v50  ;;  %v515_v48 = vrot.slane %v513_v50, 4  ;;  %v7571_v45 = vld [vmem:[%s6492_s21 + $0x8] sm:$0x3]  ;;  %v7573_v50 = vpop.permute.xlu1 %4314 }
 0x11b   : > { %v10299_v55 = vshll.u32 %v6513_v12, 16  ;;  %v10300_v36 = vshrl.u32 %v6513_v12, 16  ;;  %3233 = vrot.lane.b32.xlu1 %v5794_v8, %s6340_s11  ;;  %v389_v6 = vsel %vm6586_vm8, %v384_v37, %v388_v38  ;;  %v496_v26 = vsel %vm6488_vm2, %v494_v35, %v495_v16  ;;  %10301 = vst [vmem:[#allocation30_spill] sm:$0xff] %v7573_v50  ;;  %v7584_v37 = vld [vmem:[%s6492_s21 + $0x3c] sm:$0xe] }
 0x11c   : > { %v10302_v39 = vshll.u32 %v7306_v34, 16  ;;  %v399_v12 = vsel %vm6586_vm8, %v394_v54, %v398_v49  ;;  %v5795_v25 = vcombine.low %v493_v56, %v496_v26  ;;  %v517_v8 = vsel %vm6488_vm2, %v515_v48, %v516_v23  ;;  %v7594_v54 = vpop.permute.xlu0 %4320  ;;  %v7597_v23 = vld [vmem:[%s6492_s21 + $0x30] sm:$0xf] }
 0x11d   : > { %v7559_v31 = vrot.slane %v10299_v55, 5  ;;  %v7563_v30 = vrot.slane %v10300_v36, 4  ;;  %v5791_v38 = vcombine.low %v389_v6, %v399_v12  ;;  %v5798_v16 = vcombine.low %v514_v17, %v517_v8  ;;  %10305 = vst [vmem:[#allocation31_spill] sm:$0xff] %v7594_v54 }
 0x11e   : > { %v7577_v15 = vrot.slane %v10302_v39, 5  ;;  %v551_v35 = vshrl.u32 %v7474_v32, 16  ;;  %v554_v55 = vshll.u32 %v7474_v32, 16  ;;  %v10303_v36 = vshrl.u32 %v6559_v46, 16 }
 0x11f   : > { %v10304_v39 = vshll.u32 %v6559_v46, 16  ;;  %v565_v49 = vshrl.u32 %v7571_v45, 16  ;;  %v568_v56 = vshll.u32 %v7571_v45, 16  ;;  %3203 = vrot.lane.b32.xlu0 %v5791_v38, %s6338_s9  ;;  %3235 = vrot.lane.b32.xlu1 %v5795_v25, %s6340_s11  ;;  %v5503_v48 = vrot.slane %v7584_v37, 9  ;;  %v7608_v25 = vpop.permute.xlu1 %4352 }
 0x120   : > { %v559_v34 = vrot.slane %v10303_v36, 5  ;;  %v553_v17 = vrot.slane %v551_v35, 5  ;;  %v556_v32 = vrot.slane %v554_v55, 6  ;;  %v520_v46 = vrot.slane %v7498_v57, 5  ;;  %10306 = vst [vmem:[#allocation32_spill] sm:$0xff] %v7608_v25 }
 0x121   : > { %v560_v50 = vrot.slane %v10304_v39, 6  ;;  %v567_v26 = vrot.slane %v565_v49, 5  ;;  %v570_v12 = vrot.slane %v568_v56, 6  ;;  %v523_v8 = vrot.slane %v7504_v7, 5  ;;  %v7632_v35 = vld [vmem:[%s6492_s21 + $0x38] sm:$0x3] }
 0x122   : > { %v7604_v36 = vrot.slane %v2129_v63, 5  ;;  %v557_v39 = vor.u32 %v556_v32, %v553_v17  ;;  %v521_v38 = vsel %vm6488_vm2, %v5503_v48, %v520_v46  ;;  %v522_v54 = vrot.slane %v520_v46, 4 }
 0x123   : > { %v561_v6 = vor.u32 %v560_v50, %v559_v34  ;;  %v571_v33 = vor.u32 %v570_v12, %v567_v26  ;;  %v574_v50 = vshrl.u32 %v7514_v53, 16  ;;  %3241 = vrot.lane.b32.xlu0 %v5798_v16, %s6340_s11  ;;  %v577_v34 = vshll.u32 %v7514_v53, 16  ;;  %v7625_v12 = vpop.permute.xlu0 %4322 }
 0x124   : > { %v558_v7 = vrot.slane %v557_v39, 4  ;;  %v524_v63 = vsel %vm6488_vm2, %v522_v54, %v523_v8  ;;  %v10307_v49 = vshrl.u32 %v6594_v27, 16  ;;  %v10308_v46 = vshll.u32 %v6594_v27, 16  ;;  %10309 = vst [vmem:[#allocation33_spill] sm:$0xff] %v7625_v12 }
 0x125   : > { %v563_v55 = vrot.slane %v561_v6, 4  ;;  %v5799_v32 = vcombine.low %v521_v38, %v524_v63  ;;  %v576_v48 = vrot.slane %v574_v50, 5  ;;  %v579_v39 = vrot.slane %v577_v34, 6  ;;  %v7639_v63 = vpop.permute.xlu1 %4354 }
 0x126   : > { %v582_v56 = vrot.slane %v10307_v49, 5  ;;  %v583_v26 = vrot.slane %v10308_v46, 6  ;;  %v562_v16 = vsel %vm6632_vm11, %v558_v7, %v561_v6  ;;  %v588_v54 = vshrl.u32 %v7612_v61, 16  ;;  %10311 = vst [vmem:[#allocation34_spill] sm:$0xff] %v7639_v63 }
 0x127   : > { %v572_v17 = vsel %vm6632_vm11, %v563_v55, %v571_v33  ;;  %v591_v53 = vshll.u32 %v7612_v61, 16  ;;  %v643_v33 = vshrl.u32 %v7528_v2, 16  ;;  %v646_v38 = vshll.u32 %v7528_v2, 16  ;;  %3243 = vrot.lane.b32.xlu0 %v5799_v32, %s6340_s11 }
 0x128   : > { %v5802_v8 = vcombine.low %v562_v16, %v572_v17  ;;  %v584_v49 = vor.u32 %v583_v26, %v582_v56  ;;  %v580_v27 = vor.u32 %v579_v39, %v576_v48  ;;  %v590_v55 = vrot.slane %v588_v54, 5 }
 0x129   : > { %v593_v50 = vrot.slane %v591_v53, 6  ;;  %v10310_v6 = vshrl.u32 %v7446_v58, 16  ;;  %v645_v56 = vrot.slane %v643_v33, 5  ;;  %v648_v17 = vrot.slane %v646_v38, 6  ;;  %v7650_v33 = vpop.permute.xlu0 %4360 }
 0x12a   : > { %3273 = vrot.lane.b32.xlu1 %v5802_v8, %s6339_s10  ;;  %v586_v34 = vrot.slane %v584_v49, 4  ;;  %v10312_v46 = vshll.u32 %v7446_v58, 16  ;;  %v581_v2 = vrot.slane %v580_v27, 4  ;;  %v657_v32 = vshrl.u32 %v7632_v35, 16  ;;  %10313 = vst [vmem:[#allocation35_spill] sm:$0xff] %v7650_v33 }
 0x12b   : > { %v651_v7 = vrot.slane %v10310_v6, 5  ;;  %v594_v16 = vor.u32 %v593_v50, %v590_v55  ;;  %v660_v48 = vshll.u32 %v7632_v35, 16  ;;  %v2142_v39 = vor.u32 %v7563_v30, %v7559_v31  ;;  %v734_v6 = vld [vmem:[%s6492_s21] sm:$0xc] }
 0x12c   : > { %v652_v26 = vrot.slane %v10312_v46, 6  ;;  %v649_v53 = vor.u32 %v648_v17, %v645_v56  ;;  %v585_v38 = vsel %vm6632_vm11, %v581_v2, %v584_v49  ;;  %v659_v55 = vrot.slane %v657_v32, 5  ;;  %v7663_v49 = vld [vmem:[%s6492_s21 + $0x44] sm:$0x3]  ;;  %v7665_v2 = vpop.permute.xlu1 %4392 }
 0x12d   : > { %v595_v27 = vsel %vm6632_vm11, %v586_v34, %v594_v16  ;;  %v662_v50 = vrot.slane %v660_v48, 6  ;;  %v10314_v46 = vshll.u32 %v6528_v24, 16  ;;  %v766_v33 = vrot.slane %v7571_v45, 6  ;;  %10315 = vst [vmem:[#allocation36_spill] sm:$0xff] %v7665_v2 }
 0x12e   : > { %v653_v8 = vor.u32 %v652_v26, %v651_v7  ;;  %v5803_v30 = vcombine.low %v585_v38, %v595_v27  ;;  %v650_v54 = vrot.slane %v649_v53, 4  ;;  %v5506_v7 = vrot.slane %v734_v6, 10 }
 0x12f   : > { %v7658_v63 = vrot.slane %v10314_v46, 5  ;;  %v663_v17 = vor.u32 %v662_v50, %v659_v55  ;;  %v763_v26 = vrot.slane %v7494_v62, 6  ;;  %v666_v16 = vshrl.u32 %v7584_v37, 16 }
 0x130   : > { %v655_v56 = vrot.slane %v653_v8, 4  ;;  %3275 = vrot.lane.b32.xlu1 %v5803_v30, %s6339_s10  ;;  %v654_v34 = vsel %vm6632_vm11, %v650_v54, %v653_v8  ;;  %v669_v32 = vshll.u32 %v7584_v37, 16  ;;  %v10316_v48 = vshrl.u32 %v7498_v57, 16  ;;  %v735_v37 = vld [vmem:[%s6492_s21 + $0xc] sm:$0xc]  ;;  %v7682_v30 = vpop.permute.xlu0 %4362 }
 0x131   : > { %v764_v6 = vsel %vm6549_vm7, %v5506_v7, %v763_v26  ;;  %v765_v38 = vrot.slane %v763_v26, 4  ;;  %v10317_v27 = vshll.u32 %v7498_v57, 16  ;;  %v668_v54 = vrot.slane %v666_v16, 5  ;;  %10318 = vst [vmem:[#allocation37_spill] sm:$0xff] %v7682_v30  ;;  %v738_v26 = vld [vmem:[%s6492_s21 + $0x30] sm:$0xc] }
 0x132   : > { %v674_v53 = vrot.slane %v10316_v48, 5  ;;  %v664_v45 = vsel %vm6632_vm11, %v655_v56, %v663_v17  ;;  %v671_v8 = vrot.slane %v669_v32, 6  ;;  %v680_v46 = vshrl.u32 %v7663_v49, 16 }
 0x133   : > { %v675_v55 = vrot.slane %v10317_v27, 6  ;;  %v5806_v50 = vcombine.low %v654_v34, %v664_v45  ;;  %v2132_v48 = vor.u32 %v7604_v36, %v7536_v29  ;;  %v767_v56 = vsel %vm6549_vm7, %v765_v38, %v766_v33  ;;  %v7696_v33 = vpop.permute.xlu1 %4108 }
 0x134   : > { %v683_v7 = vshll.u32 %v7663_v49, 16  ;;  %v10319_v27 = vshrl.u32 %v6528_v24, 16  ;;  %v5810_v16 = vcombine.low %v764_v6, %v767_v56  ;;  %v672_v32 = vor.u32 %v671_v8, %v668_v54  ;;  %10320 = vst [vmem:[#allocation38_spill] sm:$0xff] %v7696_v33 }
 0x135   : > { %v676_v17 = vor.u32 %v675_v55, %v674_v53  ;;  %3281 = vrot.lane.b32.xlu0 %v5806_v50, %s6339_s10  ;;  %v682_v45 = vrot.slane %v680_v46, 5  ;;  %v5507_v29 = vrot.slane %v735_v37, 10  ;;  %v770_v36 = vrot.slane %v7543_v28, 6  ;;  %v5516_v46 = vld [vmem:[%s6492_s21 + $0xc] sm:$0xf] }
 0x136   : > { %v7692_v34 = vrot.slane %v10319_v27, 4  ;;  %v685_v2 = vrot.slane %v683_v7, 6  ;;  %3313 = vrot.lane.b32.xlu1 %v5810_v16, %s6341_s17  ;;  %v673_v53 = vrot.slane %v672_v32, 4  ;;  %v773_v24 = vrot.slane %v7612_v61, 6  ;;  %v7712_v27 = vpop.permute.xlu0 %4400 }
 0x137   : > { %v678_v30 = vrot.slane %v676_v17, 4  ;;  %v5510_v38 = vrot.slane %v738_v26, 10  ;;  %v791_v55 = vrot.slane %v7446_v58, 6  ;;  %v771_v50 = vsel %vm6549_vm7, %v5507_v29, %v770_v36  ;;  %v739_v58 = vld [vmem:[%s6492_s21 + $0x3c] sm:$0xc]  ;;  %10322 = vst [vmem:[#allocation39_spill] sm:$0xff] %v7712_v27 }
 0x138   : > { %v686_v6 = vor.u32 %v685_v2, %v682_v45  ;;  %v772_v54 = vrot.slane %v770_v36, 4  ;;  %v794_v8 = vrot.slane %v7632_v35, 6  ;;  %v7705_v37 = vrot.slane %v2142_v39, 4  ;;  %v7723_v45 = vld [vmem:[%s6492_s21 + $0x10] sm:$0xf] }
 0x139   : > { %v10321_v56 = vshrl.u32 %v7597_v23, 16  ;;  %v677_v61 = vsel %vm6632_vm11, %v673_v53, %v676_v17  ;;  %v793_v26 = vrot.slane %v791_v55, 4  ;;  %v10323_v2 = vshll.u32 %v7597_v23, 16  ;;  %v5518_v23 = vld [vmem:[%s6492_s21 + $0x18] sm:$0xf] }
 0x13a   : > { %v687_v35 = vsel %vm6632_vm11, %v678_v30, %v686_v6  ;;  %v774_v39 = vsel %vm6549_vm7, %v772_v54, %v773_v24  ;;  %v792_v32 = vsel %vm6549_vm7, %v5510_v38, %v791_v55  ;;  %v846_v53 = vshrl.u32 %v5516_v46, 16  ;;  %v7732_v54 = vpop.permute.xlu1 %4394  ;;  %v7809_v27 = vld [vmem:[%s6492_s21 + $0x44] sm:$0x1] }
 0x13b   : > { %v2032_v7 = vrot.slane %v10321_v56, 4  ;;  %v2035_v16 = vrot.slane %v10323_v2, 5  ;;  %v5807_v29 = vcombine.low %v677_v61, %v687_v35  ;;  %v5811_v17 = vcombine.low %v771_v50, %v774_v39  ;;  %10324 = vst [vmem:[#allocation40_spill] sm:$0xff] %v7732_v54 }
 0x13c   : > { %v795_v36 = vsel %vm6549_vm7, %v793_v26, %v794_v8  ;;  %v7728_v56 = vrot.slane %v2132_v48, 4  ;;  %v2046_v30 = vor.u32 %v7692_v34, %v7658_v63  ;;  %v849_v24 = vshll.u32 %v5516_v46, 16  ;;  %v5524_v48 = vld [vmem:[%s6492_s21 + $0x3c] sm:$0xf] }
 0x13d   : > { %v5511_v6 = vrot.slane %v739_v58, 10  ;;  %3283 = vrot.lane.b32.xlu0 %v5807_v29, %s6339_s10  ;;  %3315 = vrot.lane.b32.xlu1 %v5811_v17, %s6341_s17  ;;  %v5814_v38 = vcombine.low %v792_v32, %v795_v36  ;;  %v5818_v55 = vcombine.low %v5516_v46, %v7723_v45  ;;  %v798_v50 = vrot.slane %v7498_v57, 6  ;;  %v7741_v26 = vld [vmem:[%s6492_s21 + $0x1c] sm:$0xf]  ;;  %v7753_v32 = vpop.permute.xlu0 %4116 }
 0x13e   : > { %v801_v8 = vrot.slane %v7663_v49, 6  ;;  %v848_v61 = vrot.slane %v846_v53, 4  ;;  %v851_v34 = vrot.slane %v849_v24, 5  ;;  %v870_v58 = vshrl.u32 %v5518_v23, 16  ;;  %10326 = vst [vmem:[#allocation41_spill] sm:$0xff] %v7753_v32  ;;  %v7779_v54 = vpop.permute.xlu1 %4110 }
 0x13f   : > { %v873_v2 = vshll.u32 %v5518_v23, 16  ;;  %v10325_v46 = vshll.u32 %v7310_v44, 16  ;;  %v799_v57 = vsel %vm6549_vm7, %v5511_v6, %v798_v50  ;;  %v800_v49 = vrot.slane %v798_v50, 4  ;;  %v7760_v24 = vld [vmem:[%s6492_s21 + $0x14] sm:$0x1]  ;;  %10327 = vst [vmem:[#allocation42_spill] sm:$0xff] %v7779_v54 }
 0x140   : > { %v2036_v17 = vor.u32 %v2035_v16, %v2032_v7  ;;  %v942_v36 = vshrl.u32 %v5524_v48, 16  ;;  %v945_v53 = vshll.u32 %v5524_v48, 16  ;;  %v7763_v44 = vld [vmem:[%s6492_s21 + $0x48] sm:$0xf]  ;;  %v7769_v50 = vrot.slane %v2046_v30, 4 }
 0x141   : > { %v7749_v39 = vrot.slane %v10325_v46, 5  ;;  %3321 = vrot.lane.b32.xlu0 %v5814_v38, %s6341_s17  ;;  %3361 = vrot.lane.b32.xlu1 %v5818_v55, %s6342_s22  ;;  %v802_v7 = vsel %vm6549_vm7, %v800_v49, %v801_v8  ;;  %v5819_v16 = vcombine.low %v5518_v23, %v7741_v26  ;;  %v7777_v46 = vld [vmem:[%s6492_s21 + $0x40] sm:$0xf]  ;;  %v872_v35 = vrot.slane %v870_v58, 4  ;;  %v7785_v6 = vld [vmem:[%s6492_s21 + $0x4c] sm:$0xf] }
 0x142   : > { %v5815_v29 = vcombine.low %v799_v57, %v802_v7  ;;  %v875_v33 = vrot.slane %v873_v2, 5  ;;  %v852_v32 = vor.u32 %v851_v34, %v848_v61  ;;  %v10220_v30 = vshll.u32 %v7723_v45, 16  ;;  %v7792_v2 = vld [vmem:[%s6492_s21 + $0x20] sm:$0x1] }
 0x143   : > { %v10221_v38 = vshrl.u32 %v7723_v45, 16  ;;  %v865_v55 = vshll.u32 %v7760_v24, 16  ;;  %v966_v8 = vshrl.u32 %v7763_v44, 16  ;;  %v7788_v23 = vrot.slane %v2036_v17, 4 }
 0x144   : > { %v944_v49 = vrot.slane %v942_v36, 4  ;;  %v947_v40 = vrot.slane %v945_v53, 5  ;;  %v5822_v58 = vcombine.low %v5524_v48, %v7777_v46  ;;  %v853_v61 = vrot.slane %v852_v32, 4  ;;  %v7801_v36 = vpop.permute.xlu0 %4402 }
 0x145   : > { %3323 = vrot.lane.b32.xlu0 %v5815_v29, %s6341_s17  ;;  %3363 = vrot.lane.b32.xlu1 %v5819_v16, %s6342_s22  ;;  %v857_v34 = vrot.slane %v10220_v30, 5  ;;  %v861_v57 = vrot.slane %v10221_v38, 4  ;;  %v969_v17 = vshll.u32 %v7763_v44, 16  ;;  %10328 = vst [vmem:[#allocation43_spill] sm:$0xff] %v7801_v36  ;;  %v867_v53 = vrot.slane %v865_v55, 5 }
 0x146   : > { %v5823_v48 = vcombine.low %v7763_v44, %v7785_v6  ;;  %v876_v7 = vor.u32 %v875_v33, %v872_v35  ;;  %v10222_v29 = vshll.u32 %v7741_v26, 16  ;;  %v968_v16 = vrot.slane %v966_v8, 4  ;;  %v7814_v44 = vpop.permute.xlu1 %4148 }
 0x147   : > { %v862_v54 = vor.u32 %v861_v57, %v857_v34  ;;  %v10223_v32 = vshrl.u32 %v7741_v26, 16  ;;  %v889_v30 = vshll.u32 %v7792_v2, 16  ;;  %v948_v55 = vor.u32 %v947_v40, %v944_v49  ;;  %10329 = vst [vmem:[#allocation44_spill] sm:$0xff] %v7814_v44 }
 0x148   : > { %v877_v38 = vrot.slane %v876_v7, 4  ;;  %v881_v36 = vrot.slane %v10222_v29, 5  ;;  %v10224_v25 = vshll.u32 %v7777_v46, 16  ;;  %v858_v33 = vsel %vm6586_vm8, %v853_v61, %v857_v34  ;;  %v7826_v29 = vld [vmem:[%s6492_s21 + $0xc] sm:$0xe] }
 0x149   : > { %3369 = vrot.lane.b32.xlu0 %v5822_v58, %s6342_s22  ;;  %v863_v35 = vrot.slane %v862_v54, 4  ;;  %v885_v8 = vrot.slane %v10223_v32, 4  ;;  %v10225_v57 = vshrl.u32 %v7777_v46, 16  ;;  %v971_v7 = vrot.slane %v969_v17, 5  ;;  %v7832_v32 = vpop.permute.xlu0 %4118 }
 0x14a   : > { %v949_v12 = vrot.slane %v948_v55, 4  ;;  %v953_v40 = vrot.slane %v10224_v25, 5  ;;  %v961_v49 = vshll.u32 %v7809_v27, 16  ;;  %v891_v54 = vrot.slane %v889_v30, 5  ;;  %10330 = vst [vmem:[#allocation45_spill] sm:$0xff] %v7832_v32 }
 0x14b   : > { %v868_v58 = vsel %vm6586_vm8, %v863_v35, %v867_v53  ;;  %v886_v61 = vor.u32 %v885_v8, %v881_v36  ;;  %v957_v34 = vrot.slane %v10225_v57, 4  ;;  %v2052_v17 = vsel %vm6586_vm8, %v7769_v50, %v7749_v39  ;;  %v7843_v53 = vld [vmem:[%s6492_s21 + $0x50] sm:$0x1] }
 0x14c   : > { %v5826_v55 = vcombine.low %v858_v33, %v868_v58  ;;  %v882_v25 = vsel %vm6586_vm8, %v877_v38, %v881_v36  ;;  %v954_v44 = vsel %vm6586_vm8, %v949_v12, %v953_v40  ;;  %v963_v8 = vrot.slane %v961_v49, 5  ;;  %v7851_v12 = vpop.permute.xlu1 %4150 }
 0x14d   : > { %3371 = vrot.lane.b32.xlu0 %v5823_v48, %s6342_s22  ;;  %v887_v30 = vrot.slane %v886_v61, 4  ;;  %v958_v35 = vor.u32 %v957_v34, %v953_v40  ;;  %v5548_v57 = vrot.slane %v7826_v29, 9  ;;  %v1071_v39 = vrot.slane %v7723_v45, 5  ;;  %10331 = vst [vmem:[#allocation46_spill] sm:$0xff] %v7851_v12 }
 0x14e   : > { %3401 = vrot.lane.b32.xlu1 %v5826_v55, %s6343_s25  ;;  %v1074_v50 = vrot.slane %v7760_v24, 5  ;;  %v972_v33 = vor.u32 %v971_v7, %v968_v16  ;;  %v975_v38 = vshll.u32 %v7785_v6, 16  ;;  %v979_v40 = vshrl.u32 %v7785_v6, 16 }
 0x14f   : > { %v892_v36 = vsel %vm6586_vm8, %v887_v30, %v891_v54  ;;  %v959_v48 = vrot.slane %v958_v35, 4  ;;  %v985_v49 = vshll.u32 %v7843_v53, 16  ;;  %v2042_v24 = vsel %vm6586_vm8, %v7788_v23, %v7658_v63  ;;  %v7869_v30 = vpop.permute.xlu0 %4156  ;;  %v7872_v63 = vld [vmem:[%s6492_s21 + $0x50] sm:$0x1]  ;;  %v7879_v35 = vld [vmem:[%s6492_s21 + $0x18] sm:$0xe] }
 0x150   : > { %v5827_v16 = vcombine.low %v882_v25, %v892_v36  ;;  %v1072_v7 = vsel %vm6488_vm2, %v5548_v57, %v1071_v39  ;;  %v1073_v58 = vrot.slane %v1071_v39, 4  ;;  %v973_v54 = vrot.slane %v972_v33, 4  ;;  %10332 = vst [vmem:[#allocation47_spill] sm:$0xff] %v7869_v30  ;;  %10333 = vst [vmem:[#allocation48_spill] sm:$0xff] %v7872_v63 }
 0x151   : > { %v964_v61 = vsel %vm6586_vm8, %v959_v48, %v963_v8  ;;  %v977_v34 = vrot.slane %v975_v38, 5  ;;  %v981_v55 = vrot.slane %v979_v40, 4  ;;  %v10334_v8 = vsel %vm6586_vm8, %v7386_v10, %v7301_v20 }
 0x152   : > { %3403 = vrot.lane.b32.xlu1 %v5827_v16, %s6343_s25  ;;  %v5830_v23 = vcombine.low %v954_v44, %v964_v61  ;;  %v1075_v57 = vsel %vm6488_vm2, %v1073_v58, %v1074_v50  ;;  %v10335_v39 = vsel %vm6586_vm8, %v7428_v5, %v7322_v9  ;;  %v987_v48 = vrot.slane %v985_v49, 5  ;;  %v7892_v50 = vld [vmem:[%s6492_s21 + $0x3c] sm:$0xe]  ;;  %v6199_v58 = vld [vmem:[%s6492_s21] sm:$0xf] }
 0x153   : > { %v5910_v33 = vcombine.low %v10335_v39, %v10334_v8  ;;  %v5834_v36 = vcombine.low %v1072_v7, %v1075_v57  ;;  %v982_v44 = vor.u32 %v981_v55, %v977_v34  ;;  %v10336_v16 = vsel %vm6586_vm8, %v7455_v19, %v7303_v51  ;;  %v7917_v19 = vpop.permute.xlu1 %4188  ;;  %v6200_v61 = vld [vmem:[%s6492_s21 + $0x18] sm:$0xf]  ;;  %v7938_v8 = vpop.permute.xlu0 %4158  ;;  %v7941_v39 = vld [vmem:[%s6492_s21 + $0x80] sm:$0x1] }
 0x154   : > { %v10337_v10 = vsel %vm6586_vm8, %v7523_v47, %v7362_v1  ;;  %v10338_v9 = vsel %vm6586_vm8, %v7705_v37, %v7577_v15  ;;  %v10339_v5 = vsel %vm6586_vm8, %v7728_v56, %v7559_v31  ;;  %v5907_v7 = vcombine.low %v2042_v24, %v2052_v17  ;;  %3409 = vrot.lane.b32.xlu0 %v5830_v23, %s6343_s25  ;;  %v7925_v31 = vld [vmem:[%s6492_s21 + $0x1c] sm:$0xf]  ;;  %v6202_v17 = vld [vmem:[%s6492_s21 + $0xc] sm:$0xf] }
 0x155   : > { %v5906_v20 = vcombine.low %v10337_v10, %v10336_v16  ;;  %v5911_v49 = vcombine.low %v10339_v5, %v10338_v9  ;;  %v5778_v51 = vcombine.low %v6199_v58, %v7494_v62  ;;  %10340 = vst [vmem:[#allocation49_spill] sm:$0xff] %v7917_v19  ;;  %v978_v1 = vsel %vm6586_vm8, %v973_v54, %v977_v34 }
 0x156   : > { %v983_v47 = vrot.slane %v982_v44, 4  ;;  %v5549_v15 = vrot.slane %v7879_v35, 9  ;;  %v1078_v37 = vrot.slane %v7741_v26, 5  ;;  %v5780_v56 = vcombine.low %v6200_v61, %v7925_v31  ;;  %3441 = vrot.lane.b32.xlu1 %v5834_v36, %s6344_s26  ;;  %10341 = vst [vmem:[#allocation50_spill] sm:$0xff] %v7938_v8  ;;  %10342 = vst [vmem:[#allocation51_spill] sm:$0xff] %v7941_v39 }
 0x157   : > { %v5779_v62 = vcombine.low %v6202_v17, %v7543_v28  ;;  %v1081_v24 = vrot.slane %v7792_v2, 5  ;;  %v5552_v54 = vrot.slane %v7892_v50, 9  ;;  %v1099_v57 = vrot.slane %v7777_v46, 5 }
 0x158   : > { %v988_v34 = vsel %vm6586_vm8, %v983_v47, %v987_v48  ;;  %v1079_v55 = vsel %vm6488_vm2, %v5549_v15, %v1078_v37  ;;  %v1080_v23 = vrot.slane %v1078_v37, 4  ;;  %v4422_v2 = vsel %vm3793_vm12, %v5910_v33, %v7198_v3  ;;  %v7958_v33 = vpop.permute.xlu1 %4190  ;;  %v7989_v47 = vld [vmem:[%s6492_s21 + $0x48] sm:$0xe] }
 0x159   : > { %v5831_v36 = vcombine.low %v978_v1, %v988_v34  ;;  %v1102_v44 = vrot.slane %v7809_v27, 5  ;;  %v1100_v16 = vsel %vm6488_vm2, %v5552_v54, %v1099_v57  ;;  %v1101_v10 = vrot.slane %v1099_v57, 4  ;;  %10343 = vst [vmem:[#allocation52_spill] sm:$0xff] %v7958_v33 }
 0x15a   : > { %v1082_v48 = vsel %vm6488_vm2, %v1080_v23, %v1081_v24  ;;  %v4410_v9 = vsel %vm3793_vm12, %v5906_v20, %v7183_v21  ;;  %v4425_v5 = vsel %vm3793_vm12, %v5911_v49, %v7234_v18  ;;  %v4413_v3 = vsel %vm3793_vm12, %v5907_v7, %v7216_v60  ;;  %v7975_v18 = vld [vmem:[%s6492_s21 + $0x14] sm:$0x3]  ;;  %v10350_v23 = vld [vmem:[#allocation16_spill] sm:$0xff] }
 0x15b   : > { %3411 = vrot.lane.b32.xlu0 %v5831_v36, %s6343_s25  ;;  %v5835_v27 = vcombine.low %v1079_v55, %v1082_v48  ;;  %v7962_v58 = vsel %vm3793_vm12, %v5778_v51, %v7258_v43  ;;  %v7966_v1 = vsel %vm3793_vm12, %v5780_v56, %v7267_v14  ;;  %v7970_v21 = vsel %vm3793_vm12, %v5779_v62, %v7279_v41  ;;  %v10348_v56 = vld [vmem:[#allocation19_spill] sm:$0xff]  ;;  %v10351_v48 = vld [vmem:[#allocation21_spill] sm:$0xff] }
 0x15c   : > { %10344 = vst [vmem:[#allocation53_spill] sm:$0xff] %v7966_v1  ;;  %v1103_v60 = vsel %vm6488_vm2, %v1101_v10, %v1102_v44  ;;  %v4433_v20 = vsel %vm3818_vm13, %v4410_v9, %v7283_v4  ;;  %v4441_v43 = vsel %vm3818_vm13, %v4422_v2, %v7292_v42  ;;  %v4435_v49 = vsel %vm3818_vm13, %v4413_v3, %v7299_v11  ;;  %v7991_v4 = vpop.permute.xlu0 %4196  ;;  %v8005_v55 = vpop.permute.xlu1 %4236 }
 0x15d   : > { %3443 = vrot.lane.b32.xlu1 %v5835_v27, %s6344_s26  ;;  %v5838_v14 = vcombine.low %v1100_v16, %v1103_v60  ;;  %v4443_v41 = vsel %vm3818_vm13, %v4425_v5, %v7330_v59  ;;  %v1134_v7 = vshrl.u32 %v7826_v29, 16  ;;  %v1137_v51 = vshll.u32 %v7826_v29, 16  ;;  %10345 = vst [vmem:[#allocation54_spill] sm:$0xff] %v7991_v4  ;;  %10349 = vst [vmem:[#allocation19_spill] sm:$0xff] %v8005_v55  ;;  %v10352_v5 = vld [vmem:[#allocation20_spill] sm:$0xff]  ;;  %v10353_v27 = vld [vmem:[#allocation22_spill] sm:$0xff] }
 0x15e   : > { %v4451_v42 = vsel %vm3835_vm14, %v4435_v49, %v7351_v52  ;;  %v10346_v11 = vshrl.u32 %v7723_v45, 16  ;;  %v10347_v37 = vshll.u32 %v7723_v45, 16  ;;  %v1148_v61 = vshrl.u32 %v7975_v18, 16 }
 0x15f   : > { %3449 = vrot.lane.b32.xlu0 %v5838_v14, %s6344_s26  ;;  %v4457_v29 = vsel %vm3835_vm14, %v4441_v43, %v10348_v56  ;;  %v1136_v17 = vrot.slane %v1134_v7, 5  ;;  %v1139_v62 = vrot.slane %v1137_v51, 6  ;;  %v1151_v24 = vshll.u32 %v7975_v18, 16  ;;  %v10355_v14 = vld [vmem:[#allocation23_spill] sm:$0xff]  ;;  %v10356_v51 = vld [vmem:[#allocation24_spill] sm:$0xff] }
 0x160   : > { %v1142_v15 = vrot.slane %v10346_v11, 5  ;;  %v1143_v59 = vrot.slane %v10347_v37, 6  ;;  %v1150_v52 = vrot.slane %v1148_v61, 5  ;;  %v5553_v34 = vrot.slane %v7989_v47, 9  ;;  %v8017_v49 = vpop.permute.xlu0 %4198  ;;  %v241_v56 = vld [vmem:[%s6492_s21 + $0x48] sm:$0xf] }
 0x161   : > { %v4449_v57 = vsel %vm3835_vm14, %v4433_v20, %v10350_v23  ;;  %v1140_v2 = vor.u32 %v1139_v62, %v1136_v17  ;;  %v1153_v36 = vrot.slane %v1151_v24, 6  ;;  %v1106_v44 = vrot.slane %v7785_v6, 5  ;;  %10354 = vst [vmem:[#allocation16_spill] sm:$0xff] %v8017_v49  ;;  %v10358_v17 = vld [vmem:[#allocation26_spill] sm:$0xff]  ;;  %v10359_v24 = vld [vmem:[#allocation27_spill] sm:$0xff] }
 0x162   : > { %v1144_v54 = vor.u32 %v1143_v59, %v1142_v15  ;;  %v4459_v16 = vsel %vm3835_vm14, %v4443_v41, %v10351_v48  ;;  %v1109_v9 = vrot.slane %v7843_v53, 5  ;;  %v4465_v3 = vsel %vm3852_vm15, %v4449_v57, %v10352_v5  ;;  %v10357_v15 = vld [vmem:[#allocation25_spill] sm:$0xff]  ;;  %v8043_v57 = vld [vmem:[%s6492_s21 + $0x50] sm:$0x1]  ;;  %v8251_v49 = vld [vmem:[%s6492_s21 + $0x48] sm:$0xf] }
 0x163   : > { %v4467_v60 = vsel %vm3852_vm15, %v4451_v42, %v10353_v27  ;;  %v1141_v20 = vrot.slane %v1140_v2, 4  ;;  %v1154_v43 = vor.u32 %v1153_v36, %v1150_v52  ;;  %v4473_v41 = vsel %vm3852_vm15, %v4457_v29, %v10355_v14  ;;  %v5652_v42 = vld [vmem:[%s6492_s21 + $0x3c] sm:$0xf]  ;;  %v8034_v29 = vld [vmem:[%s6492_s21 + $0x4c] sm:$0xf]  ;;  %v8045_v2 = vpop.permute.xlu1 %4238 }
 0x164   : > { %v1146_v10 = vrot.slane %v1144_v54, 4  ;;  %v1107_v7 = vsel %vm6488_vm2, %v5553_v34, %v1106_v44  ;;  %v1108_v53 = vrot.slane %v1106_v44, 4  ;;  %v4481_v11 = vsel %vm3869_vm0, %v4465_v3, %v10356_v51  ;;  %10360 = vst [vmem:[#allocation21_spill] sm:$0xff] %v8045_v2  ;;  %v10362_v44 = vld [vmem:[#allocation29_spill] sm:$0xff] }
 0x165   : > { %v4475_v37 = vsel %vm3852_vm15, %v4459_v16, %v10357_v15  ;;  %v1145_v59 = vsel %vm6632_vm11, %v1141_v20, %v1144_v54  ;;  %v4483_v62 = vsel %vm3869_vm0, %v4467_v60, %v10358_v17  ;;  %v4489_v52 = vsel %vm3869_vm0, %v4473_v41, %v10359_v24  ;;  %v10361_v54 = vld [vmem:[#allocation28_spill] sm:$0xff]  ;;  %v10363_v16 = vld [vmem:[#allocation30_spill] sm:$0xff]  ;;  %v10364_v20 = vld [vmem:[#allocation31_spill] sm:$0xff] }
 0x166   : > { %v1155_v61 = vsel %vm6632_vm11, %v1146_v10, %v1154_v43  ;;  %v1110_v23 = vsel %vm6488_vm2, %v1108_v53, %v1109_v9  ;;  %v4497_v36 = vsel %vm3886_vm1, %v4481_v11, %v10361_v54  ;;  %v4491_v48 = vsel %vm3869_vm0, %v4475_v37, %v10362_v44  ;;  %v8060_v53 = vpop.permute.xlu0 %4244  ;;  %v8073_v24 = vld [vmem:[%s6492_s21 + $0x44] sm:$0x3] }
 0x167   : > { %v5842_v34 = vcombine.low %v1145_v59, %v1155_v61  ;;  %v4499_v10 = vsel %vm3886_vm1, %v4483_v62, %v10363_v16  ;;  %v5839_v5 = vcombine.low %v1107_v7, %v1110_v23  ;;  %v2054_v3 = vshrl.u32 %v5652_v42, 16  ;;  %10365 = vst [vmem:[#allocation20_spill] sm:$0xff] %v8060_v53  ;;  %v10366_v7 = vld [vmem:[#allocation33_spill] sm:$0xff]  ;;  %v10367_v61 = vld [vmem:[#allocation10_spill] sm:$0xff]  ;;  %v8077_v44 = vpop.permute.xlu1 %4276 }
 0x168   : > { %v401_v27 = vshrl.u32 %v241_v56, 16  ;;  %v404_v60 = vshll.u32 %v241_v56, 16  ;;  %v10227_v9 = vshll.u32 %v8034_v29, 16  ;;  %v4505_v43 = vsel %vm3886_vm1, %v4489_v52, %v10364_v20  ;;  %10370 = vst [vmem:[#allocation23_spill] sm:$0xff] %v8077_v44  ;;  %v243_v44 = vld [vmem:[%s6492_s21 + $0x54] sm:$0xf] }
 0x169   : > { %3481 = vrot.lane.b32.xlu1 %v5842_v34, %s6345_s27  ;;  %3451 = vrot.lane.b32.xlu0 %v5839_v5, %s6344_s26  ;;  %v10226_v14 = vshrl.u32 %v8034_v29, 16  ;;  %v420_v41 = vshll.u32 %v8043_v57, 16  ;;  %v4507_v51 = vsel %vm3886_vm1, %v4491_v48, %v10366_v7  ;;  %v2057_v59 = vshll.u32 %v5652_v42, 16 }
 0x16a   : > { %v403_v11 = vrot.slane %v401_v27, 4  ;;  %v406_v15 = vrot.slane %v404_v60, 5  ;;  %v412_v37 = vrot.slane %v10227_v9, 5  ;;  %v10368_v56 = vshll.u32 %v10367_v61, 16  ;;  %v8085_v28 = vpop.permute.xlu0 %4246 }
 0x16b   : > { %v416_v62 = vrot.slane %v10226_v14, 4  ;;  %v2056_v52 = vrot.slane %v2054_v3, 4  ;;  %v1226_v23 = vshrl.u32 %v7892_v50, 16  ;;  %v1229_v54 = vshll.u32 %v7892_v50, 16  ;;  %10373 = vst [vmem:[#allocation24_spill] sm:$0xff] %v8085_v28 }
 0x16c   : > { %v8068_v17 = vrot.slane %v10368_v56, 5  ;;  %v407_v34 = vor.u32 %v406_v15, %v403_v11  ;;  %v422_v16 = vrot.slane %v420_v41, 5  ;;  %v10371_v42 = vshrl.u32 %v7777_v46, 16 }
 0x16d   : > { %v417_v48 = vor.u32 %v416_v62, %v412_v37  ;;  %v10372_v27 = vshll.u32 %v7777_v46, 16  ;;  %v1228_v7 = vrot.slane %v1226_v23, 5  ;;  %v1231_v56 = vrot.slane %v1229_v54, 6 }
 0x16e   : > { %10369 = vst [vmem:[#allocation22_spill] sm:$0xff] %v8068_v17  ;;  %v1234_v5 = vrot.slane %v10371_v42, 5  ;;  %v408_v20 = vrot.slane %v407_v34, 4  ;;  %v1240_v3 = vshrl.u32 %v8073_v24, 16  ;;  %v2059_v11 = vrot.slane %v2057_v59, 5  ;;  %v10375_v34 = vld [vmem:[#allocation32_spill] sm:$0xff] }
 0x16f   : > { %v1235_v60 = vrot.slane %v10372_v27, 6  ;;  %v418_v15 = vrot.slane %v417_v48, 4  ;;  %v1243_v50 = vshll.u32 %v8073_v24, 16  ;;  %v10374_v41 = vshrl.u32 %v10367_v61, 16  ;;  %v10377_v61 = vld [vmem:[#allocation35_spill] sm:$0xff] }
 0x170   : > { %v413_v42 = vsel %vm6586_vm8, %v408_v20, %v412_v37  ;;  %v1232_v14 = vor.u32 %v1231_v56, %v1228_v7  ;;  %v1242_v27 = vrot.slane %v1240_v3, 5  ;;  %v4513_v23 = vsel %vm3903_vm4, %v4497_v36, %v10375_v34  ;;  %v8101_v20 = vpop.permute.xlu1 %4278  ;;  %v10379_v7 = vld [vmem:[#allocation36_spill] sm:$0xff]  ;;  %v10381_v56 = vld [vmem:[#allocation37_spill] sm:$0xff]  ;;  %v10382_v34 = vld [vmem:[#allocation11_spill] sm:$0xff] }
 0x171   : > { %v1236_v25 = vor.u32 %v1235_v60, %v1234_v5  ;;  %v2069_v62 = vrot.slane %v10374_v41, 4  ;;  %v423_v59 = vsel %vm6586_vm8, %v418_v15, %v422_v16  ;;  %v1245_v48 = vrot.slane %v1243_v50, 6  ;;  %v10376_v5 = vld [vmem:[#allocation34_spill] sm:$0xff]  ;;  %10378 = vst [vmem:[#allocation25_spill] sm:$0xff] %v8101_v20 }
 0x172   : > { %v8097_v60 = vsel %vm3903_vm4, %v4499_v10, %v10376_v5  ;;  %v4521_v41 = vsel %vm3903_vm4, %v4505_v43, %v10377_v61  ;;  %v5792_v9 = vcombine.low %v413_v42, %v423_v59  ;;  %v1233_v37 = vrot.slane %v1232_v14, 4  ;;  %v8116_v14 = vld [vmem:[%s6492_s21 + $0x50] sm:$0x3] }
 0x173   : > { %v1238_v54 = vrot.slane %v1236_v25, 4  ;;  %v8105_v36 = vsel %vm3920_vm5, %v4513_v23, %v10379_v7  ;;  %v8109_v16 = vsel %vm3903_vm4, %v4507_v51, %v10381_v56  ;;  %v2060_v3 = vor.u32 %v2059_v11, %v2056_v52  ;;  %v10386_v11 = vld [vmem:[#allocation39_spill] sm:$0xff] }
 0x174   : > { %10380 = vst [vmem:[#allocation26_spill] sm:$0xff] %v8105_v36  ;;  %v1246_v15 = vor.u32 %v1245_v48, %v1242_v27  ;;  %v2070_v10 = vor.u32 %v2069_v62, %v8068_v17  ;;  %3205 = vrot.lane.b32.xlu1 %v5792_v9, %s6338_s9  ;;  %v1237_v43 = vsel %vm6632_vm11, %v1233_v37, %v1236_v25  ;;  %v1249_v50 = vshrl.u32 %v7989_v47, 16  ;;  %v8130_v25 = vpop.permute.xlu0 %4284 }
 0x175   : > { %v1252_v42 = vshll.u32 %v7989_v47, 16  ;;  %v10383_v23 = vshll.u32 %v10382_v34, 16  ;;  %v1257_v52 = vrot.slane %v979_v40, 5  ;;  %v1258_v9 = vrot.slane %v975_v38, 6  ;;  %10385 = vst [vmem:[#allocation28_spill] sm:$0xff] %v8130_v25 }
 0x176   : > { %v1247_v51 = vsel %vm6632_vm11, %v1238_v54, %v1246_v15  ;;  %v8134_v62 = vsel %vm3920_vm5, %v4521_v41, %v10386_v11  ;;  %v5660_v47 = vld [vmem:[%s6492_s21 + $0x6c] sm:$0xf]  ;;  %v1251_v48 = vrot.slane %v1249_v50, 5  ;;  %v8137_v61 = vrot.slane %v2060_v3, 4  ;;  %v8146_v15 = vpop.permute.xlu1 %4316  ;;  %v8149_v34 = vld [vmem:[%s6492_s21 + $0x20] sm:$0x3] }
 0x177   : > { %v8122_v59 = vrot.slane %v10383_v23, 5  ;;  %10387 = vst [vmem:[#allocation29_spill] sm:$0xff] %v8134_v62  ;;  %v5846_v27 = vcombine.low %v1237_v43, %v1247_v51  ;;  %v1254_v5 = vrot.slane %v1252_v42, 6  ;;  %v1259_v54 = vor.u32 %v1258_v9, %v1257_v52  ;;  %10390 = vst [vmem:[#allocation33_spill] sm:$0xff] %v8146_v15  ;;  %v10391_v9 = vld [vmem:[#allocation12_spill] sm:$0xff]  ;;  %v10399_v15 = vld [vmem:[#allocation13_spill] sm:$0xff] }
 0x178   : > { %10388 = vst [vmem:[#allocation30_spill] sm:$0xff] %v8137_v61  ;;  %v1263_v37 = vshrl.u32 %v8116_v14, 16  ;;  %v1266_v40 = vshll.u32 %v8116_v14, 16  ;;  %v8141_v7 = vrot.slane %v2070_v10, 4  ;;  %v1157_v41 = vshrl.u32 %v7879_v35, 16  ;;  %v8159_v2 = vpop.permute.xlu0 %4286 }
 0x179   : > { %10384 = vst [vmem:[#allocation27_spill] sm:$0xff] %v8122_v59  ;;  %3489 = vrot.lane.b32.xlu0 %v5846_v27, %s6345_s27  ;;  %v1255_v38 = vor.u32 %v1254_v5, %v1251_v48  ;;  %v1160_v56 = vshll.u32 %v7879_v35, 16  ;;  %v2150_v43 = vshrl.u32 %v5660_v47, 16  ;;  %v1261_v50 = vrot.slane %v1259_v54, 4  ;;  %10396 = vst [vmem:[#allocation32_spill] sm:$0xff] %v8159_v2 }
 0x17a   : > { %10389 = vst [vmem:[#allocation31_spill] sm:$0xff] %v8141_v7  ;;  %v1265_v3 = vrot.slane %v1263_v37, 5  ;;  %v1268_v42 = vrot.slane %v1266_v40, 6  ;;  %v2153_v23 = vshll.u32 %v5660_v47, 16  ;;  %v1159_v10 = vrot.slane %v1157_v41, 5 }
 0x17b   : > { %v1256_v51 = vrot.slane %v1255_v38, 4  ;;  %v1162_v52 = vrot.slane %v1160_v56, 6  ;;  %v10392_v11 = vshll.u32 %v10391_v9, 16  ;;  %v10394_v35 = vshrl.u32 %v7741_v26, 16  ;;  %v5568_v56 = vld [vmem:[%s6492_s21 + $0x3c] sm:$0xc] }
 0x17c   : > { %v1269_v48 = vor.u32 %v1268_v42, %v1265_v3  ;;  %v10395_v20 = vshll.u32 %v7741_v26, 16  ;;  %v1171_v38 = vshrl.u32 %v8149_v34, 16  ;;  %v1174_v41 = vshll.u32 %v8149_v34, 16  ;;  %v5564_v2 = vld [vmem:[%s6492_s21 + $0xc] sm:$0xc] }
 0x17d   : > { %v8153_v27 = vrot.slane %v10392_v11, 5  ;;  %v1165_v5 = vrot.slane %v10394_v35, 5  ;;  %v1260_v47 = vsel %vm6632_vm11, %v1256_v51, %v1259_v54  ;;  %v1163_v40 = vor.u32 %v1162_v52, %v1159_v10  ;;  %v8175_v52 = vpop.permute.xlu1 %4318 }
 0x17e   : > { %v1166_v37 = vrot.slane %v10395_v20, 6  ;;  %v8166_v11 = vrot.slane %v2150_v43, 4  ;;  %v10397_v3 = vshrl.u32 %v10391_v9, 16  ;;  %v1270_v20 = vsel %vm6632_vm11, %v1261_v50, %v1269_v48  ;;  %10398 = vst [vmem:[#allocation34_spill] sm:$0xff] %v8175_v52 }
 0x17f   : > { %10393 = vst [vmem:[#allocation10_spill] sm:$0xff] %v8153_v27  ;;  %v5847_v33 = vcombine.low %v1260_v47, %v1270_v20  ;;  %v1164_v54 = vrot.slane %v1163_v40, 4  ;;  %v1173_v51 = vrot.slane %v1171_v38, 5  ;;  %v1176_v10 = vrot.slane %v1174_v41, 6  ;;  %v8192_v38 = vld [vmem:[%s6492_s21 + $0x58] sm:$0xf] }
 0x180   : > { %v8170_v42 = vrot.slane %v10397_v3, 4  ;;  %v1167_v35 = vor.u32 %v1166_v37, %v1165_v5  ;;  %v10400_v28 = vshll.u32 %v10399_v15, 16  ;;  %v5576_v9 = vrot.slane %v5568_v56, 10 }
 0x181   : > { %v1371_v3 = vrot.slane %v7777_v46, 6  ;;  %3491 = vrot.lane.b32.xlu1 %v5847_v33, %s6345_s27  ;;  %v1177_v48 = vor.u32 %v1176_v10, %v1173_v51  ;;  %v1374_v5 = vrot.slane %v8073_v24, 6  ;;  %v5572_v37 = vrot.slane %v5564_v2, 10  ;;  %v8194_v33 = vpop.permute.xlu0 %4324  ;;  %v8203_v24 = vld [vmem:[%s6492_s21 + $0x5c] sm:$0x1] }
 0x182   : > { %v8179_v43 = vrot.slane %v10400_v28, 5  ;;  %v1169_v12 = vrot.slane %v1167_v35, 4  ;;  %v1168_v50 = vsel %vm6632_vm11, %v1164_v54, %v1167_v35  ;;  %v1343_v40 = vrot.slane %v7723_v45, 6  ;;  %10403 = vst [vmem:[#allocation36_spill] sm:$0xff] %v8194_v33  ;;  %v235_v45 = vld [vmem:[%s6492_s21 + $0x24] sm:$0xf] }
 0x183   : > { %v1372_v28 = vsel %vm6549_vm7, %v5576_v9, %v1371_v3  ;;  %v1373_v15 = vrot.slane %v1371_v3, 4  ;;  %v1346_v46 = vrot.slane %v7975_v18, 6  ;;  %v8196_v41 = vrot.slane %v2153_v23, 5  ;;  %v8212_v3 = vld [vmem:[%s6492_s21 + $0x28] sm:$0xf] }
 0x184   : > { %10401 = vst [vmem:[#allocation35_spill] sm:$0xff] %v8179_v43  ;;  %v2166_v56 = vor.u32 %v8170_v42, %v8153_v27  ;;  %v1178_v2 = vsel %vm6632_vm11, %v1169_v12, %v1177_v48  ;;  %v425_v20 = vshrl.u32 %v243_v44, 16  ;;  %v1344_v54 = vsel %vm6549_vm7, %v5572_v37, %v1343_v40  ;;  %v8214_v12 = vpop.permute.xlu1 %4356  ;;  %v8222_v37 = vld [vmem:[%s6492_s21 + $0x2c] sm:$0x1] }
 0x185   : > { %v5843_v35 = vcombine.low %v1168_v50, %v1178_v2  ;;  %v1375_v18 = vsel %vm6549_vm7, %v1373_v15, %v1374_v5  ;;  %v1345_v23 = vrot.slane %v1343_v40, 4  ;;  %v428_v9 = vshll.u32 %v243_v44, 16  ;;  %10404 = vst [vmem:[#allocation37_spill] sm:$0xff] %v8214_v12  ;;  %v8235_v52 = vpop.permute.xlu0 %4326 }
 0x186   : > { %v5854_v51 = vcombine.low %v1372_v28, %v1375_v18  ;;  %v427_v10 = vrot.slane %v425_v20, 4  ;;  %v10228_v42 = vshll.u32 %v8192_v38, 16  ;;  %v10229_v48 = vshrl.u32 %v8192_v38, 16  ;;  %10405 = vst [vmem:[#allocation11_spill] sm:$0xff] %v8235_v52 }
 0x187   : > { %3483 = vrot.lane.b32.xlu0 %v5843_v35, %s6345_s27  ;;  %v1347_v50 = vsel %vm6549_vm7, %v1345_v23, %v1346_v46  ;;  %v444_v5 = vshll.u32 %v8203_v24, 16  ;;  %v329_v28 = vshrl.u32 %v235_v45, 16  ;;  %v430_v15 = vrot.slane %v428_v9, 5  ;;  %v8233_v23 = vld [vmem:[%s6492_s21 + $0x48] sm:$0xe] }
 0x188   : > { %3529 = vrot.lane.b32.xlu1 %v5854_v51, %s6346_s28  ;;  %v5850_v44 = vcombine.low %v1344_v54, %v1347_v50  ;;  %v436_v40 = vrot.slane %v10228_v42, 5  ;;  %v332_v2 = vshll.u32 %v235_v45, 16  ;;  %v440_v20 = vrot.slane %v10229_v48, 4  ;;  %v8240_v50 = vld [vmem:[%s6492_s21 + $0x18] sm:$0xe] }
 0x189   : > { %v331_v35 = vrot.slane %v329_v28, 4  ;;  %v10230_v18 = vshll.u32 %v8212_v3, 16  ;;  %v431_v54 = vor.u32 %v430_v15, %v427_v10  ;;  %v10231_v9 = vshrl.u32 %v8212_v3, 16  ;;  %v8266_v55 = vpop.permute.xlu0 %4364 }
 0x18a   : > { %v334_v51 = vrot.slane %v332_v2, 5  ;;  %v348_v45 = vshll.u32 %v8222_v37, 16  ;;  %v530_v42 = vrot.slane %v8043_v57, 5  ;;  %v441_v28 = vor.u32 %v440_v20, %v436_v40  ;;  %v8248_v2 = vpop.permute.xlu1 %4358  ;;  %10408 = vst [vmem:[#allocation13_spill] sm:$0xff] %v8266_v55 }
 0x18b   : > { %3521 = vrot.lane.b32.xlu0 %v5850_v44, %s6346_s28  ;;  %v446_v48 = vrot.slane %v444_v5, 5  ;;  %v340_v46 = vrot.slane %v10230_v18, 5  ;;  %v432_v52 = vrot.slane %v431_v54, 4  ;;  %v344_v10 = vrot.slane %v10231_v9, 4  ;;  %10406 = vst [vmem:[#allocation39_spill] sm:$0xff] %v8248_v2 }
 0x18c   : > { %v335_v12 = vor.u32 %v334_v51, %v331_v35  ;;  %v350_v15 = vrot.slane %v348_v45, 5  ;;  %v442_v33 = vrot.slane %v441_v28, 4  ;;  %v5504_v57 = vrot.slane %v8233_v23, 9  ;;  %v5569_v45 = vld [vmem:[%s6492_s21 + $0x48] sm:$0xc] }
 0x18d   : > { %v527_v44 = vrot.slane %v8034_v29, 5  ;;  %v5500_v5 = vrot.slane %v8240_v50, 9  ;;  %v437_v20 = vsel %vm6586_vm8, %v432_v52, %v436_v40  ;;  %v345_v54 = vor.u32 %v344_v10, %v340_v46  ;;  %v5565_v40 = vld [vmem:[%s6492_s21 + $0x18] sm:$0xc] }
 0x18e   : > { %v336_v35 = vrot.slane %v335_v12, 4  ;;  %v499_v51 = vrot.slane %v7925_v31, 5  ;;  %v8260_v18 = vrot.slane %v2166_v56, 4  ;;  %v447_v28 = vsel %vm6586_vm8, %v442_v33, %v446_v48 }
 0x18f   : > { %v528_v9 = vsel %vm6488_vm2, %v5504_v57, %v527_v44  ;;  %v529_v2 = vrot.slane %v527_v44, 4  ;;  %v2078_v8 = vshrl.u32 %v8251_v49, 16  ;;  %v5793_v25 = vcombine.low %v437_v20, %v447_v28 }
 0x190   : > { %10407 = vst [vmem:[#allocation12_spill] sm:$0xff] %v8260_v18  ;;  %v341_v52 = vsel %vm6586_vm8, %v336_v35, %v340_v46  ;;  %v346_v12 = vrot.slane %v345_v54, 4  ;;  %v500_v33 = vsel %vm6488_vm2, %v5500_v5, %v499_v51  ;;  %v501_v48 = vrot.slane %v499_v51, 4  ;;  %v8281_v35 = vpop.permute.xlu1 %4396 }
 0x191   : > { %v531_v56 = vsel %vm6488_vm2, %v529_v2, %v530_v42  ;;  %v5577_v10 = vrot.slane %v5569_v45, 10  ;;  %3207 = vrot.lane.b32.xlu1 %v5793_v25, %s6338_s9  ;;  %v1378_v20 = vrot.slane %v7785_v6, 6  ;;  %v1381_v46 = vrot.slane %v8116_v14, 6  ;;  %10409 = vst [vmem:[#allocation8_spill] sm:$0xff] %v8281_v35  ;;  %v10410_v42 = vld [vmem:[#allocation17_spill] sm:$0xff]  ;;  %v10412_v45 = vld [vmem:[#allocation40_spill] sm:$0xff] }
 0x192   : > { %v351_v57 = vsel %vm6586_vm8, %v346_v12, %v350_v15  ;;  %v5800_v44 = vcombine.low %v528_v9, %v531_v56  ;;  %v10411_v2 = vrot.slane %v10410_v42, 5  ;;  %v5573_v51 = vrot.slane %v5565_v40, 10  ;;  %v8306_v12 = vld [vmem:[%s6492_s21 + $0x48] sm:$0xf]  ;;  %v8308_v40 = vpop.permute.xlu0 %4366 }
 0x193   : > { %v5789_v54 = vcombine.low %v341_v52, %v351_v57  ;;  %v1350_v25 = vrot.slane %v7741_v26, 6  ;;  %v8291_v9 = vsel %vm3920_vm5, %v8097_v60, %v10412_v45  ;;  %v1379_v6 = vsel %vm6549_vm7, %v5577_v10, %v1378_v20  ;;  %10414 = vst [vmem:[#allocation40_spill] sm:$0xff] %v8308_v40  ;;  %v8325_v57 = vld [vmem:[%s6492_s21 + $0x4c] sm:$0xf] }
 0x194   : > { %v503_v5 = vsel %vm6488_vm2, %v501_v48, %v10411_v2  ;;  %10413 = vst [vmem:[#allocation17_spill] sm:$0xff] %v8291_v9  ;;  %v1380_v14 = vrot.slane %v1378_v20, 4  ;;  %v1353_v15 = vrot.slane %v8149_v34, 6  ;;  %v10415_v34 = vor.u32 %v8196_v41, %v8166_v11  ;;  %v8328_v20 = vld [vmem:[%s6492_s21 + $0x18] sm:$0xf] }
 0x195   : > { %3199 = vrot.lane.b32.xlu0 %v5789_v54, %s6338_s9  ;;  %v5796_v60 = vcombine.low %v500_v33, %v503_v5  ;;  %v1352_v52 = vrot.slane %v1350_v25, 4  ;;  %3245 = vrot.lane.b32.xlu1 %v5800_v44, %s6340_s11  ;;  %v1351_v10 = vsel %vm6549_vm7, %v5573_v51, %v1350_v25  ;;  %v8330_v11 = vrot.slane %v2078_v8, 4  ;;  %v8336_v2 = vld [vmem:[%s6492_s21 + $0x54] sm:$0xe]  ;;  %v8339_v44 = vld [vmem:[%s6492_s21 + $0x24] sm:$0xe] }
 0x196   : > { %v8313_v56 = vrot.slane %v10415_v34, 4  ;;  %v1382_v33 = vsel %vm6549_vm7, %v1380_v14, %v1381_v46  ;;  %v10418_v46 = vld [vmem:[#allocation14_spill] sm:$0xff]  ;;  %v10423_v8 = vshll.u32 %v8034_v29, 16  ;;  %v537_v28 = vrot.slane %v8203_v24, 5  ;;  %v8368_v48 = vld [vmem:[%s6492_s21 + $0x50] sm:$0x3] }
 0x197   : > { %10417 = vst [vmem:[#allocation56_spill] sm:$0xff] %v8330_v11  ;;  %v5855_v54 = vcombine.low %v1379_v6, %v1382_v33  ;;  %v1354_v42 = vsel %vm6549_vm7, %v1352_v52, %v1353_v15  ;;  %v10419_v5 = vshll.u32 %v10418_v46, 16  ;;  %v10421_v51 = vshrl.u32 %v10418_v46, 16  ;;  %v8353_v34 = vld [vmem:[%s6492_s21 + $0x1c] sm:$0xf]  ;;  %v8355_v15 = vpop.permute.xlu1 %4398 }
 0x198   : > { %10416 = vst [vmem:[#allocation55_spill] sm:$0xff] %v8313_v56  ;;  %v698_v14 = vrot.slane %v10423_v8, 6  ;;  %v1522_v6 = vshrl.u32 %v8306_v12, 16  ;;  %10424 = vst [vmem:[#allocation58_spill] sm:$0xff] %v8355_v15  ;;  %v5851_v52 = vcombine.low %v1351_v10, %v1354_v42  ;;  %v1525_v33 = vshll.u32 %v8306_v12, 16 }
 0x199   : > { %v8343_v45 = vrot.slane %v10419_v5, 5  ;;  %v8347_v25 = vrot.slane %v10421_v51, 4  ;;  %3237 = vrot.lane.b32.xlu0 %v5796_v60, %s6340_s11  ;;  %v5862_v46 = vcombine.low %v8306_v12, %v8325_v57  ;;  %3531 = vrot.lane.b32.xlu1 %v5855_v54, %s6346_s28  ;;  %v5505_v51 = vrot.slane %v8336_v2, 9  ;;  %v8375_v54 = vpop.permute.xlu0 %4404 }
 0x19a   : > { %v534_v8 = vrot.slane %v8192_v38, 5  ;;  %v5501_v26 = vrot.slane %v8339_v44, 9  ;;  %v1429_v60 = vshll.u32 %v8328_v20, 16  ;;  %v5858_v10 = vcombine.low %v8328_v20, %v8353_v34  ;;  %10425 = vst [vmem:[#allocation59_spill] sm:$0xff] %v8375_v54 }
 0x19b   : > { %10420 = vst [vmem:[#allocation14_spill] sm:$0xff] %v8343_v45  ;;  %10422 = vst [vmem:[#allocation57_spill] sm:$0xff] %v8347_v25  ;;  %v506_v12 = vrot.slane %v8212_v3, 5  ;;  %v509_v42 = vrot.slane %v8222_v37, 5  ;;  %v689_v41 = vshrl.u32 %v8233_v23, 16  ;;  %v692_v15 = vshll.u32 %v8233_v23, 16  ;;  %v8394_v32 = vpop.permute.xlu1 %3201 }
 0x19c   : > { %v535_v5 = vsel %vm6488_vm2, %v5505_v51, %v534_v8  ;;  %v536_v24 = vrot.slane %v534_v8, 4  ;;  %v10426_v55 = vshrl.u32 %v8034_v29, 16  ;;  %v703_v54 = vshrl.u32 %v8368_v48, 16  ;;  %v8513_v25 = vld [vmem:[%s6492_s21 + $0x2c] sm:$0x3] }
 0x19d   : > { %3523 = vrot.lane.b32.xlu0 %v5851_v52, %s6346_s28  ;;  %v507_v40 = vsel %vm6488_vm2, %v5501_v26, %v506_v12  ;;  %v508_v35 = vrot.slane %v506_v12, 4  ;;  %3577 = vrot.lane.b32.xlu1 %v5862_v46, %s6347_s29  ;;  %v691_v8 = vrot.slane %v689_v41, 5  ;;  %v694_v19 = vrot.slane %v692_v15, 6  ;;  %v8392_v52 = vld [vmem:[%s6492_s21 + $0x20] sm:$0x3]  ;;  %v10427_v15 = vld [vmem:[#allocation9_spill] sm:$0xff] }
 0x19e   : > { %v697_v37 = vrot.slane %v10426_v55, 5  ;;  %v538_v51 = vsel %vm6488_vm2, %v536_v24, %v537_v28  ;;  %v706_v23 = vshll.u32 %v8368_v48, 16  ;;  %v705_v53 = vrot.slane %v703_v54, 5 }
 0x19f   : > { %v5801_v26 = vcombine.low %v535_v5, %v538_v51  ;;  %v510_v55 = vsel %vm6488_vm2, %v508_v35, %v509_v42  ;;  %v695_v30 = vor.u32 %v694_v19, %v691_v8  ;;  %v597_v17 = vshrl.u32 %v8240_v50, 16  ;;  %v8404_v35 = vpop.permute.xlu0 %4406 }
 0x1a0   : > { %v699_v12 = vor.u32 %v698_v14, %v697_v37  ;;  %v5797_v4 = vcombine.low %v507_v40, %v510_v55  ;;  %v708_v46 = vrot.slane %v706_v23, 6  ;;  %v600_v41 = vshll.u32 %v8240_v50, 16  ;;  %10429 = vst [vmem:[#allocation9_spill] sm:$0xff] %v8404_v35  ;;  %v10430_v50 = vld [vmem:[#allocation18_spill] sm:$0xff] }
 0x1a1   : > { %3569 = vrot.lane.b32.xlu0 %v5858_v10, %s6347_s29  ;;  %v10428_v24 = vshrl.u32 %v10427_v15, 16  ;;  %v611_v5 = vshrl.u32 %v8392_v52, 16  ;;  %3247 = vrot.lane.b32.xlu1 %v5801_v26, %s6340_s11  ;;  %v696_v19 = vrot.slane %v695_v30, 4  ;;  %v599_v14 = vrot.slane %v597_v17, 5  ;;  %v8414_v26 = vld [vmem:[%s6492_s21 + $0x54] sm:$0xf] }
 0x1a2   : > { %v701_v28 = vrot.slane %v699_v12, 4  ;;  %v709_v40 = vor.u32 %v708_v46, %v705_v53  ;;  %v614_v10 = vshll.u32 %v8392_v52, 16  ;;  %v1524_v42 = vrot.slane %v1522_v6, 4  ;;  %v8417_v30 = vld [vmem:[%s6492_s21 + $0x58] sm:$0xf]  ;;  %v8419_v53 = vpop.permute.xlu1 %3233 }
 0x1a3   : > { %v605_v61 = vrot.slane %v10428_v24, 5  ;;  %v602_v54 = vrot.slane %v600_v41, 6  ;;  %v613_v51 = vrot.slane %v611_v5, 5  ;;  %v1527_v8 = vrot.slane %v1525_v33, 5  ;;  %v8422_v17 = vld [vmem:[%s6492_s21 + $0x78] sm:$0xf] }
 0x1a4   : > { %v700_v23 = vsel %vm6632_vm11, %v696_v19, %v699_v12  ;;  %v710_v55 = vsel %vm6632_vm11, %v701_v28, %v709_v40  ;;  %v616_v15 = vrot.slane %v614_v10, 6  ;;  %v1546_v12 = vshrl.u32 %v8414_v26, 16  ;;  %v10433_v24 = vld [vmem:[#allocation43_spill] sm:$0xff] }
 0x1a5   : > { %v607_v37 = vor.u32 %v10430_v50, %v605_v61  ;;  %3239 = vrot.lane.b32.xlu0 %v5797_v4, %s6340_s11  ;;  %v5808_v61 = vcombine.low %v700_v23, %v710_v55  ;;  %v603_v6 = vor.u32 %v602_v54, %v599_v14  ;;  %v10431_v46 = vshll.u32 %v8251_v49, 16  ;;  %v8443_v54 = vld [vmem:[%s6492_s21 + $0x50] sm:$0x1]  ;;  %v8445_v50 = vpop.permute.xlu0 %3203 }
 0x1a6   : > { %v8435_v5 = vsel %vm3920_vm5, %v8109_v16, %v10433_v24  ;;  %v617_v4 = vor.u32 %v616_v15, %v613_v51  ;;  %v10435_v19 = vshrl.u32 %v8328_v20, 16  ;;  %v1431_v14 = vrot.slane %v1429_v60, 5  ;;  %v8453_v51 = vld [vmem:[%s6492_s21 + $0x24] sm:$0xf]  ;;  %v8464_v24 = vld [vmem:[%s6492_s21 + $0x20] sm:$0x1]  ;;  %v8469_v23 = vpop.permute.xlu1 %3235 }
 0x1a7   : > { %v609_v33 = vrot.slane %v607_v37, 4  ;;  %v8428_v28 = vrot.slane %v10431_v46, 5  ;;  %10434 = vst [vmem:[#allocation43_spill] sm:$0xff] %v8435_v5  ;;  %3285 = vrot.lane.b32.xlu1 %v5808_v61, %s6339_s10  ;;  %v604_v49 = vrot.slane %v603_v6, 4  ;;  %v5863_v10 = vcombine.low %v8414_v26, %v8417_v30  ;;  %v8460_v61 = vld [vmem:[%s6492_s21 + $0x28] sm:$0xf] }
 0x1a8   : > { %v1428_v40 = vrot.slane %v10435_v19, 4  ;;  %v8457_v15 = vrot.slane %v1546_v12, 4  ;;  %v1528_v46 = vor.u32 %v1527_v8, %v1524_v42  ;;  %v10234_v41 = vshll.u32 %v8325_v57, 16  ;;  %v8867_v5 = vld [vmem:[%s6492_s21 + $0x2c] sm:$0x3] }
 0x1a9   : > { %10432 = vst [vmem:[#allocation18_spill] sm:$0xff] %v8428_v28  ;;  %v618_v20 = vsel %vm6632_vm11, %v609_v33, %v617_v4  ;;  %v608_v55 = vsel %vm6632_vm11, %v604_v49, %v607_v37  ;;  %v10235_v33 = vshrl.u32 %v8325_v57, 16  ;;  %v1541_v4 = vshll.u32 %v8443_v54, 16  ;;  %v8490_v6 = vpop.permute.xlu0 %3241 }
 0x1aa   : > { %v5804_v19 = vcombine.low %v608_v55, %v618_v20  ;;  %v1529_v37 = vrot.slane %v1528_v46, 4  ;;  %v1432_v12 = vor.u32 %v1431_v14, %v1428_v40  ;;  %v10237_v49 = vshll.u32 %v8353_v34, 16 }
 0x1ab   : > { %3579 = vrot.lane.b32.xlu1 %v5863_v10, %s6347_s29  ;;  %v10238_v42 = vshrl.u32 %v8353_v34, 16  ;;  %v5859_v8 = vcombine.low %v8453_v51, %v8460_v61  ;;  %v1533_v20 = vrot.slane %v10234_v41, 5  ;;  %v1537_v55 = vrot.slane %v10235_v33, 4 }
 0x1ac   : > { %3277 = vrot.lane.b32.xlu0 %v5804_v19, %s6339_s10  ;;  %v1445_v16 = vshll.u32 %v8464_v24, 16  ;;  %v1433_v40 = vrot.slane %v1432_v12, 4  ;;  %v1437_v14 = vrot.slane %v10237_v49, 5  ;;  %v8488_v19 = vld [vmem:[%s6492_s21 + $0x5c] sm:$0x3]  ;;  %v1543_v33 = vrot.slane %v1541_v4, 5  ;;  %v8504_v4 = vpop.permute.xlu1 %3273 }
 0x1ad   : > { %v1441_v46 = vrot.slane %v10238_v42, 4  ;;  %v1534_v41 = vsel %vm6586_vm8, %v1529_v37, %v1533_v20  ;;  %v1538_v60 = vor.u32 %v1537_v55, %v1533_v20  ;;  %v712_v59 = vshrl.u32 %v8336_v2, 16 }
 0x1ae   : > { %v1447_v35 = vrot.slane %v1445_v16, 5  ;;  %v1438_v10 = vsel %vm6586_vm8, %v1433_v40, %v1437_v14  ;;  %v715_v49 = vshll.u32 %v8336_v2, 16  ;;  %v10436_v7 = vshrl.u32 %v8192_v38, 16 }
 0x1af   : > { %v1442_v12 = vor.u32 %v1441_v46, %v1437_v14  ;;  %v1539_v42 = vrot.slane %v1538_v60, 4  ;;  %v10437_v18 = vshll.u32 %v8192_v38, 16  ;;  %v726_v16 = vshrl.u32 %v8488_v19, 16 }
 0x1b0   : > { %3571 = vrot.lane.b32.xlu0 %v5859_v8, %s6347_s29  ;;  %v720_v43 = vrot.slane %v10436_v7, 5  ;;  %v714_v55 = vrot.slane %v712_v59, 5  ;;  %v717_v40 = vrot.slane %v715_v49, 6  ;;  %v729_v14 = vshll.u32 %v8488_v19, 16 }
 0x1b1   : > { %v721_v37 = vrot.slane %v10437_v18, 6  ;;  %v1443_v20 = vrot.slane %v1442_v12, 4  ;;  %v1544_v2 = vsel %vm6586_vm8, %v1539_v42, %v1543_v33  ;;  %v728_v8 = vrot.slane %v726_v16, 5  ;;  %v8515_v12 = vpop.permute.xlu0 %3243 }
 0x1b2   : > { %v620_v7 = vshrl.u32 %v8339_v44, 16  ;;  %v5870_v46 = vcombine.low %v1534_v41, %v1544_v2  ;;  %v718_v63 = vor.u32 %v717_v40, %v714_v55  ;;  %v731_v45 = vrot.slane %v729_v14, 6  ;;  %v740_v14 = vld [vmem:[%s6492_s21 + $0x48] sm:$0xc]  ;;  %v8529_v2 = vpop.permute.xlu1 %3275 }
 0x1b3   : > { %v722_v60 = vor.u32 %v721_v37, %v720_v43  ;;  %v1448_v18 = vsel %vm6586_vm8, %v1443_v20, %v1447_v35  ;;  %v623_v33 = vshll.u32 %v8339_v44, 16  ;;  %v10438_v35 = vshrl.u32 %v8212_v3, 16 }
 0x1b4   : > { %v5866_v59 = vcombine.low %v1438_v10, %v1448_v18  ;;  %v622_v39 = vrot.slane %v620_v7, 5  ;;  %3617 = vrot.lane.b32.xlu1 %v5870_v46, %s6348_s23  ;;  %v719_v43 = vrot.slane %v718_v63, 4  ;;  %v732_v41 = vor.u32 %v731_v45, %v728_v8  ;;  %v736_v46 = vld [vmem:[%s6492_s21 + $0x18] sm:$0xc] }
 0x1b5   : > { %v724_v49 = vrot.slane %v722_v60, 4  ;;  %v628_v42 = vrot.slane %v10438_v35, 5  ;;  %v10439_v37 = vshll.u32 %v8212_v3, 16  ;;  %v10440_v20 = vshll.u32 %v8414_v26, 16 }
 0x1b6   : > { %3609 = vrot.lane.b32.xlu0 %v5866_v59, %s6348_s23  ;;  %v625_v10 = vrot.slane %v623_v33, 6  ;;  %v634_v44 = vshrl.u32 %v8513_v25, 16  ;;  %v637_v40 = vshll.u32 %v8513_v25, 16  ;;  %v10441_v63 = vshrl.u32 %v8453_v51, 16 }
 0x1b7   : > { %v629_v16 = vrot.slane %v10439_v37, 6  ;;  %v1551_v55 = vrot.slane %v10440_v20, 5  ;;  %v723_v8 = vsel %vm6632_vm11, %v719_v43, %v722_v60  ;;  %v733_v26 = vsel %vm6632_vm11, %v724_v49, %v732_v41 }
 0x1b8   : > { %v1452_v45 = vrot.slane %v10441_v63, 4  ;;  %v5809_v18 = vcombine.low %v723_v8, %v733_v26  ;;  %v626_v59 = vor.u32 %v625_v10, %v622_v39  ;;  %v636_v33 = vrot.slane %v634_v44, 5  ;;  %v8540_v63 = vpop.permute.xlu0 %3281  ;;  %v10443_v8 = vld [vmem:[#allocation15_spill] sm:$0xff] }
 0x1b9   : > { %v630_v7 = vor.u32 %v629_v16, %v628_v42  ;;  %v639_v35 = vrot.slane %v637_v40, 6  ;;  %v5512_v20 = vrot.slane %v740_v14, 10  ;;  %v805_v56 = vrot.slane %v8034_v29, 6  ;;  %v8556_v14 = vld [vmem:[%s6492_s21 + $0x5c] sm:$0x1] }
 0x1ba   : > { %v808_v27 = vrot.slane %v8368_v48, 6  ;;  %3287 = vrot.lane.b32.xlu1 %v5809_v18, %s6339_s10  ;;  %v627_v60 = vrot.slane %v626_v59, 4  ;;  %v5508_v49 = vrot.slane %v736_v46, 10  ;;  %v777_v41 = vrot.slane %v7925_v31, 6 }
 0x1bb   : > { %v632_v37 = vrot.slane %v630_v7, 4  ;;  %v640_v43 = vor.u32 %v639_v35, %v636_v33  ;;  %v10442_v39 = vshll.u32 %v8453_v51, 16  ;;  %v806_v16 = vsel %vm6549_vm7, %v5512_v20, %v805_v56  ;;  %v8558_v51 = vpop.permute.xlu1 %3313 }
 0x1bc   : > { %v807_v10 = vrot.slane %v805_v56, 4  ;;  %v780_v29 = vrot.slane %v8392_v52, 6  ;;  %v631_v48 = vsel %vm6632_vm11, %v627_v60, %v630_v7  ;;  %v778_v40 = vsel %vm6549_vm7, %v5508_v49, %v777_v41 }
 0x1bd   : > { %v1455_v42 = vrot.slane %v10442_v39, 5  ;;  %v641_v44 = vsel %vm6632_vm11, %v632_v37, %v640_v43  ;;  %v779_v31 = vrot.slane %v777_v41, 4  ;;  %v10444_v26 = vshll.u32 %v10443_v8, 16  ;;  %v8572_v37 = vld [vmem:[%s6492_s21 + $0x2c] sm:$0x1] }
 0x1be   : > { %v5805_v46 = vcombine.low %v631_v48, %v641_v44  ;;  %v809_v52 = vsel %vm6549_vm7, %v807_v10, %v808_v27  ;;  %v1552_v7 = vor.u32 %v1551_v55, %v8457_v15  ;;  %v10250_v33 = vshll.u32 %v8417_v30, 16  ;;  %v8576_v15 = vpop.permute.xlu0 %3283 }
 0x1bf   : > { %v8562_v56 = vrot.slane %v10444_v26, 5  ;;  %v5816_v18 = vcombine.low %v806_v16, %v809_v52  ;;  %v781_v59 = vsel %vm6549_vm7, %v779_v31, %v780_v29  ;;  %v10251_v35 = vshrl.u32 %v8417_v30, 16  ;;  %v8586_v16 = vld [vmem:[%s6492_s21 + $0x48] sm:$0xe]  ;;  %v8602_v52 = vld [vmem:[%s6492_s21 + $0x18] sm:$0xe] }
 0x1c0   : > { %3279 = vrot.lane.b32.xlu0 %v5805_v46, %s6339_s10  ;;  %v5812_v20 = vcombine.low %v778_v40, %v781_v59  ;;  %v1553_v60 = vrot.slane %v1552_v7, 4  ;;  %v1565_v43 = vshll.u32 %v8556_v14, 16  ;;  %v1456_v27 = vor.u32 %v1455_v42, %v1452_v45  ;;  %v8604_v7 = vpop.permute.xlu1 %3315 }
 0x1c1   : > { %10445 = vst [vmem:[#allocation15_spill] sm:$0xff] %v8562_v56  ;;  %3325 = vrot.lane.b32.xlu1 %v5816_v18, %s6341_s17  ;;  %v1557_v55 = vrot.slane %v10250_v33, 5  ;;  %v1561_v49 = vrot.slane %v10251_v35, 4  ;;  %v10248_v41 = vshll.u32 %v8460_v61, 16  ;;  %v10249_v39 = vshrl.u32 %v8460_v61, 16 }
 0x1c2   : > { %v10446_v10 = vshrl.u32 %v8422_v17, 16  ;;  %v10448_v42 = vshrl.u32 %v10443_v8, 16  ;;  %v1457_v48 = vrot.slane %v1456_v27, 4  ;;  %v1469_v44 = vshll.u32 %v8572_v37, 16  ;;  %v741_v33 = vld [vmem:[%s6492_s21 + $0x54] sm:$0xc] }
 0x1c3   : > { %v1562_v40 = vor.u32 %v1561_v49, %v1557_v55  ;;  %v1567_v31 = vrot.slane %v1565_v43, 5  ;;  %v1461_v26 = vrot.slane %v10248_v41, 5  ;;  %v1465_v46 = vrot.slane %v10249_v39, 4  ;;  %v8618_v41 = vpop.permute.xlu0 %3321 }
 0x1c4   : > { %v8590_v45 = vrot.slane %v10446_v10, 4  ;;  %v8594_v29 = vrot.slane %v10448_v42, 4  ;;  %3317 = vrot.lane.b32.xlu0 %v5812_v20, %s6341_s17  ;;  %v1558_v8 = vsel %vm6586_vm8, %v1553_v60, %v1557_v55  ;;  %v1471_v18 = vrot.slane %v1469_v44, 5 }
 0x1c5   : > { %v5618_v59 = vrot.slane %v8586_v16, 9  ;;  %v1679_v43 = vrot.slane %v8325_v57, 5  ;;  %v1563_v27 = vrot.slane %v1562_v40, 4  ;;  %v1462_v49 = vsel %vm6586_vm8, %v1457_v48, %v1461_v26 }
 0x1c6   : > { %10447 = vst [vmem:[#allocation60_spill] sm:$0xff] %v8590_v45  ;;  %10449 = vst [vmem:[#allocation61_spill] sm:$0xff] %v8594_v29  ;;  %v1466_v10 = vor.u32 %v1465_v46, %v1461_v26  ;;  %v1682_v42 = vrot.slane %v8443_v54, 5  ;;  %v5614_v55 = vrot.slane %v8602_v52, 9  ;;  %v1651_v44 = vrot.slane %v8353_v34, 5 }
 0x1c7   : > { %v1680_v20 = vsel %vm6488_vm2, %v5618_v59, %v1679_v43  ;;  %v1681_v60 = vrot.slane %v1679_v43, 4  ;;  %v1568_v40 = vsel %vm6586_vm8, %v1563_v27, %v1567_v31  ;;  %v1654_v48 = vrot.slane %v8464_v24, 5  ;;  %v6204_v26 = vld [vmem:[%s6492_s21 + $0x30] sm:$0xf]  ;;  %v6205_v46 = vld [vmem:[%s6492_s21 + $0x34] sm:$0xf] }
 0x1c8   : > { %v1467_v39 = vrot.slane %v1466_v10, 4  ;;  %v5782_v54 = vcombine.low %v6204_v26, %v6205_v46  ;;  %v5871_v59 = vcombine.low %v1558_v8, %v1568_v40  ;;  %v1652_v35 = vsel %vm6488_vm2, %v5614_v55, %v1651_v44  ;;  %v737_v29 = vld [vmem:[%s6492_s21 + $0x24] sm:$0xc]  ;;  %v8639_v10 = vpop.permute.xlu1 %3361  ;;  %v6207_v40 = vld [vmem:[%s6492_s21 + $0x40] sm:$0xf] }
 0x1c9   : > { %v1683_v43 = vsel %vm6488_vm2, %v1681_v60, %v1682_v42  ;;  %v1653_v45 = vrot.slane %v1651_v44, 4  ;;  %v10450_v56 = vshll.u32 %v8422_v17, 16  ;;  %v5513_v55 = vrot.slane %v741_v33, 10  ;;  %v8651_v44 = vld [vmem:[%s6492_s21 + $0x58] sm:$0xf] }
 0x1ca   : > { %v1472_v24 = vsel %vm6586_vm8, %v1467_v39, %v1471_v18  ;;  %v5878_v27 = vcombine.low %v1680_v20, %v1683_v43  ;;  %v3808_v8 = vsel %vm3793_vm12, %v5782_v54, %v8394_v32  ;;  %3619 = vrot.lane.b32.xlu1 %v5871_v59, %s6348_s23  ;;  %v812_v17 = vrot.slane %v8192_v38, 6  ;;  %v5520_v46 = vld [vmem:[%s6492_s21 + $0x24] sm:$0xf]  ;;  %v8675_v54 = vld [vmem:[%s6492_s21 + $0x28] sm:$0xf] }
 0x1cb   : > { %v8633_v31 = vrot.slane %v10450_v56, 5  ;;  %v5867_v42 = vcombine.low %v1462_v49, %v1472_v24  ;;  %v1655_v60 = vsel %vm6488_vm2, %v1653_v45, %v1654_v48  ;;  %v8646_v56 = vld [vmem:[%s6492_s21 + $0x54] sm:$0xf]  ;;  %v815_v18 = vrot.slane %v8488_v19, 6  ;;  %v8660_v19 = vpop.permute.xlu0 %3323  ;;  %v6206_v49 = vld [vmem:[%s6492_s21 + $0x3c] sm:$0xf] }
 0x1cc   : > { %v5874_v39 = vcombine.low %v1652_v35, %v1655_v60  ;;  %v5509_v32 = vrot.slane %v737_v29, 10  ;;  %v784_v20 = vrot.slane %v8212_v3, 6  ;;  %v813_v33 = vsel %vm6549_vm7, %v5513_v55, %v812_v17  ;;  %v8678_v43 = vld [vmem:[%s6492_s21 + $0x54] sm:$0xe]  ;;  %v8687_v55 = vld [vmem:[%s6492_s21 + $0x24] sm:$0xe] }
 0x1cd   : > { %10451 = vst [vmem:[#allocation62_spill] sm:$0xff] %v8633_v31  ;;  %3611 = vrot.lane.b32.xlu0 %v5867_v42, %s6348_s23  ;;  %v814_v45 = vrot.slane %v812_v17, 4  ;;  %v787_v38 = vrot.slane %v8513_v25, 6  ;;  %v3820_v35 = vsel %vm3818_vm13, %v7962_v58, %v8419_v53  ;;  %v5783_v48 = vcombine.low %v6206_v49, %v6207_v40  ;;  %v8689_v17 = vpop.permute.xlu1 %3363  ;;  %v8776_v31 = vld [vmem:[%s6492_s21 + $0x34] sm:$0xf] }
 0x1ce   : > { %v785_v3 = vsel %vm6549_vm7, %v5509_v32, %v784_v20  ;;  %v786_v29 = vrot.slane %v784_v20, 4  ;;  %v990_v26 = vshrl.u32 %v8646_v56, 16  ;;  %3657 = vrot.lane.b32.xlu1 %v5878_v27, %s6349_s30  ;;  %v993_v25 = vshll.u32 %v8646_v56, 16 }
 0x1cf   : > { %v816_v58 = vsel %vm6549_vm7, %v814_v45, %v815_v18  ;;  %v5824_v53 = vcombine.low %v8646_v56, %v8651_v44  ;;  %v894_v59 = vshrl.u32 %v5520_v46, 16  ;;  %v3811_v27 = vsel %vm3793_vm12, %v5783_v48, %v8445_v50  ;;  %v8709_v40 = vpop.permute.xlu0 %3369 }
 0x1d0   : > { %v5817_v24 = vcombine.low %v813_v33, %v816_v58  ;;  %v788_v42 = vsel %vm6549_vm7, %v786_v29, %v787_v38  ;;  %v8684_v60 = vrot.slane %v990_v26, 4  ;;  %v8692_v18 = vrot.slane %v993_v25, 5 }
 0x1d1   : > { %3649 = vrot.lane.b32.xlu0 %v5874_v39, %s6349_s30  ;;  %v5813_v56 = vcombine.low %v785_v3, %v788_v42  ;;  %v8694_v32 = vrot.slane %v894_v59, 4  ;;  %v897_v20 = vshll.u32 %v5520_v46, 16  ;;  %v5820_v33 = vcombine.low %v5520_v46, %v8675_v54 }
 0x1d2   : > { %v3822_v50 = vsel %vm3818_vm13, %v7970_v21, %v8469_v23  ;;  %v3828_v45 = vsel %vm3818_vm13, %v3808_v8, %v8490_v6  ;;  %v5619_v38 = vrot.slane %v8678_v43, 9  ;;  %3327 = vrot.lane.b32.xlu1 %v5817_v24, %s6341_s17  ;;  %v1686_v3 = vrot.slane %v8417_v30, 5  ;;  %v8722_v8 = vld [vmem:[%s6492_s21 + $0x50] sm:$0x3]  ;;  %v8735_v24 = vpop.permute.xlu1 %3401 }
 0x1d3   : > { %v8704_v39 = vrot.slane %v897_v20, 5  ;;  %v1689_v29 = vrot.slane %v8556_v14, 5  ;;  %v5615_v49 = vrot.slane %v8687_v55, 9  ;;  %v1658_v48 = vrot.slane %v8460_v61, 5 }
 0x1d4   : > { %v1661_v21 = vrot.slane %v8572_v37, 5  ;;  %v8715_v23 = vsel %vm3835_vm14, %v3820_v35, %v8504_v4  ;;  %v8719_v6 = vsel %vm3818_vm13, %v3811_v27, %v8515_v12  ;;  %v1687_v14 = vsel %vm6488_vm2, %v5619_v38, %v1686_v3 }
 0x1d5   : > { %3319 = vrot.lane.b32.xlu0 %v5813_v56, %s6341_s17  ;;  %v1688_v26 = vrot.slane %v1686_v3, 4  ;;  %v1806_v46 = vshrl.u32 %v8586_v16, 16  ;;  %v1809_v37 = vshll.u32 %v8586_v16, 16  ;;  %v1659_v4 = vsel %vm6488_vm2, %v5615_v49, %v1658_v48 }
 0x1d6   : > { %v1660_v35 = vrot.slane %v1658_v48, 4  ;;  %v10452_v12 = vshrl.u32 %v8325_v57, 16  ;;  %v10453_v25 = vshll.u32 %v8325_v57, 16  ;;  %3373 = vrot.lane.b32.xlu1 %v5824_v53, %s6342_s22  ;;  %v1820_v16 = vshrl.u32 %v8722_v8, 16  ;;  %v8745_v48 = vld [vmem:[%s6492_s21 + $0x20] sm:$0x3] }
 0x1d7   : > { %v1690_v42 = vsel %vm6488_vm2, %v1688_v26, %v1689_v29  ;;  %v1808_v27 = vrot.slane %v1806_v46, 5  ;;  %v1811_v56 = vrot.slane %v1809_v37, 6  ;;  %v1823_v49 = vshll.u32 %v8722_v8, 16  ;;  %v8749_v26 = vpop.permute.xlu0 %3371 }
 0x1d8   : > { %v1814_v58 = vrot.slane %v10452_v12, 5  ;;  %v1815_v59 = vrot.slane %v10453_v25, 6  ;;  %v5879_v20 = vcombine.low %v1687_v14, %v1690_v42  ;;  %v1662_v38 = vsel %vm6488_vm2, %v1660_v35, %v1661_v21 }
 0x1d9   : > { %3365 = vrot.lane.b32.xlu0 %v5820_v33, %s6342_s22  ;;  %v5875_v12 = vcombine.low %v1659_v4, %v1662_v38  ;;  %v1812_v53 = vor.u32 %v1811_v56, %v1808_v27  ;;  %v1822_v25 = vrot.slane %v1820_v16, 5  ;;  %v1714_v29 = vshrl.u32 %v8602_v52, 16  ;;  %v5530_v38 = vld [vmem:[%s6492_s21 + $0x60] sm:$0xf] }
 0x1da   : > { %v1816_v3 = vor.u32 %v1815_v59, %v1814_v58  ;;  %v1825_v46 = vrot.slane %v1823_v49, 6  ;;  %v1717_v21 = vshll.u32 %v8602_v52, 16  ;;  %v10454_v37 = vshrl.u32 %v8353_v34, 16  ;;  %3659 = vrot.lane.b32.xlu1 %v5879_v20, %s6349_s30  ;;  %v8763_v49 = vld [vmem:[%s6492_s21 + $0x64] sm:$0xf]  ;;  %v8765_v20 = vpop.permute.xlu1 %3403 }
 0x1db   : > { %v1813_v58 = vrot.slane %v1812_v53, 4  ;;  %v1716_v33 = vrot.slane %v1714_v29, 5  ;;  %v10455_v4 = vshll.u32 %v8353_v34, 16  ;;  %v1728_v42 = vshrl.u32 %v8745_v48, 16 }
 0x1dc   : > { %v1818_v14 = vrot.slane %v1816_v3, 4  ;;  %v1722_v35 = vrot.slane %v10454_v37, 5  ;;  %v1826_v27 = vor.u32 %v1825_v46, %v1822_v25  ;;  %v1719_v56 = vrot.slane %v1717_v21, 6 }
 0x1dd   : > { %v1723_v59 = vrot.slane %v10455_v4, 6  ;;  %v1731_v16 = vshll.u32 %v8745_v48, 16  ;;  %v3839_v52 = vsel %vm3835_vm14, %v3822_v50, %v8529_v2  ;;  %3651 = vrot.lane.b32.xlu0 %v5875_v12, %s6349_s30  ;;  %v1817_v53 = vsel %vm6632_vm11, %v1813_v58, %v1816_v3  ;;  %v5522_v4 = vld [vmem:[%s6492_s21 + $0x30] sm:$0xf] }
 0x1de   : > { %v1730_v25 = vrot.slane %v1728_v42, 5  ;;  %v3845_v46 = vsel %vm3835_vm14, %v3828_v45, %v8540_v63  ;;  %v1827_v21 = vsel %vm6632_vm11, %v1818_v14, %v1826_v27  ;;  %v1720_v37 = vor.u32 %v1719_v56, %v1716_v33  ;;  %v8793_v56 = vld [vmem:[%s6492_s21 + $0x5c] sm:$0x1] }
 0x1df   : > { %v1724_v29 = vor.u32 %v1723_v59, %v1722_v35  ;;  %v1733_v2 = vrot.slane %v1731_v16, 6  ;;  %v1014_v50 = vshrl.u32 %v5530_v38, 16  ;;  %v5886_v28 = vcombine.low %v1817_v53, %v1827_v21  ;;  %v8779_v35 = vpop.permute.xlu0 %3409 }
 0x1e0   : > { %v1017_v11 = vshll.u32 %v5530_v38, 16  ;;  %v5825_v3 = vcombine.low %v5530_v38, %v8763_v49  ;;  %v1721_v58 = vrot.slane %v1720_v37, 4  ;;  %v918_v14 = vshrl.u32 %v5522_v4, 16 }
 0x1e1   : > { %v1726_v12 = vrot.slane %v1724_v29, 4  ;;  %v1734_v63 = vor.u32 %v1733_v2, %v1730_v25  ;;  %v8781_v45 = vrot.slane %v1014_v50, 4  ;;  %3697 = vrot.lane.b32.xlu1 %v5886_v28, %s6350_s4  ;;  %v921_v59 = vshll.u32 %v5522_v4, 16  ;;  %v8807_v28 = vld [vmem:[%s6492_s21 + $0x2c] sm:$0x1]  ;;  %v8809_v25 = vpop.permute.xlu1 %3441 }
 0x1e2   : > { %v8784_v33 = vrot.slane %v1017_v11, 5  ;;  %v5821_v42 = vcombine.low %v5522_v4, %v8776_v31  ;;  %v8790_v27 = vsel %vm3852_vm15, %v8715_v23, %v8558_v51  ;;  %v1725_v16 = vsel %vm6632_vm11, %v1721_v58, %v1724_v29 }
 0x1e3   : > { %v1735_v38 = vsel %vm6632_vm11, %v1726_v12, %v1734_v63  ;;  %v8799_v53 = vrot.slane %v918_v14, 4  ;;  %v8804_v11 = vsel %vm3835_vm14, %v8719_v6, %v8576_v15  ;;  %v8811_v23 = vrot.slane %v921_v59, 5  ;;  %v8827_v12 = vpop.permute.xlu0 %3411 }
 0x1e4   : > { %v5882_v51 = vcombine.low %v1725_v16, %v1735_v38  ;;  %v996_v29 = vor.u32 %v8692_v18, %v8684_v60  ;;  %v10257_v21 = vshll.u32 %v8651_v44, 16  ;;  %v10258_v37 = vshrl.u32 %v8651_v44, 16  ;;  %v8842_v38 = vld [vmem:[%s6492_s21 + $0x5c] sm:$0x3] }
 0x1e5   : > { %v1009_v2 = vshll.u32 %v8793_v56, 16  ;;  %v900_v15 = vor.u32 %v8704_v39, %v8694_v32  ;;  %v10255_v6 = vshll.u32 %v8675_v54, 16  ;;  %3375 = vrot.lane.b32.xlu1 %v5825_v3, %s6342_s22  ;;  %v10256_v18 = vshrl.u32 %v8675_v54, 16 }
 0x1e6   : > { %3689 = vrot.lane.b32.xlu0 %v5882_v51, %s6350_s4  ;;  %v997_v50 = vrot.slane %v996_v29, 4  ;;  %v1001_v60 = vrot.slane %v10257_v21, 5  ;;  %v913_v4 = vshll.u32 %v8807_v28, 16  ;;  %v1005_v32 = vrot.slane %v10258_v37, 4 }
 0x1e7   : > { %v1011_v39 = vrot.slane %v1009_v2, 5  ;;  %v901_v58 = vrot.slane %v900_v15, 4  ;;  %v905_v63 = vrot.slane %v10255_v6, 5  ;;  %v909_v14 = vrot.slane %v10256_v18, 4 }
 0x1e8   : > { %v1002_v3 = vsel %vm6586_vm8, %v997_v50, %v1001_v60  ;;  %v915_v59 = vrot.slane %v913_v4, 5  ;;  %v8839_v16 = vsel %vm3852_vm15, %v3839_v52, %v8604_v7  ;;  %v1006_v51 = vor.u32 %v1005_v32, %v1001_v60  ;;  %v8851_v50 = vpop.permute.xlu1 %3443 }
 0x1e9   : > { %v906_v29 = vsel %vm6586_vm8, %v901_v58, %v905_v63  ;;  %v8848_v2 = vsel %vm3852_vm15, %v3845_v46, %v8618_v41  ;;  %v1829_v15 = vshrl.u32 %v8678_v43, 16  ;;  %v910_v4 = vor.u32 %v909_v14, %v905_v63  ;;  %v8862_v63 = vpop.permute.xlu0 %3449 }
 0x1ea   : > { %3367 = vrot.lane.b32.xlu0 %v5821_v42, %s6342_s22  ;;  %v1832_v7 = vshll.u32 %v8678_v43, 16  ;;  %v10456_v52 = vshrl.u32 %v8417_v30, 16  ;;  %v10457_v32 = vshll.u32 %v8417_v30, 16  ;;  %v1007_v6 = vrot.slane %v1006_v51, 4 }
 0x1eb   : > { %v1831_v18 = vrot.slane %v1829_v15, 5  ;;  %v1843_v41 = vshrl.u32 %v8842_v38, 16  ;;  %v1846_v46 = vshll.u32 %v8842_v38, 16  ;;  %v911_v21 = vrot.slane %v910_v4, 4 }
 0x1ec   : > { %v1837_v60 = vrot.slane %v10456_v52, 5  ;;  %v1838_v58 = vrot.slane %v10457_v32, 6  ;;  %v1834_v37 = vrot.slane %v1832_v7, 6  ;;  %v1737_v42 = vshrl.u32 %v8687_v55, 16  ;;  %v8872_v62 = vpop.permute.xlu1 %3481 }
 0x1ed   : > { %v1012_v43 = vsel %vm6586_vm8, %v1007_v6, %v1011_v39  ;;  %v1845_v14 = vrot.slane %v1843_v41, 5  ;;  %v1848_v52 = vrot.slane %v1846_v46, 6  ;;  %v1740_v51 = vshll.u32 %v8687_v55, 16 }
 0x1ee   : > { %v1839_v9 = vor.u32 %v1838_v58, %v1837_v60  ;;  %v5832_v15 = vcombine.low %v1002_v3, %v1012_v43  ;;  %v916_v4 = vsel %vm6586_vm8, %v911_v21, %v915_v59  ;;  %v1835_v7 = vor.u32 %v1834_v37, %v1831_v18  ;;  %v5634_v37 = vld [vmem:[%s6492_s21 + $0x48] sm:$0xc] }
 0x1ef   : > { %v5828_v32 = vcombine.low %v906_v29, %v916_v4  ;;  %v1849_v58 = vor.u32 %v1848_v52, %v1845_v14  ;;  %v1739_v1 = vrot.slane %v1737_v42, 5  ;;  %v1742_v36 = vrot.slane %v1740_v51, 6  ;;  %v5630_v42 = vld [vmem:[%s6492_s21 + $0x18] sm:$0xc] }
 0x1f0   : > { %v1841_v60 = vrot.slane %v1839_v9, 4  ;;  %3413 = vrot.lane.b32.xlu1 %v5832_v15, %s6343_s25  ;;  %v1836_v6 = vrot.slane %v1835_v7, 4  ;;  %v10458_v39 = vshrl.u32 %v8460_v61, 16  ;;  %v10459_v55 = vshll.u32 %v8460_v61, 16  ;;  %v8894_v15 = vpop.permute.xlu0 %3451 }
 0x1f1   : > { %v1751_v21 = vshrl.u32 %v8867_v5, 16  ;;  %3405 = vrot.lane.b32.xlu0 %v5828_v32, %s6343_s25  ;;  %v1743_v59 = vor.u32 %v1742_v36, %v1739_v1  ;;  %v1754_v29 = vshll.u32 %v8867_v5, 16  ;;  %v3871_v46 = vsel %vm3869_vm0, %v8790_v27, %v8639_v10 }
 0x1f2   : > { %v1745_v41 = vrot.slane %v10458_v39, 5  ;;  %v1746_v3 = vrot.slane %v10459_v55, 6  ;;  %v1850_v18 = vsel %vm6632_vm11, %v1841_v60, %v1849_v58  ;;  %v1840_v43 = vsel %vm6632_vm11, %v1836_v6, %v1839_v9  ;;  %v8903_v6 = vpop.permute.xlu1 %3205  ;;  %v8914_v55 = vld [vmem:[%s6492_s21 + $0x68] sm:$0x1] }
 0x1f3   : > { %v1753_v52 = vrot.slane %v1751_v21, 5  ;;  %v3864_v51 = vsel %vm3852_vm15, %v8804_v11, %v8660_v19  ;;  %v5887_v4 = vcombine.low %v1840_v43, %v1850_v18  ;;  %v1744_v1 = vrot.slane %v1743_v59, 4 }
 0x1f4   : > { %v1747_v14 = vor.u32 %v1746_v3, %v1745_v41  ;;  %v1756_v36 = vrot.slane %v1754_v29, 6  ;;  %v5642_v7 = vrot.slane %v5634_v37, 10  ;;  %v1951_v10 = vrot.slane %v8325_v57, 6  ;;  %v8929_v18 = vpop.permute.xlu0 %3489 }
 0x1f5   : > { %v1954_v27 = vrot.slane %v8722_v8, 6  ;;  %v5638_v32 = vrot.slane %v5630_v42, 10  ;;  %3699 = vrot.lane.b32.xlu1 %v5887_v4, %s6350_s4  ;;  %v1923_v19 = vrot.slane %v8353_v34, 6  ;;  %v1926_v11 = vrot.slane %v8745_v48, 6 }
 0x1f6   : > { %v1749_v60 = vrot.slane %v1747_v14, 4  ;;  %v1748_v9 = vsel %vm6632_vm11, %v1744_v1, %v1747_v14  ;;  %v1757_v58 = vor.u32 %v1756_v36, %v1753_v52  ;;  %v1952_v39 = vsel %vm6549_vm7, %v5642_v7, %v1951_v10 }
 0x1f7   : > { %v1953_v57 = vrot.slane %v1951_v10, 4  ;;  %v3873_v8 = vsel %vm3869_vm0, %v8839_v16, %v8689_v17  ;;  %v3879_v41 = vsel %vm3869_vm0, %v8848_v2, %v8709_v40  ;;  %v1924_v48 = vsel %vm6549_vm7, %v5638_v32, %v1923_v19  ;;  %v8927_v2 = vld [vmem:[%s6492_s21 + $0x38] sm:$0x1]  ;;  %v8948_v10 = vpop.permute.xlu1 %3491 }
 0x1f8   : > { %v1758_v34 = vsel %vm6632_vm11, %v1749_v60, %v1757_v58  ;;  %v1925_v3 = vrot.slane %v1923_v19, 4  ;;  %v1020_v21 = vor.u32 %v8784_v33, %v8781_v45  ;;  %v1023_v16 = vshll.u32 %v8763_v49, 16  ;;  %v8946_v60 = vld [vmem:[%s6492_s21 + $0x54] sm:$0xe] }
 0x1f9   : > { %v5883_v37 = vcombine.low %v1748_v9, %v1758_v34  ;;  %v1955_v17 = vsel %vm6549_vm7, %v1953_v57, %v1954_v27  ;;  %v1027_v40 = vshrl.u32 %v8763_v49, 16  ;;  %v1033_v45 = vshll.u32 %v8914_v55, 16 }
 0x1fa   : > { %v5894_v59 = vcombine.low %v1952_v39, %v1955_v17  ;;  %v1927_v29 = vsel %vm6549_vm7, %v1925_v3, %v1926_v11  ;;  %v1021_v42 = vrot.slane %v1020_v21, 4  ;;  %v1025_v43 = vrot.slane %v1023_v16, 5 }
 0x1fb   : > { %3691 = vrot.lane.b32.xlu0 %v5883_v37, %s6350_s4  ;;  %v5890_v33 = vcombine.low %v1924_v48, %v1927_v29  ;;  %v1029_v14 = vrot.slane %v1027_v40, 4  ;;  %v924_v52 = vor.u32 %v8811_v23, %v8799_v53  ;;  %v1035_v4 = vrot.slane %v1033_v45, 5  ;;  %v8955_v23 = vld [vmem:[%s6492_s21 + $0x24] sm:$0xe]  ;;  %v8967_v48 = vpop.permute.xlu0 %3483 }
 0x1fc   : > { %3737 = vrot.lane.b32.xlu1 %v5894_v59, %s6351_s5  ;;  %v927_v1 = vshll.u32 %v8776_v31, 16  ;;  %v931_v36 = vshrl.u32 %v8776_v31, 16  ;;  %v937_v7 = vshll.u32 %v8927_v2, 16  ;;  %v1026_v27 = vsel %vm6586_vm8, %v1021_v42, %v1025_v43 }
 0x1fd   : > { %v1030_v32 = vor.u32 %v1029_v14, %v1025_v43  ;;  %v925_v9 = vrot.slane %v924_v52, 4  ;;  %v3888_v53 = vsel %vm3886_vm1, %v3871_v46, %v8735_v24  ;;  %v3881_v39 = vsel %vm3869_vm0, %v3864_v51, %v8749_v26  ;;  %v5635_v51 = vld [vmem:[%s6492_s21 + $0x54] sm:$0xc]  ;;  %v5631_v14 = vld [vmem:[%s6492_s21 + $0x24] sm:$0xc]  ;;  %v8982_v52 = vpop.permute.xlu1 %3529 }
 0x1fe   : > { %v929_v58 = vrot.slane %v927_v1, 5  ;;  %v933_v19 = vrot.slane %v931_v36, 4  ;;  %v939_v11 = vrot.slane %v937_v7, 5  ;;  %v5554_v34 = vrot.slane %v8946_v60, 9 }
 0x1ff   : > { %3729 = vrot.lane.b32.xlu0 %v5890_v33, %s6351_s5  ;;  %v1031_v57 = vrot.slane %v1030_v32, 4  ;;  %v1113_v24 = vrot.slane %v8651_v44, 5  ;;  %v1116_v46 = vrot.slane %v8793_v56, 5  ;;  %v5550_v37 = vrot.slane %v8955_v23, 9 }
 0x200   : > { %v930_v3 = vsel %vm6586_vm8, %v925_v9, %v929_v58  ;;  %v934_v21 = vor.u32 %v933_v19, %v929_v58  ;;  %v1085_v26 = vrot.slane %v8675_v54, 5  ;;  %v1088_v56 = vrot.slane %v8807_v28, 5 }
 0x201   : > { %v1036_v17 = vsel %vm6586_vm8, %v1031_v57, %v1035_v4  ;;  %v1114_v59 = vsel %vm6488_vm2, %v5554_v34, %v1113_v24  ;;  %v1115_v29 = vrot.slane %v1113_v24, 4  ;;  %v3890_v4 = vsel %vm3886_vm1, %v3873_v8, %v8765_v20 }
 0x202   : > { %v5833_v42 = vcombine.low %v1026_v27, %v1036_v17  ;;  %v935_v45 = vrot.slane %v934_v21, 4  ;;  %v1086_v33 = vsel %vm6488_vm2, %v5550_v37, %v1085_v26  ;;  %v1087_v43 = vrot.slane %v1085_v26, 4  ;;  %v9004_v21 = vld [vmem:[%s6492_s21 + $0x60] sm:$0xe]  ;;  %v6209_v37 = vld [vmem:[%s6492_s21 + $0x54] sm:$0xf] }
 0x203   : > { %v1117_v7 = vsel %vm6488_vm2, %v1115_v29, %v1116_v46  ;;  %v3896_v32 = vsel %vm3886_vm1, %v3879_v41, %v8779_v35  ;;  %v5643_v28 = vrot.slane %v5635_v51, 10  ;;  %v1958_v19 = vrot.slane %v8417_v30, 6  ;;  %v8997_v41 = vpop.permute.xlu0 %3521  ;;  %v9014_v51 = vld [vmem:[%s6492_s21 + $0x28] sm:$0xf]  ;;  %v9017_v17 = vld [vmem:[%s6492_s21 + $0x24] sm:$0xf] }
 0x204   : > { %3415 = vrot.lane.b32.xlu1 %v5833_v42, %s6343_s25  ;;  %v940_v27 = vsel %vm6586_vm8, %v935_v45, %v939_v11  ;;  %v5840_v9 = vcombine.low %v1114_v59, %v1117_v7  ;;  %v1089_v58 = vsel %vm6488_vm2, %v1087_v43, %v1088_v56  ;;  %v1961_v35 = vrot.slane %v8842_v38, 6  ;;  %v9033_v59 = vpop.permute.xlu1 %3207 }
 0x205   : > { %v5829_v57 = vcombine.low %v930_v3, %v940_v27  ;;  %v5836_v20 = vcombine.low %v1086_v33, %v1089_v58  ;;  %v5639_v8 = vrot.slane %v5631_v14, 10  ;;  %v1959_v11 = vsel %vm6549_vm7, %v5643_v28, %v1958_v19  ;;  %v6208_v3 = vld [vmem:[%s6492_s21 + $0x58] sm:$0xf]  ;;  %v9051_v28 = vld [vmem:[%s6492_s21 + $0x5c] sm:$0x3] }
 0x206   : > { %v1960_v34 = vrot.slane %v1958_v19, 4  ;;  %v1930_v24 = vrot.slane %v8460_v61, 6  ;;  %v1933_v46 = vrot.slane %v8867_v5, 6  ;;  %v3905_v30 = vsel %vm3903_vm4, %v3888_v53, %v8809_v25  ;;  %v9022_v61 = vld [vmem:[%s6492_s21 + $0x30] sm:$0xe] }
 0x207   : > { %3407 = vrot.lane.b32.xlu0 %v5829_v57, %s6343_s25  ;;  %v3898_v38 = vsel %vm3886_vm1, %v3881_v39, %v8827_v12  ;;  %v5902_v26 = vcombine.low %v6209_v37, %v6208_v3  ;;  %v5898_v5 = vcombine.low %v9017_v17, %v9014_v51  ;;  %v9031_v39 = vsel %vm3903_vm4, %v3890_v4, %v8851_v50  ;;  %v9053_v27 = vpop.permute.xlu0 %3199  ;;  %v9085_v37 = vld [vmem:[%s6492_s21 + $0x2c] sm:$0x3] }
 0x208   : > { %3453 = vrot.lane.b32.xlu1 %v5840_v9, %s6344_s26  ;;  %v1962_v25 = vsel %vm6549_vm7, %v1960_v34, %v1961_v35  ;;  %v1931_v12 = vsel %vm6549_vm7, %v5639_v8, %v1930_v24  ;;  %v1932_v53 = vrot.slane %v1930_v24, 4  ;;  %v9037_v56 = vsel %vm3903_vm4, %v3896_v32, %v8862_v63 }
 0x209   : > { %v5895_v29 = vcombine.low %v1959_v11, %v1962_v25  ;;  %v5555_v42 = vrot.slane %v9004_v21, 9  ;;  %v1120_v45 = vrot.slane %v8763_v49, 5  ;;  %v1123_v43 = vrot.slane %v8914_v55, 5 }
 0x20a   : > { %v1934_v33 = vsel %vm6549_vm7, %v1932_v53, %v1933_v46  ;;  %v5551_v14 = vrot.slane %v9022_v61, 9  ;;  %v1092_v50 = vrot.slane %v8776_v31, 5  ;;  %v1095_v32 = vrot.slane %v8927_v2, 5  ;;  %v9068_v2 = vpop.permute.xlu1 %3245 }
 0x20b   : > { %3445 = vrot.lane.b32.xlu0 %v5836_v20, %s6344_s26  ;;  %v5891_v7 = vcombine.low %v1931_v12, %v1934_v33  ;;  %v1121_v63 = vsel %vm6488_vm2, %v5555_v42, %v1120_v45  ;;  %v1122_v4 = vrot.slane %v1120_v45, 4  ;;  %v9062_v58 = vsel %vm3920_vm5, %v3905_v30, %v8872_v62  ;;  %v9087_v25 = vpop.permute.xlu0 %3237  ;;  %v6184_v12 = vld [vmem:[#allocation2] sm:$0xff]  }
 0x20c   : > { %3739 = vrot.lane.b32.xlu1 %v5895_v29, %s6351_s5  ;;  %v9058_v55 = vsel %vm6488_vm2, %v5551_v14, %v1092_v50  ;;  %v1094_v9 = vrot.slane %v1092_v50, 4  ;;  %v9066_v19 = vsel %vm3903_vm4, %v3898_v38, %v8894_v15  ;;  %v1272_v20 = vshrl.u32 %v8946_v60, 16  ;;  %6025 = vmatprep.subr.bf16.mxu0 %v6184_v12 }
 0x20d   : > { %v1124_v57 = vsel %vm6488_vm2, %v1122_v4, %v1123_v43  ;;  %v1275_v35 = vshll.u32 %v8946_v60, 16  ;;  %v10460_v8 = vshrl.u32 %v8651_v44, 16  ;;  %v10461_v24 = vshll.u32 %v8651_v44, 16  ;;  %6051 = vmatprep.subr.bf16.mxu1 %v6184_v12  ;;  %6026 = vmatpush3.bf16.msra.mxu0 %v6184_v12 }
 0x20e   : > { %v5841_v34 = vcombine.low %v1121_v63, %v1124_v57  ;;  %v1096_v62 = vsel %vm6488_vm2, %v1094_v9, %v1095_v32  ;;  %v1286_v46 = vshrl.u32 %v9051_v28, 16  ;;  %v1274_v38 = vrot.slane %v1272_v20, 5  ;;  %v9092_v33 = vpop.permute.xlu1 %3531  ;;  %6056 = vmatpush3.bf16.msra.mxu1 %v6184_v12 }
 0x20f   : > { %v1280_v11 = vrot.slane %v10460_v8, 5  ;;  %v1281_v15 = vrot.slane %v10461_v24, 6  ;;  %3731 = vrot.lane.b32.xlu0 %v5891_v7, %s6351_s5  ;;  %v5837_v30 = vcombine.low %v9058_v55, %v1096_v62  ;;  %v1277_v3 = vrot.slane %v1275_v35, 6  ;;  %v9104_v8 = vpop.permute.xlu0 %3523 }
 0x210   : > { %v1289_v60 = vshll.u32 %v9051_v28, 16  ;;  %3785 = vrot.lane.b32.xlu1 %v5902_v26, %s6352_s20  ;;  %v1288_v29 = vrot.slane %v1286_v46, 5  ;;  %v1180_v42 = vshrl.u32 %v8955_v23, 16  ;;  %v1183_v45 = vshll.u32 %v8955_v23, 16  ;;  %v6213_v46 = vld [vmem:[%s6492_s21 + $0x4c] sm:$0xf] }
 0x211   : > { %v1282_v53 = vor.u32 %v1281_v15, %v1280_v11  ;;  %v1278_v43 = vor.u32 %v1277_v3, %v1274_v38  ;;  %v10462_v50 = vshrl.u32 %v8675_v54, 16  ;;  %v10463_v63 = vshll.u32 %v8675_v54, 16  ;;  %v6185_v11 = vld [vmem:[#allocation2 + $0x8] sm:$0xff]  }
 0x212   : > { %v1291_v14 = vrot.slane %v1289_v60, 6  ;;  %v1182_v26 = vrot.slane %v1180_v42, 5  ;;  %v1185_v55 = vrot.slane %v1183_v45, 6  ;;  %v1194_v9 = vshrl.u32 %v9085_v37, 16  ;;  %v6212_v15 = vld [vmem:[%s6492_s21 + $0x48] sm:$0xf]  ;;  %v9116_v60 = vpop.permute.xlu1 %3577  ;;  %6027 = vmatprep.subr.bf16.mxu0 %v6185_v11  ;;  %6052 = vmatprep.subr.bf16.mxu1 %v6185_v11 }
 0x213   : > { %v1188_v7 = vrot.slane %v10462_v50, 5  ;;  %v1189_v4 = vrot.slane %v10463_v63, 6  ;;  %v1284_v32 = vrot.slane %v1282_v53, 4  ;;  %3777 = vrot.lane.b32.xlu0 %v5898_v5, %s6352_s20  ;;  %v1279_v23 = vrot.slane %v1278_v43, 4  ;;  %6028 = vmatpush3.bf16.msra.mxu0 %v6185_v11  ;;  %v6186_v45 = vld [vmem:[#allocation2 + $0x10] sm:$0xff]  }
 0x214   : > { %v1292_v57 = vor.u32 %v1291_v14, %v1288_v29  ;;  %v1197_v35 = vshll.u32 %v9085_v37, 16  ;;  %3455 = vrot.lane.b32.xlu1 %v5841_v34, %s6344_s26  ;;  %v1186_v62 = vor.u32 %v1185_v55, %v1182_v26  ;;  %v1196_v24 = vrot.slane %v1194_v9, 5  ;;  %6057 = vmatpush3.bf16.msra.mxu1 %v6185_v11  ;;  %v6216_v14 = vld [vmem:[%s6492_s21 + $0x34] sm:$0xf]  ;;  %v6217_v50 = vld [vmem:[%s6492_s21 + $0x30] sm:$0xf] }
 0x215   : > { %v1190_v20 = vor.u32 %v1189_v4, %v1188_v7  ;;  %v5784_v38 = vcombine.low %v6212_v15, %v6213_v46  ;;  %v3930_v51 = vsel %vm3920_vm5, %v9037_v56, %v8929_v18  ;;  %v1283_v17 = vsel %vm6632_vm11, %v1279_v23, %v1282_v53  ;;  %v6214_v18 = vld [vmem:[%s6492_s21 + $0x64] sm:$0xf]  ;;  %v6215_v56 = vld [vmem:[%s6492_s21 + $0x60] sm:$0xf]  ;;  %v9137_v4 = vpop.permute.xlu0 %3569  ;;  %6029 = vmatprep.subr.bf16.mxu0 %v6186_v45  ;;  %v6187_v11 = vld [vmem:[#allocation2 + $0x18] sm:$0xff]  }
 0x216   : > { %v1293_v5 = vsel %vm6632_vm11, %v1284_v32, %v1292_v57  ;;  %v1199_v34 = vrot.slane %v1197_v35, 6  ;;  %v1187_v29 = vrot.slane %v1186_v62, 4  ;;  %v5903_v53 = vcombine.low %v6215_v56, %v6214_v18  ;;  %v9143_v32 = vld [vmem:[%s6492_s21 + $0x68] sm:$0x3]  ;;  %6053 = vmatprep.subr.bf16.mxu1 %v6186_v45  ;;  %v6218_v18 = vld [vmem:[%s6492_s21 + $0x54] sm:$0xf] }
 0x217   : > { %v1192_v3 = vrot.slane %v1190_v20, 4  ;;  %v5848_v12 = vcombine.low %v1283_v17, %v1293_v5  ;;  %v9120_v42 = vsel %vm3793_vm12, %v5784_v38, %v8903_v6  ;;  %3447 = vrot.lane.b32.xlu0 %v5837_v30, %s6344_s26  ;;  %v5899_v7 = vcombine.low %v6217_v50, %v6216_v14  ;;  %6030 = vmatpush3.bf16.msra.mxu0 %v6186_v45  ;;  %v6219_v56 = vld [vmem:[%s6492_s21 + $0x58] sm:$0xf] }
 0x218   : > { %v1200_v43 = vor.u32 %v1199_v34, %v1196_v24  ;;  %v9130_v63 = vsel %vm3920_vm5, %v9066_v19, %v8948_v10  ;;  %v9135_v6 = vsel %vm3920_vm5, %v9031_v39, %v8967_v48  ;;  %v1191_v30 = vsel %vm6632_vm11, %v1187_v29, %v1190_v20  ;;  %v9163_v20 = vld [vmem:[%s6492_s21 + $0x38] sm:$0x3]  ;;  %6058 = vmatpush3.bf16.msra.mxu1 %v6186_v45  ;;  %v5570_v45 = vld [vmem:[%s6492_s21 + $0x54] sm:$0xc] }
 0x219   : > { %3493 = vrot.lane.b32.xlu1 %v5848_v12, %s6345_s27  ;;  %v1295_v26 = vshrl.u32 %v9004_v21, 16  ;;  %v1298_v10 = vshll.u32 %v9004_v21, 16  ;;  %v9151_v39 = vsel %vm3937_vm6, %v3930_v51, %v8982_v52  ;;  %v9156_v19 = vsel %vm3937_vm6, %v9062_v58, %v8997_v41  ;;  %v9177_v17 = vpop.permute.xlu0 %3239  ;;  %6031 = vmatprep.subr.bf16.mxu0 %v6187_v11 }
 0x21a   : > { %v1201_v48 = vsel %vm6632_vm11, %v1192_v3, %v1200_v43  ;;  %v1303_v55 = vrot.slane %v1027_v40, 5  ;;  %v1304_v57 = vrot.slane %v1023_v16, 6  ;;  %v1309_v52 = vshrl.u32 %v9143_v32, 16  ;;  %v9169_v40 = vpop.permute.xlu1 %3247  ;;  %6054 = vmatprep.subr.bf16.mxu1 %v6187_v11  ;;  %v10464_v43 = vld [vmem:[#allocation29_spill] sm:$0xff] }
 0x21b   : > { %v5844_v9 = vcombine.low %v1191_v30, %v1201_v48  ;;  %v1297_v23 = vrot.slane %v1295_v26, 5  ;;  %v1300_v21 = vrot.slane %v1298_v10, 6  ;;  %v1312_v35 = vshll.u32 %v9143_v32, 16  ;;  %6032 = vmatpush3.bf16.msra.mxu0 %v6187_v11  ;;  %v6220_v26 = vld [vmem:[%s6492_s21 + $0x24] sm:$0xf] }
 0x21c   : > { %v1203_v41 = vshrl.u32 %v9022_v61, 16  ;;  %v1206_v58 = vshll.u32 %v9022_v61, 16  ;;  %v1305_v62 = vor.u32 %v1304_v57, %v1303_v55  ;;  %v1211_v24 = vrot.slane %v931_v36, 5  ;;  %6059 = vmatpush3.bf16.msra.mxu1 %v6187_v11  ;;  %v6221_v10 = vld [vmem:[%s6492_s21 + $0x28] sm:$0xf] }
 0x21d   : > { %3485 = vrot.lane.b32.xlu0 %v5844_v9, %s6345_s27  ;;  %3787 = vrot.lane.b32.xlu1 %v5903_v53, %s6352_s20  ;;  %v1301_v16 = vor.u32 %v1300_v21, %v1297_v23  ;;  %v1212_v15 = vrot.slane %v927_v1, 6  ;;  %v1311_v46 = vrot.slane %v1309_v52, 5  ;;  %v1314_v38 = vrot.slane %v1312_v35, 6  ;;  %v5566_v55 = vld [vmem:[%s6492_s21 + $0x24] sm:$0xc] }
 0x21e   : > { %v1205_v61 = vrot.slane %v1203_v41, 5  ;;  %v1208_v51 = vrot.slane %v1206_v58, 6  ;;  %v1307_v3 = vrot.slane %v1305_v62, 4  ;;  %v1217_v12 = vshrl.u32 %v9163_v20, 16  ;;  %v9198_v57 = vpop.permute.xlu1 %3285 }
 0x21f   : > { %v1302_v5 = vrot.slane %v1301_v16, 4  ;;  %v1213_v34 = vor.u32 %v1212_v15, %v1211_v24  ;;  %v1315_v1 = vor.u32 %v1314_v38, %v1311_v46  ;;  %v1220_v29 = vshll.u32 %v9163_v20, 16  ;;  %v9208_v24 = vpop.permute.xlu0 %3277  ;;  %v10465_v15 = vld [vmem:[#allocation26_spill] sm:$0xff] }
 0x220   : > { %v1209_v36 = vor.u32 %v1208_v51, %v1205_v61  ;;  %v5785_v53 = vcombine.low %v6218_v18, %v6219_v56  ;;  %v1219_v30 = vrot.slane %v1217_v12, 5  ;;  %v5781_v48 = vcombine.low %v6220_v26, %v6221_v10  ;;  %v5571_v61 = vld [vmem:[%s6492_s21 + $0x60] sm:$0xc]  ;;  %v9269_v26 = vld [vmem:[%s6492_s21 + $0x30] sm:$0xf] }
 0x221   : > { %3779 = vrot.lane.b32.xlu0 %v5899_v7, %s6352_s20  ;;  %4560 = vrot.lane.b32.xlu1 %v10464_v43, %s6353_s24  ;;  %v1306_v14 = vsel %vm6632_vm11, %v1302_v5, %v1305_v62  ;;  %v1215_v50 = vrot.slane %v1213_v34, 4  ;;  %v1316_v9 = vsel %vm6632_vm11, %v1307_v3, %v1315_v1  ;;  %v1222_v21 = vrot.slane %v1220_v29, 6  ;;  %v10466_v5 = vld [vmem:[#allocation53_spill] sm:$0xff] }
 0x222   : > { %v1210_v23 = vrot.slane %v1209_v36, 4  ;;  %v9196_v7 = vsel %vm3793_vm12, %v5785_v53, %v9033_v59  ;;  %v5849_v52 = vcombine.low %v1306_v14, %v1316_v9  ;;  %v9202_v35 = vsel %vm3793_vm12, %v5781_v48, %v9053_v27  ;;  %v9249_v29 = vpop.permute.xlu1 %3579  ;;  %v9261_v14 = vld [vmem:[%s6492_s21 + $0x64] sm:$0xf]  ;;  %v9285_v9 = vld [vmem:[%s6492_s21 + $0x34] sm:$0xf] }
 0x223   : > { %v5578_v41 = vrot.slane %v5570_v45, 10  ;;  %v1385_v58 = vrot.slane %v8651_v44, 6  ;;  %v1223_v16 = vor.u32 %v1222_v21, %v1219_v30  ;;  %v1388_v62 = vrot.slane %v9051_v28, 6 }
 0x224   : > { %v1214_v11 = vsel %vm6632_vm11, %v1210_v23, %v1213_v34  ;;  %v5574_v59 = vrot.slane %v5566_v55, 10  ;;  %v1357_v44 = vrot.slane %v8675_v54, 6  ;;  %v1360_v38 = vrot.slane %v9085_v37, 6  ;;  %v5567_v37 = vld [vmem:[%s6492_s21 + $0x30] sm:$0xc] }
 0x225   : > { %4552 = vrot.lane.b32.xlu0 %v10465_v15, %s6353_s24  ;;  %3495 = vrot.lane.b32.xlu1 %v5849_v52, %s6345_s27  ;;  %v1386_v27 = vsel %vm6549_vm7, %v5578_v41, %v1385_v58  ;;  %v1387_v46 = vrot.slane %v1385_v58, 4  ;;  %v1224_v28 = vsel %vm6632_vm11, %v1215_v50, %v1223_v16  ;;  %v9223_v51 = vsel %vm3818_vm13, %v9120_v42, %v9068_v2  ;;  %v9263_v50 = vpop.permute.xlu0 %3571  ;;  %v9288_v23 = vld [vmem:[%s6492_s21 + $0x6c] sm:$0xf]  ;;  %v9296_v41 = vld [vmem:[%s6492_s21 + $0x70] sm:$0xf] }
 0x226   : > { %v9228_v3 = vsel %vm3818_vm13, %v10466_v5, %v9087_v25  ;;  %v9233_v54 = vsel %vm3937_vm6, %v9130_v63, %v9092_v33  ;;  %v5845_v34 = vcombine.low %v1214_v11, %v1224_v28  ;;  %v1358_v1 = vsel %vm6549_vm7, %v5574_v59, %v1357_v44  ;;  %v9247_v63 = vld [vmem:[%s6492_s21 + $0x60] sm:$0xf]  ;;  %v9308_v15 = vpop.permute.xlu1 %3617 }
 0x227   : > { %v1389_v12 = vsel %vm6549_vm7, %v1387_v46, %v1388_v62  ;;  %v1359_v2 = vrot.slane %v1357_v44, 4  ;;  %v9243_v25 = vsel %vm3937_vm6, %v9135_v6, %v9104_v8  ;;  %v5579_v36 = vrot.slane %v5571_v61, 10  ;;  %v9306_v59 = vld [vmem:[%s6492_s21 + $0x40] sm:$0xf] }
 0x228   : > { %v5856_v42 = vcombine.low %v1386_v27, %v1389_v12  ;;  %v1392_v33 = vrot.slane %v8763_v49, 6  ;;  %v1395_v56 = vrot.slane %v9143_v32, 6  ;;  %v5575_v53 = vrot.slane %v5567_v37, 10 }
 0x229   : > { %3487 = vrot.lane.b32.xlu0 %v5845_v34, %s6345_s27  ;;  %v1361_v18 = vsel %vm6549_vm7, %v1359_v2, %v1360_v38  ;;  %v1364_v45 = vrot.slane %v8776_v31, 6  ;;  %v1367_v43 = vrot.slane %v9163_v20, 6  ;;  %v1570_v30 = vshrl.u32 %v9247_v63, 16  ;;  %v9326_v34 = vpop.permute.xlu0 %3609 }
 0x22a   : > { %3533 = vrot.lane.b32.xlu1 %v5856_v42, %s6346_s28  ;;  %v5852_v8 = vcombine.low %v1358_v1, %v1361_v18  ;;  %v1393_v49 = vsel %vm6549_vm7, %v5579_v36, %v1392_v33  ;;  %v1394_v6 = vrot.slane %v1392_v33, 4  ;;  %v9276_v20 = vsel %vm3954_vm9, %v9151_v39, %v9116_v60  ;;  %v9335_v1 = vld [vmem:[%s6492_s21 + $0x68] sm:$0x1] }
 0x22b   : > { %v1365_v32 = vsel %vm6549_vm7, %v5575_v53, %v1364_v45  ;;  %v1366_v31 = vrot.slane %v1364_v45, 4  ;;  %v9281_v48 = vsel %vm3954_vm9, %v9156_v19, %v9137_v4  ;;  %v1573_v55 = vshll.u32 %v9247_v63, 16  ;;  %v9299_v4 = vld [vmem:[%s6492_s21 + $0x3c] sm:$0xf]  ;;  %v10467_v19 = vld [vmem:[#allocation43_spill] sm:$0xff] }
 0x22c   : > { %v1396_v10 = vsel %vm6549_vm7, %v1394_v6, %v1395_v56  ;;  %v1572_v60 = vrot.slane %v1570_v30, 4  ;;  %v5864_v39 = vcombine.low %v9247_v63, %v9261_v14  ;;  %v1474_v16 = vshrl.u32 %v9269_v26, 16  ;;  %v9349_v63 = vld [vmem:[%s6492_s21 + $0x38] sm:$0x1]  ;;  %v9355_v6 = vpop.permute.xlu1 %3287 }
 0x22d   : > { %3525 = vrot.lane.b32.xlu0 %v5852_v8, %s6346_s28  ;;  %v5857_v21 = vcombine.low %v1393_v49, %v1396_v10  ;;  %v1368_v52 = vsel %vm6549_vm7, %v1366_v31, %v1367_v43  ;;  %v1575_v11 = vrot.slane %v1573_v55, 5  ;;  %v1477_v62 = vshll.u32 %v9269_v26, 16  ;;  %v9373_v55 = vld [vmem:[%s6492_s21 + $0x74] sm:$0x1] }
 0x22e   : > { %4562 = vrot.lane.b32.xlu1 %v10467_v19, %s6353_s24  ;;  %v5853_v58 = vcombine.low %v1365_v32, %v1368_v52  ;;  %v5860_v27 = vcombine.low %v9269_v26, %v9285_v9  ;;  %v9315_v46 = vsel %vm3818_vm13, %v9196_v7, %v9169_v40  ;;  %v9320_v44 = vsel %vm3818_vm13, %v9202_v35, %v9177_v17  ;;  %v10468_v40 = vld [vmem:[#allocation17_spill] sm:$0xff] }
 0x22f   : > { %v1594_v38 = vshrl.u32 %v9288_v23, 16  ;;  %v1476_v61 = vrot.slane %v1474_v16, 4  ;;  %v1479_v28 = vrot.slane %v1477_v62, 5  ;;  %v1597_v5 = vshll.u32 %v9288_v23, 16 }
 0x230   : > { %v5865_v37 = vcombine.low %v9288_v23, %v9296_v41  ;;  %v1498_v12 = vshrl.u32 %v9299_v4, 16  ;;  %v1501_v17 = vshll.u32 %v9299_v4, 16  ;;  %v5861_v35 = vcombine.low %v9299_v4, %v9306_v59 }
 0x231   : > { %4554 = vrot.lane.b32.xlu0 %v10468_v40, %s6353_s24  ;;  %v1596_v7 = vrot.slane %v1594_v38, 4  ;;  %v1599_v2 = vrot.slane %v1597_v5, 5  ;;  %v9341_v42 = vsel %vm3835_vm14, %v9223_v51, %v9198_v57  ;;  %v9346_v36 = vsel %vm3835_vm14, %v9228_v3, %v9208_v24 }
 0x232   : > { %3535 = vrot.lane.b32.xlu1 %v5857_v21, %s6346_s28  ;;  %v1576_v33 = vor.u32 %v1575_v11, %v1572_v60  ;;  %v1500_v18 = vrot.slane %v1498_v12, 4  ;;  %v1503_v56 = vrot.slane %v1501_v17, 5  ;;  %v1579_v53 = vshll.u32 %v9261_v14, 16  ;;  %v9375_v23 = vpop.permute.xlu0 %3279  ;;  %v9406_v12 = vld [vmem:[%s6492_s21 + $0x60] sm:$0xe] }
 0x233   : > { %v1583_v45 = vshrl.u32 %v9261_v14, 16  ;;  %v1589_v49 = vshll.u32 %v9335_v1, 16  ;;  %v1480_v57 = vor.u32 %v1479_v28, %v1476_v61  ;;  %v1483_v51 = vshll.u32 %v9285_v9, 16  ;;  %v9399_v5 = vpop.permute.xlu1 %3325 }
 0x234   : > { %v1577_v8 = vrot.slane %v1576_v33, 4  ;;  %v1581_v24 = vrot.slane %v1579_v53, 5  ;;  %v1487_v43 = vshrl.u32 %v9285_v9, 16  ;;  %v1493_v32 = vshll.u32 %v9349_v63, 16 }
 0x235   : > { %3527 = vrot.lane.b32.xlu0 %v5853_v58, %s6346_s28  ;;  %v1585_v3 = vrot.slane %v1583_v45, 4  ;;  %v1591_v31 = vrot.slane %v1589_v49, 5  ;;  %v1481_v30 = vrot.slane %v1480_v57, 4  ;;  %v1485_v26 = vrot.slane %v1483_v51, 5 }
 0x236   : > { %3581 = vrot.lane.b32.xlu1 %v5864_v39, %s6347_s29  ;;  %v9370_v10 = vsel %vm3954_vm9, %v9233_v54, %v9249_v29  ;;  %v1582_v21 = vsel %vm6586_vm8, %v1577_v8, %v1581_v24  ;;  %v1489_v60 = vrot.slane %v1487_v43, 4  ;;  %v1495_v39 = vrot.slane %v1493_v32, 5 }
 0x237   : > { %v1586_v52 = vor.u32 %v1585_v3, %v1581_v24  ;;  %v1486_v4 = vsel %vm6586_vm8, %v1481_v30, %v1485_v26  ;;  %v9386_v54 = vsel %vm3954_vm9, %v9243_v25, %v9263_v50  ;;  %v1600_v29 = vor.u32 %v1599_v2, %v1596_v7  ;;  %v9396_v25 = vld [vmem:[%s6492_s21 + $0x44] sm:$0x1]  ;;  %v9418_v3 = vld [vmem:[%s6492_s21 + $0x30] sm:$0xe] }
 0x238   : > { %v1603_v19 = vshll.u32 %v9296_v41, 16  ;;  %v1490_v11 = vor.u32 %v1489_v60, %v1485_v26  ;;  %v1607_v16 = vshrl.u32 %v9296_v41, 16  ;;  %v1613_v62 = vshll.u32 %v9373_v55, 16 }
 0x239   : > { %3573 = vrot.lane.b32.xlu0 %v5860_v27, %s6347_s29  ;;  %v1587_v58 = vrot.slane %v1586_v52, 4  ;;  %v1601_v38 = vrot.slane %v1600_v29, 4  ;;  %v1504_v50 = vor.u32 %v1503_v56, %v1500_v18  ;;  %v1507_v28 = vshll.u32 %v9306_v59, 16  ;;  %v3318_v56 = vpop.permute.xlu0 %3317 }
 0x23a   : > { %3583 = vrot.lane.b32.xlu1 %v5865_v37, %s6347_s29  ;;  %v1605_v61 = vrot.slane %v1603_v19, 5  ;;  %v1491_v40 = vrot.slane %v1490_v11, 4  ;;  %v1609_v7 = vrot.slane %v1607_v16, 4  ;;  %v1615_v37 = vrot.slane %v1613_v62, 5 }
 0x23b   : > { %v1592_v27 = vsel %vm6586_vm8, %v1587_v58, %v1591_v31  ;;  %v1505_v33 = vrot.slane %v1504_v50, 4  ;;  %v1509_v18 = vrot.slane %v1507_v28, 5  ;;  %v1511_v57 = vshrl.u32 %v9306_v59, 16  ;;  %v9457_v50 = vld [vmem:[%s6492_s21 + $0x3c] sm:$0xe] }
 0x23c   : > { %v5872_v17 = vcombine.low %v1582_v21, %v1592_v27  ;;  %v1606_v2 = vsel %vm6586_vm8, %v1601_v38, %v1605_v61  ;;  %v1496_v8 = vsel %vm6586_vm8, %v1491_v40, %v1495_v39  ;;  %v1610_v49 = vor.u32 %v1609_v7, %v1605_v61  ;;  %v9439_v58 = vpop.permute.xlu1 %3619 }
 0x23d   : > { %3575 = vrot.lane.b32.xlu0 %v5861_v35, %s6347_s29  ;;  %v1517_v24 = vshll.u32 %v9396_v25, 16  ;;  %v5868_v32 = vcombine.low %v1486_v4, %v1496_v8  ;;  %v1510_v31 = vsel %vm6586_vm8, %v1505_v33, %v1509_v18  ;;  %v5620_v35 = vrot.slane %v9406_v12, 9 }
 0x23e   : > { %3621 = vrot.lane.b32.xlu1 %v5872_v17, %s6348_s23  ;;  %v1611_v30 = vrot.slane %v1610_v49, 4  ;;  %v1513_v26 = vrot.slane %v1511_v57, 4  ;;  %v9429_v52 = vsel %vm3971_vm10, %v9276_v20, %v9308_v15  ;;  %v9434_v60 = vsel %vm3971_vm10, %v9281_v48, %v9326_v34  ;;  %v9447_v48 = vld [vmem:[%s6492_s21 + $0x6c] sm:$0xe] }
 0x23f   : > { %v1519_v21 = vrot.slane %v1517_v24, 5  ;;  %v1693_v39 = vrot.slane %v9261_v14, 5  ;;  %v1696_v4 = vrot.slane %v9335_v1, 5  ;;  %v5616_v29 = vrot.slane %v9418_v3, 9  ;;  %v9459_v27 = vpop.permute.xlu0 %3611 }
 0x240   : > { %v1616_v20 = vsel %vm6586_vm8, %v1611_v30, %v1615_v37  ;;  %v1514_v15 = vor.u32 %v1513_v26, %v1509_v18  ;;  %v1665_v11 = vrot.slane %v9285_v9, 5  ;;  %v1668_v62 = vrot.slane %v9349_v63, 5  ;;  %v9474_v33 = vpop.permute.xlu1 %3657 }
 0x241   : > { %3613 = vrot.lane.b32.xlu0 %v5868_v32, %s6348_s23  ;;  %v5873_v34 = vcombine.low %v1606_v2, %v1616_v20  ;;  %v1694_v1 = vsel %vm6488_vm2, %v5620_v35, %v1693_v39  ;;  %v1695_v38 = vrot.slane %v1693_v39, 4  ;;  %v9454_v61 = vsel %vm3835_vm14, %v9315_v46, %v9355_v6 }
 0x242   : > { %v1515_v40 = vrot.slane %v1514_v15, 4  ;;  %v1666_v63 = vsel %vm6488_vm2, %v5616_v29, %v1665_v11  ;;  %v1667_v7 = vrot.slane %v1665_v11, 4  ;;  %v9466_v37 = vsel %vm3835_vm14, %v9320_v44, %v9375_v23 }
 0x243   : > { %3623 = vrot.lane.b32.xlu1 %v5873_v34, %s6348_s23  ;;  %v1697_v46 = vsel %vm6488_vm2, %v1695_v38, %v1696_v4  ;;  %v5621_v6 = vrot.slane %v9447_v48, 9  ;;  %v1700_v17 = vrot.slane %v9296_v41, 5  ;;  %v1703_v2 = vrot.slane %v9373_v55, 5  ;;  %v9483_v30 = vpop.permute.xlu0 %3649 }
 0x244   : > { %v1520_v18 = vsel %vm6586_vm8, %v1515_v40, %v1519_v21  ;;  %v5880_v8 = vcombine.low %v1694_v1, %v1697_v46  ;;  %v1669_v44 = vsel %vm6488_vm2, %v1667_v7, %v1668_v62  ;;  %v5617_v23 = vrot.slane %v9457_v50, 9  ;;  %v9520_v40 = vld [vmem:[%s6492_s21 + $0x38] sm:$0x3] }
 0x245   : > { %v5869_v49 = vcombine.low %v1510_v31, %v1520_v18  ;;  %v5876_v24 = vcombine.low %v1666_v63, %v1669_v44  ;;  %v1701_v32 = vsel %vm6488_vm2, %v5621_v6, %v1700_v17  ;;  %v1702_v35 = vrot.slane %v1700_v17, 4  ;;  %v9497_v31 = vld [vmem:[%s6492_s21 + $0x68] sm:$0x3] }
 0x246   : > { %v1672_v55 = vrot.slane %v9306_v59, 5  ;;  %v1675_v26 = vrot.slane %v9396_v25, 5  ;;  %v9490_v21 = vsel %vm3852_vm15, %v9341_v42, %v9399_v5  ;;  %v9494_v39 = vsel %vm3852_vm15, %v9346_v36, %v3318_v56  ;;  %v9507_v5 = vpop.permute.xlu1 %3327 }
 0x247   : > { %3615 = vrot.lane.b32.xlu0 %v5869_v49, %s6348_s23  ;;  %3661 = vrot.lane.b32.xlu1 %v5880_v8, %s6349_s30  ;;  %v1704_v4 = vsel %vm6488_vm2, %v1702_v35, %v1703_v2  ;;  %v1852_v25 = vshrl.u32 %v9406_v12, 16  ;;  %v1855_v29 = vshll.u32 %v9406_v12, 16  ;;  %v1860_v42 = vrot.slane %v1583_v45, 5  ;;  %v9515_v12 = vpop.permute.xlu0 %3319 }
 0x248   : > { %v5881_v36 = vcombine.low %v1701_v32, %v1704_v4  ;;  %v1673_v56 = vsel %vm6488_vm2, %v5617_v23, %v1672_v55  ;;  %v1674_v20 = vrot.slane %v1672_v55, 4  ;;  %v1861_v15 = vrot.slane %v1579_v53, 6 }
 0x249   : > { %v1854_v11 = vrot.slane %v1852_v25, 5  ;;  %v1857_v62 = vrot.slane %v1855_v29, 6  ;;  %v1866_v34 = vshrl.u32 %v9497_v31, 16  ;;  %v1869_v1 = vshll.u32 %v9497_v31, 16 }
 0x24a   : > { %v1676_v45 = vsel %vm6488_vm2, %v1674_v20, %v1675_v26  ;;  %v1862_v38 = vor.u32 %v1861_v15, %v1860_v42  ;;  %v1760_v63 = vshrl.u32 %v9418_v3, 16  ;;  %v1763_v7 = vshll.u32 %v9418_v3, 16  ;;  %v9526_v2 = vpop.permute.xlu1 %3373  ;;  %v9552_v42 = vld [vmem:[%s6492_s21 + $0x74] sm:$0x3] }
 0x24b   : > { %3653 = vrot.lane.b32.xlu0 %v5876_v24, %s6349_s30  ;;  %3663 = vrot.lane.b32.xlu1 %v5881_v36, %s6349_s30  ;;  %v5877_v53 = vcombine.low %v1673_v56, %v1676_v45  ;;  %v1858_v46 = vor.u32 %v1857_v62, %v1854_v11  ;;  %v1868_v6 = vrot.slane %v1866_v34, 5  ;;  %v1871_v17 = vrot.slane %v1869_v1, 6  ;;  %v9533_v32 = vpop.permute.xlu0 %3365 }
 0x24c   : > { %v1864_v18 = vrot.slane %v1862_v38, 4  ;;  %v1762_v0 = vrot.slane %v1760_v63, 5  ;;  %v1765_v8 = vrot.slane %v1763_v7, 6  ;;  %v1768_v44 = vrot.slane %v1487_v43, 5  ;;  %v9568_v7 = vld [vmem:[%s6492_s21 + $0x44] sm:$0x3] }
 0x24d   : > { %v1859_v23 = vrot.slane %v1858_v46, 4  ;;  %v1872_v49 = vor.u32 %v1871_v17, %v1868_v6  ;;  %v1769_v3 = vrot.slane %v1483_v51, 6  ;;  %v1774_v24 = vshrl.u32 %v9520_v40, 16 }
 0x24e   : > { %v1766_v35 = vor.u32 %v1765_v8, %v1762_v0  ;;  %v1777_v55 = vshll.u32 %v9520_v40, 16  ;;  %v9539_v26 = vsel %vm3971_vm10, %v9370_v10, %v9439_v58  ;;  %v9544_v43 = vsel %vm3971_vm10, %v9386_v54, %v9459_v27  ;;  %v9560_v11 = vpop.permute.xlu1 %3659 }
 0x24f   : > { %3655 = vrot.lane.b32.xlu0 %v5877_v53, %s6349_s30  ;;  %v1863_v51 = vsel %vm6632_vm11, %v1859_v23, %v1862_v38  ;;  %v1873_v4 = vsel %vm6632_vm11, %v1864_v18, %v1872_v49  ;;  %v1770_v25 = vor.u32 %v1769_v3, %v1768_v44  ;;  %v1776_v29 = vrot.slane %v1774_v24, 5 }
 0x250   : > { %v5888_v36 = vcombine.low %v1863_v51, %v1873_v4  ;;  %v1767_v10 = vrot.slane %v1766_v35, 4  ;;  %v1779_v58 = vrot.slane %v1777_v55, 6  ;;  %v1875_v56 = vshrl.u32 %v9447_v48, 16  ;;  %v10469_v35 = vld [vmem:[#allocation56_spill] sm:$0xff]  ;;  %v10470_v55 = vld [vmem:[#allocation18_spill] sm:$0xff] }
 0x251   : > { %v1772_v54 = vrot.slane %v1770_v25, 4  ;;  %v1878_v27 = vshll.u32 %v9447_v48, 16  ;;  %v1883_v20 = vrot.slane %v1607_v16, 5  ;;  %v1884_v15 = vrot.slane %v1603_v19, 6  ;;  %v9571_v19 = vpop.permute.xlu0 %3651 }
 0x252   : > { %3701 = vrot.lane.b32.xlu1 %v5888_v36, %s6350_s4  ;;  %v1771_v62 = vsel %vm6632_vm11, %v1767_v10, %v1770_v25  ;;  %v1780_v34 = vor.u32 %v1779_v58, %v1776_v29  ;;  %v1877_v1 = vrot.slane %v1875_v56, 5  ;;  %v1889_v45 = vshrl.u32 %v9552_v42, 16  ;;  %v5636_v25 = vld [vmem:[%s6492_s21 + $0x60] sm:$0xc]  ;;  %v10472_v10 = vld [vmem:[#allocation61_spill] sm:$0xff] }
 0x253   : > { %v1880_v38 = vrot.slane %v1878_v27, 6  ;;  %v1885_v63 = vor.u32 %v1884_v15, %v1883_v20  ;;  %v1892_v48 = vshll.u32 %v9552_v42, 16  ;;  %v1783_v16 = vshrl.u32 %v9457_v50, 16  ;;  %v9586_v29 = vpop.permute.xlu1 %3697  ;;  %v10471_v36 = vld [vmem:[#allocation15_spill] sm:$0xff]  ;;  %v5632_v27 = vld [vmem:[%s6492_s21 + $0x30] sm:$0xc] }
 0x254   : > { %v1781_v53 = vsel %vm6632_vm11, %v1772_v54, %v1780_v34  ;;  %v1891_v46 = vrot.slane %v1889_v45, 5  ;;  %v1786_v6 = vshll.u32 %v9457_v50, 16  ;;  %v1791_v17 = vrot.slane %v1511_v57, 5  ;;  %v10473_v20 = vld [vmem:[#allocation60_spill] sm:$0xff]  ;;  %v10474_v15 = vld [vmem:[#allocation62_spill] sm:$0xff] }
 0x255   : > { %v5884_v18 = vcombine.low %v1771_v62, %v1781_v53  ;;  %v1881_v0 = vor.u32 %v1880_v38, %v1877_v1  ;;  %v1887_v8 = vrot.slane %v1885_v63, 4  ;;  %v1894_v44 = vrot.slane %v1892_v48, 6 }
 0x256   : > { %v1785_v23 = vrot.slane %v1783_v16, 5  ;;  %v1788_v49 = vrot.slane %v1786_v6, 6  ;;  %v1792_v3 = vrot.slane %v1507_v28, 6  ;;  %v1797_v24 = vshrl.u32 %v9568_v7, 16 }
 0x257   : > { %v2084_v51 = vor.u32 %v10470_v55, %v10469_v35  ;;  %3693 = vrot.lane.b32.xlu0 %v5884_v18, %s6350_s4  ;;  %v1882_v50 = vrot.slane %v1881_v0, 4  ;;  %v1895_v4 = vor.u32 %v1894_v44, %v1891_v46  ;;  %v1800_v57 = vshll.u32 %v9568_v7, 16  ;;  %v5637_v44 = vld [vmem:[%s6492_s21 + $0x6c] sm:$0xc] }
 0x258   : > { %v2190_v58 = vor.u32 %v10472_v10, %v10471_v36  ;;  %v1789_v56 = vor.u32 %v1788_v49, %v1785_v23  ;;  %v1793_v54 = vor.u32 %v1792_v3, %v1791_v17  ;;  %v1799_v28 = vrot.slane %v1797_v24, 5  ;;  %v9597_v38 = vpop.permute.xlu0 %3689  ;;  %v5633_v3 = vld [vmem:[%s6492_s21 + $0x3c] sm:$0xc]  ;;  %v6223_v35 = vld [vmem:[%s6492_s21 + $0x6c] sm:$0xf] }
 0x259   : > { %v2180_v62 = vor.u32 %v10474_v15, %v10473_v20  ;;  %v1886_v34 = vsel %vm6632_vm11, %v1882_v50, %v1885_v63  ;;  %v1896_v1 = vsel %vm6632_vm11, %v1887_v8, %v1895_v4  ;;  %v1802_v45 = vrot.slane %v1800_v57, 6  ;;  %v3376_v4 = vpop.permute.xlu1 %3375 }
 0x25a   : > { %v5889_v48 = vcombine.low %v1886_v34, %v1896_v1  ;;  %v1790_v16 = vrot.slane %v1789_v56, 4  ;;  %v1795_v53 = vrot.slane %v1793_v54, 4  ;;  %v5644_v46 = vrot.slane %v5636_v25, 10  ;;  %v10476_v34 = vld [vmem:[#allocation55_spill] sm:$0xff] }
 0x25b   : > { %v1803_v6 = vor.u32 %v1802_v45, %v1799_v28  ;;  %v1965_v17 = vrot.slane %v9261_v14, 6  ;;  %v1968_v18 = vrot.slane %v9497_v31, 6  ;;  %v5640_v0 = vrot.slane %v5632_v27, 10 }
 0x25c   : > { %3703 = vrot.lane.b32.xlu1 %v5889_v48, %s6350_s4  ;;  %v1794_v63 = vsel %vm6632_vm11, %v1790_v16, %v1793_v54  ;;  %v1937_v8 = vrot.slane %v9285_v9, 6  ;;  %v1940_v23 = vrot.slane %v9520_v40, 6  ;;  %v3868_v49 = vsel %vm3852_vm15, %v9454_v61, %v9507_v5  ;;  %v3368_v61 = vpop.permute.xlu0 %3367 }
 0x25d   : > { %v1804_v14 = vsel %vm6632_vm11, %v1795_v53, %v1803_v6  ;;  %v1966_v31 = vsel %vm6549_vm7, %v5644_v46, %v1965_v17  ;;  %v1967_v24 = vrot.slane %v1965_v17, 4  ;;  %v3860_v50 = vsel %vm3852_vm15, %v9466_v37, %v9515_v12  ;;  %v10477_v53 = vld [vmem:[#allocation51_spill] sm:$0xff]  ;;  %v10479_v17 = vld [vmem:[#allocation57_spill] sm:$0xff] }
 0x25e   : > { %v5885_v9 = vcombine.low %v1794_v63, %v1804_v14  ;;  %v1938_v40 = vsel %vm6549_vm7, %v5640_v0, %v1937_v8  ;;  %v1939_v57 = vrot.slane %v1937_v8, 4  ;;  %v5645_v25 = vrot.slane %v5637_v44, 10  ;;  %v10482_v63 = vld [vmem:[#allocation48_spill] sm:$0xff] }
 0x25f   : > { %v1969_v22 = vsel %vm6549_vm7, %v1967_v24, %v1968_v18  ;;  %v1972_v5 = vrot.slane %v9296_v41, 6  ;;  %v1975_v10 = vrot.slane %v9552_v42, 6  ;;  %v5641_v56 = vrot.slane %v5633_v3, 10  ;;  %v10475_v42 = vld [vmem:[#allocation10_spill] sm:$0xff]  ;;  %v10484_v24 = vld [vmem:[#allocation12_spill] sm:$0xff] }
 0x260   : > { %3695 = vrot.lane.b32.xlu0 %v5885_v9, %s6350_s4  ;;  %v5896_v54 = vcombine.low %v1966_v31, %v1969_v22  ;;  %v1941_v37 = vsel %vm6549_vm7, %v1939_v57, %v1940_v23  ;;  %v1944_v12 = vrot.slane %v9306_v59, 6  ;;  %v1947_v28 = vrot.slane %v9568_v7, 6  ;;  %v10480_v18 = vld [vmem:[#allocation14_spill] sm:$0xff]  ;;  %v10485_v9 = vld [vmem:[#allocation35_spill] sm:$0xff]  ;;  %v6222_v57 = vld [vmem:[%s6492_s21 + $0x70] sm:$0xf] }
 0x261   : > { %v5892_v27 = vcombine.low %v1938_v40, %v1941_v37  ;;  %v1973_v20 = vsel %vm6549_vm7, %v5645_v25, %v1972_v5  ;;  %v1974_v15 = vrot.slane %v1972_v5, 4  ;;  %v3883_v41 = vsel %vm3869_vm0, %v9490_v21, %v9526_v2  ;;  %v10491_v22 = vld [vmem:[#allocation22_spill] sm:$0xff] }
 0x262   : > { %v2162_v1 = vsel %vm6586_vm8, %v10476_v34, %v10475_v42  ;;  %3741 = vrot.lane.b32.xlu1 %v5896_v54, %s6351_s5  ;;  %v1945_v59 = vsel %vm6549_vm7, %v5641_v56, %v1944_v12  ;;  %v1946_v7 = vrot.slane %v1944_v12, 4  ;;  %v3875_v45 = vsel %vm3869_vm0, %v9494_v39, %v9533_v32  ;;  %v3414_v6 = vpop.permute.xlu1 %3413  ;;  %v6188_v37 = vld [vmem:[#allocation2 + $0x20] sm:$0x3f]   ;;  %v10493_v42 = vld [vmem:[#allocation41_spill] sm:$0xff] }
 0x263   : > { %v2181_v48 = vrot.slane %v2180_v62, 4  ;;  %v2191_v16 = vrot.slane %v2190_v58, 4  ;;  %v10478_v46 = vshll.u32 %v10477_v53, 16  ;;  %v1976_v2 = vsel %vm6549_vm7, %v1974_v15, %v1975_v10  ;;  %v3406_v58 = vpop.permute.xlu0 %3405  ;;  %v6224_v12 = vld [vmem:[%s6492_s21 + $0x40] sm:$0xf] }
 0x264   : > { %v10481_v0 = vor.u32 %v10479_v17, %v10480_v18  ;;  %v10483_v8 = vshll.u32 %v10482_v63, 16  ;;  %3733 = vrot.lane.b32.xlu0 %v5892_v27, %s6351_s5  ;;  %v5897_v39 = vcombine.low %v1973_v20, %v1976_v2  ;;  %v1948_v32 = vsel %vm6549_vm7, %v1946_v7, %v1947_v28  ;;  %v6225_v28 = vld [vmem:[%s6492_s21 + $0x3c] sm:$0xf]  ;;  %v6227_v7 = vld [vmem:[%s6492_s21 + $0x78] sm:$0xf]  ;;  %v10494_v53 = vld [vmem:[#allocation47_spill] sm:$0xff] }
 0x265   : > { %v2195_v21 = vrot.slane %v10478_v46, 5  ;;  %v2085_v62 = vrot.slane %v2084_v51, 4  ;;  %v5893_v3 = vcombine.low %v1945_v59, %v1948_v32  ;;  %v9660_v14 = vsel %vm3869_vm0, %v3868_v49, %v3376_v4  ;;  %v10488_v4 = vld [vmem:[#allocation27_spill] sm:$0xff]  ;;  %v6226_v59 = vld [vmem:[%s6492_s21 + $0x7c] sm:$0xf] }
 0x266   : > { %v2095_v44 = vrot.slane %v10481_v0, 4  ;;  %v2099_v23 = vrot.slane %v10483_v8, 5  ;;  %v9663_v31 = vsel %vm3869_vm0, %v3860_v50, %v3368_v61  ;;  %v10486_v47 = vsel %vm6586_vm8, %v10484_v24, %v10485_v9  ;;  %3743 = vrot.lane.b32.xlu1 %v5897_v39, %s6351_s5  ;;  %v10487_v50 = vld [vmem:[#allocation31_spill] sm:$0xff]  ;;  %v10490_v61 = vld [vmem:[#allocation30_spill] sm:$0xff]  ;;  %v6228_v0 = vld [vmem:[%s6492_s21 + $0x4c] sm:$0xf] }
 0x267   : > { %v5912_v40 = vcombine.low %v2162_v1, %v10486_v47  ;;  %v5904_v55 = vcombine.low %v6223_v35, %v6222_v57  ;;  %v9674_v51 = vsel %vm3886_vm1, %v3883_v41, %v3414_v6  ;;  %v9677_v49 = vsel %vm3886_vm1, %v3875_v45, %v3406_v58  ;;  %v10496_v17 = vld [vmem:[#allocation54_spill] sm:$0xff]  ;;  %v10497_v8 = vld [vmem:[#allocation44_spill] sm:$0xff]  ;;  %v10500_v24 = vld [vmem:[#allocation49_spill] sm:$0xff] }
 0x268   : > { %v10489_v25 = vsel %vm6586_vm8, %v10487_v50, %v10488_v4  ;;  %v10492_v5 = vsel %vm6586_vm8, %v10490_v61, %v10491_v22  ;;  %v2186_v56 = vsel %vm6586_vm8, %v2181_v48, %v10471_v36  ;;  %v2196_v54 = vsel %vm6586_vm8, %v2191_v16, %v2195_v21  ;;  %3735 = vrot.lane.b32.xlu0 %v5893_v3, %s6351_s5  ;;  %v9707_v48 = vpop.permute.xlu1 %3699  ;;  %v10495_v21 = vld [vmem:[#allocation38_spill] sm:$0xff]  ;;  %v10498_v39 = vld [vmem:[#allocation20_spill] sm:$0xff] }
 0x269   : > { %v5908_v10 = vcombine.low %v10492_v5, %v10489_v25  ;;  %v5900_v27 = vcombine.low %v6225_v28, %v6224_v12  ;;  %vm4648_vm2 = vcmask 1044480   ;;  %vm4649_vm7 = vcmask 1045504   ;;  %v10501_v47 = vld [vmem:[#allocation28_spill] sm:$0xff]  ;;  %v10502_v57 = vld [vmem:[#allocation50_spill] sm:$0xff] }
 0x26a   : > { %v2090_v20 = vsel %vm6586_vm8, %v2085_v62, %v10480_v18  ;;  %v2100_v36 = vsel %vm6586_vm8, %v2095_v44, %v2099_v23  ;;  %v6354_v15 = vmov 65535   ;;  %v4428_v34 = vsel %vm3793_vm12, %v5912_v40, %v10493_v42  ;;  %3789 = vrot.lane.b32.xlu1 %v5904_v55, %s6352_s20  ;;  %v6229_v44 = vld [vmem:[%s6492_s21 + $0x48] sm:$0xf]  ;;  %v10499_v62 = vld [vmem:[#allocation45_spill] sm:$0xff]  ;;  %v10505_v61 = vld [vmem:[#allocation42_spill] sm:$0xff] }
 0x26b   : > { %v4650_v41 = vsel %vm4648_vm2, 4294967295, %v6354_v15  ;;  %v5913_v1 = vcombine.low %v2186_v56, %v2196_v54  ;;  %v5905_v45 = vcombine.low %v6227_v7, %v6226_v59  ;;  %v4445_v13 = vsel %vm3818_vm13, %v4428_v34, %v10494_v53  ;;  %v10503_v55 = vld [vmem:[#allocation19_spill] sm:$0xff]  ;;  %v10504_v4 = vld [vmem:[#allocation36_spill] sm:$0xff]  ;;  %v10515_v53 = vld [vmem:[#allocation37_spill] sm:$0xff] }
 0x26c   : > { %v4651_v16 = vsel %vm4649_vm7, %v4650_v41, 0  ;;  %v4416_v2 = vsel %vm3793_vm12, %v5908_v10, %v10495_v21  ;;  %v5909_v6 = vcombine.low %v2090_v20, %v2100_v36  ;;  %v4461_v18 = vsel %vm3835_vm14, %v4445_v13, %v10496_v17  ;;  %3781 = vrot.lane.b32.xlu0 %v5900_v27, %s6352_s20  ;;  %v10506_v5 = vld [vmem:[#allocation16_spill] sm:$0xff]  ;;  %v10507_v56 = vld [vmem:[#allocation23_spill] sm:$0xff]  ;;  %v10509_v27 = vld [vmem:[#allocation46_spill] sm:$0xff] }
 0x26d   : > { %v4653_v46 = vand.u32 %v6188_v37, %v4651_v16  ;;  %v5901_v63 = vcombine.low %v6229_v44, %v6228_v0  ;;  %v4437_v23 = vsel %vm3818_vm13, %v4416_v2, %v10497_v8  ;;  %v4477_v32 = vsel %vm3852_vm15, %v4461_v18, %v10498_v39  ;;  %v9722_v58 = vpop.permute.xlu0 %3691  ;;  %v10508_v37 = vld [vmem:[#allocation13_spill] sm:$0xff]  ;;  %v10510_v36 = vld [vmem:[#allocation24_spill] sm:$0xff]  ;;  %v10512_v34 = vld [vmem:[#allocation59_spill] sm:$0xff] }
 0x26e   : > { %v4431_v3 = vsel %vm3793_vm12, %v5913_v1, %v10499_v62  ;;  %v4453_v9 = vsel %vm3835_vm14, %v4437_v23, %v10500_v24  ;;  %v4493_v40 = vsel %vm3869_vm0, %v4477_v32, %v10501_v47  ;;  %3791 = vrot.lane.b32.xlu1 %v5905_v45, %s6352_s20  ;;  %v4419_v22 = vsel %vm3793_vm12, %v5909_v6, %v10505_v61  ;;  %v3738_v28 = vpop.permute.xlu1 %3737  ;;  %v10511_v41 = vld [vmem:[#allocation33_spill] sm:$0xff]  ;;  %v10513_v59 = vld [vmem:[#allocation52_spill] sm:$0xff]  ;;  %v10517_v2 = vld [vmem:[#allocation11_spill] sm:$0xff] }
 0x26f   : > { %6033 = vmatprep.subr.bf16.mxu0 %v4653_v46  ;;  %6055 = vmatprep.subr.bf16.mxu1 %v4653_v46  ;;  %v4447_v35 = vsel %vm3818_vm13, %v4431_v3, %v10502_v57  ;;  %v4469_v50 = vsel %vm3852_vm15, %v4453_v9, %v10503_v55  ;;  %v4509_v25 = vsel %vm3886_vm1, %v4493_v40, %v10504_v4  ;;  %v10514_v45 = vld [vmem:[#allocation32_spill] sm:$0xff]  ;;  %v10519_v44 = vld [vmem:[#allocation25_spill] sm:$0xff]  ;;  %v10521_v39 = vld [vmem:[#allocation34_spill] sm:$0xff]  ;;  %vm3988_vm8 = vcmask 293888  }
 0x270   : > { %6034 = vmatpush3.bf16.msra.mxu0 %v4653_v46  ;;  %6060 = vmatpush3.bf16.msra.mxu1 %v4653_v46  ;;  %v4463_v10 = vsel %vm3835_vm14, %v4447_v35, %v10506_v5  ;;  %v4485_v54 = vsel %vm3869_vm0, %v4469_v50, %v10507_v56  ;;  %v4525_v12 = vsel %vm3903_vm4, %v4509_v25, %v10508_v37  ;;  %v10516_v46 = vld [vmem:[#allocation21_spill] sm:$0xff]  ;;  %v10518_v17 = vld [vmem:[#allocation8_spill] sm:$0xff]  ;;  %v10523_v24 = vld [vmem:[#allocation39_spill] sm:$0xff]  ;;  %vm4005_vm11 = vcmask 318464  }
 0x271   : > { %3783 = vrot.lane.b32.xlu0 %v5901_v63, %s6352_s20  ;;  %v4439_v20 = vsel %vm3818_vm13, %v4419_v22, %v10509_v27  ;;  %v4479_v15 = vsel %vm3852_vm15, %v4463_v10, %v10510_v36  ;;  %v4501_v42 = vsel %vm3886_vm1, %v4485_v54, %v10511_v41  ;;  %v4541_v1 = vsel %vm3920_vm5, %v4525_v12, %v10512_v34  ;;  %v3730_v0 = vpop.permute.xlu0 %3729  ;;  %v10520_v8 = vld [vmem:[#allocation40_spill] sm:$0xff]  ;;  %v10522_v62 = vld [vmem:[#allocation9_spill] sm:$0xff]  ;;  %v10524_v40 = vld [vmem:[#allocation58_spill] sm:$0xff] }
 0x272   : > { %v4455_v7 = vsel %vm3835_vm14, %v4439_v20, %v10513_v59  ;;  %v4495_v16 = vsel %vm3869_vm0, %v4479_v15, %v10514_v45  ;;  %v4517_v13 = vsel %vm3903_vm4, %v4501_v42, %v10515_v53  ;;  %4564 = vrot.lane.b32.xlu1 %v4541_v1, %s6353_s24  ;;  %vm4022_vm12 = vcmask 343040  }
 0x273   : > { %v4471_v21 = vsel %vm3852_vm15, %v4455_v7, %v10516_v46  ;;  %v4511_v6 = vsel %vm3886_vm1, %v4495_v16, %v10517_v2  ;;  %v4533_v18 = vsel %vm3920_vm5, %v4517_v13, %v10518_v17  ;;  %vm4039_vm13 = vcmask 367616  }
 0x274   : > { %v4487_v63 = vsel %vm3869_vm0, %v4471_v21, %v10519_v44  ;;  %v4527_v23 = vsel %vm3903_vm4, %v4511_v6, %v10520_v8  ;;  %vm4568_vm14 = vcmask 392192   ;;  %vm4631_vm15 = vcmask 613376  }
 0x275   : > { %4556 = vrot.lane.b32.xlu0 %v4533_v18, %s6353_s24  ;;  %v4503_v32 = vsel %vm3886_vm1, %v4487_v63, %v10521_v39  ;;  %v4543_v3 = vsel %vm3920_vm5, %v4527_v23, %v10522_v62  ;;  %v3990_v7 = vsel %vm3988_vm8, %v9434_v60, %v9483_v30  ;;  %v3992_v18 = vsel %vm3988_vm8, %v9544_v43, %v9571_v19 }
 0x276   : > { %v4519_v9 = vsel %vm3903_vm4, %v4503_v32, %v10523_v24  ;;  %4566 = vrot.lane.b32.xlu1 %v4543_v3, %s6353_s24  ;;  %v3416_v47 = vpop.permute.xlu1 %3415  ;;  %vm5270_vm2 = vcmask 1045509  }
 0x277   : > { %v4535_v57 = vsel %vm3920_vm5, %v4519_v9, %v10524_v40  ;;  %v3902_v35 = vsel %vm3886_vm1, %v9660_v14, %v3416_v47 }
 0x279   : > { %4558 = vrot.lane.b32.xlu0 %v4535_v57, %s6353_s24  ;;  %v3408_v55 = vpop.permute.xlu0 %3407 }
 0x27a   : > { %v3894_v50 = vsel %vm3886_vm1, %v9663_v31, %v3408_v55  ;;  %v3454_v4 = vpop.permute.xlu1 %3453 }
 0x27b   : > { %v3917_v25 = vsel %vm3903_vm4, %v9674_v51, %v3454_v4 }
 0x27d   : > { %v3446_v61 = vpop.permute.xlu0 %3445 }
 0x27e   : > { %v3909_v22 = vsel %vm3903_vm4, %v9677_v49, %v3446_v61  ;;  %v3740_v5 = vpop.permute.xlu1 %3739  ;;  %v3998_v49 = vsel %vm3988_vm8, %v9429_v52, %v9474_v33  ;;  %v4007_v33 = vsel %vm4005_vm11, %v3990_v7, %v9597_v38  ;;  %v4000_v38 = vsel %vm3988_vm8, %v9539_v26, %v9560_v11 }
 0x27f   : > { %v4015_v41 = vsel %vm4005_vm11, %v3998_v49, %v9586_v29  ;;  %v4024_v29 = vsel %vm4022_vm12, %v4007_v33, %v3730_v0  ;;  %v4017_v2 = vsel %vm4005_vm11, %v4000_v38, %v9707_v48  ;;  %v4009_v26 = vsel %vm4005_vm11, %v3992_v18, %v9722_v58 }
 0x280   : > { %v4032_v42 = vsel %vm4022_vm12, %v4015_v41, %v3738_v28  ;;  %v4034_v6 = vsel %vm4022_vm12, %v4017_v2, %v3740_v5 }
 0x281   : > { %v3732_v10 = vpop.permute.xlu0 %3731 }
 0x282   : > { %v3786_v56 = vpop.permute.xlu1 %3785  ;;  %v4026_v8 = vsel %vm4022_vm12, %v4009_v26, %v3732_v10 }
 0x283   : > { %v4049_v34 = vsel %vm4039_vm13, %v4032_v42, %v3786_v56 }
 0x285   : > { %v3778_v54 = vpop.permute.xlu0 %3777 }
 0x286   : > { %v3456_v37 = vpop.permute.xlu1 %3455  ;;  %v4041_v28 = vsel %vm4039_vm13, %v4024_v29, %v3778_v54 }
 0x287   : > { %v3919_v14 = vsel %vm3903_vm4, %v3902_v35, %v3456_v37 }
 0x289   : > { %v3448_v12 = vpop.permute.xlu0 %3447 }
 0x28a   : > { %v3911_v27 = vsel %vm3903_vm4, %v3894_v50, %v3448_v12 }
 0x28b   : > { %v3494_v20 = vpop.permute.xlu1 %3493 }
 0x28c   : > { %v3934_v31 = vsel %vm3920_vm5, %v3917_v25, %v3494_v20 }
 0x28f   : > { %v3486_v51 = vpop.permute.xlu0 %3485  ;;  %v3788_v36 = vpop.permute.xlu1 %3787 }
 0x290   : > { %v3926_v15 = vsel %vm3920_vm5, %v3909_v22, %v3486_v51  ;;  %v4051_v0 = vsel %vm4039_vm13, %v4034_v6, %v3788_v36 }
 0x293   : > { %v3780_v1 = vpop.permute.xlu0 %3779  ;;  %v4561_v59 = vpop.permute.xlu1 %4560 }
 0x294   : > { %v4578_v52 = vsel %vm4568_vm14, %v4049_v34, %v4561_v59  ;;  %v4043_v48 = vsel %vm4039_vm13, %v4026_v8, %v3780_v1  ;;  %v6355_v8 = vmov 1983009808  }
 0x295   : > { %6043 = vmatprep.mubr.msk.bf16.mxu1 %vm4631_vm15, %v4578_v52 }
 0x297   : > { %v4553_v45 = vpop.permute.xlu0 %4552  ;;  %v3496_v16 = vpop.permute.xlu1 %3495 }
 0x298   : > { %v4570_v53 = vsel %vm4568_vm14, %v4041_v28, %v4553_v45  ;;  %v3936_v13 = vsel %vm3920_vm5, %v3919_v14, %v3496_v16 }
 0x299   : > { %6035 = vmatprep.mubr.msk.bf16.mxu0 %vm4631_vm15, %v4570_v53 }
 0x29b   : > { %v3488_v60 = vpop.permute.xlu0 %3487 }
 0x29c   : > { %v3928_v30 = vsel %vm3920_vm5, %v3911_v27, %v3488_v60  ;;  %v3534_v46 = vpop.permute.xlu1 %3533 }
 0x29d   : > { %v3951_v21 = vsel %vm3937_vm6, %v3934_v31, %v3534_v46 }
 0x29f   : > { %v3526_v17 = vpop.permute.xlu0 %3525 }
 0x2a0   : > { %v3943_v44 = vsel %vm3937_vm6, %v3926_v15, %v3526_v17  ;;  %v4563_v63 = vpop.permute.xlu1 %4562 }
 0x2a1   : > { %v4580_v11 = vsel %vm4568_vm14, %v4051_v0, %v4563_v63 }
 0x2a2   : > { %6044 = vmatmul.mubr.msk.bf16.vlgmr.msra.gmra.mrb[0].mxu1 %vm4631_vm15, %v4580_v11 }
 0x2a3   : > { %v4555_v23 = vpop.permute.xlu0 %4554 }
 0x2a4   : > { %v4572_v39 = vsel %vm4568_vm14, %v4043_v48, %v4555_v23  ;;  %v3536_v43 = vpop.permute.xlu1 %3535  ;;  %v4786_v48 = vunpack.c.l.s4 %v6355_v8  ;;  %v4788_v23 = vlaneseq }
 0x2a5   : > { %6036 = vmatmul.mubr.msk.bf16.vlgmr.msra.gmra.mrb[0].mxu0 %vm4631_vm15, %v4572_v39  ;;  %v3953_v36 = vsel %vm3937_vm6, %v3936_v13, %v3536_v43  ;;  %v9868_v39 = vld [vmem:[#allocation4] ss:$0 sm:$0xff] }
 0x2a7   : > { %v3528_v19 = vpop.permute.xlu0 %3527 }
 0x2a8   : > { %v3582_v32 = vpop.permute.xlu1 %3581  ;;  %v3945_v59 = vsel %vm3937_vm6, %v3928_v30, %v3528_v19  ;;  %v4787_v19 = vunpack.c.0.s8 %v4786_v48  ;;  %vm5266_vm6 = vcmask 1043459  }
 0x2a9   : > { %v3968_v12 = vsel %vm3954_vm9, %v3951_v21, %v3582_v32  ;;  %v4789_v32 = vshrl.u32 %v4788_v23, 7 }
 0x2ab   : > { %v3574_v62 = vpop.permute.xlu0 %3573 }
 0x2ac   : > { %v3584_v3 = vpop.permute.xlu1 %3583  ;;  %v3960_v31 = vsel %vm3954_vm9, %v3943_v44, %v3574_v62 }
 0x2ad   : > { %v3970_v42 = vsel %vm3954_vm9, %v3953_v36, %v3584_v3 }
 0x2af   : > { %v3576_v24 = vpop.permute.xlu0 %3575 }
 0x2b0   : > { %v3622_v58 = vpop.permute.xlu1 %3621  ;;  %v3962_v28 = vsel %vm3954_vm9, %v3945_v59, %v3576_v24  ;;  %v9875_v24 = vstv %s9871_s6  ;;  %vm5268_vm9 = vcmask 1044484   ;;  %s10546_s6 = smov (!%p216_p7, %s9871_s6), 11 }
 0x2b1   : > { %v3985_v27 = vsel %vm3971_vm10, %v3968_v12, %v3622_v58  ;;  %vm5182_vm4 = vcmp.ge.s32.totalorder %v9875_v24, 2  ;;  %vm5186_vm5 = vcmp.lt.s32.totalorder %v9875_v24, 10  ;;  %s5493_s7 = sshll.u32 %s10546_s6, 1 }
 0x2b2   : > { %vm9927_vm7 = vmand %vm5182_vm4, %vm5186_vm5  ;;  %s220_s8 = sadd.s32 %s6062_s12, %s5493_s7 }
 0x2b3   : > { %v3614_v9 = vpop.permute.xlu0 %3613  ;;  %s5494_s13 = sshll.u32 %s220_s8, 2 }
 0x2b4   : > { %v3977_v49 = vsel %vm3971_vm10, %v3960_v31, %v3614_v9  ;;  %s10006_s10 = scalar_lea.vmem %s10176_s3, %s5494_s13 }
 0x2b5   : > { %v3624_v47 = vpop.permute.xlu1 %3623 }
 0x2b6   : > { %v3987_v7 = vsel %vm3971_vm10, %v3970_v42, %v3624_v47 }
 0x2b9   : > { %v3616_v40 = vpop.permute.xlu0 %3615  ;;  %v3662_v57 = vpop.permute.xlu1 %3661 }
 0x2ba   : > { %v4002_v51 = vsel %vm3988_vm8, %v3985_v27, %v3662_v57  ;;  %v3979_v13 = vsel %vm3971_vm10, %v3962_v28, %v3616_v40 }
 0x2bd   : > { %v3654_v35 = vpop.permute.xlu0 %3653  ;;  %v3664_v55 = vpop.permute.xlu1 %3663 }
 0x2be   : > { %v3994_v34 = vsel %vm3988_vm8, %v3977_v49, %v3654_v35  ;;  %v4004_v45 = vsel %vm3988_vm8, %v3987_v7, %v3664_v55 }
 0x2c1   : > { %v3656_v50 = vpop.permute.xlu0 %3655 }
 0x2c2   : > { %v3996_v38 = vsel %vm3988_vm8, %v3979_v13, %v3656_v50  ;;  %vm5272_vm8 = vcmask 1046534  }
 0x2c4   : > { %v3702_v4 = vpop.permute.xlu1 %3701 }
 0x2c5   : > { %v4019_v15 = vsel %vm4005_vm11, %v4002_v51, %v3702_v4  ;;  %v9880_v4 = vsub.s32 %v4787_v19, %v4789_v32 }
 0x2c9   : > { %v3694_v25 = vpop.permute.xlu0 %3693 }
 0x2ca   : > { %v4011_v52 = vsel %vm4005_vm11, %v3994_v34, %v3694_v25 }
 0x2ce   : > { %v3704_v61 = vpop.permute.xlu1 %3703 }
 0x2cf   : > { %v4021_v60 = vsel %vm4005_vm11, %v4004_v45, %v3704_v61 }
 0x2d2   : > { %v3696_v22 = vpop.permute.xlu0 %3695 }
 0x2d3   : > { %v4013_v6 = vsel %vm4005_vm11, %v3996_v38, %v3696_v22  ;;  %vm5274_vm11 = vcmask 1047559  }
 0x2d4   : > { %v3742_v5 = vpop.permute.xlu1 %3741 }
 0x2d5   : > { %v4036_v1 = vsel %vm4022_vm12, %v4019_v15, %v3742_v5  ;;  %v9885_v5 = vadd.s32 2, %v9875_v24 }
 0x2d6   : > { %v3734_v10 = vpop.permute.xlu0 %3733 }
 0x2d7   : > { %v4028_v16 = vsel %vm4022_vm12, %v4011_v52, %v3734_v10  ;;  %vm5184_vm0 = vcmp.ge.s32.totalorder %v9885_v5, 2  ;;  %vm5188_vm1 = vcmp.lt.s32.totalorder %v9885_v5, 10 }
 0x2d8   : > { %v3744_v56 = vpop.permute.xlu1 %3743  ;;  %vm9919_vm10 = vmand %vm5184_vm0, %vm5188_vm1 }
 0x2d9   : > { %v4038_v21 = vsel %vm4022_vm12, %v4021_v60, %v3744_v56 }
 0x2da   : > { %v3736_v54 = vpop.permute.xlu0 %3735 }
 0x2db   : > { %v4030_v0 = vsel %vm4022_vm12, %v4013_v6, %v3736_v54  ;;  %vm5276_vm12 = vcmask 1041409  }
 0x2dc   : > { %v3790_v37 = vpop.permute.xlu1 %3789 }
 0x2dd   : > { %v4053_v33 = vsel %vm4039_vm13, %v4036_v1, %v3790_v37 }
 0x2de   : > { %v3782_v14 = vpop.permute.xlu0 %3781 }
 0x2df   : > { %v4045_v30 = vsel %vm4039_vm13, %v4028_v16, %v3782_v14 }
 0x2e0   : > { %v3792_v20 = vpop.permute.xlu1 %3791 }
 0x2e1   : > { %v4055_v17 = vsel %vm4039_vm13, %v4038_v21, %v3792_v20 }
 0x2e3   : > { %v3784_v41 = vpop.permute.xlu0 %3783 }
 0x2e4   : > { %v4565_v29 = vpop.permute.xlu1 %4564  ;;  %v4047_v63 = vsel %vm4039_vm13, %v4030_v0, %v3784_v41 }
 0x2e5   : > { %v4582_v53 = vsel %vm4568_vm14, %v4053_v33, %v4565_v29 }
 0x2e6   : > { %6047 = vmatprep.mubr.msk.bf16.mxu1 %vm4631_vm15, %v4582_v53 }
 0x2e7   : > { %v4557_v46 = vpop.permute.xlu0 %4556 }
 0x2e8   : > { %v4574_v2 = vsel %vm4568_vm14, %v4045_v30, %v4557_v46  ;;  %v4567_v18 = vpop.permute.xlu1 %4566 }
 0x2e9   : > { %6039 = vmatprep.mubr.msk.bf16.mxu0 %vm4631_vm15, %v4574_v2  ;;  %v4584_v44 = vsel %vm4568_vm14, %v4055_v17, %v4567_v18 }
 0x2ea   : > { %6048 = vmatmul.mubr.msk.bf16.gmra.mrb[4].mxu1 %vm4631_vm15, %v4584_v44 }
 0x2eb   : > { %v4559_v26 = vpop.permute.xlu0 %4558 }
 0x2ec   : > { %v4576_v11 = vsel %vm4568_vm14, %v4047_v63, %v4559_v26 }
 0x2ed   : > { %6040 = vmatmul.mubr.msk.bf16.gmra.mrb[4].mxu0 %vm4631_vm15, %v4576_v11 }
 0x375   : > { %v6045_v43 = vpop.f32.mrb[0].mxu1 }
 0x376   : > { %v4730_v62 = vadd.f32 %v6045_v43, %v9868_v39  ;;  %v4721_v3 = vpop.f32.mrb[1].mxu1 }
 0x377   : > { %v4722_v58 = vadd.f32 %v9868_v39, %v4721_v3  ;;  %v6046_v9 = vpop.f32.mrb[2].mxu1 }
 0x378   : > { %v6037_v47 = vpop.f32.mrb[0].mxu0  ;;  %v4762_v40 = vmax.f32 %v4730_v62, 0.0  ;;  %v4733_v57 = vadd.f32 %v6046_v9, %v9868_v39  ;;  %v4724_v35 = vpop.f32.mrb[3].mxu1 }
 0x379   : > { %v4698_v55 = vadd.f32 %v6037_v47, %v9868_v39  ;;  %v4689_v50 = vpop.f32.mrb[1].mxu0  ;;  %v4760_v25 = vmax.f32 %v4722_v58, 0.0  ;;  %v4725_v61 = vadd.f32 %v9868_v39, %v4724_v35 }
 0x37a   : > { %v4690_v22 = vadd.f32 %v9868_v39, %v4689_v50  ;;  %v6038_v10 = vpop.f32.mrb[2].mxu0  ;;  %v4763_v56 = vmax.f32 %v4733_v57, 0.0 }
 0x37b   : > { %v4754_v54 = vmax.f32 %v4698_v55, 0.0  ;;  %v4772_v37 = vmax.f32 %v4760_v25, %v4762_v40  ;;  %v4701_v14 = vadd.f32 %v6038_v10, %v9868_v39  ;;  %v4692_v12 = vpop.f32.mrb[3].mxu0  ;;  %v4761_v27 = vmax.f32 %v4725_v61, 0.0 }
 0x37c   : > { %v4752_v20 = vmax.f32 %v4690_v22, 0.0  ;;  %v4693_v31 = vadd.f32 %v9868_v39, %v4692_v12 }
 0x37d   : > { %v4852_v51 = vcombine.high %v4772_v37, %v4772_v37  ;;  %v4859_v36 = vrot.slane %v4772_v37, %v9880_v4  ;;  %v4755_v49 = vmax.f32 %v4701_v14, 0.0  ;;  %v9890_v15 = vmax.f32 %v4761_v27, %v4763_v56 }
 0x37e   : > { %v4768_v41 = vmax.f32 %v4752_v20, %v4754_v54  ;;  %v4753_v42 = vmax.f32 %v4693_v31, 0.0 }
 0x37f   : > { %v4866_v34 = vrot.slane %v4852_v51, %v9880_v4  ;;  %v4867_v1 = vcombine.high %v4859_v36, %v4859_v36  ;;  %v5065_v59 = vsel %vm758_vm3, %v4859_v36, -inf  ;;  %v4869_v7 = vcombine.high %v9890_v15, %v9890_v15 }
 0x380   : > { %v4784_v52 = vcombine.high %v4768_v41, %v4768_v41  ;;  %v4791_v33 = vrot.slane %v4768_v41, %v9880_v4  ;;  %v5066_v29 = vrot.slane %v5065_v59, 4  ;;  %v9899_v28 = vmax.f32 %v4753_v42, %v4755_v49 }
 0x381   : > { %v4868_v45 = vcombine.high %v4866_v34, %v4866_v34  ;;  %v5072_v16 = vsel %vm758_vm3, %v4867_v1, -inf  ;;  %v5079_v53 = vsel %vm758_vm3, %v4866_v34, -inf  ;;  %v9907_v13 = vrot.slane %v9890_v15, %v9880_v4 }
 0x382   : > { %v4798_v60 = vrot.slane %v4784_v52, %v9880_v4  ;;  %v4799_v30 = vcombine.high %v4791_v33, %v4791_v33  ;;  %v4953_v46 = vsel %vm758_vm3, %v4791_v33, -inf  ;;  %v5067_v38 = vmax.f32 %v5065_v59, %v5066_v29 }
 0x383   : > { %v4954_v21 = vrot.slane %v4953_v46, 4  ;;  %v5073_v2 = vrot.slane %v5072_v16, 4  ;;  %v5080_v6 = vrot.slane %v5079_v53, 4  ;;  %v5086_v17 = vsel %vm758_vm3, %v4868_v45, -inf }
 0x384   : > { %v4800_v18 = vcombine.high %v4798_v60, %v4798_v60  ;;  %v4960_v0 = vsel %vm758_vm3, %v4799_v30, -inf  ;;  %v4967_v44 = vsel %vm758_vm3, %v4798_v60, -inf  ;;  %v5068_v63 = vrot.slane %v5067_v38, 2 }
 0x385   : > { %v4955_v26 = vmax.f32 %v4953_v46, %v4954_v21  ;;  %v4961_v11 = vrot.slane %v4960_v0, 4  ;;  %v4968_v8 = vrot.slane %v4967_v44, 4  ;;  %v5074_v48 = vmax.f32 %v5072_v16, %v5073_v2 }
 0x386   : > { %v4974_v23 = vsel %vm758_vm3, %v4800_v18, -inf  ;;  %v5069_v43 = vmax.f32 %v5067_v38, %v5068_v63  ;;  %v5081_v19 = vmax.f32 %v5079_v53, %v5080_v6  ;;  %v5087_v32 = vrot.slane %v5086_v17, 4 }
 0x387   : > { %v4956_v62 = vrot.slane %v4955_v26, 2  ;;  %v4962_v3 = vmax.f32 %v4960_v0, %v4961_v11  ;;  %v4969_v58 = vmax.f32 %v4967_v44, %v4968_v8  ;;  %v4975_v9 = vrot.slane %v4974_v23, 4 }
 0x388   : > { %v5070_v47 = vrot.slane %v5069_v43, 1  ;;  %v5075_v40 = vrot.slane %v5074_v48, 2  ;;  %v5082_v57 = vrot.slane %v5081_v19, 2  ;;  %v5088_v35 = vmax.f32 %v5086_v17, %v5087_v32 }
 0x389   : > { %v4957_v55 = vmax.f32 %v4955_v26, %v4956_v62  ;;  %v4963_v50 = vrot.slane %v4962_v3, 2  ;;  %v4970_v25 = vrot.slane %v4969_v58, 2  ;;  %v4976_v61 = vmax.f32 %v4974_v23, %v4975_v9 }
 0x38a   : > { %v5071_v10 = vmax.f32 %v5069_v43, %v5070_v47  ;;  %v5076_v56 = vmax.f32 %v5074_v48, %v5075_v40  ;;  %v5083_v54 = vmax.f32 %v5081_v19, %v5082_v57  ;;  %v5089_v37 = vrot.slane %v5088_v35, 2 }
 0x38b   : > { %v4958_v14 = vrot.slane %v4957_v55, 1  ;;  %v4964_v12 = vmax.f32 %v4962_v3, %v4963_v50  ;;  %v4971_v27 = vmax.f32 %v4969_v58, %v4970_v25  ;;  %v4977_v20 = vrot.slane %v4976_v61, 2 }
 0x38c   : > { %v5077_v5 = vrot.slane %v5076_v56, 1  ;;  %v5084_v51 = vrot.slane %v5083_v54, 1  ;;  %v5090_v36 = vmax.f32 %v5088_v35, %v5089_v37  ;;  %v5218_v49 = vsel %vm9919_vm10, %v5071_v10, 0.0 }
 0x38d   : > { %v4959_v41 = vmax.f32 %v4957_v55, %v4958_v14  ;;  %v4965_v42 = vrot.slane %v4964_v12, 1  ;;  %v4972_v34 = vrot.slane %v4971_v27, 1  ;;  %v4978_v1 = vmax.f32 %v4976_v61, %v4977_v20 }
 0x38e   : > { %v5078_v59 = vmax.f32 %v5076_v56, %v5077_v5  ;;  %v5085_v52 = vmax.f32 %v5083_v54, %v5084_v51  ;;  %v5091_v33 = vrot.slane %v5090_v36, 1  ;;  %v4801_v29 = vcombine.high %v9899_v28, %v9899_v28 }
 0x38f   : > { %v4966_v45 = vmax.f32 %v4964_v12, %v4965_v42  ;;  %v4973_v16 = vmax.f32 %v4971_v27, %v4972_v34  ;;  %v4979_v53 = vrot.slane %v4978_v1, 1  ;;  %v5202_v60 = vsel %vm9927_vm7, %v4959_v41, 0.0 }
 0x390   : > { %v9937_v30 = vmax.f32 %v5090_v36, %v5091_v33  ;;  %v5219_v46 = vsel %vm9919_vm10, %v5078_v59, 0.0  ;;  %v5220_v38 = vsel %vm9919_vm10, %v5085_v52, 0.0  ;;  %v4808_v21 = vrot.slane %v9899_v28, %v9880_v4 }
 0x391   : > { %v4980_v2 = vmax.f32 %v4978_v1, %v4979_v53  ;;  %v5203_v6 = vsel %vm9927_vm7, %v4966_v45, 0.0  ;;  %v5204_v17 = vsel %vm9927_vm7, %v4973_v16, 0.0  ;;  %v5284_v18 = vsel %vm5266_vm6, %v5219_v46, %v5218_v49 }
 0x392   : > { %v5267_v0 = vsel %vm5266_vm6, %v5203_v6, %v5202_v60  ;;  %v5221_v44 = vsel %vm9919_vm10, %v9937_v30, 0.0  ;;  %v9955_v63 = vsel %vm5268_vm9, %v5220_v38, %v5284_v18  ;;  %v4815_v28 = vrot.slane %v4801_v29, %v9880_v4 }
 0x393   : > { %v5205_v26 = vsel %vm9927_vm7, %v4980_v2, 0.0  ;;  %v5269_v11 = vsel %vm5268_vm9, %v5204_v17, %v5267_v0  ;;  %v4816_v8 = vcombine.high %v4808_v21, %v4808_v21  ;;  %v4981_v48 = vsel %vm758_vm3, %v4808_v21, -inf }
 0x394   : > { %v4817_v23 = vcombine.high %v4815_v28, %v4815_v28  ;;  %v4982_v43 = vrot.slane %v4981_v48, 4  ;;  %v4995_v19 = vsel %vm758_vm3, %v4815_v28, -inf  ;;  %v5271_v32 = vsel %vm5270_vm2, %v5205_v26, %v5269_v11 }
 0x395   : > { %v4988_v62 = vsel %vm758_vm3, %v4816_v8, -inf  ;;  %v4996_v3 = vrot.slane %v4995_v19, 4  ;;  %v4883_v58 = vrot.slane %v4869_v7, %v9880_v4  ;;  %v4884_v9 = vcombine.high %v9907_v13, %v9907_v13 }
 0x396   : > { %v4983_v47 = vmax.f32 %v4981_v48, %v4982_v43  ;;  %v4989_v40 = vrot.slane %v4988_v62, 4  ;;  %v5002_v57 = vsel %vm758_vm3, %v4817_v23, -inf  ;;  %v5093_v35 = vsel %vm758_vm3, %v9907_v13, -inf }
 0x397   : > { %v4997_v55 = vmax.f32 %v4995_v19, %v4996_v3  ;;  %v5003_v50 = vrot.slane %v5002_v57, 4  ;;  %v4885_v25 = vcombine.high %v4883_v58, %v4883_v58  ;;  %v5094_v15 = vrot.slane %v5093_v35, 4 }
 0x398   : > { %v4984_v7 = vrot.slane %v4983_v47, 2  ;;  %v4990_v61 = vmax.f32 %v4988_v62, %v4989_v40  ;;  %v5100_v10 = vsel %vm758_vm3, %v4884_v9, -inf  ;;  %v5107_v56 = vsel %vm758_vm3, %v4883_v58, -inf }
 0x399   : > { %v4998_v54 = vrot.slane %v4997_v55, 2  ;;  %v5004_v37 = vmax.f32 %v5002_v57, %v5003_v50  ;;  %v5095_v13 = vmax.f32 %v5093_v35, %v5094_v15  ;;  %v5101_v14 = vrot.slane %v5100_v10, 4 }
 0x39a   : > { %v4985_v12 = vmax.f32 %v4983_v47, %v4984_v7  ;;  %v4991_v27 = vrot.slane %v4990_v61, 2  ;;  %v5108_v20 = vrot.slane %v5107_v56, 4  ;;  %v5114_v5 = vsel %vm758_vm3, %v4885_v25, -inf }
 0x39b   : > { %v4999_v51 = vmax.f32 %v4997_v55, %v4998_v54  ;;  %v5005_v36 = vrot.slane %v5004_v37, 2  ;;  %v5096_v49 = vrot.slane %v5095_v13, 2  ;;  %v5102_v41 = vmax.f32 %v5100_v10, %v5101_v14 }
 0x39c   : > { %v4986_v42 = vrot.slane %v4985_v12, 1  ;;  %v4992_v34 = vmax.f32 %v4990_v61, %v4991_v27  ;;  %v5109_v1 = vmax.f32 %v5107_v56, %v5108_v20  ;;  %v5115_v59 = vrot.slane %v5114_v5, 4 }
 0x39d   : > { %v5000_v52 = vrot.slane %v4999_v51, 1  ;;  %v5006_v33 = vmax.f32 %v5004_v37, %v5005_v36  ;;  %v5097_v29 = vmax.f32 %v5095_v13, %v5096_v49  ;;  %v5103_v45 = vrot.slane %v5102_v41, 2 }
 0x39e   : > { %v4987_v16 = vmax.f32 %v4985_v12, %v4986_v42  ;;  %v4993_v53 = vrot.slane %v4992_v34, 1  ;;  %v5110_v60 = vrot.slane %v5109_v1, 2  ;;  %v5116_v46 = vmax.f32 %v5114_v5, %v5115_v59 }
 0x39f   : > { %v5001_v38 = vmax.f32 %v4999_v51, %v5000_v52  ;;  %v5007_v21 = vrot.slane %v5006_v33, 1  ;;  %v5098_v2 = vrot.slane %v5097_v29, 1  ;;  %v5104_v6 = vmax.f32 %v5102_v41, %v5103_v45 }
 0x3a0   : > { %v4994_v17 = vmax.f32 %v4992_v34, %v4993_v53  ;;  %v5206_v18 = vsel %vm9927_vm7, %v4987_v16, 0.0  ;;  %v5111_v0 = vmax.f32 %v5109_v1, %v5110_v60  ;;  %v5117_v28 = vrot.slane %v5116_v46, 2 }
 0x3a1   : > { %v5008_v26 = vmax.f32 %v5006_v33, %v5007_v21  ;;  %v5208_v11 = vsel %vm9927_vm7, %v5001_v38, 0.0  ;;  %v5273_v8 = vsel %vm5272_vm8, %v5206_v18, %v5271_v32  ;;  %v5099_v48 = vmax.f32 %v5097_v29, %v5098_v2 }
 0x3a2   : > { %v5207_v23 = vsel %vm9927_vm7, %v4994_v17, 0.0  ;;  %v5105_v43 = vrot.slane %v5104_v6, 1  ;;  %v5112_v19 = vrot.slane %v5111_v0, 1  ;;  %v5118_v62 = vmax.f32 %v5116_v46, %v5117_v28 }
 0x3a3   : > { %v5209_v3 = vsel %vm9927_vm7, %v5008_v26, 0.0  ;;  %v5275_v58 = vsel %vm5274_vm11, %v5207_v23, %v5273_v8  ;;  %v5222_v9 = vsel %vm9919_vm10, %v5099_v48, 0.0  ;;  %v5286_v32 = vsel %vm5270_vm2, %v5221_v44, %v9955_v63 }
 0x3a4   : > { %v5277_v31 = vsel %vm5276_vm12, %v5209_v3, %v5208_v11  ;;  %v5304_v47 = vsel %vm758_vm3, 0.0, %v5275_v58  ;;  %v5106_v40 = vmax.f32 %v5104_v6, %v5105_v43  ;;  %v5113_v57 = vmax.f32 %v5111_v0, %v5112_v19 }
 0x3a5   : > { %v5308_v35 = vsel %vm758_vm3, %v5277_v31, 0.0  ;;  %v6004_v55 = vpack.c.bf16 %v5304_v47, %v5304_v47  ;;  %v5119_v30 = vrot.slane %v5118_v62, 1  ;;  %v5287_v44 = vsel %vm5272_vm8, %v5222_v9, %v5286_v32 }
 0x3a6   : > { %v6005_v63 = vpack.c.bf16 %v5308_v35, %v5308_v35  ;;  %v5223_v50 = vsel %vm9919_vm10, %v5106_v40, 0.0  ;;  %v5224_v61 = vsel %vm9919_vm10, %v5113_v57, 0.0  ;;  %v5179_v21 = vadd.s32 1, %v9875_v24 }
 0x3a7   : > { %5344 = vst [vmem:[%s10006_s10] sm:$0xf] %v6004_v55  ;;  %v5120_v25 = vmax.f32 %v5118_v62, %v5119_v30  ;;  %v5288_v15 = vsel %vm5274_vm11, %v5223_v50, %v5287_v44  ;;  %v10036_v2 = vadd.s32 3, %v9875_v24 }
 0x3a8   : > { %5345 = vst [vmem:[%s10006_s10 + $0x4] sm:$0x3] %v6005_v63  ;;  %v5306_v7 = vsel %vm758_vm3, 0.0, %v5288_v15  ;;  %vm5183_vm13 = vcmp.ge.s32.totalorder %v5179_v21, 2  ;;  %vm5187_vm14 = vcmp.lt.s32.totalorder %v5179_v21, 10 }
 0x3a9   : > { %v5225_v10 = vsel %vm9919_vm10, %v5120_v25, 0.0  ;;  %v6008_v56 = vpack.c.bf16 %v5306_v7, %v5306_v7  ;;  %vm5185_vm15 = vcmp.ge.s32.totalorder %v10036_v2, 2  ;;  %vm5189_vm0 = vcmp.lt.s32.totalorder %v10036_v2, 10  ;;  %vm10064_vm1 = vmand %vm5183_vm13, %vm5187_vm14 }
 0x3aa   : > { %v5289_v54 = vsel %vm5276_vm12, %v5225_v10, %v5224_v61  ;;  %vm10072_vm4 = vmand %vm5185_vm15, %vm5189_vm0 }
 0x3ab   : > { %v5310_v37 = vsel %vm758_vm3, %v5289_v54, 0.0  ;;  %5348 = vst [vmem:[%s10006_s10 + $0x10] sm:$0xf] %v6008_v56 }
 0x3ac   : > { %v6009_v13 = vpack.c.bf16 %v5310_v37, %v5310_v37 }
 0x3ae   : > { %5349 = vst [vmem:[%s10006_s10 + $0x14] sm:$0x3] %v6009_v13 }
 0x3bd   : > { %v6049_v14 = vpop.f32.mrb[4].mxu1 }
 0x3be   : > { %v4746_v12 = vadd.f32 %v6049_v14, %v9868_v39  ;;  %v4737_v27 = vpop.f32.mrb[5].mxu1 }
 0x3bf   : > { %v4738_v5 = vadd.f32 %v9868_v39, %v4737_v27  ;;  %v6050_v51 = vpop.f32.mrb[6].mxu1 }
 0x3c0   : > { %v6041_v20 = vpop.f32.mrb[4].mxu0  ;;  %v4766_v22 = vmax.f32 %v4746_v12, 0.0  ;;  %v4749_v41 = vadd.f32 %v6050_v51, %v9868_v39  ;;  %v4740_v42 = vpop.f32.mrb[7].mxu1 }
 0x3c1   : > { %v4714_v36 = vadd.f32 %v6041_v20, %v9868_v39  ;;  %v4705_v49 = vpop.f32.mrb[5].mxu0  ;;  %v4764_v1 = vmax.f32 %v4738_v5, 0.0  ;;  %v4741_v52 = vadd.f32 %v9868_v39, %v4740_v42 }
 0x3c2   : > { %v4706_v34 = vadd.f32 %v9868_v39, %v4705_v49  ;;  %v6042_v59 = vpop.f32.mrb[6].mxu0  ;;  %v4767_v45 = vmax.f32 %v4749_v41, 0.0 }
 0x3c3   : > { %v4758_v33 = vmax.f32 %v4714_v36, 0.0  ;;  %v4717_v29 = vadd.f32 %v6042_v59, %v9868_v39  ;;  %v4708_v16 = vpop.f32.mrb[7].mxu0  ;;  %v4774_v60 = vmax.f32 %v4764_v1, %v4766_v22  ;;  %v4765_v38 = vmax.f32 %v4741_v52, 0.0 }
 0x3c4   : > { %v4756_v53 = vmax.f32 %v4706_v34, 0.0  ;;  %v4709_v46 = vadd.f32 %v9868_v39, %v4708_v16 }
 0x3c5   : > { %v4759_v6 = vmax.f32 %v4717_v29, 0.0  ;;  %v4886_v18 = vcombine.high %v4774_v60, %v4774_v60  ;;  %v4893_v0 = vrot.slane %v4774_v60, %v9880_v4  ;;  %v10039_v26 = vmax.f32 %v4765_v38, %v4767_v45 }
 0x3c6   : > { %v4770_v17 = vmax.f32 %v4756_v53, %v4758_v33  ;;  %v4757_v28 = vmax.f32 %v4709_v46, 0.0 }
 0x3c7   : > { %v4900_v48 = vrot.slane %v4886_v18, %v9880_v4  ;;  %v4901_v39 = vcombine.high %v4893_v0, %v4893_v0  ;;  %v5121_v23 = vsel %vm758_vm3, %v4893_v0, -inf  ;;  %v4903_v43 = vcombine.high %v10039_v26, %v10039_v26 }
 0x3c8   : > { %v4818_v11 = vcombine.high %v4770_v17, %v4770_v17  ;;  %v4825_v8 = vrot.slane %v4770_v17, %v9880_v4  ;;  %v10044_v24 = vmax.f32 %v4757_v28, %v4759_v6  ;;  %v10050_v19 = vrot.slane %v10039_v26, %v9880_v4 }
 0x3c9   : > { %v4902_v9 = vcombine.high %v4900_v48, %v4900_v48  ;;  %v5122_v31 = vrot.slane %v5121_v23, 4  ;;  %v5128_v47 = vsel %vm758_vm3, %v4901_v39, -inf  ;;  %v5135_v40 = vsel %vm758_vm3, %v4900_v48, -inf }
 0x3ca   : > { %v4832_v62 = vrot.slane %v4818_v11, %v9880_v4  ;;  %v4833_v3 = vcombine.high %v4825_v8, %v4825_v8  ;;  %v5009_v58 = vsel %vm758_vm3, %v4825_v8, -inf  ;;  %v5129_v30 = vrot.slane %v5128_v47, 4 }
 0x3cb   : > { %v5010_v32 = vrot.slane %v5009_v58, 4  ;;  %v5123_v25 = vmax.f32 %v5121_v23, %v5122_v31  ;;  %v5136_v61 = vrot.slane %v5135_v40, 4  ;;  %v5142_v10 = vsel %vm758_vm3, %v4902_v9, -inf }
 0x3cc   : > { %v4834_v57 = vcombine.high %v4832_v62, %v4832_v62  ;;  %v5016_v35 = vsel %vm758_vm3, %v4833_v3, -inf  ;;  %v5023_v55 = vsel %vm758_vm3, %v4832_v62, -inf  ;;  %v5130_v7 = vmax.f32 %v5128_v47, %v5129_v30 }
 0x3cd   : > { %v5011_v44 = vmax.f32 %v5009_v58, %v5010_v32  ;;  %v5017_v63 = vrot.slane %v5016_v35, 4  ;;  %v5024_v50 = vrot.slane %v5023_v55, 4  ;;  %v5124_v14 = vrot.slane %v5123_v25, 2 }
 0x3ce   : > { %v5030_v15 = vsel %vm758_vm3, %v4834_v57, -inf  ;;  %v5131_v12 = vrot.slane %v5130_v7, 2  ;;  %v5137_v27 = vmax.f32 %v5135_v40, %v5136_v61  ;;  %v5143_v20 = vrot.slane %v5142_v10, 4 }
 0x3cf   : > { %v5012_v56 = vrot.slane %v5011_v44, 2  ;;  %v5018_v54 = vmax.f32 %v5016_v35, %v5017_v63  ;;  %v5025_v37 = vmax.f32 %v5023_v55, %v5024_v50  ;;  %v5031_v13 = vrot.slane %v5030_v15, 4 }
 0x3d0   : > { %v5125_v49 = vmax.f32 %v5123_v25, %v5124_v14  ;;  %v5132_v41 = vmax.f32 %v5130_v7, %v5131_v12  ;;  %v5138_v42 = vrot.slane %v5137_v27, 2  ;;  %v5144_v34 = vmax.f32 %v5142_v10, %v5143_v20 }
 0x3d1   : > { %v5013_v5 = vmax.f32 %v5011_v44, %v5012_v56  ;;  %v5019_v51 = vrot.slane %v5018_v54, 2  ;;  %v5026_v36 = vrot.slane %v5025_v37, 2  ;;  %v5032_v22 = vmax.f32 %v5030_v15, %v5031_v13 }
 0x3d2   : > { %v5126_v45 = vrot.slane %v5125_v49, 1  ;;  %v5133_v16 = vrot.slane %v5132_v41, 1  ;;  %v5139_v53 = vmax.f32 %v5137_v27, %v5138_v42  ;;  %v5145_v60 = vrot.slane %v5144_v34, 2 }
 0x3d3   : > { %v5014_v1 = vrot.slane %v5013_v5, 1  ;;  %v5020_v59 = vmax.f32 %v5018_v54, %v5019_v51  ;;  %v5027_v52 = vmax.f32 %v5025_v37, %v5026_v36  ;;  %v5033_v33 = vrot.slane %v5032_v22, 2 }
 0x3d4   : > { %v5127_v21 = vmax.f32 %v5125_v49, %v5126_v45  ;;  %v5134_v0 = vmax.f32 %v5132_v41, %v5133_v16  ;;  %v5140_v28 = vrot.slane %v5139_v53, 1  ;;  %v5146_v11 = vmax.f32 %v5144_v34, %v5145_v60 }
 0x3d5   : > { %v5015_v46 = vmax.f32 %v5013_v5, %v5014_v1  ;;  %v5021_v38 = vrot.slane %v5020_v59, 1  ;;  %v5028_v6 = vrot.slane %v5027_v52, 1  ;;  %v5034_v17 = vmax.f32 %v5032_v22, %v5033_v33 }
 0x3d6   : > { %v5141_v62 = vmax.f32 %v5139_v53, %v5140_v28  ;;  %v5147_v3 = vrot.slane %v5146_v11, 1  ;;  %v5226_v58 = vsel %vm10072_vm4, %v5127_v21, 0.0  ;;  %v5227_v2 = vsel %vm10072_vm4, %v5134_v0, 0.0 }
 0x3d7   : > { %v5022_v8 = vmax.f32 %v5020_v59, %v5021_v38  ;;  %v5029_v48 = vmax.f32 %v5027_v52, %v5028_v6  ;;  %v5035_v39 = vrot.slane %v5034_v17, 1  ;;  %v5210_v23 = vsel %vm10064_vm1, %v5015_v46, 0.0 }
 0x3d8   : > { %v5290_v47 = vsel %vm5266_vm6, %v5227_v2, %v5226_v58  ;;  %v10088_v57 = vmax.f32 %v5146_v11, %v5147_v3  ;;  %v5228_v35 = vsel %vm10072_vm4, %v5141_v62, 0.0  ;;  %v4835_v55 = vcombine.high %v10044_v24, %v10044_v24 }
 0x3d9   : > { %v5036_v9 = vmax.f32 %v5034_v17, %v5035_v39  ;;  %v5211_v32 = vsel %vm10064_vm1, %v5022_v8, 0.0  ;;  %v5212_v31 = vsel %vm10064_vm1, %v5029_v48, 0.0  ;;  %v10098_v63 = vsel %vm5268_vm9, %v5228_v35, %v5290_v47 }
 0x3da   : > { %v5278_v40 = vsel %vm5266_vm6, %v5211_v32, %v5210_v23  ;;  %v4842_v50 = vrot.slane %v10044_v24, %v9880_v4  ;;  %v5229_v25 = vsel %vm10072_vm4, %v10088_v57, 0.0  ;;  %v4849_v15 = vrot.slane %v4835_v55, %v9880_v4 }
 0x3db   : > { %v5213_v30 = vsel %vm10064_vm1, %v5036_v9, 0.0  ;;  %v5279_v44 = vsel %vm5268_vm9, %v5212_v31, %v5278_v40  ;;  %v4917_v61 = vrot.slane %v4903_v43, %v9880_v4  ;;  %v4918_v54 = vcombine.high %v10050_v19, %v10050_v19 }
 0x3dc   : > { %v5280_v7 = vsel %vm5270_vm2, %v5213_v30, %v5279_v44  ;;  %v4850_v10 = vcombine.high %v4842_v50, %v4842_v50  ;;  %v5037_v56 = vsel %vm758_vm3, %v4842_v50, -inf  ;;  %v5149_v24 = vsel %vm758_vm3, %v10050_v19, -inf }
 0x3dd   : > { %v4851_v37 = vcombine.high %v4849_v15, %v4849_v15  ;;  %v5038_v13 = vrot.slane %v5037_v56, 4  ;;  %v5051_v14 = vsel %vm758_vm3, %v4849_v15, -inf  ;;  %v4919_v12 = vcombine.high %v4917_v61, %v4917_v61 }
 0x3de   : > { %v5044_v27 = vsel %vm758_vm3, %v4850_v10, -inf  ;;  %v5052_v20 = vrot.slane %v5051_v14, 4  ;;  %v5150_v5 = vrot.slane %v5149_v24, 4  ;;  %v5156_v4 = vsel %vm758_vm3, %v4918_v54, -inf }
 0x3df   : > { %v5039_v26 = vmax.f32 %v5037_v56, %v5038_v13  ;;  %v5045_v43 = vrot.slane %v5044_v27, 4  ;;  %v5058_v51 = vsel %vm758_vm3, %v4851_v37, -inf  ;;  %v5157_v36 = vrot.slane %v5156_v4, 4 }
 0x3e0   : > { %v5053_v22 = vmax.f32 %v5051_v14, %v5052_v20  ;;  %v5059_v49 = vrot.slane %v5058_v51, 4  ;;  %v5151_v41 = vmax.f32 %v5149_v24, %v5150_v5  ;;  %v5163_v19 = vsel %vm758_vm3, %v4917_v61, -inf }
 0x3e1   : > { %v5040_v42 = vrot.slane %v5039_v26, 2  ;;  %v5046_v34 = vmax.f32 %v5044_v27, %v5045_v43  ;;  %v5158_v1 = vmax.f32 %v5156_v4, %v5157_v36  ;;  %v5164_v59 = vrot.slane %v5163_v19, 4 }
 0x3e2   : > { %v5054_v52 = vrot.slane %v5053_v22, 2  ;;  %v5060_v33 = vmax.f32 %v5058_v51, %v5059_v49  ;;  %v5152_v45 = vrot.slane %v5151_v41, 2  ;;  %v5170_v16 = vsel %vm758_vm3, %v4919_v12, -inf }
 0x3e3   : > { %v5041_v53 = vmax.f32 %v5039_v26, %v5040_v42  ;;  %v5047_v60 = vrot.slane %v5046_v34, 2  ;;  %v5159_v46 = vrot.slane %v5158_v1, 2  ;;  %v5165_v38 = vmax.f32 %v5163_v19, %v5164_v59 }
 0x3e4   : > { %v5055_v6 = vmax.f32 %v5053_v22, %v5054_v52  ;;  %v5061_v17 = vrot.slane %v5060_v33, 2  ;;  %v5153_v21 = vmax.f32 %v5151_v41, %v5152_v45  ;;  %v5171_v0 = vrot.slane %v5170_v16, 4 }
 0x3e5   : > { %v5042_v28 = vrot.slane %v5041_v53, 1  ;;  %v5048_v11 = vmax.f32 %v5046_v34, %v5047_v60  ;;  %v5160_v8 = vmax.f32 %v5158_v1, %v5159_v46  ;;  %v5166_v48 = vrot.slane %v5165_v38, 2 }
 0x3e6   : > { %v5056_v39 = vrot.slane %v5055_v6, 1  ;;  %v5062_v23 = vmax.f32 %v5060_v33, %v5061_v17  ;;  %v5154_v62 = vrot.slane %v5153_v21, 1  ;;  %v5172_v3 = vmax.f32 %v5170_v16, %v5171_v0 }
 0x3e7   : > { %v5043_v58 = vmax.f32 %v5041_v53, %v5042_v28  ;;  %v5049_v2 = vrot.slane %v5048_v11, 1  ;;  %v5161_v9 = vrot.slane %v5160_v8, 1  ;;  %v5167_v32 = vmax.f32 %v5165_v38, %v5166_v48 }
 0x3e8   : > { %v5057_v31 = vmax.f32 %v5055_v6, %v5056_v39  ;;  %v5063_v47 = vrot.slane %v5062_v23, 1  ;;  %v5155_v40 = vmax.f32 %v5153_v21, %v5154_v62  ;;  %v5173_v35 = vrot.slane %v5172_v3, 2 }
 0x3e9   : > { %v5050_v55 = vmax.f32 %v5048_v11, %v5049_v2  ;;  %v5214_v30 = vsel %vm10064_vm1, %v5043_v58, 0.0  ;;  %v5162_v44 = vmax.f32 %v5160_v8, %v5161_v9  ;;  %v5168_v50 = vrot.slane %v5167_v32, 1 }
 0x3ea   : > { %v5064_v15 = vmax.f32 %v5062_v23, %v5063_v47  ;;  %v5281_v61 = vsel %vm5272_vm8, %v5214_v30, %v5280_v7  ;;  %v5174_v10 = vmax.f32 %v5172_v3, %v5173_v35  ;;  %v5216_v54 = vsel %vm10064_vm1, %v5057_v31, 0.0 }
 0x3eb   : > { %v5215_v56 = vsel %vm10064_vm1, %v5050_v55, 0.0  ;;  %v5169_v24 = vmax.f32 %v5167_v32, %v5168_v50  ;;  %v5230_v37 = vsel %vm10072_vm4, %v5155_v40, 0.0  ;;  %v5292_v7 = vsel %vm5270_vm2, %v5229_v25, %v10098_v63 }
 0x3ec   : > { %v5217_v13 = vsel %vm10064_vm1, %v5064_v15, 0.0  ;;  %v5282_v14 = vsel %vm5274_vm11, %v5215_v56, %v5281_v61  ;;  %v5175_v12 = vrot.slane %v5174_v10, 1  ;;  %v5231_v29 = vsel %vm10072_vm4, %v5162_v44, 0.0 }
 0x3ed   : > { %v5283_v27 = vsel %vm5276_vm12, %v5217_v13, %v5216_v54  ;;  %v5305_v20 = vsel %vm758_vm3, 0.0, %v5282_v14  ;;  %v5293_v5 = vsel %vm5272_vm8, %v5230_v37, %v5292_v7  ;;  %v5232_v25 = vsel %vm10072_vm4, %v5169_v24, 0.0 }
 0x3ee   : > { %v5309_v4 = vsel %vm758_vm3, %v5283_v27, 0.0  ;;  %v6006_v26 = vpack.c.bf16 %v5305_v20, %v5305_v20  ;;  %v5176_v43 = vmax.f32 %v5174_v10, %v5175_v12  ;;  %v5294_v57 = vsel %vm5274_vm11, %v5231_v29, %v5293_v5 }
 0x3ef   : > { %v6007_v51 = vpack.c.bf16 %v5309_v4, %v5309_v4  ;;  %v5307_v63 = vsel %vm758_vm3, 0.0, %v5294_v57 }
 0x3f0   : > { %5346 = vst [vmem:[%s10006_s10 + $0x8] sm:$0xf] %v6006_v26  ;;  %v5233_v36 = vsel %vm10072_vm4, %v5176_v43, 0.0  ;;  %v6010_v22 = vpack.c.bf16 %v5307_v63, %v5307_v63 }
 0x3f1   : > { %5347 = vst [vmem:[%s10006_s10 + $0xc] sm:$0x3] %v6007_v51  ;;  %v5295_v49 = vsel %vm5276_vm12, %v5233_v36, %v5232_v25 }
 0x3f2   : > { %v5311_v41 = vsel %vm758_vm3, %v5295_v49, 0.0  ;;  %5350 = vst [vmem:[%s10006_s10 + $0x18] sm:$0xf] %v6010_v22 }
 0x3f3   : > { %v6011_v19 = vpack.c.bf16 %v5311_v41, %v5311_v41 }
 0x3f5   : > { %5351 = vst [vmem:[%s10006_s10 + $0x1c] sm:$0x3] %v6011_v19 }
 0x3f6 PF: > { %s15_s16 = sadd.s32 1, %s6332_s16   ;;  %s10533_s12 = smov %s6324_s14 }
 0x3f7   : > { %p12_p8 = scmp.ge.s32.totalorder %s15_s16, 8   ;;  %s10534_s13 = smov %s6328_s15 }
 0x3f8   : > { %s10535_s14 = smov %s10538_s18  ;;  %s10536_s15 = smov %s10542_s19 }
 0x3f9   :  { %14 = sbr.rel (!%p12_p8) target bundleno = 4 (0x4), region = 76 }
 0x400   :  { %5384 = vsyncpa [#allocation3], 1 }
 0x401   :  { %5386 = vsyncpa [#allocation3 + $0x1], 1 }
 0x402   :  { %5387 = vsyncpa [#allocation5], 1 }

// kernel: cnn_forward.4
= control target key start
LH: loop header
LB: loop body
LE: loop exit
PB: predicated region body
PF: predicated region fallthrough
CT: control target
= control target key end

     0   :  { %s7717_s12 = smov 0   ;;  %s7719_s13 = smov 0   ;;  %s9620_s0 = inlined_call_operand.vmem [shape: bf16[2,12,12,128], index: 0, kind: input, shape index: {}]   ;;  %s9621_s1 = inlined_call_operand.vmem [shape: bf16[13,256,128], index: 1, kind: input, shape index: {}]   ;;  %s9622_s2 = inlined_call_operand.vmem [shape: f32[1,128], index: 2, kind: input, shape index: {}]   ;;  %s9623_s3 = inlined_call_operand.vmem [shape: bf16[2,4,4,128], index: 3, kind: output, shape index: {}]  }
   0x1   :  { %s7721_s14 = smov 0  }
   0x2 LB: > { %s25_s15 = sadd.s32 1, %s7690_s13  ;;  %p5922_p0 = scmp.ge.s32.totalorder %s7694_s14, 1  ;;  %s7694_s14 = sphi %s7721_s14, %s13_s14   ;;  %s7690_s13 = sphi %s7719_s13, %s9633_s13   ;;  %s7686_s12 = sphi %s7717_s12, %s9632_s12  }
   0x3   : > { %p27_p1 = scmp.ge.s32.totalorder %s25_s15, 2  ;;  %p151_p2 = scmp.lt.s32.totalorder %s7694_s14, 3 }
   0x5   : > { %s9635_s15 = smov (%p27_p1, %s25_s15), 0  ;;  %p152_p3 = pnand %p5922_p0, %p151_p2 }
   0x6   : > { %v7444_v0 = vld [vmem:[%s9621_s1 + $0xc0] sm:$0xff] (!%p152_p3)   ;;  %v7448_v4 = vld [vmem:[%s9621_s1 + $0xc8] sm:$0xff] (!%p152_p3)   ;;  %v7452_v8 = vld [vmem:[%s9621_s1 + $0xd0] sm:$0xff] (!%p152_p3)   ;;  %p179_p4 = scmp.lt.s32.totalorder (!%p152_p3), %s7686_s12, 1  ;;  %vm469_vm0 = vsmask.f32 (!%p152_p3), 2304 }
   0x7   : > { %155 = sbr.rel (%p152_p3) target bundleno = 617 (0x269), region = 32  ;;  %v7445_v1 = vld [vmem:[%s9621_s1 + $0x40] sm:$0xff] (!%p152_p3)   ;;  %6882 = vmatprep.subr.bf16.mxu0 (!%p152_p3), %v7444_v0  ;;  %v7449_v5 = vld [vmem:[%s9621_s1 + $0x48] sm:$0xff] (!%p152_p3)   ;;  %v7453_v9 = vld [vmem:[%s9621_s1 + $0x50] sm:$0xff] (!%p152_p3)   ;;  %vm470_vm1 = vsmask.f32 (!%p152_p3), 6416 }
   0x8   : > { %v7446_v2 = vld [vmem:[%s9621_s1 + $0x80] sm:$0xff] (!%p152_p3)   ;;  %6922 = vmatprep.subr.bf16.mxu1 (!%p152_p3), %v7445_v1  ;;  %v7450_v6 = vld [vmem:[%s9621_s1 + $0x88] sm:$0xff] (!%p152_p3)   ;;  %v7454_v10 = vld [vmem:[%s9621_s1 + $0x90] sm:$0xff] (!%p152_p3)   ;;  %vm426_vm2 = vcmask (!%p152_p3), 1042432   ;;  %vm427_vm3 = vcmask (!%p152_p3), 1046532   ;;  %vm1027_vm9 = vcmask (!%p152_p3), 1041408  }
   0x9   : > { %v7447_v3 = vld [vmem:[%s9621_s1] sm:$0xff] (!%p152_p3)   ;;  %6883 = vmatpush3.bf16.msra.mxu0 (!%p152_p3), %v7446_v2  ;;  %v7451_v7 = vld [vmem:[%s9621_s1 + $0x8] sm:$0xff] (!%p152_p3)   ;;  %v7455_v11 = vld [vmem:[%s9621_s1 + $0x10] sm:$0xff] (!%p152_p3)   ;;  %vm215_vm5 = vsmask.f32 (!%p152_p3), 3328  ;;  %vm1028_vm10 = vcmask (!%p152_p3), 1045508  }
   0xa   : > { %6923 = vmatpush3.bf16.msra.mxu1 (!%p152_p3), %v7447_v3  ;;  %6884 = vmatprep.subr.bf16.mxu0 (!%p152_p3), %v7448_v4  ;;  %v7456_v12 = vld [vmem:[%s9621_s1 + $0xd8] sm:$0xff] (!%p152_p3)   ;;  %v7460_v16 = vld [vmem:[%s9621_s1 + $0xe0] sm:$0xff] (!%p152_p3)   ;;  %v7464_v20 = vld [vmem:[%s9621_s1 + $0xe8] sm:$0xff] (!%p152_p3)   ;;  %vm216_vm6 = vsmask.f32 (!%p152_p3), 7440  ;;  %vm5753_vm12 = vcmask (!%p152_p3), 1041409  }
   0xb   : > { %6924 = vmatprep.subr.bf16.mxu1 (!%p152_p3), %v7449_v5  ;;  %v7457_v13 = vld [vmem:[%s9621_s1 + $0x58] sm:$0xff] (!%p152_p3)   ;;  %v7461_v17 = vld [vmem:[%s9621_s1 + $0x60] sm:$0xff] (!%p152_p3)   ;;  %v7465_v21 = vld [vmem:[%s9621_s1 + $0x68] sm:$0xff] (!%p152_p3)   ;;  %vm5756_vm13 = vcmask (!%p152_p3), 1042434   ;;  %vm5759_vm14 = vcmask (!%p152_p3), 1043459  }
   0xc   : > { %v7458_v14 = vld [vmem:[%s9621_s1 + $0x98] sm:$0xff] (!%p152_p3)   ;;  %v7462_v18 = vld [vmem:[%s9621_s1 + $0xa0] sm:$0xff] (!%p152_p3)   ;;  %v7466_v22 = vld [vmem:[%s9621_s1 + $0xa8] sm:$0xff] (!%p152_p3)  }
   0xd   : > { %6885 = vmatpush3.bf16.msra.mxu0 (!%p152_p3), %v7450_v6  ;;  %v7459_v15 = vld [vmem:[%s9621_s1 + $0x18] sm:$0xff] (!%p152_p3)   ;;  %v7463_v19 = vld [vmem:[%s9621_s1 + $0x20] sm:$0xff] (!%p152_p3)   ;;  %v7467_v23 = vld [vmem:[%s9621_s1 + $0x28] sm:$0xff] (!%p152_p3)  }
   0xe   : > { %6925 = vmatpush3.bf16.msra.mxu1 %v7451_v7  ;;  %6886 = vmatprep.subr.bf16.mxu0 %v7452_v8  ;;  %s9637_s12 = smov (!%p179_p4, %s7686_s12), 1  ;;  %v7468_v24 = vld [vmem:[%s9621_s1 + $0xf0] sm:$0xff]   ;;  %v7472_v28 = vld [vmem:[%s9621_s1 + $0xf8] sm:$0xff]   ;;  %vm7869_vm4 = vmor %vm469_vm0, %vm470_vm1 }
   0xf   : > { %6926 = vmatprep.subr.bf16.mxu1 %v7453_v9  ;;  %v7469_v25 = vld [vmem:[%s9621_s1 + $0x70] sm:$0xff]   ;;  %s7418_s22 = smul.u32 96, %s9637_s12  ;;  %v7473_v29 = vld [vmem:[%s9621_s1 + $0x78] sm:$0xff]   ;;  %v7477_v61 = vld [vmem:[%s9621_s1 + $0x140] sm:$0xff]   ;;  %s6881_s16 = sshll.u32 %s9637_s12, 3 }
  0x10   : > { %v7470_v26 = vld [vmem:[%s9621_s1 + $0xb0] sm:$0xff]   ;;  %v7474_v30 = vld [vmem:[%s9621_s1 + $0xb8] sm:$0xff]   ;;  %v7478_v62 = vld [vmem:[%s9621_s1 + $0x1c0] sm:$0xff]   ;;  %s9562_s18 = scalar_lea.vmem %s9623_s3, %s6881_s16 }
  0x11   : > { %6887 = vmatpush3.bf16.msra.mxu0 %v7454_v10  ;;  %v7471_v27 = vld [vmem:[%s9621_s1 + $0x30] sm:$0xff]   ;;  %s7835_s6 = scalar_lea.vmem %s9620_s0, %s7418_s22  ;;  %v7475_v31 = vld [vmem:[%s9621_s1 + $0x38] sm:$0xff]   ;;  %vm7885_vm7 = vmor %vm426_vm2, %vm427_vm3 }
  0x12   : > { %6927 = vmatpush3.bf16.msra.mxu1 %v7455_v11  ;;  %6888 = vmatprep.subr.bf16.mxu0 %v7456_v12  ;;  %v7844_v32 = vld [vmem:[%s7835_s6] sm:$0xe]  ;;  %v7847_v33 = vld [vmem:[%s7835_s6 + $0x8] sm:$0xe]  ;;  %v7850_v34 = vld [vmem:[%s7835_s6 + $0x4] sm:$0x3] }
  0x13   : > { %6928 = vmatprep.subr.bf16.mxu1 %v7457_v13  ;;  %v7853_v35 = vld [vmem:[%s7835_s6 + $0xc] sm:$0x3]  ;;  %v473_v36 = vshrl.u32 %v7844_v32, 16  ;;  %v476_v37 = vshll.u32 %v7844_v32, 16  ;;  %v482_v38 = vshrl.u32 %v7850_v34, 16  ;;  %v485_v39 = vshll.u32 %v7850_v34, 16  ;;  %vm7891_vm8 = vmor %vm215_vm5, %vm216_vm6 }
  0x14   : > { %v491_v40 = vshrl.u32 %v7847_v33, 16  ;;  %v494_v41 = vshll.u32 %v7847_v33, 16  ;;  %v500_v42 = vshrl.u32 %v7853_v35, 16  ;;  %v503_v43 = vshll.u32 %v7853_v35, 16  ;;  %v199_v44 = vld [vmem:[%s7835_s6] sm:$0xf]  ;;  %vm8165_vm11 = vmor %vm1027_vm9, %vm1028_vm10 }
  0x15   : > { %6889 = vmatpush3.bf16.msra.mxu0 %v7458_v14  ;;  %v475_v45 = vrot.slane %v473_v36, 5  ;;  %v478_v46 = vrot.slane %v476_v37, 6  ;;  %v484_v47 = vrot.slane %v482_v38, 5  ;;  %v487_v48 = vrot.slane %v485_v39, 6  ;;  %v200_v49 = vld [vmem:[%s7835_s6 + $0x8] sm:$0xf] }
  0x16   : > { %6929 = vmatpush3.bf16.msra.mxu1 %v7459_v15  ;;  %6890 = vmatprep.subr.bf16.mxu0 %v7460_v16  ;;  %v493_v50 = vrot.slane %v491_v40, 5  ;;  %v496_v51 = vrot.slane %v494_v41, 6  ;;  %v502_v52 = vrot.slane %v500_v42, 5  ;;  %v505_v53 = vrot.slane %v503_v43, 6  ;;  %v207_v54 = vld [vmem:[%s7835_s6 + $0x4] sm:$0x1] }
  0x17   : > { %6930 = vmatprep.subr.bf16.mxu1 %v7461_v17  ;;  %v479_v55 = vor.u32 %v478_v46, %v475_v45  ;;  %v488_v56 = vor.u32 %v487_v48, %v484_v47  ;;  %v208_v57 = vld [vmem:[%s7835_s6 + $0xc] sm:$0x1]  ;;  %v219_v0 = vshrl.u32 %v199_v44, 16  ;;  %v222_v1 = vshll.u32 %v199_v44, 16  ;;  %v7923_v39 = vld [vmem:[%s7835_s6 + $0x10] sm:$0xe] }
  0x18   : > { %v497_v59 = vor.u32 %v496_v51, %v493_v50  ;;  %v506_v60 = vor.u32 %v505_v53, %v502_v52  ;;  %v228_v2 = vshll.u32 %v207_v54, 16  ;;  %v233_v4 = vshrl.u32 %v200_v49, 16  ;;  %v7482_v37 = vld [vmem:[%s9621_s1 + $0x1c8] sm:$0xff]   ;;  %v7926_v40 = vld [vmem:[%s7835_s6 + $0x18] sm:$0xe] }
  0x19   : > { %6891 = vmatpush3.bf16.msra.mxu0 %v7462_v18  ;;  %v480_v63 = vrot.slane %v479_v55, 4  ;;  %v236_v5 = vshll.u32 %v200_v49, 16  ;;  %v242_v6 = vshll.u32 %v208_v57, 16  ;;  %v221_v8 = vrot.slane %v219_v0, 4  ;;  %v7483_v38 = vld [vmem:[%s9621_s1 + $0x108] sm:$0xff]  }
  0x1a   : > { %6931 = vmatpush3.bf16.msra.mxu1 %v7463_v19  ;;  %6892 = vmatprep.subr.bf16.mxu0 %v7464_v20  ;;  %v498_v3 = vrot.slane %v497_v59, 4  ;;  %v224_v9 = vrot.slane %v222_v1, 5  ;;  %v230_v10 = vrot.slane %v228_v2, 5  ;;  %v235_v12 = vrot.slane %v233_v4, 4  ;;  %v7929_v42 = vld [vmem:[%s7835_s6 + $0x14] sm:$0x3] }
  0x1b   : > { %6932 = vmatprep.subr.bf16.mxu1 %v7465_v21  ;;  %v489_v7 = vsel %vm7869_vm4, %v480_v63, %v488_v56  ;;  %v238_v13 = vrot.slane %v236_v5, 5  ;;  %v244_v14 = vrot.slane %v242_v6, 5  ;;  %v431_v17 = vrot.slane %v207_v54, 5  ;;  %v7932_v43 = vld [vmem:[%s7835_s6 + $0x1c] sm:$0x3]  ;;  %v7484_v51 = vld [vmem:[%s9621_s1 + $0x188] sm:$0xff]  }
  0x1c   : > { %v507_v11 = vsel %vm7869_vm4, %v498_v3, %v506_v60  ;;  %v225_v16 = vor.u32 %v224_v9, %v221_v8  ;;  %v435_v18 = vrot.slane %v208_v57, 5  ;;  %v7914_v36 = vcombine.low %v199_v44, %v200_v49  ;;  %v7941_v50 = vld [vmem:[%s7835_s6 + $0x10] sm:$0xf]  ;;  %v7949_v56 = vld [vmem:[%s7835_s6 + $0x18] sm:$0xf] }
  0x1d   : > { %6893 = vmatpush3.bf16.msra.mxu0 %v7466_v22  ;;  %v5946_v15 = vcombine.low %v489_v7, %v507_v11  ;;  %v239_v21 = vor.u32 %v238_v13, %v235_v12  ;;  %v5934_v22 = vrot.slane %v7844_v32, 9  ;;  %v7481_v32 = vld [vmem:[%s9621_s1 + $0x148] sm:$0xff]   ;;  %v509_v44 = vshrl.u32 %v7923_v39, 16  ;;  %v210_v2 = vld [vmem:[%s7835_s6 + $0x1c] sm:$0x1]  ;;  %v7486_v4 = vld [vmem:[%s9621_s1 + $0x150] sm:$0xff]  }
  0x1e   : > { %6933 = vmatpush3.bf16.msra.mxu1 %v7467_v23  ;;  %6894 = vmatprep.subr.bf16.mxu0 %v7468_v24  ;;  %v5935_v23 = vrot.slane %v7847_v33, 9  ;;  %v226_v24 = vrot.slane %v225_v16, 4  ;;  %v512_v45 = vshll.u32 %v7923_v39, 16  ;;  %v518_v46 = vshrl.u32 %v7929_v42, 16  ;;  %v7487_v13 = vld [vmem:[%s9621_s1 + $0x1d0] sm:$0xff]  }
  0x1f   : > { %6934 = vmatprep.subr.bf16.mxu1 %v7469_v25  ;;  %809 = vmatprep.mubr.bf16.mxu0 %v5946_v15  ;;  %v240_v25 = vrot.slane %v239_v21, 4  ;;  %v521_v47 = vshll.u32 %v7929_v42, 16  ;;  %v527_v48 = vshrl.u32 %v7926_v40, 16  ;;  %v530_v49 = vshll.u32 %v7926_v40, 16 }
  0x20   : > { %v511_v52 = vrot.slane %v509_v44, 5  ;;  %v514_v53 = vrot.slane %v512_v45, 6  ;;  %v536_v54 = vshrl.u32 %v7932_v43, 16  ;;  %v539_v55 = vshll.u32 %v7932_v43, 16  ;;  %v7491_v44 = vld [vmem:[%s9621_s1 + $0x1d8] sm:$0xff]  }
  0x21   : > { %6895 = vmatpush3.bf16.msra.mxu0 %v7470_v26  ;;  %v432_v26 = vsel %vm7885_vm7, %v5934_v22, %v431_v17  ;;  %v245_v33 = vsel %vm7891_vm8, %v240_v25, %v244_v14  ;;  %v520_v57 = vrot.slane %v518_v46, 5  ;;  %v523_v59 = vrot.slane %v521_v47, 6 }
  0x22   : > { %6935 = vmatpush3.bf16.msra.mxu1 %v7471_v27  ;;  %6896 = vmatprep.subr.bf16.mxu0 %v7472_v28  ;;  %v436_v27 = vsel %vm7885_vm7, %v5935_v23, %v435_v18  ;;  %v7479_v28 = vld [vmem:[%s9621_s1 + $0x100] sm:$0xff]   ;;  %v529_v60 = vrot.slane %v527_v48, 5  ;;  %v515_v63 = vor.u32 %v514_v53, %v511_v52  ;;  %v538_v0 = vrot.slane %v536_v54, 5  ;;  %v7492_v48 = vld [vmem:[%s9621_s1 + $0x118] sm:$0xff]   ;;  %v8004_v54 = vld [vmem:[%s7835_s6 + $0x28] sm:$0xe] }
  0x23   : > { %6936 = vmatprep.subr.bf16.mxu1 %v7473_v29  ;;  %v231_v29 = vsel %vm7891_vm8, %v226_v24, %v230_v10  ;;  %v541_v1 = vrot.slane %v539_v55, 6  ;;  %v247_v3 = vshrl.u32 %v7941_v50, 16  ;;  %v524_v5 = vor.u32 %v523_v59, %v520_v57  ;;  %v7488_v24 = vld [vmem:[%s9621_s1 + $0x110] sm:$0xff]   ;;  %v8001_v53 = vld [vmem:[%s7835_s6 + $0x20] sm:$0xe] }
  0x24   : > { %v5930_v41 = vcombine.low %v231_v29, %v245_v33  ;;  %v250_v7 = vshll.u32 %v7941_v50, 16  ;;  %v516_v9 = vrot.slane %v515_v63, 4  ;;  %v261_v12 = vshrl.u32 %v7949_v56, 16  ;;  %v7489_v33 = vld [vmem:[%s9621_s1 + $0x190] sm:$0xff]   ;;  %v8007_v55 = vld [vmem:[%s7835_s6 + $0x24] sm:$0x3] }
  0x25   : > { %6897 = vmatpush3.bf16.msra.mxu0 %v7474_v30  ;;  %v5942_v30 = vcombine.low %v432_v26, %v436_v27  ;;  %v542_v10 = vor.u32 %v541_v1, %v538_v0  ;;  %v249_v11 = vrot.slane %v247_v3, 4  ;;  %v264_v17 = vshll.u32 %v7949_v56, 16  ;;  %v8010_v59 = vld [vmem:[%s7835_s6 + $0x2c] sm:$0x3] }
  0x26   : > { %6937 = vmatpush3.bf16.msra.mxu1 %v7475_v31  ;;  %6962 = vmatprep.subr.bf16.mxu0 %v7477_v61  ;;  %v7480_v31 = vld [vmem:[%s9621_s1 + $0x180] sm:$0xff]   ;;  %v532_v61 = vrot.slane %v530_v49, 6  ;;  %v252_v15 = vrot.slane %v250_v7, 5  ;;  %v525_v18 = vsel %vm7869_vm4, %v516_v9, %v524_v5  ;;  %v263_v21 = vrot.slane %v261_v12, 4  ;;  %v7493_v49 = vld [vmem:[%s9621_s1 + $0x198] sm:$0xff]  }
  0x27   : > { %7002 = vmatprep.subr.bf16.mxu1 %v7478_v62  ;;  %970 = vmatprep.mubr.bf16.mxu1 %v5930_v41  ;;  %v209_v62 = vld [vmem:[%s7835_s6 + $0x14] sm:$0x1]  ;;  %v270_v22 = vshll.u32 %v210_v2, 16  ;;  %v5936_v23 = vrot.slane %v7923_v39, 9  ;;  %v266_v27 = vrot.slane %v264_v17, 5  ;;  %v7490_v41 = vld [vmem:[%s9621_s1 + $0x158] sm:$0xff]   ;;  %v7998_v52 = vcombine.low %v7941_v50, %v7949_v56 }
  0x28   : > { %810 = vmatmul.mubr.bf16.vlgmr.msra.gmra.mrb[0].mxu0 %v5942_v30  ;;  %v533_v6 = vor.u32 %v532_v61, %v529_v60  ;;  %v256_v8 = vshll.u32 %v209_v62, 16  ;;  %v253_v26 = vor.u32 %v252_v15, %v249_v11  ;;  %v545_v60 = vshrl.u32 %v8001_v53, 16  ;;  %v7495_v56 = vld [vmem:[%s9621_s1 + $0x160] sm:$0xff]   ;;  %v204_v7 = vld [vmem:[%s7835_s6 + $0x28] sm:$0xf] }
  0x29   : > { %6963 = vmatpush3.bf16.msra.mxu0 %v7479_v28  ;;  %971 = vmatmul.mubr.bf16.vlgmr.msra.gmra.mrb[0].mxu1 %v7914_v36  ;;  %v439_v28 = vrot.slane %v209_v62, 5  ;;  %v272_v30 = vrot.slane %v270_v22, 5  ;;  %v548_v61 = vshll.u32 %v8001_v53, 16  ;;  %v554_v50 = vshrl.u32 %v8007_v55, 16  ;;  %v211_v12 = vld [vmem:[%s7835_s6 + $0x24] sm:$0x1] }
  0x2a   : > { %6964 = vmatprep.subr.bf16.mxu0 %v7481_v32  ;;  %7003 = vmatpush3.bf16.msra.mxu1 %v7480_v31  ;;  %v534_v14 = vrot.slane %v533_v6, 4  ;;  %v258_v16 = vrot.slane %v256_v8, 5  ;;  %v5937_v31 = vrot.slane %v7926_v40, 9  ;;  %v443_v32 = vrot.slane %v210_v2, 5  ;;  %v8023_v2 = vld [vmem:[%s7835_s6 + $0x20] sm:$0xf] }
  0x2b   : > { %7004 = vmatprep.subr.bf16.mxu1 %v7482_v37  ;;  %v254_v37 = vrot.slane %v253_v26, 4  ;;  %v440_v39 = vsel %vm7885_vm7, %v5936_v23, %v439_v28  ;;  %v557_v62 = vshll.u32 %v8007_v55, 16  ;;  %v563_v63 = vshrl.u32 %v8004_v54, 16  ;;  %v212_v15 = vld [vmem:[%s7835_s6 + $0x2c] sm:$0x1] }
  0x2c   : > { %v543_v25 = vsel %vm7869_vm4, %v534_v14, %v542_v10  ;;  %v444_v40 = vsel %vm7885_vm7, %v5937_v31, %v443_v32  ;;  %v566_v0 = vshll.u32 %v8004_v54, 16  ;;  %v572_v1 = vshrl.u32 %v8010_v59, 16 }
  0x2d   : > { %6965 = vmatpush3.bf16.msra.mxu0 %v7483_v38  ;;  %v5947_v29 = vcombine.low %v525_v18, %v543_v25  ;;  %v267_v38 = vor.u32 %v266_v27, %v263_v21  ;;  %v259_v45 = vsel %vm7891_vm8, %v254_v37, %v258_v16  ;;  %v5943_v47 = vcombine.low %v440_v39, %v444_v40  ;;  %v7496_v18 = vld [vmem:[%s9621_s1 + $0x1e0] sm:$0xff]  }
  0x2e   : > { %6966 = vmatprep.subr.bf16.mxu0 %v7486_v4  ;;  %7005 = vmatpush3.bf16.msra.mxu1 %v7484_v51  ;;  %v547_v3 = vrot.slane %v545_v60, 5  ;;  %v550_v4 = vrot.slane %v548_v61, 6  ;;  %v556_v5 = vrot.slane %v554_v50, 5  ;;  %v575_v6 = vshll.u32 %v8010_v59, 16 }
  0x2f   : > { %7006 = vmatprep.subr.bf16.mxu1 %v7487_v13  ;;  %817 = vmatprep.mubr.bf16.mxu0 %v5947_v29  ;;  %v268_v46 = vrot.slane %v267_v38, 4  ;;  %v559_v8 = vrot.slane %v557_v62, 6  ;;  %v565_v9 = vrot.slane %v563_v63, 5  ;;  %v568_v10 = vrot.slane %v566_v0, 6  ;;  %v7497_v29 = vld [vmem:[%s9621_s1 + $0x120] sm:$0xff]  }
  0x30   : > { %818 = vmatmul.mubr.bf16.gmra.mrb[4].mxu0 %v5943_v47  ;;  %v574_v11 = vrot.slane %v572_v1, 5  ;;  %v551_v13 = vor.u32 %v550_v4, %v547_v3  ;;  %v577_v14 = vrot.slane %v575_v6, 6  ;;  %v275_v16 = vshrl.u32 %v8023_v2, 16  ;;  %v7498_v47 = vld [vmem:[%s9621_s1 + $0x1a0] sm:$0xff]   ;;  %v7501_v1 = vld [vmem:[%s9621_s1 + $0x128] sm:$0xff]  }
  0x31   : > { %6967 = vmatpush3.bf16.msra.mxu0 %v7488_v24  ;;  %v273_v51 = vsel %vm7891_vm8, %v268_v46, %v272_v30  ;;  %v278_v17 = vshll.u32 %v8023_v2, 16  ;;  %v560_v21 = vor.u32 %v559_v8, %v556_v5  ;;  %v569_v22 = vor.u32 %v568_v10, %v565_v9  ;;  %v7502_v4 = vld [vmem:[%s9621_s1 + $0x1a8] sm:$0xff]   ;;  %v8068_v5 = vld [vmem:[%s7835_s6 + $0x30] sm:$0xe]  ;;  %v8076_v9 = vld [vmem:[%s7835_s6 + $0x38] sm:$0xe] }
  0x32   : > { %7007 = vmatpush3.bf16.msra.mxu1 %v7489_v33  ;;  %6968 = vmatprep.subr.bf16.mxu0 %v7490_v41  ;;  %v5931_v57 = vcombine.low %v259_v45, %v273_v51  ;;  %v284_v23 = vshll.u32 %v211_v12, 16  ;;  %v289_v24 = vshrl.u32 %v204_v7, 16  ;;  %v552_v25 = vrot.slane %v551_v13, 4  ;;  %v8079_v10 = vld [vmem:[%s7835_s6 + $0x34] sm:$0x3] }
  0x33   : > { %7008 = vmatprep.subr.bf16.mxu1 %v7491_v44  ;;  %v578_v26 = vor.u32 %v577_v14, %v574_v11  ;;  %v277_v27 = vrot.slane %v275_v16, 4  ;;  %v280_v28 = vrot.slane %v278_v17, 5  ;;  %v570_v30 = vrot.slane %v569_v22, 4  ;;  %v8082_v11 = vld [vmem:[%s7835_s6 + $0x3c] sm:$0x3] }
  0x34   : > { %978 = vmatprep.mubr.bf16.mxu1 %v5931_v57  ;;  %v286_v31 = vrot.slane %v284_v23, 5  ;;  %v291_v32 = vrot.slane %v289_v24, 4  ;;  %v292_v33 = vshll.u32 %v204_v7, 16  ;;  %v561_v37 = vsel %vm7869_vm4, %v552_v25, %v560_v21  ;;  %v8088_v16 = vld [vmem:[%s7835_s6 + $0x30] sm:$0xf] }
  0x35   : > { %6969 = vmatpush3.bf16.msra.mxu0 %v7492_v48  ;;  %979 = vmatmul.mubr.bf16.gmra.mrb[4].mxu1 %v7998_v52  ;;  %v281_v38 = vor.u32 %v280_v28, %v277_v27  ;;  %v298_v39 = vshll.u32 %v212_v15, 16  ;;  %v5938_v41 = vrot.slane %v8001_v53, 9  ;;  %v579_v40 = vsel %vm7869_vm4, %v570_v30, %v578_v26  ;;  %v7499_v53 = vld [vmem:[%s9621_s1 + $0x168] sm:$0xff]   ;;  %v8098_v22 = vld [vmem:[%s7835_s6 + $0x38] sm:$0xf] }
  0x36   : > { %7009 = vmatpush3.bf16.msra.mxu1 %v7493_v49  ;;  %6970 = vmatprep.subr.bf16.mxu0 %v7495_v56  ;;  %v294_v44 = vrot.slane %v292_v33, 5  ;;  %v447_v45 = vrot.slane %v211_v12, 5  ;;  %v5939_v46 = vrot.slane %v8004_v54, 9  ;;  %v5948_v48 = vcombine.low %v561_v37, %v579_v40  ;;  %v7500_v56 = vld [vmem:[%s9621_s1 + $0x1e8] sm:$0xff]   ;;  %v213_v27 = vld [vmem:[%s7835_s6 + $0x34] sm:$0x1] }
  0x37   : > { %7010 = vmatprep.subr.bf16.mxu1 %v7496_v18  ;;  %v282_v49 = vrot.slane %v281_v38, 4  ;;  %v300_v51 = vrot.slane %v298_v39, 5  ;;  %v451_v57 = vrot.slane %v212_v15, 5  ;;  %v1032_v54 = vrot.slane %v7850_v34, 6  ;;  %v7515_v34 = vld [vmem:[%s9621_s1 + $0x200] sm:$0xff]  }
  0x38   : > { %v295_v60 = vor.u32 %v294_v44, %v291_v32  ;;  %v448_v61 = vsel %vm7885_vm7, %v5938_v41, %v447_v45  ;;  %825 = vmatprep.mubr.bf16.mxu0 %v5948_v48  ;;  %v1036_v3 = vrot.slane %v7853_v35, 6  ;;  %v8073_v8 = vcombine.low %v8023_v2, %v204_v7  ;;  %v7504_v2 = vld [vmem:[%s9621_s1 + $0x170] sm:$0xff]   ;;  %v214_v32 = vld [vmem:[%s7835_s6 + $0x3c] sm:$0x1] }
  0x39   : > { %6971 = vmatpush3.bf16.msra.mxu0 %v7497_v29  ;;  %v452_v50 = vsel %vm7885_vm7, %v5939_v46, %v451_v57  ;;  %v287_v62 = vsel %vm7891_vm8, %v282_v49, %v286_v31  ;;  %v581_v13 = vshrl.u32 %v8068_v5, 16  ;;  %v584_v14 = vshll.u32 %v8068_v5, 16  ;;  %v7505_v41 = vld [vmem:[%s9621_s1 + $0x1f0] sm:$0xff]  }
  0x3a   : > { %7011 = vmatpush3.bf16.msra.mxu1 %v7498_v47  ;;  %6972 = vmatprep.subr.bf16.mxu0 %v7499_v53  ;;  %v296_v63 = vrot.slane %v295_v60, 4  ;;  %v5944_v0 = vcombine.low %v448_v61, %v452_v50  ;;  %v590_v15 = vshrl.u32 %v8079_v10, 16  ;;  %v593_v7 = vshll.u32 %v8079_v10, 16  ;;  %v7506_v57 = vld [vmem:[%s9621_s1 + $0x130] sm:$0xff]  }
  0x3b   : > { %7012 = vmatprep.subr.bf16.mxu1 %v7500_v56  ;;  %v599_v17 = vshrl.u32 %v8076_v9, 16  ;;  %v602_v18 = vshll.u32 %v8076_v9, 16  ;;  %v608_v21 = vshrl.u32 %v8082_v11, 16  ;;  %v583_v23 = vrot.slane %v581_v13, 5  ;;  %v7507_v13 = vld [vmem:[%s9621_s1 + $0x1b0] sm:$0xff]  }
  0x3c   : > { %v301_v6 = vsel %vm7891_vm8, %v296_v63, %v300_v51  ;;  %826 = vmatmul.mubr.bf16.gmra.mrb[8].mxu0 %v5944_v0  ;;  %v586_v24 = vrot.slane %v584_v14, 6  ;;  %v592_v25 = vrot.slane %v590_v15, 5  ;;  %v611_v26 = vshll.u32 %v8082_v11, 16 }
  0x3d   : > { %v5932_v12 = vcombine.low %v287_v62, %v301_v6  ;;  %6973 = vmatpush3.bf16.msra.mxu0 %v7501_v1  ;;  %v595_v28 = vrot.slane %v593_v7, 6  ;;  %v601_v29 = vrot.slane %v599_v17, 5  ;;  %v604_v30 = vrot.slane %v602_v18, 6 }
  0x3e   : > { %7013 = vmatpush3.bf16.msra.mxu1 %v7502_v4  ;;  %6974 = vmatprep.subr.bf16.mxu0 %v7504_v2  ;;  %v610_v31 = vrot.slane %v608_v21, 5  ;;  %v587_v33 = vor.u32 %v586_v24, %v583_v23  ;;  %v613_v37 = vrot.slane %v611_v26, 6  ;;  %v303_v38 = vshrl.u32 %v8088_v16, 16  ;;  %v7509_v21 = vld [vmem:[%s9621_s1 + $0x1f8] sm:$0xff]  }
  0x3f   : > { %986 = vmatprep.mubr.bf16.mxu1 %v5932_v12  ;;  %v306_v39 = vshll.u32 %v8088_v16, 16  ;;  %v596_v40 = vor.u32 %v595_v28, %v592_v25  ;;  %v605_v44 = vor.u32 %v604_v30, %v601_v29  ;;  %v312_v45 = vshll.u32 %v213_v27, 16  ;;  %7014 = vmatprep.subr.bf16.mxu1 %v7505_v41  ;;  %v7511_v28 = vld [vmem:[%s9621_s1 + $0x1b8] sm:$0xff]   ;;  %v6103_v41 = vld [vmem:[%s7835_s6 + $0x10] sm:$0xe] }
  0x40   : > { %987 = vmatmul.mubr.bf16.gmra.mrb[8].mxu1 %v8073_v8  ;;  %v317_v46 = vshrl.u32 %v8098_v22, 16  ;;  %v588_v47 = vrot.slane %v587_v33, 4  ;;  %v614_v48 = vor.u32 %v613_v37, %v610_v31  ;;  %v305_v49 = vrot.slane %v303_v38, 4  ;;  %v6087_v33 = vld [vmem:[%s7835_s6 + $0xc] sm:$0x1] }
  0x41   : > { %v308_v51 = vrot.slane %v306_v39, 5  ;;  %v606_v53 = vrot.slane %v605_v44, 4  ;;  %v314_v60 = vrot.slane %v312_v45, 5  ;;  %v320_v50 = vshll.u32 %v8098_v22, 16  ;;  %6975 = vmatpush3.bf16.msra.mxu0 %v7506_v57  ;;  %v6089_v37 = vld [vmem:[%s7835_s6 + $0x14] sm:$0x1] }
  0x42   : > { %v319_v61 = vrot.slane %v317_v46, 4  ;;  %v597_v56 = vsel %vm7869_vm4, %v588_v47, %v596_v40  ;;  %v326_v63 = vshll.u32 %v214_v32, 16  ;;  %v5940_v0 = vrot.slane %v8068_v5, 9  ;;  %v7508_v5 = vld [vmem:[%s9621_s1 + $0x178] sm:$0xff]   ;;  %7015 = vmatpush3.bf16.msra.mxu1 %v7507_v13  ;;  %v6102_v39 = vld [vmem:[%s7835_s6 + $0x8] sm:$0xe] }
  0x43   : > { %v309_v62 = vor.u32 %v308_v51, %v305_v49  ;;  %v615_v1 = vsel %vm7869_vm4, %v606_v53, %v614_v48  ;;  %v322_v4 = vrot.slane %v320_v50, 5  ;;  %v455_v6 = vrot.slane %v213_v27, 5  ;;  %6976 = vmatprep.subr.bf16.mxu0 %v7508_v5  ;;  %v7510_v27 = vld [vmem:[%s9621_s1 + $0x138] sm:$0xff]   ;;  %7016 = vmatprep.subr.bf16.mxu1 %v7509_v21  ;;  %v1003_v47 = vld [vmem:[%s7835_s6] sm:$0xc] }
  0x44   : > { %v5941_v12 = vrot.slane %v8076_v9, 9  ;;  %v5949_v14 = vcombine.low %v597_v56, %v615_v1  ;;  %v328_v2 = vrot.slane %v326_v63, 5  ;;  %v459_v7 = vrot.slane %v214_v32, 5  ;;  %v7512_v32 = vld [vmem:[%s7835_s6 + $0x8] ss:$8 sps:$4 sm:$0xff]   ;;  %v7513_v13 = vld [vmem:[%s9621_s1 + $0x240] sm:$0xff]  }
  0x45   : > { %v310_v15 = vrot.slane %v309_v62, 4  ;;  %v323_v17 = vor.u32 %v322_v4, %v319_v61  ;;  %v456_v18 = vsel %vm7885_vm7, %v5940_v0, %v455_v6  ;;  %v1040_v23 = vrot.slane %v7929_v42, 6  ;;  %6977 = vmatpush3.bf16.msra.mxu0 %v7510_v27  ;;  %v1004_v53 = vld [vmem:[%s7835_s6 + $0x8] sm:$0xc]  ;;  %v6088_v0 = vld [vmem:[%s7835_s6 + $0x10] sm:$0xf] }
  0x46   : > { %833 = vmatprep.mubr.bf16.mxu0 %v5949_v14  ;;  %v460_v9 = vsel %vm7885_vm7, %v5941_v12, %v459_v7  ;;  %v1044_v29 = vrot.slane %v7932_v43, 6  ;;  %v8147_v31 = vcombine.low %v8088_v16, %v8098_v22  ;;  %7017 = vmatpush3.bf16.msra.mxu1 %v7511_v28  ;;  %v1048_v40 = vrot.slane %v8007_v55, 6  ;;  %v6086_v63 = vld [vmem:[%s7835_s6 + $0x8] sm:$0xf]  ;;  %v7525_v42 = vld [vmem:[%s9621_s1 + $0x290] sm:$0xff]   ;;  %v7533_v55 = vld [vmem:[%s9621_s1 + $0x220] sm:$0xff]  }
  0x47   : > { %v315_v24 = vsel %vm7891_vm8, %v310_v15, %v314_v60  ;;  %v324_v25 = vrot.slane %v323_v17, 4  ;;  %v5945_v26 = vcombine.low %v456_v18, %v460_v9  ;;  %v1052_v44 = vrot.slane %v8010_v59, 6  ;;  %7042 = vmatprep.subr.bf16.mxu0 %v7513_v13  ;;  %v7534_v59 = vld [vmem:[%s9621_s1 + $0x2a0] sm:$0xff]  }
  0x48   : > { %v6110_v45 = vrot.slane %v6102_v39, 9  ;;  %v1470_v46 = vrot.slane %v6087_v33, 5  ;;  %v6111_v16 = vrot.slane %v6103_v41, 9  ;;  %v1474_v22 = vrot.slane %v6089_v37, 5 }
  0x49   : > { %v329_v30 = vsel %vm7891_vm8, %v324_v25, %v328_v2  ;;  %834 = vmatmul.mubr.bf16.gmra.mrb[12].mxu0 %v5945_v26  ;;  %v1342_v48 = vshll.u32 %v6087_v33, 16  ;;  %v1356_v49 = vshll.u32 %v6089_v37, 16  ;;  %v1743_v51 = vshrl.u32 %v6102_v39, 16  ;;  %v7514_v26 = vld [vmem:[%s9621_s1 + $0x2c0] sm:$0xff]  }
  0x4a   : > { %v5933_v38 = vcombine.low %v315_v24, %v329_v30  ;;  %1275 = vmatprep.mubr.bf16.mxu0 %v7512_v32  ;;  %v1746_v57 = vshll.u32 %v6102_v39, 16  ;;  %v1471_v60 = vsel %vm7885_vm7, %v6110_v45, %v1470_v46  ;;  %v1475_v61 = vsel %vm7885_vm7, %v6111_v16, %v1474_v22  ;;  %7082 = vmatprep.subr.bf16.mxu1 %v7514_v26  ;;  %v7519_v16 = vld [vmem:[%s9621_s1 + $0x208] sm:$0xff]  }
  0x4b   : > { %v1761_v50 = vshrl.u32 %v6103_v41, 16  ;;  %v1764_v56 = vshll.u32 %v6103_v41, 16  ;;  %v6122_v1 = vcombine.low %v1471_v60, %v1475_v61  ;;  %v1745_v4 = vrot.slane %v1743_v51, 5  ;;  %v7518_v51 = vld [vmem:[%s9621_s1 + $0x2c8] sm:$0xff]   ;;  %v6091_v60 = vld [vmem:[%s7835_s6 + $0x1c] sm:$0x1] }
  0x4c   : > { %994 = vmatprep.mubr.bf16.mxu1 %v5933_v38  ;;  %v1748_v6 = vrot.slane %v1746_v57, 6  ;;  %v6014_v12 = vrot.slane %v1003_v47, 10  ;;  %v6015_v2 = vrot.slane %v1004_v53, 10  ;;  %v1333_v7 = vshrl.u32 %v6086_v63, 16  ;;  %v7517_v38 = vld [vmem:[%s9621_s1 + $0x248] sm:$0xff]  }
  0x4d   : > { %995 = vmatmul.mubr.bf16.gmra.mrb[12].mxu1 %v8147_v31  ;;  %v1763_v14 = vrot.slane %v1761_v50, 5  ;;  %v1766_v15 = vrot.slane %v1764_v56, 6  ;;  %v1336_v17 = vshll.u32 %v6086_v63, 16  ;;  %v1347_v18 = vshrl.u32 %v6088_v0, 16  ;;  %v7521_v57 = vld [vmem:[%s7835_s6 + $0x18] ss:$8 sps:$4 sm:$0xff]  }
  0x4e   : > { %1693 = vmatprep.mubr.bf16.mxu1 %v6122_v1  ;;  %v1033_v5 = vsel %vm8165_vm11, %v6014_v12, %v1032_v54  ;;  %v1749_v9 = vor.u32 %v1748_v6, %v1745_v4  ;;  %v1037_v21 = vsel %vm8165_vm11, %v6015_v2, %v1036_v3  ;;  %v1335_v24 = vrot.slane %v1333_v7, 4  ;;  %v6093_v61 = vld [vmem:[%s7835_s6 + $0x24] sm:$0x1]  ;;  %v8214_v50 = vld [vmem:[%s7835_s6 + $0x18] sm:$0xe]  ;;  %v7522_v6 = vld [vmem:[%s9621_s1 + $0x250] sm:$0xff]  }
  0x4f   : > { %v1350_v25 = vshll.u32 %v6088_v0, 16  ;;  %v6030_v54 = vcombine.low %v1033_v5, %v1037_v21  ;;  %v1338_v27 = vrot.slane %v1336_v17, 5  ;;  %v1349_v28 = vrot.slane %v1347_v18, 4  ;;  %v8217_v63 = vld [vmem:[%s7835_s6 + $0x20] sm:$0xe]  ;;  %v7520_v12 = vld [vmem:[%s9621_s1 + $0x288] sm:$0xff]  }
  0x50   : > { %v1056_v30 = vrot.slane %v8079_v10, 6  ;;  %v1767_v32 = vor.u32 %v1766_v15, %v1763_v14  ;;  %v1060_v3 = vrot.slane %v8082_v11, 6  ;;  %v1344_v33 = vrot.slane %v1342_v48, 5  ;;  %v7516_v48 = vld [vmem:[%s9621_s1 + $0x280] sm:$0xff]   ;;  %v1005_v14 = vld [vmem:[%s7835_s6 + $0x10] sm:$0xc] }
  0x51   : > { %v1352_v35 = vrot.slane %v1350_v25, 5  ;;  %1276 = vmatmul.mubr.bf16.vlgmr.msra.gmra.mrb[16].mxu0 %v6030_v54  ;;  %v1339_v37 = vor.u32 %v1338_v27, %v1335_v24  ;;  %v1358_v39 = vrot.slane %v1356_v49, 5  ;;  %v8193_v41 = vrot.slane %v1749_v9, 4  ;;  %v1006_v15 = vld [vmem:[%s7835_s6 + $0x18] sm:$0xc]  ;;  %v7542_v10 = vld [vmem:[%s9621_s1 + $0x230] sm:$0xff]  }
  0x52   : > { %7043 = vmatpush3.bf16.msra.mxu0 %v7515_v34  ;;  %v8198_v22 = vrot.slane %v1767_v32, 4  ;;  %1283 = vmatprep.mubr.bf16.mxu0 %v7521_v57  ;;  %v6112_v0 = vrot.slane %v8214_v50, 9  ;;  %v1478_v1 = vrot.slane %v6091_v60, 5  ;;  %v1482_v4 = vrot.slane %v6093_v61, 5  ;;  %v6090_v18 = vld [vmem:[%s7835_s6 + $0x18] sm:$0xf] }
  0x53   : > { %v1353_v45 = vor.u32 %v1352_v35, %v1349_v28  ;;  %v1340_v46 = vrot.slane %v1339_v37, 4  ;;  %7044 = vmatprep.subr.bf16.mxu0 %v7517_v38  ;;  %v6113_v13 = vrot.slane %v8217_v63, 9  ;;  %v1370_v2 = vshll.u32 %v6091_v60, 16  ;;  %v6092_v9 = vld [vmem:[%s7835_s6 + $0x20] sm:$0xf]  ;;  %v7523_v34 = vld [vmem:[%s9621_s1 + $0x2d0] sm:$0xff]  }
  0x54   : > { %v1479_v7 = vsel %vm7885_vm7, %v6112_v0, %v1478_v1  ;;  %v6016_v5 = vrot.slane %v1005_v14, 10  ;;  %v6017_v17 = vrot.slane %v1006_v15, 10  ;;  %v1361_v24 = vshrl.u32 %v6090_v18, 16  ;;  %v7524_v35 = vld [vmem:[%s9621_s1 + $0x210] sm:$0xff]   ;;  %v7529_v60 = vld [vmem:[%s9621_s1 + $0x298] sm:$0xff]  }
  0x55   : > { %v1354_v47 = vrot.slane %v1353_v45, 4  ;;  %v1345_v49 = vsel %vm7891_vm8, %v1340_v46, %v1344_v33  ;;  %v1483_v21 = vsel %vm7885_vm7, %v6113_v13, %v1482_v4  ;;  %v1364_v25 = vshll.u32 %v6090_v18, 16  ;;  %v7526_v46 = vld [vmem:[%s9621_s1 + $0x258] sm:$0xff]   ;;  %v6097_v1 = vld [vmem:[%s7835_s6 + $0x34] sm:$0x1] }
  0x56   : > { %7045 = vmatpush3.bf16.msra.mxu0 %v7519_v16  ;;  %v1372_v26 = vrot.slane %v1370_v2, 5  ;;  %v6123_v54 = vcombine.low %v1479_v7, %v1483_v21  ;;  %v1041_v27 = vsel %vm8165_vm11, %v6016_v5, %v1040_v23  ;;  %v1045_v28 = vsel %vm8165_vm11, %v6017_v17, %v1044_v29  ;;  %v8272_v4 = vld [vmem:[%s7835_s6 + $0x28] sm:$0xe]  ;;  %v1007_v2 = vld [vmem:[%s7835_s6 + $0x20] sm:$0xc]  ;;  %v7543_v11 = vld [vmem:[%s9621_s1 + $0x2b0] sm:$0xff]  }
  0x57   : > { %v1359_v53 = vsel %vm7891_vm8, %v1354_v47, %v1358_v39  ;;  %7046 = vmatprep.subr.bf16.mxu0 %v7522_v6  ;;  %v1375_v32 = vshrl.u32 %v6092_v9, 16  ;;  %v6031_v33 = vcombine.low %v1041_v27, %v1045_v28  ;;  %v1363_v37 = vrot.slane %v1361_v24, 4  ;;  %v7527_v47 = vld [vmem:[%s9621_s1 + $0x2d8] sm:$0xff]   ;;  %v8275_v6 = vld [vmem:[%s7835_s6 + $0x30] sm:$0xe]  ;;  %v7531_v7 = vld [vmem:[%s9621_s1 + $0x260] sm:$0xff]  }
  0x58   : > { %v6118_v56 = vcombine.low %v1345_v49, %v1359_v53  ;;  %v1366_v38 = vrot.slane %v1364_v25, 5  ;;  %v1378_v39 = vshll.u32 %v6092_v9, 16  ;;  %v1384_v45 = vshll.u32 %v6093_v61, 16  ;;  %v7530_v61 = vld [vmem:[%s7835_s6 + $0x28] ss:$8 sps:$4 sm:$0xff]  }
  0x59   : > { %v1377_v23 = vrot.slane %v1375_v32, 4  ;;  %1284 = vmatmul.mubr.bf16.gmra.mrb[20].mxu0 %v6031_v33  ;;  %v6114_v13 = vrot.slane %v8272_v4, 9  ;;  %v6115_v15 = vrot.slane %v8275_v6, 9  ;;  %v1490_v5 = vrot.slane %v6097_v1, 5  ;;  %v1008_v17 = vld [vmem:[%s7835_s6 + $0x28] sm:$0xc] }
  0x5a   : > { %1694 = vmatmul.mubr.bf16.vlgmr.msra.gmra.mrb[16].mxu1 %v6118_v56  ;;  %7047 = vmatpush3.bf16.msra.mxu0 %v7524_v35  ;;  %v1367_v43 = vor.u32 %v1366_v38, %v1363_v37  ;;  %v1380_v29 = vrot.slane %v1378_v39, 5  ;;  %v1386_v16 = vrot.slane %v1384_v45, 5  ;;  %v6095_v56 = vld [vmem:[%s7835_s6 + $0x2c] sm:$0x1]  ;;  %v6018_v18 = vrot.slane %v1007_v2, 10 }
  0x5b   : > { %7083 = vmatpush3.bf16.msra.mxu1 %v7516_v48  ;;  %1701 = vmatprep.mubr.bf16.mxu1 %v6123_v54  ;;  %v1486_v14 = vrot.slane %v6095_v56, 5  ;;  %v6094_v9 = vld [vmem:[%s7835_s6 + $0x28] sm:$0xf]  ;;  %v6019_v24 = vrot.slane %v1008_v17, 10  ;;  %v6096_v25 = vld [vmem:[%s7835_s6 + $0x30] sm:$0xf]  ;;  %v1491_v27 = vsel %vm7885_vm7, %v6115_v15, %v1490_v5 }
  0x5c   : > { %7084 = vmatprep.subr.bf16.mxu1 %v7518_v51  ;;  %v1368_v48 = vrot.slane %v1367_v43, 4  ;;  %v1381_v49 = vor.u32 %v1380_v29, %v1377_v23  ;;  %7048 = vmatprep.subr.bf16.mxu0 %v7526_v46  ;;  %v7528_v51 = vld [vmem:[%s9621_s1 + $0x218] sm:$0xff]   ;;  %v7532_v54 = vld [vmem:[%s9621_s1 + $0x2e0] sm:$0xff]   ;;  %v1049_v28 = vsel %vm8165_vm11, %v6018_v18, %v1048_v40  ;;  %v1398_v32 = vshll.u32 %v6095_v56, 16  ;;  %v7535_v46 = vld [vmem:[%s9621_s1 + $0x268] sm:$0xff]  }
  0x5d   : > { %1291 = vmatprep.mubr.bf16.mxu0 %v7530_v61  ;;  %v1487_v21 = vsel %vm7885_vm7, %v6114_v13, %v1486_v14  ;;  %v1403_v35 = vshrl.u32 %v6096_v25, 16  ;;  %v1053_v37 = vsel %vm8165_vm11, %v6019_v24, %v1052_v44  ;;  %v1406_v43 = vshll.u32 %v6096_v25, 16  ;;  %v7538_v56 = vld [vmem:[%s9621_s1 + $0x2a8] sm:$0xff]   ;;  %v8329_v13 = vld [vmem:[%s7835_s6 + $0x38] sm:$0xe]  ;;  %v7540_v18 = vld [vmem:[%s9621_s1 + $0x270] sm:$0xff]  }
  0x5e   : > { %v1373_v57 = vsel %vm7891_vm8, %v1368_v48, %v1372_v26  ;;  %v1382_v53 = vrot.slane %v1381_v49, 4  ;;  %7049 = vmatpush3.bf16.msra.mxu0 %v7528_v51  ;;  %v1389_v26 = vshrl.u32 %v6094_v9, 16  ;;  %v6124_v33 = vcombine.low %v1487_v21, %v1491_v27  ;;  %v7536_v49 = vld [vmem:[%s9621_s1 + $0x2e8] sm:$0xff]   ;;  %v8332_v14 = vld [vmem:[%s7835_s6 + $0x40] sm:$0xe] }
  0x5f   : > { %7085 = vmatpush3.bf16.msra.mxu1 %v7520_v12  ;;  %7050 = vmatprep.subr.bf16.mxu0 %v7531_v7  ;;  %v1400_v23 = vrot.slane %v1398_v32, 5  ;;  %v1405_v45 = vrot.slane %v1403_v35, 4  ;;  %v1412_v29 = vshll.u32 %v6097_v1, 16  ;;  %v1408_v44 = vrot.slane %v1406_v43, 5  ;;  %v6099_v1 = vld [vmem:[%s7835_s6 + $0x3c] sm:$0x1] }
  0x60   : > { %7086 = vmatprep.subr.bf16.mxu1 %v7523_v34  ;;  %v1387_v0 = vsel %vm7891_vm8, %v1382_v53, %v1386_v16  ;;  %v1392_v34 = vshll.u32 %v6094_v9, 16  ;;  %v1391_v38 = vrot.slane %v1389_v26, 4  ;;  %v1779_v51 = vshrl.u32 %v8214_v50, 16  ;;  %v1009_v17 = vld [vmem:[%s7835_s6 + $0x30] sm:$0xc] }
  0x61   : > { %v6119_v12 = vcombine.low %v1373_v57, %v1387_v0  ;;  %v1409_v48 = vor.u32 %v1408_v44, %v1405_v45  ;;  %v7537_v57 = vld [vmem:[%s9621_s1 + $0x228] sm:$0xff]   ;;  %v1782_v53 = vshll.u32 %v8214_v50, 16  ;;  %v7539_v0 = vld [vmem:[%s7835_s6 + $0x38] ss:$8 sps:$4 sm:$0xff]   ;;  %v6101_v50 = vld [vmem:[%s7835_s6 + $0x44] sm:$0x1] }
  0x62   : > { %v1394_v39 = vrot.slane %v1392_v34, 5  ;;  %7051 = vmatpush3.bf16.msra.mxu0 %v7533_v55  ;;  %v6116_v2 = vrot.slane %v8329_v13, 9  ;;  %v1494_v7 = vrot.slane %v6099_v1, 5  ;;  %v6117_v5 = vrot.slane %v8332_v14, 9  ;;  %v1010_v21 = vld [vmem:[%s7835_s6 + $0x38] sm:$0xc] }
  0x63   : > { %7087 = vmatpush3.bf16.msra.mxu1 %v7525_v42  ;;  %v6032_v42 = vcombine.low %v1049_v28, %v1053_v37  ;;  %7052 = vmatprep.subr.bf16.mxu0 %v7535_v46  ;;  %v1410_v61 = vrot.slane %v1409_v48, 4  ;;  %v1498_v9 = vrot.slane %v6101_v50, 5  ;;  %v6020_v24 = vrot.slane %v1009_v17, 10  ;;  %v6098_v25 = vld [vmem:[%s7835_s6 + $0x38] sm:$0xf]  ;;  %v7541_v32 = vld [vmem:[%s9621_s1 + $0x2f0] sm:$0xff]  }
  0x64   : > { %7088 = vmatprep.subr.bf16.mxu1 %v7527_v47  ;;  %1702 = vmatmul.mubr.bf16.gmra.mrb[20].mxu1 %v6119_v12  ;;  %v1395_v40 = vor.u32 %v1394_v39, %v1391_v38  ;;  %v1414_v47 = vrot.slane %v1412_v29, 5  ;;  %v1495_v26 = vsel %vm7885_vm7, %v6116_v2, %v1494_v7  ;;  %v6021_v34 = vrot.slane %v1010_v21, 10  ;;  %v7544_v44 = vld [vmem:[%s9621_s1 + $0x278] sm:$0xff]  }
  0x65   : > { %1709 = vmatprep.mubr.bf16.mxu1 %v6124_v33  ;;  %1292 = vmatmul.mubr.bf16.gmra.mrb[24].mxu0 %v6032_v42  ;;  %v1417_v27 = vshrl.u32 %v6098_v25, 16  ;;  %v1420_v28 = vshll.u32 %v6098_v25, 16  ;;  %v1499_v35 = vsel %vm7885_vm7, %v6117_v5, %v1498_v9  ;;  %v1057_v33 = vsel %vm8165_vm11, %v6020_v24, %v1056_v30  ;;  %v7545_v48 = vld [vmem:[%s9621_s1 + $0x2f8] sm:$0xff]   ;;  %v6183_v5 = vld [vmem:[%s7835_s6 + $0x10] sm:$0xc] }
  0x66   : > { %v1396_v16 = vrot.slane %v1395_v40, 4  ;;  %7053 = vmatpush3.bf16.msra.mxu0 %v7537_v57  ;;  %v1415_v12 = vsel %vm7891_vm8, %v1410_v61, %v1414_v47  ;;  %1299 = vmatprep.mubr.bf16.mxu0 %v7539_v0  ;;  %v1426_v37 = vshll.u32 %v6099_v1, 16  ;;  %v6125_v39 = vcombine.low %v1495_v26, %v1499_v35  ;;  %v7546_v57 = vld [vmem:[%s9621_s1 + $0x238] sm:$0xff]   ;;  %v6174_v1 = vld [vmem:[%s7835_s6 + $0xc] sm:$0x3] }
  0x67   : > { %7089 = vmatpush3.bf16.msra.mxu1 %v7529_v60  ;;  %7054 = vmatprep.subr.bf16.mxu0 %v7540_v18  ;;  %v1061_v42 = vsel %vm8165_vm11, %v6021_v34, %v1060_v3  ;;  %v1422_v45 = vrot.slane %v1420_v28, 5  ;;  %v7547_v0 = vld [vmem:[%s9621_s1 + $0x2b8] sm:$0xff]   ;;  %v7549_v18 = vld [vmem:[%s9621_s1 + $0x340] sm:$0xff]   ;;  %v1912_v25 = vrot.slane %v6174_v1, 6  ;;  %v8392_v26 = vld [vmem:[%s7835_s6 + $0x10] sm:$0xf] }
  0x68   : > { %7090 = vmatprep.subr.bf16.mxu1 %v7532_v54  ;;  %v1401_v60 = vsel %vm7891_vm8, %v1396_v16, %v1400_v23  ;;  %v6100_v54 = vld [vmem:[%s7835_s6 + $0x40] sm:$0xf]  ;;  %v1419_v23 = vrot.slane %v1417_v27, 4  ;;  %v6033_v43 = vcombine.low %v1057_v33, %v1061_v42  ;;  %v1428_v55 = vrot.slane %v1426_v37, 5  ;;  %v8398_v35 = vld [vmem:[%s7835_s6 + $0x18] sm:$0xf] }
  0x69   : > { %v6120_v15 = vcombine.low %v1401_v60, %v1415_v12  ;;  %v1431_v38 = vshrl.u32 %v6100_v54, 16  ;;  %v1434_v29 = vshll.u32 %v6100_v54, 16  ;;  %v8375_v60 = vrot.slane %v1782_v53, 6  ;;  %v7550_v34 = vld [vmem:[%s9621_s1 + $0x3c0] sm:$0xff]  }
  0x6a   : > { %v1423_v30 = vor.u32 %v1422_v45, %v1419_v23  ;;  %7055 = vmatpush3.bf16.msra.mxu0 %v7542_v10  ;;  %v1752_v12 = vshrl.u32 %v6174_v1, 16  ;;  %v6191_v28 = vrot.slane %v6183_v5, 10  ;;  %v2197_v42 = vshrl.u32 %v8392_v26, 16 }
  0x6b   : > { %7091 = vmatpush3.bf16.msra.mxu1 %v7534_v59  ;;  %v1433_v40 = vrot.slane %v1431_v38, 4  ;;  %v1440_v59 = vshll.u32 %v6101_v50, 16  ;;  %v1436_v3 = vrot.slane %v1434_v29, 5  ;;  %7056 = vmatprep.subr.bf16.mxu0 %v7544_v44  ;;  %v1755_v50 = vshll.u32 %v6174_v1, 16  ;;  %v8403_v38 = vld [vmem:[%s7835_s6 + $0x14] sm:$0x1] }
  0x6c   : > { %7092 = vmatprep.subr.bf16.mxu1 %v7536_v49  ;;  %1710 = vmatmul.mubr.bf16.gmra.mrb[24].mxu1 %v6120_v15  ;;  %v1424_v46 = vrot.slane %v1423_v30, 4  ;;  %v8370_v49 = vrot.slane %v1779_v51, 5  ;;  %v6175_v51 = vld [vmem:[%s7835_s6 + $0x14] sm:$0x3]  ;;  %v6182_v15 = vld [vmem:[%s7835_s6 + $0x8] sm:$0xc]  ;;  %v6270_v5 = vcombine.low %v8392_v26, %v8398_v35 }
  0x6d   : > { %1717 = vmatprep.mubr.bf16.mxu1 %v6125_v39  ;;  %1300 = vmatmul.mubr.bf16.gmra.mrb[28].mxu0 %v6033_v43  ;;  %v1442_v16 = vrot.slane %v1440_v59, 5  ;;  %v1437_v47 = vor.u32 %v1436_v3, %v1433_v40  ;;  %v1770_v2 = vshrl.u32 %v6175_v51, 16  ;;  %v1773_v7 = vshll.u32 %v6175_v51, 16  ;;  %v8406_v39 = vld [vmem:[%s7835_s6 + $0x1c] sm:$0x1] }
  0x6e   : > { %v1429_v61 = vsel %vm7891_vm8, %v1424_v46, %v1428_v55  ;;  %7057 = vmatpush3.bf16.msra.mxu0 %v7546_v57  ;;  %v6190_v17 = vrot.slane %v6182_v15, 10  ;;  %v1754_v21 = vrot.slane %v1752_v12, 5  ;;  %v1757_v24 = vrot.slane %v1755_v50, 6  ;;  %v7552_v15 = vld [vmem:[%s9621_s1 + $0x380] sm:$0xff]  }
  0x6f   : > { %7093 = vmatpush3.bf16.msra.mxu1 %v7538_v56  ;;  %v1438_v56 = vrot.slane %v1437_v47, 4  ;;  %v1772_v54 = vrot.slane %v1770_v2, 5  ;;  %v1775_v27 = vrot.slane %v1773_v7, 6  ;;  %7122 = vmatprep.subr.bf16.mxu0 %v7549_v18  ;;  %v2200_v23 = vshll.u32 %v8392_v26, 16  ;;  %v6176_v18 = vld [vmem:[%s7835_s6 + $0x1c] sm:$0x3] }
  0x70   : > { %7094 = vmatprep.subr.bf16.mxu1 %v7541_v32  ;;  %v1916_v32 = vrot.slane %v6175_v51, 6  ;;  %v1758_v33 = vor.u32 %v1757_v24, %v1754_v21  ;;  %v1913_v37 = vsel %vm8165_vm11, %v6190_v17, %v1912_v25  ;;  %v2206_v55 = vshll.u32 %v8403_v38, 16  ;;  %v7554_v17 = vld [vmem:[%s9621_s1 + $0x3c8] sm:$0xff]   ;;  %v6184_v21 = vld [vmem:[%s7835_s6 + $0x18] sm:$0xc] }
  0x71   : > { %v1443_v53 = vsel %vm7891_vm8, %v1438_v56, %v1442_v16  ;;  %v1776_v45 = vor.u32 %v1775_v27, %v1772_v54  ;;  %v2211_v40 = vshrl.u32 %v8398_v35, 16  ;;  %v2199_v10 = vrot.slane %v2197_v42, 4  ;;  %v7551_v56 = vld [vmem:[%s9621_s1 + $0x300] sm:$0xff]  }
  0x72   : > { %v6121_v9 = vcombine.low %v1429_v61, %v1443_v53  ;;  %v1917_v43 = vsel %vm8165_vm11, %v6191_v28, %v1916_v32  ;;  %v2202_v30 = vrot.slane %v2200_v23, 5  ;;  %v2214_v59 = vshll.u32 %v8398_v35, 16  ;;  %v7555_v53 = vld [vmem:[%s9621_s1 + $0x308] sm:$0xff]   ;;  %v6185_v25 = vld [vmem:[%s7835_s6 + $0x20] sm:$0xc]  ;;  %v7558_v28 = vld [vmem:[%s9621_s1 + $0x350] sm:$0xff]  }
  0x73   : > { %7095 = vmatpush3.bf16.msra.mxu1 %v7543_v11  ;;  %v6202_v29 = vcombine.low %v1913_v37, %v1917_v43  ;;  %v2213_v11 = vrot.slane %v2211_v40, 4  ;;  %v2220_v3 = vshll.u32 %v8406_v39, 16  ;;  %v1785_v44 = vor.u32 %v8375_v60, %v8370_v49  ;;  %v7553_v60 = vld [vmem:[%s9621_s1 + $0x348] sm:$0xff]   ;;  %v8458_v32 = vld [vmem:[%s7835_s6 + $0x20] sm:$0xf] }
  0x74   : > { %7096 = vmatprep.subr.bf16.mxu1 %v7545_v48  ;;  %1718 = vmatmul.mubr.bf16.gmra.mrb[28].mxu1 %v6121_v9  ;;  %v2203_v46 = vor.u32 %v2202_v30, %v2199_v10  ;;  %v2208_v16 = vrot.slane %v2206_v55, 5  ;;  %v2216_v47 = vrot.slane %v2214_v59, 5  ;;  %v1759_v48 = vsel %vm7869_vm4, %v8193_v41, %v1758_v33  ;;  %v6177_v9 = vld [vmem:[%s7835_s6 + $0x24] sm:$0x3]  ;;  %v8461_v35 = vld [vmem:[%s7835_s6 + $0x28] sm:$0xf] }
  0x75   : > { %2135 = vmatprep.mubr.bf16.mxu0 %v6202_v29  ;;  %v2222_v57 = vrot.slane %v2220_v3, 5  ;;  %v1777_v61 = vsel %vm7869_vm4, %v8198_v22, %v1776_v45  ;;  %v2576_v41 = vrot.slane %v8403_v38, 5  ;;  %v2580_v51 = vrot.slane %v8406_v39, 5  ;;  %v7556_v37 = vld [vmem:[%s9621_s1 + $0x388] sm:$0xff]   ;;  %v8469_v23 = vld [vmem:[%s7835_s6 + $0x24] sm:$0x1] }
  0x76   : > { %v2217_v1 = vor.u32 %v2216_v47, %v2213_v11  ;;  %v6198_v49 = vcombine.low %v1759_v48, %v1777_v61  ;;  %v8434_v50 = vrot.slane %v1785_v44, 4  ;;  %v1797_v2 = vshrl.u32 %v8217_v63, 16  ;;  %v8472_v45 = vld [vmem:[%s7835_s6 + $0x2c] sm:$0x1]  ;;  %v7559_v59 = vld [vmem:[%s9621_s1 + $0x3d0] sm:$0xff]  }
  0x77   : > { %7097 = vmatpush3.bf16.msra.mxu1 %v7547_v0  ;;  %v2204_v0 = vrot.slane %v2203_v46, 4  ;;  %v1920_v54 = vrot.slane %v6176_v18, 6  ;;  %v1924_v27 = vrot.slane %v6177_v9, 6  ;;  %v6193_v26 = vrot.slane %v6185_v25, 10  ;;  %v7590_v38 = vld [vmem:[%s9621_s1 + $0x4c8] sm:$0xff]  }
  0x78   : > { %7162 = vmatprep.subr.bf16.mxu1 %v7550_v34  ;;  %v2218_v12 = vrot.slane %v2217_v1, 4  ;;  %2136 = vmatmul.mubr.bf16.vlgmr.msra.gmra.mrb[32].mxu0 %v6198_v49  ;;  %v6192_v34 = vrot.slane %v6184_v21, 10  ;;  %v1788_v33 = vshrl.u32 %v6176_v18, 16  ;;  %v2225_v43 = vshrl.u32 %v8458_v32, 16 }
  0x79   : > { %v2209_v22 = vsel %vm7891_vm8, %v2204_v0, %v2208_v16  ;;  %7123 = vmatpush3.bf16.msra.mxu0 %v7551_v56  ;;  %v2228_v55 = vshll.u32 %v8458_v32, 16  ;;  %v1925_v40 = vsel %vm8165_vm11, %v6193_v26, %v1924_v27  ;;  %v2234_v29 = vshll.u32 %v8469_v23, 16  ;;  %v7560_v16 = vld [vmem:[%s9621_s1 + $0x310] sm:$0xff]  }
  0x7a   : > { %v2223_v7 = vsel %vm7891_vm8, %v2218_v12, %v2222_v57  ;;  %7124 = vmatprep.subr.bf16.mxu0 %v7553_v60  ;;  %v1921_v42 = vsel %vm8165_vm11, %v6192_v34, %v1920_v54  ;;  %v2239_v10 = vshrl.u32 %v8461_v35, 16  ;;  %v2242_v30 = vshll.u32 %v8461_v35, 16  ;;  %v7561_v60 = vld [vmem:[%s9621_s1 + $0x390] sm:$0xff]  }
  0x7b   : > { %v6274_v24 = vcombine.low %v2209_v22, %v2223_v7  ;;  %v6203_v11 = vcombine.low %v1921_v42, %v1925_v40  ;;  %v2227_v3 = vrot.slane %v2225_v43, 4  ;;  %v2230_v44 = vrot.slane %v2228_v55, 5  ;;  %v7562_v7 = vld [vmem:[%s9621_s1 + $0x358] sm:$0xff]   ;;  %v6178_v55 = vld [vmem:[%s7835_s6 + $0x2c] sm:$0x3] }
  0x7c   : > { %v2248_v46 = vshll.u32 %v8472_v45, 16  ;;  %v2236_v47 = vrot.slane %v2234_v29, 5  ;;  %v2241_v48 = vrot.slane %v2239_v10, 4  ;;  %v2244_v57 = vrot.slane %v2242_v30, 5  ;;  %v7565_v43 = vld [vmem:[%s9621_s1 + $0x398] sm:$0xff]  }
  0x7d   : > { %2509 = vmatprep.mubr.bf16.mxu1 %v6274_v24  ;;  %7125 = vmatpush3.bf16.msra.mxu0 %v7555_v53  ;;  %v1790_v61 = vrot.slane %v1788_v33, 5  ;;  %v2231_v56 = vor.u32 %v2230_v44, %v2227_v3  ;;  %v1791_v1 = vshll.u32 %v6176_v18, 16  ;;  %v1799_v49 = vrot.slane %v1797_v2, 5  ;;  %v8517_v40 = vld [vmem:[%s7835_s6 + $0x34] sm:$0x3]  ;;  %v7567_v3 = vld [vmem:[%s9621_s1 + $0x360] sm:$0xff]  }
  0x7e   : > { %2510 = vmatmul.mubr.bf16.vlgmr.msra.gmra.mrb[32].mxu1 %v6270_v5  ;;  %7126 = vmatprep.subr.bf16.mxu0 %v7558_v28  ;;  %v2250_v0 = vrot.slane %v2248_v46, 5  ;;  %v2245_v22 = vor.u32 %v2244_v57, %v2241_v48  ;;  %v1800_v12 = vshll.u32 %v8217_v63, 16  ;;  %v1809_v53 = vshll.u32 %v6177_v9, 16  ;;  %v7563_v28 = vld [vmem:[%s9621_s1 + $0x3d8] sm:$0xff]   ;;  %v6186_v29 = vld [vmem:[%s7835_s6 + $0x28] sm:$0xc] }
  0x7f   : > { %7163 = vmatpush3.bf16.msra.mxu1 %v7552_v15  ;;  %2143 = vmatprep.mubr.bf16.mxu0 %v6203_v11  ;;  %v1806_v15 = vshrl.u32 %v6177_v9, 16  ;;  %v2232_v5 = vrot.slane %v2231_v56, 4  ;;  %v6271_v9 = vcombine.low %v8458_v32, %v8461_v35  ;;  %v1815_v26 = vshrl.u32 %v8272_v4, 16  ;;  %v7564_v32 = vld [vmem:[%s9621_s1 + $0x318] sm:$0xff]   ;;  %v8524_v11 = vld [vmem:[%s7835_s6 + $0x30] sm:$0xf] }
  0x80   : > { %7164 = vmatprep.subr.bf16.mxu1 %v7554_v17  ;;  %v1793_v17 = vrot.slane %v1791_v1, 6  ;;  %v2246_v21 = vrot.slane %v2245_v22, 4  ;;  %v1802_v18 = vrot.slane %v1800_v12, 6  ;;  %v1811_v24 = vrot.slane %v1809_v53, 6  ;;  %v7569_v53 = vld [vmem:[%s9621_s1 + $0x320] sm:$0xff]  }
  0x81   : > { %7127 = vmatpush3.bf16.msra.mxu0 %v7560_v16  ;;  %v1808_v2 = vrot.slane %v1806_v15, 5  ;;  %v2237_v25 = vsel %vm7891_vm8, %v2232_v5, %v2236_v47  ;;  %v1818_v35 = vshll.u32 %v8272_v4, 16  ;;  %v6187_v4 = vld [vmem:[%s7835_s6 + $0x30] sm:$0xc]  ;;  %v1928_v30 = vrot.slane %v6178_v55, 6 }
  0x82   : > { %7128 = vmatprep.subr.bf16.mxu0 %v7562_v7  ;;  %v1794_v63 = vor.u32 %v1793_v17, %v1790_v61  ;;  %v2251_v34 = vsel %vm7891_vm8, %v2246_v21, %v2250_v0  ;;  %v1803_v54 = vor.u32 %v1802_v18, %v1799_v49  ;;  %v1932_v46 = vrot.slane %v8517_v40, 6  ;;  %v8531_v16 = vld [vmem:[%s7835_s6 + $0x38] sm:$0xf]  ;;  %v8534_v47 = vld [vmem:[%s7835_s6 + $0x34] sm:$0x1]  ;;  %v7568_v49 = vld [vmem:[%s9621_s1 + $0x3e0] sm:$0xff]  }
  0x83   : > { %7165 = vmatpush3.bf16.msra.mxu1 %v7556_v37  ;;  %v1812_v27 = vor.u32 %v1811_v24, %v1808_v2  ;;  %v6275_v33 = vcombine.low %v2237_v25, %v2251_v34  ;;  %v2253_v48 = vshrl.u32 %v8524_v11, 16  ;;  %v8540_v61 = vld [vmem:[%s7835_s6 + $0x3c] sm:$0x1]  ;;  %v2256_v56 = vshll.u32 %v8524_v11, 16  ;;  %v7570_v18 = vld [vmem:[%s9621_s1 + $0x3a0] sm:$0xff]  }
  0x84   : > { %7166 = vmatprep.subr.bf16.mxu1 %v7559_v59  ;;  %v1795_v37 = vsel %vm7869_vm4, %v8434_v50, %v1794_v63  ;;  %v1804_v42 = vrot.slane %v1803_v54, 4  ;;  %v6194_v50 = vrot.slane %v6186_v29, 10  ;;  %v6195_v59 = vrot.slane %v6187_v4, 10 }
  0x85   : > { %2517 = vmatprep.mubr.bf16.mxu1 %v6275_v33  ;;  %7129 = vmatpush3.bf16.msra.mxu0 %v7564_v32  ;;  %v2262_v0 = vshll.u32 %v8534_v47, 16  ;;  %v2267_v1 = vshrl.u32 %v8531_v16, 16  ;;  %v2255_v22 = vrot.slane %v2253_v48, 4  ;;  %v2270_v12 = vshll.u32 %v8531_v16, 16 }
  0x86   : > { %v1813_v10 = vsel %vm7869_vm4, %v1804_v42, %v1812_v27  ;;  %2518 = vmatmul.mubr.bf16.gmra.mrb[36].mxu1 %v6271_v9  ;;  %v1929_v57 = vsel %vm8165_vm11, %v6194_v50, %v1928_v30  ;;  %7130 = vmatprep.subr.bf16.mxu0 %v7567_v3  ;;  %v2276_v15 = vshll.u32 %v8540_v61, 16  ;;  %v2258_v5 = vrot.slane %v2256_v56, 5 }
  0x87   : > { %7167 = vmatpush3.bf16.msra.mxu1 %v7561_v60  ;;  %v6199_v44 = vcombine.low %v1795_v37, %v1813_v10  ;;  %v1933_v60 = vsel %vm8165_vm11, %v6195_v59, %v1932_v46  ;;  %v2264_v17 = vrot.slane %v2262_v0, 5  ;;  %v2269_v21 = vrot.slane %v2267_v1, 4  ;;  %v7574_v1 = vld [vmem:[%s9621_s1 + $0x3a8] sm:$0xff]  }
  0x88   : > { %7168 = vmatprep.subr.bf16.mxu1 %v7563_v28  ;;  %v6204_v7 = vcombine.low %v1929_v57, %v1933_v60  ;;  %v2272_v2 = vrot.slane %v2270_v12, 5  ;;  %v2278_v24 = vrot.slane %v2276_v15, 5  ;;  %v1817_v25 = vrot.slane %v1815_v26, 5  ;;  %v7571_v28 = vld [vmem:[%s9621_s1 + $0x368] sm:$0xff]   ;;  %v8584_v60 = vld [vmem:[%s7835_s6 + $0x44] sm:$0x3] }
  0x89   : > { %2144 = vmatmul.mubr.bf16.gmra.mrb[36].mxu0 %v6199_v44  ;;  %v1820_v63 = vrot.slane %v1818_v35, 6  ;;  %v2259_v9 = vor.u32 %v2258_v5, %v2255_v22  ;;  %v1824_v34 = vshrl.u32 %v6178_v55, 16  ;;  %v1827_v54 = vshll.u32 %v6178_v55, 16  ;;  %v6188_v22 = vld [vmem:[%s7835_s6 + $0x38] sm:$0xc] }
  0x8a   : > { %7131 = vmatpush3.bf16.msra.mxu0 %v7569_v53  ;;  %2151 = vmatprep.mubr.bf16.mxu0 %v6204_v7  ;;  %v1833_v27 = vshrl.u32 %v8275_v6, 16  ;;  %v2273_v33 = vor.u32 %v2272_v2, %v2269_v21  ;;  %v1836_v37 = vshll.u32 %v8275_v6, 16  ;;  %v1842_v42 = vshrl.u32 %v8517_v40, 16  ;;  %v7572_v6 = vld [vmem:[%s9621_s1 + $0x3e8] sm:$0xff]   ;;  %v6189_v12 = vld [vmem:[%s7835_s6 + $0x40] sm:$0xc] }
  0x8b   : > { %7169 = vmatpush3.bf16.msra.mxu1 %v7565_v43  ;;  %v1821_v32 = vor.u32 %v1820_v63, %v1817_v25  ;;  %v2260_v26 = vrot.slane %v2259_v9, 4  ;;  %v1826_v35 = vrot.slane %v1824_v34, 5  ;;  %v1829_v43 = vrot.slane %v1827_v54, 6  ;;  %7132 = vmatprep.subr.bf16.mxu0 %v7571_v28  ;;  %v8598_v2 = vld [vmem:[%s7835_s6 + $0x44] sm:$0x1]  ;;  %v7576_v54 = vld [vmem:[%s9621_s1 + $0x370] sm:$0xff]  }
  0x8c   : > { %7170 = vmatprep.subr.bf16.mxu1 %v7568_v49  ;;  %v1835_v29 = vrot.slane %v1833_v27, 5  ;;  %v2274_v4 = vrot.slane %v2273_v33, 4  ;;  %v1838_v10 = vrot.slane %v1836_v37, 6  ;;  %v1844_v50 = vrot.slane %v1842_v42, 5  ;;  %v6180_v49 = vld [vmem:[%s7835_s6 + $0x3c] sm:$0x3] }
  0x8d   : > { %v1822_v55 = vrot.slane %v1821_v32, 4  ;;  %v2265_v30 = vsel %vm7891_vm8, %v2260_v26, %v2264_v17  ;;  %v1830_v59 = vor.u32 %v1829_v43, %v1826_v35  ;;  %v1845_v3 = vshll.u32 %v8517_v40, 16  ;;  %v7573_v40 = vld [vmem:[%s9621_s1 + $0x328] sm:$0xff]   ;;  %v8590_v17 = vld [vmem:[%s7835_s6 + $0x40] sm:$0xf]  ;;  %v7577_v37 = vld [vmem:[%s9621_s1 + $0x3f0] sm:$0xff]  }
  0x8e   : > { %v2279_v44 = vsel %vm7891_vm8, %v2274_v4, %v2278_v24  ;;  %v1839_v46 = vor.u32 %v1838_v10, %v1835_v29  ;;  %v6272_v48 = vcombine.low %v8524_v11, %v8531_v16  ;;  %7133 = vmatpush3.bf16.msra.mxu0 %v7573_v40  ;;  %v6196_v15 = vrot.slane %v6188_v22, 10  ;;  %v8601_v24 = vld [vmem:[%s7835_s6 + $0x4c] sm:$0x1] }
  0x8f   : > { %7171 = vmatpush3.bf16.msra.mxu1 %v7570_v18  ;;  %v6276_v57 = vcombine.low %v2265_v30, %v2279_v44  ;;  %v1847_v56 = vrot.slane %v1845_v3, 6  ;;  %v1831_v11 = vsel %vm7869_vm4, %v1822_v55, %v1830_v59  ;;  %v1936_v53 = vrot.slane %v6180_v49, 6  ;;  %v8595_v18 = vld [vmem:[%s7835_s6 + $0x48] sm:$0xf]  ;;  %7134 = vmatprep.subr.bf16.mxu0 %v7576_v54 }
  0x90   : > { %7172 = vmatprep.subr.bf16.mxu1 %v7572_v6  ;;  %v1840_v0 = vrot.slane %v1839_v46, 4  ;;  %v6197_v7 = vrot.slane %v6189_v12, 10  ;;  %v1940_v5 = vrot.slane %v8584_v60, 6  ;;  %v2281_v34 = vshrl.u32 %v8590_v17, 16  ;;  %v7580_v12 = vld [vmem:[%s9621_s1 + $0x378] sm:$0xff]  }
  0x91   : > { %2525 = vmatprep.mubr.bf16.mxu1 %v6276_v57  ;;  %v1848_v16 = vor.u32 %v1847_v56, %v1844_v50  ;;  %v1937_v63 = vsel %vm8165_vm11, %v6196_v15, %v1936_v53  ;;  %v2284_v28 = vshll.u32 %v8590_v17, 16  ;;  %v2290_v33 = vshll.u32 %v8598_v2, 16  ;;  %v7578_v57 = vld [vmem:[%s9621_s1 + $0x330] sm:$0xff]  }
  0x92   : > { %2526 = vmatmul.mubr.bf16.gmra.mrb[40].mxu1 %v6272_v48  ;;  %v1941_v9 = vsel %vm8165_vm11, %v6197_v7, %v1940_v5  ;;  %v2295_v32 = vshrl.u32 %v8595_v18, 16  ;;  %v2283_v42 = vrot.slane %v2281_v34, 4  ;;  %v2298_v26 = vshll.u32 %v8595_v18, 16  ;;  %7135 = vmatpush3.bf16.msra.mxu0 %v7578_v57 }
  0x93   : > { %v1849_v21 = vsel %vm7869_vm4, %v1840_v0, %v1848_v16  ;;  %7173 = vmatpush3.bf16.msra.mxu1 %v7574_v1  ;;  %v6205_v27 = vcombine.low %v1937_v63, %v1941_v9  ;;  %v2304_v35 = vshll.u32 %v8601_v24, 16  ;;  %v1851_v43 = vshrl.u32 %v8329_v13, 16  ;;  %v7579_v1 = vld [vmem:[%s9621_s1 + $0x3b0] sm:$0xff]   ;;  %7136 = vmatprep.subr.bf16.mxu0 %v7580_v12  ;;  %v7581_v63 = vld [vmem:[%s9621_s1 + $0x3f8] sm:$0xff]  }
  0x94   : > { %v6200_v25 = vcombine.low %v1831_v11, %v1849_v21  ;;  %v2286_v29 = vrot.slane %v2284_v28, 5  ;;  %v2292_v4 = vrot.slane %v2290_v33, 5  ;;  %v2297_v55 = vrot.slane %v2295_v32, 4  ;;  %7174 = vmatprep.subr.bf16.mxu1 %v7577_v37  ;;  %v7583_v33 = vld [vmem:[%s9621_s1 + $0x3b8] sm:$0xff]  }
  0x95   : > { %v1854_v10 = vshll.u32 %v8329_v13, 16  ;;  %v2300_v50 = vrot.slane %v2298_v26, 5  ;;  %v2306_v30 = vrot.slane %v2304_v35, 5  ;;  %v1853_v59 = vrot.slane %v1851_v43, 5  ;;  %v7585_v35 = vld [vmem:[%s9621_s1 + $0x440] sm:$0xff]  }
  0x96   : > { %2152 = vmatmul.mubr.bf16.gmra.mrb[40].mxu0 %v6200_v25  ;;  %v1860_v3 = vshrl.u32 %v6180_v49, 16  ;;  %v2287_v6 = vor.u32 %v2286_v29, %v2283_v42  ;;  %v1863_v46 = vshll.u32 %v6180_v49, 16  ;;  %v1869_v48 = vshrl.u32 %v8332_v14, 16 }
  0x97   : > { %2159 = vmatprep.mubr.bf16.mxu0 %v6205_v27  ;;  %v1856_v44 = vrot.slane %v1854_v10, 6  ;;  %v2301_v56 = vor.u32 %v2300_v50, %v2297_v55  ;;  %v1872_v0 = vshll.u32 %v8332_v14, 16  ;;  %v1878_v13 = vshrl.u32 %v8584_v60, 16  ;;  %7175 = vmatpush3.bf16.msra.mxu1 %v7579_v1  ;;  %v7582_v27 = vld [vmem:[%s9621_s1 + $0x338] sm:$0xff]  }
  0x98   : > { %v1862_v40 = vrot.slane %v1860_v3, 5  ;;  %v2288_v11 = vrot.slane %v2287_v6, 4  ;;  %v1865_v22 = vrot.slane %v1863_v46, 6  ;;  %v1871_v49 = vrot.slane %v1869_v48, 5  ;;  %7176 = vmatprep.subr.bf16.mxu1 %v7581_v63  ;;  %7137 = vmatpush3.bf16.msra.mxu0 %v7582_v27  ;;  %v6343_v55 = vld [vmem:[%s7835_s6 + $0x1c] sm:$0x3] }
  0x99   : > { %v1857_v16 = vor.u32 %v1856_v44, %v1853_v59  ;;  %v2302_v15 = vrot.slane %v2301_v56, 4  ;;  %v1874_v53 = vrot.slane %v1872_v0, 6  ;;  %v1880_v7 = vrot.slane %v1878_v13, 5  ;;  %7202 = vmatprep.subr.bf16.mxu0 %v7585_v35  ;;  %v7586_v3 = vld [vmem:[%s9621_s1 + $0x4c0] sm:$0xff]  }
  0x9a   : > { %v1881_v14 = vshll.u32 %v8584_v60, 16  ;;  %v2293_v5 = vsel %vm7891_vm8, %v2288_v11, %v2292_v4  ;;  %v1866_v25 = vor.u32 %v1865_v22, %v1862_v40  ;;  %v6273_v60 = vcombine.low %v8590_v17, %v8595_v18  ;;  %v6326_v17 = vld [vmem:[%s7835_s6 + $0x10] sm:$0xe]  ;;  %v6327_v18 = vld [vmem:[%s7835_s6 + $0x18] sm:$0xe]  ;;  %v7588_v27 = vld [vmem:[%s9621_s1 + $0x480] sm:$0xff]  }
  0x9b   : > { %v1858_v21 = vrot.slane %v1857_v16, 4  ;;  %v2307_v9 = vsel %vm7891_vm8, %v2302_v15, %v2306_v30  ;;  %v1875_v34 = vor.u32 %v1874_v53, %v1871_v49  ;;  %v2584_v32 = vrot.slane %v8469_v23, 5  ;;  %7177 = vmatpush3.bf16.msra.mxu1 %v7583_v33  ;;  %v6342_v4 = vld [vmem:[%s7835_s6 + $0x14] sm:$0x3]  ;;  %v7584_v13 = vld [vmem:[%s7835_s6 + $0x18] ss:$8 sps:$4 sm:$0xff]  }
  0x9c   : > { %v1883_v54 = vrot.slane %v1881_v14, 6  ;;  %v6277_v28 = vcombine.low %v2293_v5, %v2307_v9  ;;  %v6334_v43 = vrot.slane %v6326_v17, 9  ;;  %v6335_v29 = vrot.slane %v6327_v18, 9  ;;  %7242 = vmatprep.subr.bf16.mxu1 %v7586_v3  ;;  %v6406_v49 = vld [vmem:[%s7835_s6 + $0x10] sm:$0xc] }
  0x9d   : > { %v1867_v37 = vsel %vm7869_vm4, %v1858_v21, %v1866_v25  ;;  %v1876_v42 = vrot.slane %v1875_v34, 4  ;;  %v2615_v50 = vshrl.u32 %v6326_v17, 16  ;;  %v2618_v30 = vshll.u32 %v6326_v17, 16  ;;  %v6407_v14 = vld [vmem:[%s7835_s6 + $0x18] sm:$0xc] }
  0x9e   : > { %v1884_v26 = vor.u32 %v1883_v54, %v1880_v7  ;;  %2533 = vmatprep.mubr.bf16.mxu1 %v6277_v28  ;;  %v2624_v59 = vshrl.u32 %v6342_v4, 16  ;;  %v2627_v44 = vshll.u32 %v6342_v4, 16  ;;  %v2633_v46 = vshrl.u32 %v6327_v18, 16 }
  0x9f   : > { %2534 = vmatmul.mubr.bf16.gmra.mrb[44].mxu1 %v6273_v60  ;;  %v2636_v48 = vshll.u32 %v6327_v18, 16  ;;  %v2617_v57 = vrot.slane %v2615_v50, 5  ;;  %v2620_v56 = vrot.slane %v2618_v30, 6  ;;  %v2642_v0 = vshrl.u32 %v6343_v55, 16  ;;  %v7589_v18 = vld [vmem:[%s9621_s1 + $0x448] sm:$0xff]  }
  0xa0   : > { %v1885_v10 = vsel %vm7869_vm4, %v1876_v42, %v1884_v26  ;;  %v2626_v40 = vrot.slane %v2624_v59, 5  ;;  %v2629_v1 = vrot.slane %v2627_v44, 6  ;;  %v2635_v11 = vrot.slane %v2633_v46, 5  ;;  %3261 = vmatprep.mubr.bf16.mxu1 %v7584_v13  ;;  %v6344_v50 = vld [vmem:[%s7835_s6 + $0x24] sm:$0x3] }
  0xa1   : > { %v6201_v6 = vcombine.low %v1867_v37, %v1885_v10  ;;  %v2638_v16 = vrot.slane %v2636_v48, 6  ;;  %v2645_v22 = vshll.u32 %v6343_v55, 16  ;;  %v2621_v12 = vor.u32 %v2620_v56, %v2617_v57  ;;  %v7587_v37 = vld [vmem:[%s9621_s1 + $0x400] sm:$0xff]   ;;  %v6329_v10 = vld [vmem:[%s7835_s6 + $0x28] sm:$0xe] }
  0xa2   : > { %v2644_v15 = vrot.slane %v2642_v0, 5  ;;  %v3018_v53 = vrot.slane %v6342_v4, 6  ;;  %v3022_v7 = vrot.slane %v6343_v55, 6  ;;  %v2630_v5 = vor.u32 %v2629_v1, %v2626_v40  ;;  %v7591_v4 = vld [vmem:[%s9621_s1 + $0x408] sm:$0xff]   ;;  %v6328_v55 = vld [vmem:[%s7835_s6 + $0x20] sm:$0xe] }
  0xa3   : > { %2160 = vmatmul.mubr.bf16.gmra.mrb[44].mxu0 %v6201_v6  ;;  %v2639_v21 = vor.u32 %v2638_v16, %v2635_v11  ;;  %v2647_v25 = vrot.slane %v2645_v22, 6  ;;  %v2577_v63 = vsel %vm7885_vm7, %v6334_v43, %v2576_v41  ;;  %v2622_v9 = vrot.slane %v2621_v12, 4  ;;  %v7592_v43 = vld [vmem:[%s9621_s1 + $0x488] sm:$0xff]  }
  0xa4   : > { %v2581_v34 = vsel %vm7885_vm7, %v6335_v29, %v2580_v51  ;;  %v6414_v54 = vrot.slane %v6406_v49, 10  ;;  %v6415_v60 = vrot.slane %v6407_v14, 10  ;;  %v2588_v29 = vrot.slane %v8472_v45, 5  ;;  %v6345_v30 = vld [vmem:[%s7835_s6 + $0x2c] sm:$0x3] }
  0xa5   : > { %v2640_v28 = vrot.slane %v2639_v21, 4  ;;  %v2648_v33 = vor.u32 %v2647_v25, %v2644_v15  ;;  %v2631_v41 = vsel %vm7869_vm4, %v2622_v9, %v2630_v5  ;;  %v6350_v26 = vcombine.low %v2577_v63, %v2581_v34  ;;  %v7593_v49 = vld [vmem:[%s7835_s6 + $0x28] ss:$8 sps:$4 sm:$0xff]   ;;  %v6408_v14 = vld [vmem:[%s7835_s6 + $0x20] sm:$0xc] }
  0xa6   : > { %v3019_v39 = vsel %vm8165_vm11, %v6414_v54, %v3018_v53  ;;  %v3023_v51 = vsel %vm8165_vm11, %v6415_v60, %v3022_v7  ;;  %v2651_v59 = vshrl.u32 %v6328_v55, 16  ;;  %v2654_v3 = vshll.u32 %v6328_v55, 16  ;;  %v6409_v5 = vld [vmem:[%s7835_s6 + $0x28] sm:$0xc] }
  0xa7   : > { %v2649_v42 = vsel %vm7869_vm4, %v2640_v28, %v2648_v33  ;;  %v6430_v17 = vcombine.low %v3019_v39, %v3023_v51  ;;  %v2660_v6 = vshrl.u32 %v6344_v50, 16  ;;  %v2663_v44 = vshll.u32 %v6344_v50, 16  ;;  %v7594_v28 = vld [vmem:[%s9621_s1 + $0x450] sm:$0xff]  }
  0xa8   : > { %v6354_v35 = vcombine.low %v2631_v41, %v2649_v42  ;;  %v2669_v46 = vshrl.u32 %v6329_v10, 16  ;;  %v2672_v45 = vshll.u32 %v6329_v10, 16  ;;  %v2678_v48 = vshrl.u32 %v6345_v30, 16  ;;  %v7595_v33 = vld [vmem:[%s9621_s1 + $0x4d0] sm:$0xff]  }
  0xa9   : > { %3262 = vmatmul.mubr.bf16.vlgmr.msra.gmra.mrb[48].mxu1 %v6430_v17  ;;  %v2681_v57 = vshll.u32 %v6345_v30, 16  ;;  %v2653_v56 = vrot.slane %v2651_v59, 5  ;;  %v2656_v40 = vrot.slane %v2654_v3, 6  ;;  %v2662_v0 = vrot.slane %v2660_v6, 5  ;;  %v7596_v39 = vld [vmem:[%s9621_s1 + $0x410] sm:$0xff]  }
  0xaa   : > { %2951 = vmatprep.mubr.bf16.mxu0 %v6354_v35  ;;  %7243 = vmatpush3.bf16.msra.mxu1 %v7588_v27  ;;  %v2665_v13 = vrot.slane %v2663_v44, 6  ;;  %v2671_v1 = vrot.slane %v2669_v46, 5  ;;  %v2674_v11 = vrot.slane %v2672_v45, 6  ;;  %v2680_v16 = vrot.slane %v2678_v48, 5  ;;  %v7598_v35 = vld [vmem:[%s9621_s1 + $0x458] sm:$0xff]  }
  0xab   : > { %2952 = vmatmul.mubr.bf16.vlgmr.msra.gmra.mrb[48].mxu0 %v6350_v26  ;;  %7244 = vmatprep.subr.bf16.mxu1 %v7590_v38  ;;  %v2683_v22 = vrot.slane %v2681_v57, 6  ;;  %v2657_v12 = vor.u32 %v2656_v40, %v2653_v56  ;;  %v6336_v53 = vrot.slane %v6328_v55, 9  ;;  %v6337_v7 = vrot.slane %v6329_v10, 9  ;;  %v7597_v26 = vld [vmem:[%s9621_s1 + $0x490] sm:$0xff]   ;;  %v7601_v55 = vld [vmem:[%s9621_s1 + $0x498] sm:$0xff]  }
  0xac   : > { %7203 = vmatpush3.bf16.msra.mxu0 %v7587_v37  ;;  %v2666_v15 = vor.u32 %v2665_v13, %v2662_v0  ;;  %v2675_v21 = vor.u32 %v2674_v11, %v2671_v1  ;;  %3269 = vmatprep.mubr.bf16.mxu1 %v7593_v49  ;;  %v6416_v63 = vrot.slane %v6408_v14, 10  ;;  %v3026_v9 = vrot.slane %v6344_v50, 6  ;;  %v6330_v10 = vld [vmem:[%s7835_s6 + $0x30] sm:$0xe]  ;;  %v6346_v59 = vld [vmem:[%s7835_s6 + $0x34] sm:$0x3] }
  0xad   : > { %7204 = vmatprep.subr.bf16.mxu0 %v7589_v18  ;;  %v2684_v25 = vor.u32 %v2683_v22, %v2680_v16  ;;  %v2658_v34 = vrot.slane %v2657_v12, 4  ;;  %v2585_v54 = vsel %vm7885_vm7, %v6336_v53, %v2584_v32  ;;  %v2589_v60 = vsel %vm7885_vm7, %v6337_v7, %v2588_v29  ;;  %v7600_v29 = vld [vmem:[%s9621_s1 + $0x418] sm:$0xff]   ;;  %v6410_v12 = vld [vmem:[%s7835_s6 + $0x30] sm:$0xc] }
  0xae   : > { %7245 = vmatpush3.bf16.msra.mxu1 %v7592_v43  ;;  %v6417_v27 = vrot.slane %v6409_v5, 10  ;;  %v2676_v38 = vrot.slane %v2675_v21, 4  ;;  %v3027_v41 = vsel %vm8165_vm11, %v6416_v63, %v3026_v9  ;;  %v3030_v23 = vrot.slane %v6345_v30, 6  ;;  %v7599_v43 = vld [vmem:[%s9621_s1 + $0x4d8] sm:$0xff]  }
  0xaf   : > { %v2667_v32 = vsel %vm7869_vm4, %v2658_v34, %v2666_v15  ;;  %7246 = vmatprep.subr.bf16.mxu1 %v7595_v33  ;;  %v6351_v37 = vcombine.low %v2585_v54, %v2589_v60  ;;  %v2596_v50 = vrot.slane %v8540_v61, 5  ;;  %v6331_v30 = vld [vmem:[%s7835_s6 + $0x38] sm:$0xe]  ;;  %v6347_v3 = vld [vmem:[%s7835_s6 + $0x3c] sm:$0x3]  ;;  %v2687_v6 = vshrl.u32 %v6330_v10, 16 }
  0xb0   : > { %7205 = vmatpush3.bf16.msra.mxu0 %v7591_v4  ;;  %v2685_v51 = vsel %vm7869_vm4, %v2676_v38, %v2684_v25  ;;  %v3031_v42 = vsel %vm8165_vm11, %v6417_v27, %v3030_v23  ;;  %v2592_v4 = vrot.slane %v8534_v47, 5  ;;  %v2690_v44 = vshll.u32 %v6330_v10, 16  ;;  %v7602_v1 = vld [vmem:[%s7835_s6 + $0x38] ss:$8 sps:$4 sm:$0xff]  }
  0xb1   : > { %7206 = vmatprep.subr.bf16.mxu0 %v7594_v28  ;;  %v6355_v17 = vcombine.low %v2667_v32, %v2685_v51  ;;  %v6431_v18 = vcombine.low %v3027_v41, %v3031_v42  ;;  %v2696_v47 = vshrl.u32 %v6346_v59, 16  ;;  %v2699_v46 = vshll.u32 %v6346_v59, 16  ;;  %v6411_v5 = vld [vmem:[%s7835_s6 + $0x38] sm:$0xc]  ;;  %v7603_v34 = vld [vmem:[%s9621_s1 + $0x460] sm:$0xff]  }
  0xb2   : > { %7247 = vmatpush3.bf16.msra.mxu1 %v7597_v26  ;;  %v2705_v45 = vshrl.u32 %v6331_v30, 16  ;;  %v2708_v48 = vshll.u32 %v6331_v30, 16  ;;  %v2714_v57 = vshrl.u32 %v6347_v3, 16  ;;  %v2717_v56 = vshll.u32 %v6347_v3, 16  ;;  %v7604_v54 = vld [vmem:[%s9621_s1 + $0x4e0] sm:$0xff]  }
  0xb3   : > { %2959 = vmatprep.mubr.bf16.mxu0 %v6355_v17  ;;  %3270 = vmatmul.mubr.bf16.gmra.mrb[52].mxu1 %v6431_v18  ;;  %v2689_v40 = vrot.slane %v2687_v6, 5  ;;  %v2692_v0 = vrot.slane %v2690_v44, 6  ;;  %v2698_v61 = vrot.slane %v2696_v47, 5  ;;  %v2701_v13 = vrot.slane %v2699_v46, 6  ;;  %v7606_v26 = vld [vmem:[%s9621_s1 + $0x4a0] sm:$0xff]  }
  0xb4   : > { %7207 = vmatpush3.bf16.msra.mxu0 %v7596_v39  ;;  %7248 = vmatprep.subr.bf16.mxu1 %v7599_v43  ;;  %v2707_v11 = vrot.slane %v2705_v45, 5  ;;  %v2710_v16 = vrot.slane %v2708_v48, 6  ;;  %v2716_v22 = vrot.slane %v2714_v57, 5  ;;  %v2719_v49 = vrot.slane %v2717_v56, 6  ;;  %v7605_v39 = vld [vmem:[%s9621_s1 + $0x420] sm:$0xff]   ;;  %v7608_v43 = vld [vmem:[%s9621_s1 + $0x4e8] sm:$0xff]  }
  0xb5   : > { %2960 = vmatmul.mubr.bf16.gmra.mrb[52].mxu0 %v6351_v37  ;;  %7208 = vmatprep.subr.bf16.mxu0 %v7598_v35  ;;  %v2693_v15 = vor.u32 %v2692_v0, %v2689_v40  ;;  %v2702_v53 = vor.u32 %v2701_v13, %v2698_v61  ;;  %v6338_v7 = vrot.slane %v6330_v10, 9  ;;  %v6339_v14 = vrot.slane %v6331_v30, 9  ;;  %v7607_v35 = vld [vmem:[%s9621_s1 + $0x468] sm:$0xff]   ;;  %v6332_v10 = vld [vmem:[%s7835_s6 + $0x40] sm:$0xe] }
  0xb6   : > { %7249 = vmatpush3.bf16.msra.mxu1 %v7601_v55  ;;  %3277 = vmatprep.mubr.bf16.mxu1 %v7602_v1  ;;  %v2711_v21 = vor.u32 %v2710_v16, %v2707_v11  ;;  %v2720_v25 = vor.u32 %v2719_v49, %v2716_v22  ;;  %v6418_v63 = vrot.slane %v6410_v12, 10  ;;  %v3034_v9 = vrot.slane %v6346_v59, 6  ;;  %v7610_v55 = vld [vmem:[%s9621_s1 + $0x4a8] sm:$0xff]   ;;  %v6348_v59 = vld [vmem:[%s7835_s6 + $0x44] sm:$0x3] }
  0xb7   : > { %v2694_v60 = vrot.slane %v2693_v15, 4  ;;  %v2593_v27 = vsel %vm7885_vm7, %v6338_v7, %v2592_v4  ;;  %v2597_v28 = vsel %vm7885_vm7, %v6339_v14, %v2596_v50  ;;  %v6419_v33 = vrot.slane %v6411_v5, 10  ;;  %7250 = vmatprep.subr.bf16.mxu1 %v7604_v54  ;;  %v6333_v50 = vld [vmem:[%s7835_s6 + $0x48] sm:$0xe]  ;;  %v6412_v12 = vld [vmem:[%s7835_s6 + $0x40] sm:$0xc] }
  0xb8   : > { %7209 = vmatpush3.bf16.msra.mxu0 %v7600_v29  ;;  %v2712_v38 = vrot.slane %v2711_v21, 4  ;;  %v3035_v41 = vsel %vm8165_vm11, %v6418_v63, %v3034_v9  ;;  %v3038_v23 = vrot.slane %v6347_v3, 6  ;;  %v6352_v37 = vcombine.low %v2593_v27, %v2597_v28  ;;  %v7609_v29 = vld [vmem:[%s9621_s1 + $0x428] sm:$0xff]   ;;  %v7612_v15 = vld [vmem:[%s9621_s1 + $0x470] sm:$0xff]  }
  0xb9   : > { %7210 = vmatprep.subr.bf16.mxu0 %v7603_v34  ;;  %v2703_v32 = vsel %vm7869_vm4, %v2694_v60, %v2702_v53  ;;  %v2600_v4 = vrot.slane %v8598_v2, 5  ;;  %v2604_v30 = vrot.slane %v8601_v24, 5  ;;  %v6349_v3 = vld [vmem:[%s7835_s6 + $0x4c] sm:$0x3]  ;;  %v2723_v6 = vshrl.u32 %v6332_v10, 16 }
  0xba   : > { %v2721_v51 = vsel %vm7869_vm4, %v2712_v38, %v2720_v25  ;;  %v3039_v42 = vsel %vm8165_vm11, %v6419_v33, %v3038_v23  ;;  %7251 = vmatpush3.bf16.msra.mxu1 %v7606_v26  ;;  %v2726_v44 = vshll.u32 %v6332_v10, 16  ;;  %v2732_v47 = vshrl.u32 %v6348_v59, 16  ;;  %v7611_v1 = vld [vmem:[%s7835_s6 + $0x48] ss:$8 sps:$4 sm:$0xff]  }
  0xbb   : > { %v6356_v17 = vcombine.low %v2703_v32, %v2721_v51  ;;  %v6432_v18 = vcombine.low %v3035_v41, %v3039_v42  ;;  %7252 = vmatprep.subr.bf16.mxu1 %v7608_v43  ;;  %v2735_v2 = vshll.u32 %v6348_v59, 16  ;;  %v2741_v46 = vshrl.u32 %v6333_v50, 16  ;;  %v6413_v5 = vld [vmem:[%s7835_s6 + $0x48] sm:$0xc]  ;;  %v7613_v33 = vld [vmem:[%s9621_s1 + $0x4f0] sm:$0xff]   ;;  %v7619_v43 = vld [vmem:[%s9621_s1 + $0x4b8] sm:$0xff]  }
  0xbc   : > { %7211 = vmatpush3.bf16.msra.mxu0 %v7605_v39  ;;  %v2744_v45 = vshll.u32 %v6333_v50, 16  ;;  %v2725_v48 = vrot.slane %v2723_v6, 5  ;;  %v2728_v57 = vrot.slane %v2726_v44, 6  ;;  %v2750_v56 = vshrl.u32 %v6349_v3, 16  ;;  %v7614_v23 = vld [vmem:[%s9621_s1 + $0x430] sm:$0xff]  }
  0xbd   : > { %2967 = vmatprep.mubr.bf16.mxu0 %v6356_v17  ;;  %3278 = vmatmul.mubr.bf16.gmra.mrb[56].mxu1 %v6432_v18  ;;  %v2753_v40 = vshll.u32 %v6349_v3, 16  ;;  %v2734_v0 = vrot.slane %v2732_v47, 5  ;;  %v2737_v24 = vrot.slane %v2735_v2, 6  ;;  %v2743_v61 = vrot.slane %v2741_v46, 5  ;;  %v7616_v17 = vld [vmem:[%s9621_s1 + $0x478] sm:$0xff]  }
  0xbe   : > { %2968 = vmatmul.mubr.bf16.gmra.mrb[56].mxu0 %v6352_v37  ;;  %7212 = vmatprep.subr.bf16.mxu0 %v7607_v35  ;;  %v2746_v13 = vrot.slane %v2744_v45, 6  ;;  %v2729_v11 = vor.u32 %v2728_v57, %v2725_v48  ;;  %v2752_v16 = vrot.slane %v2750_v56, 5  ;;  %v6340_v49 = vrot.slane %v6332_v10, 9  ;;  %v7615_v37 = vld [vmem:[%s9621_s1 + $0x4b0] sm:$0xff]   ;;  %v7617_v18 = vld [vmem:[%s9621_s1 + $0x4f8] sm:$0xff]  }
  0xbf   : > { %7253 = vmatpush3.bf16.msra.mxu1 %v7610_v55  ;;  %v2755_v22 = vrot.slane %v2753_v40, 6  ;;  %v2738_v53 = vor.u32 %v2737_v24, %v2734_v0  ;;  %3285 = vmatprep.mubr.bf16.mxu1 %v7611_v1  ;;  %v6341_v14 = vrot.slane %v6333_v50, 9  ;;  %v6420_v21 = vrot.slane %v6412_v12, 10  ;;  %v7618_v35 = vld [vmem:[%s9621_s1 + $0x438] sm:$0xff]   ;;  %v6503_v50 = vld [vmem:[%s7835_s6 + $0x20] sm:$0xe] }
  0xc0   : > { %7213 = vmatpush3.bf16.msra.mxu0 %v7609_v29  ;;  %v2747_v7 = vor.u32 %v2746_v13, %v2743_v61  ;;  %v2730_v25 = vrot.slane %v2729_v11, 4  ;;  %v2601_v9 = vsel %vm7885_vm7, %v6340_v49, %v2600_v4  ;;  %v3042_v34 = vrot.slane %v6348_v59, 6  ;;  %7254 = vmatprep.subr.bf16.mxu1 %v7613_v33  ;;  %v6487_v29 = vld [vmem:[%s7835_s6 + $0x1c] sm:$0x1]  ;;  %v8839_v4 = vld [vmem:[%s7835_s6 + $0x24] sm:$0x1] }
  0xc1   : > { %v2756_v63 = vor.u32 %v2755_v22, %v2752_v16  ;;  %7214 = vmatprep.subr.bf16.mxu0 %v7612_v15  ;;  %v2605_v60 = vsel %vm7885_vm7, %v6341_v14, %v2604_v30  ;;  %v6421_v27 = vrot.slane %v6413_v5, 10  ;;  %v3046_v28 = vrot.slane %v6349_v3, 6  ;;  %v6502_v55 = vld [vmem:[%s7835_s6 + $0x18] sm:$0xe]  ;;  %v6574_v2 = vld [vmem:[%s7835_s6 + $0x1c] sm:$0x3] }
  0xc2   : > { %v2748_v54 = vrot.slane %v2747_v7, 4  ;;  %v2739_v38 = vsel %vm7869_vm4, %v2730_v25, %v2738_v53  ;;  %v3043_v41 = vsel %vm8165_vm11, %v6420_v21, %v3042_v34  ;;  %v6353_v39 = vcombine.low %v2601_v9, %v2605_v60  ;;  %v6575_v56 = vld [vmem:[%s7835_s6 + $0x24] sm:$0x3]  ;;  %v6582_v1 = vld [vmem:[%s7835_s6 + $0x18] sm:$0xc] }
  0xc3   : > { %v3047_v51 = vsel %vm8165_vm11, %v6421_v27, %v3046_v28  ;;  %7255 = vmatpush3.bf16.msra.mxu1 %v7615_v37  ;;  %v3328_v10 = vshll.u32 %v6487_v29, 16  ;;  %v6510_v30 = vrot.slane %v6502_v55, 9  ;;  %v3456_v59 = vrot.slane %v6487_v29, 5  ;;  %v7620_v40 = vld [vmem:[%s9621_s1 + $0x540] sm:$0xff]   ;;  %v6486_v21 = vld [vmem:[%s7835_s6 + $0x18] sm:$0xf] }
  0xc4   : > { %v2757_v32 = vsel %vm7869_vm4, %v2748_v54, %v2756_v63  ;;  %v6433_v26 = vcombine.low %v3043_v41, %v3047_v51  ;;  %7215 = vmatpush3.bf16.msra.mxu0 %v7614_v23  ;;  %7256 = vmatprep.subr.bf16.mxu1 %v7617_v18  ;;  %v6511_v3 = vrot.slane %v6503_v50, 9  ;;  %v3460_v6 = vrot.slane %v8839_v4, 5  ;;  %v7621_v11 = vld [vmem:[%s9621_s1 + $0x5c0] sm:$0xff]   ;;  %v7625_v29 = vld [vmem:[%s9621_s1 + $0x5c8] sm:$0xff]  }
  0xc5   : > { %v6357_v42 = vcombine.low %v2739_v38, %v2757_v32  ;;  %7216 = vmatprep.subr.bf16.mxu0 %v7616_v17  ;;  %v3729_v44 = vshrl.u32 %v6502_v55, 16  ;;  %v3732_v47 = vshll.u32 %v6502_v55, 16  ;;  %v8845_v46 = vrot.slane %v3328_v10, 5  ;;  %v6583_v15 = vld [vmem:[%s7835_s6 + $0x20] sm:$0xc] }
  0xc6   : > { %3286 = vmatmul.mubr.bf16.gmra.mrb[60].mxu1 %v6433_v26  ;;  %v3342_v45 = vshll.u32 %v8839_v4, 16  ;;  %v3457_v48 = vsel %vm7885_vm7, %v6510_v30, %v3456_v59  ;;  %v3747_v57 = vshrl.u32 %v6503_v50, 16  ;;  %v3461_v0 = vsel %vm7885_vm7, %v6511_v3, %v3460_v6  ;;  %v6488_v54 = vld [vmem:[%s7835_s6 + $0x20] sm:$0xf] }
  0xc7   : > { %2975 = vmatprep.mubr.bf16.mxu0 %v6357_v42  ;;  %7257 = vmatpush3.bf16.msra.mxu1 %v7619_v43  ;;  %v3731_v24 = vrot.slane %v3729_v44, 5  ;;  %v3734_v61 = vrot.slane %v3732_v47, 6  ;;  %v3750_v13 = vshll.u32 %v6503_v50, 16  ;;  %v6522_v16 = vcombine.low %v3457_v48, %v3461_v0  ;;  %v7623_v26 = vld [vmem:[%s9621_s1 + $0x580] sm:$0xff]   ;;  %v6493_v0 = vld [vmem:[%s7835_s6 + $0x34] sm:$0x1] }
  0xc8   : > { %2976 = vmatmul.mubr.bf16.gmra.mrb[60].mxu0 %v6353_v39  ;;  %v3749_v22 = vrot.slane %v3747_v57, 5  ;;  %v3738_v49 = vshrl.u32 %v6574_v2, 16  ;;  %v3741_v12 = vshll.u32 %v6574_v2, 16  ;;  %v3756_v14 = vshrl.u32 %v6575_v56, 16  ;;  %7322 = vmatprep.subr.bf16.mxu1 %v7621_v11  ;;  %v7627_v57 = vld [vmem:[%s9621_s1 + $0x588] sm:$0xff]  }
  0xc9   : > { %7217 = vmatpush3.bf16.msra.mxu0 %v7618_v35  ;;  %v3735_v53 = vor.u32 %v3734_v61, %v3731_v24  ;;  %v3752_v7 = vrot.slane %v3750_v13, 6  ;;  %v3759_v5 = vshll.u32 %v6575_v56, 16  ;;  %3679 = vmatprep.mubr.bf16.mxu0 %v6522_v16  ;;  %v6590_v9 = vrot.slane %v6582_v1, 10  ;;  %v6504_v24 = vld [vmem:[%s7835_s6 + $0x28] sm:$0xe] }
  0xca   : > { %7282 = vmatprep.subr.bf16.mxu0 %v7620_v40  ;;  %v3740_v25 = vrot.slane %v3738_v49, 5  ;;  %v3743_v63 = vrot.slane %v3741_v12, 6  ;;  %v3898_v34 = vrot.slane %v6574_v2, 6  ;;  %v3758_v28 = vrot.slane %v3756_v14, 5  ;;  %v7624_v1 = vld [vmem:[%s9621_s1 + $0x548] sm:$0xff]  }
  0xcb   : > { %v3736_v60 = vrot.slane %v3735_v53, 4  ;;  %v3753_v27 = vor.u32 %v3752_v7, %v3749_v22  ;;  %v3761_v33 = vrot.slane %v3759_v5, 6  ;;  %v6591_v23 = vrot.slane %v6583_v15, 10  ;;  %v8895_v11 = vld [vmem:[%s7835_s6 + $0x30] sm:$0xe] }
  0xcc   : > { %v3744_v38 = vor.u32 %v3743_v63, %v3740_v25  ;;  %v3899_v41 = vsel %vm8165_vm11, %v6590_v9, %v3898_v34  ;;  %v3902_v32 = vrot.slane %v6575_v56, 6  ;;  %v3319_v37 = vshrl.u32 %v6486_v21, 16  ;;  %v6491_v56 = vld [vmem:[%s7835_s6 + $0x2c] sm:$0x1]  ;;  %v8902_v53 = vld [vmem:[%s7835_s6 + $0x34] sm:$0x3] }
  0xcd   : > { %v3754_v39 = vrot.slane %v3753_v27, 4  ;;  %v3762_v51 = vor.u32 %v3761_v33, %v3758_v28  ;;  %v3322_v42 = vshll.u32 %v6486_v21, 16  ;;  %v3333_v18 = vshrl.u32 %v6488_v54, 16  ;;  %v6576_v49 = vld [vmem:[%s7835_s6 + $0x2c] sm:$0x3] }
  0xce   : > { %v3903_v17 = vsel %vm8165_vm11, %v6591_v23, %v3902_v32  ;;  %v3336_v35 = vshll.u32 %v6488_v54, 16  ;;  %v3745_v43 = vsel %vm7869_vm4, %v3736_v60, %v3744_v38  ;;  %v3321_v55 = vrot.slane %v3319_v37, 4  ;;  %v6584_v7 = vld [vmem:[%s7835_s6 + $0x28] sm:$0xc]  ;;  %v6585_v21 = vld [vmem:[%s7835_s6 + $0x30] sm:$0xc] }
  0xcf   : > { %v6602_v4 = vcombine.low %v3899_v41, %v3903_v17  ;;  %v3324_v10 = vrot.slane %v3322_v42, 5  ;;  %v3763_v50 = vsel %vm7869_vm4, %v3754_v39, %v3762_v51  ;;  %v3335_v30 = vrot.slane %v3333_v18, 4  ;;  %v6490_v9 = vld [vmem:[%s7835_s6 + $0x28] sm:$0xf]  ;;  %v6492_v27 = vld [vmem:[%s7835_s6 + $0x30] sm:$0xf] }
  0xd0   : > { %v3338_v59 = vrot.slane %v3336_v35, 5  ;;  %v6598_v3 = vcombine.low %v3745_v43, %v3763_v50  ;;  %v3344_v44 = vrot.slane %v3342_v45, 5  ;;  %v7622_v45 = vld [vmem:[%s9621_s1 + $0x500] sm:$0xff]   ;;  %v3464_v61 = vrot.slane %v6491_v56, 5  ;;  %v7626_v34 = vld [vmem:[%s9621_s1 + $0x508] sm:$0xff]  }
  0xd1   : > { %4121 = vmatprep.mubr.bf16.mxu1 %v6602_v4  ;;  %v3325_v6 = vor.u32 %v3324_v10, %v3321_v55  ;;  %v6512_v16 = vrot.slane %v6504_v24, 9  ;;  %v3468_v22 = vrot.slane %v6493_v0, 5  ;;  %v6513_v15 = vrot.slane %v8895_v11, 9 }
  0xd2   : > { %v3339_v47 = vor.u32 %v3338_v59, %v3335_v30  ;;  %4122 = vmatmul.mubr.bf16.vlgmr.msra.gmra.mrb[64].mxu1 %v6598_v3  ;;  %v6592_v25 = vrot.slane %v6584_v7, 10  ;;  %v3910_v63 = vrot.slane %v8902_v53, 6  ;;  %v6593_v60 = vrot.slane %v6585_v21, 10  ;;  %v7630_v30 = vld [vmem:[%s9621_s1 + $0x510] sm:$0xff]   ;;  %v7634_v21 = vld [vmem:[%s9621_s1 + $0x518] sm:$0xff]  }
  0xd3   : > { %v3326_v48 = vrot.slane %v3325_v6, 4  ;;  %7323 = vmatpush3.bf16.msra.mxu1 %v7623_v26  ;;  %v3465_v5 = vsel %vm7885_vm7, %v6512_v16, %v3464_v61  ;;  %v3469_v54 = vsel %vm7885_vm7, %v6513_v15, %v3468_v22  ;;  %v3347_v28 = vshrl.u32 %v6490_v9, 16  ;;  %v7629_v26 = vld [vmem:[%s9621_s1 + $0x5d0] sm:$0xff]  }
  0xd4   : > { %v3340_v40 = vrot.slane %v3339_v47, 4  ;;  %7324 = vmatprep.subr.bf16.mxu1 %v7625_v29  ;;  %v3350_v33 = vshll.u32 %v6490_v9, 16  ;;  %v6523_v38 = vcombine.low %v3465_v5, %v3469_v54  ;;  %v3356_v23 = vshll.u32 %v6491_v56, 16  ;;  %v7628_v29 = vld [vmem:[%s9621_s1 + $0x550] sm:$0xff]   ;;  %v6497_v54 = vld [vmem:[%s7835_s6 + $0x44] sm:$0x1] }
  0xd5   : > { %v3331_v13 = vsel %vm7891_vm8, %v3326_v48, %v8845_v46  ;;  %v3906_v46 = vrot.slane %v6576_v49, 6  ;;  %v3361_v32 = vshrl.u32 %v6492_v27, 16  ;;  %v3911_v39 = vsel %vm8165_vm11, %v6593_v60, %v3910_v63  ;;  %v7631_v59 = vld [vmem:[%s9621_s1 + $0x590] sm:$0xff]  }
  0xd6   : > { %v3345_v12 = vsel %vm7891_vm8, %v3340_v40, %v3344_v44  ;;  %v3349_v51 = vrot.slane %v3347_v28, 4  ;;  %v3352_v37 = vrot.slane %v3350_v33, 5  ;;  %v3364_v42 = vshll.u32 %v6492_v27, 16  ;;  %v6506_v33 = vld [vmem:[%s7835_s6 + $0x38] sm:$0xe] }
  0xd7   : > { %v6518_v14 = vcombine.low %v3331_v13, %v3345_v12  ;;  %7325 = vmatpush3.bf16.msra.mxu1 %v7627_v57  ;;  %v3907_v41 = vsel %vm8165_vm11, %v6592_v25, %v3906_v46  ;;  %v3358_v18 = vrot.slane %v3356_v23, 5  ;;  %v3363_v35 = vrot.slane %v3361_v32, 4 }
  0xd8   : > { %v6603_v17 = vcombine.low %v3907_v41, %v3911_v39  ;;  %v3370_v43 = vshll.u32 %v6493_v0, 16  ;;  %v3353_v4 = vor.u32 %v3352_v37, %v3349_v51  ;;  %v3366_v55 = vrot.slane %v3364_v42, 5  ;;  %7326 = vmatprep.subr.bf16.mxu1 %v7629_v26  ;;  %v6578_v51 = vld [vmem:[%s7835_s6 + $0x3c] sm:$0x3]  ;;  %v8965_v26 = vld [vmem:[%s7835_s6 + $0x44] sm:$0x3] }
  0xd9   : > { %3680 = vmatmul.mubr.bf16.vlgmr.msra.gmra.mrb[64].mxu0 %v6518_v14  ;;  %v3765_v10 = vshrl.u32 %v6504_v24, 16  ;;  %v3768_v50 = vshll.u32 %v6504_v24, 16  ;;  %v3774_v6 = vshrl.u32 %v6576_v49, 16  ;;  %v3777_v44 = vshll.u32 %v6576_v49, 16 }
  0xda   : > { %7283 = vmatpush3.bf16.msra.mxu0 %v7622_v45  ;;  %3687 = vmatprep.mubr.bf16.mxu0 %v6523_v38  ;;  %v3372_v3 = vrot.slane %v3370_v43, 5  ;;  %v3783_v47 = vshrl.u32 %v8895_v11, 16  ;;  %v3354_v48 = vrot.slane %v3353_v4, 4  ;;  %v3367_v57 = vor.u32 %v3366_v55, %v3363_v35  ;;  %v7632_v45 = vld [vmem:[%s9621_s1 + $0x558] sm:$0xff]   ;;  %v8958_v38 = vld [vmem:[%s7835_s6 + $0x40] sm:$0xe] }
  0xdb   : > { %7284 = vmatprep.subr.bf16.mxu0 %v7624_v1  ;;  %4129 = vmatprep.mubr.bf16.mxu1 %v6603_v17  ;;  %v3767_v56 = vrot.slane %v3765_v10, 5  ;;  %v3770_v40 = vrot.slane %v3768_v50, 6  ;;  %v3776_v0 = vrot.slane %v3774_v6, 5  ;;  %v3779_v24 = vrot.slane %v3777_v44, 6  ;;  %v6586_v17 = vld [vmem:[%s7835_s6 + $0x38] sm:$0xc] }
  0xdc   : > { %7327 = vmatpush3.bf16.msra.mxu1 %v7631_v59  ;;  %v3785_v61 = vrot.slane %v3783_v47, 5  ;;  %v3786_v13 = vshll.u32 %v8895_v11, 16  ;;  %v3359_v1 = vsel %vm7891_vm8, %v3354_v48, %v3358_v18  ;;  %v3368_v16 = vrot.slane %v3367_v57, 4  ;;  %v7633_v11 = vld [vmem:[%s9621_s1 + $0x5d8] sm:$0xff]   ;;  %v6587_v18 = vld [vmem:[%s7835_s6 + $0x40] sm:$0xc] }
  0xdd   : > { %v3771_v22 = vor.u32 %v3770_v40, %v3767_v56  ;;  %v3792_v49 = vshrl.u32 %v8902_v53, 16  ;;  %v3780_v12 = vor.u32 %v3779_v24, %v3776_v0  ;;  %v3795_v7 = vshll.u32 %v8902_v53, 16  ;;  %v7635_v53 = vld [vmem:[%s9621_s1 + $0x598] sm:$0xff]   ;;  %7328 = vmatprep.subr.bf16.mxu1 %v7633_v11  ;;  %v6496_v10 = vld [vmem:[%s7835_s6 + $0x40] sm:$0xf] }
  0xde   : > { %7285 = vmatpush3.bf16.msra.mxu0 %v7626_v34  ;;  %v3788_v15 = vrot.slane %v3786_v13, 6  ;;  %v3373_v46 = vsel %vm7891_vm8, %v3368_v16, %v3372_v3  ;;  %v6495_v34 = vld [vmem:[%s7835_s6 + $0x3c] sm:$0x1]  ;;  %v6514_v23 = vrot.slane %v6506_v33, 9  ;;  %v6515_v32 = vrot.slane %v8958_v38, 9  ;;  %v7636_v50 = vld [vmem:[%s9621_s1 + $0x560] sm:$0xff]  }
  0xdf   : > { %7286 = vmatprep.subr.bf16.mxu0 %v7628_v29  ;;  %v3772_v14 = vrot.slane %v3771_v22, 4  ;;  %v3794_v5 = vrot.slane %v3792_v49, 5  ;;  %v6519_v25 = vcombine.low %v3359_v1, %v3373_v46  ;;  %v3797_v9 = vrot.slane %v3795_v7, 6  ;;  %v6494_v55 = vld [vmem:[%s7835_s6 + $0x38] sm:$0xf]  ;;  %v7637_v44 = vld [vmem:[%s9621_s1 + $0x5e0] sm:$0xff]  }
  0xe0   : > { %v3789_v63 = vor.u32 %v3788_v15, %v3785_v61  ;;  %7329 = vmatpush3.bf16.msra.mxu1 %v7635_v53  ;;  %v3472_v41 = vrot.slane %v6495_v34, 5  ;;  %v3476_v39 = vrot.slane %v6497_v54, 5  ;;  %v3384_v37 = vshll.u32 %v6495_v34, 16  ;;  %v7638_v22 = vld [vmem:[%s9621_s1 + $0x520] sm:$0xff]   ;;  %v7640_v34 = vld [vmem:[%s9621_s1 + $0x568] sm:$0xff]  }
  0xe1   : > { %3688 = vmatmul.mubr.bf16.gmra.mrb[68].mxu0 %v6519_v25  ;;  %v3781_v60 = vsel %vm7869_vm4, %v3772_v14, %v3780_v12  ;;  %v3798_v28 = vor.u32 %v3797_v9, %v3794_v5  ;;  %v6594_v4 = vrot.slane %v6586_v17, 10  ;;  %v3914_v59 = vrot.slane %v6578_v51, 6  ;;  %7330 = vmatprep.subr.bf16.mxu1 %v7637_v44  ;;  %v9021_v44 = vld [vmem:[%s7835_s6 + $0x50] sm:$0xe] }
  0xe2   : > { %7287 = vmatpush3.bf16.msra.mxu0 %v7630_v30  ;;  %v3790_v27 = vrot.slane %v3789_v63, 4  ;;  %v3473_v43 = vsel %vm7885_vm7, %v6514_v23, %v3472_v41  ;;  %v3477_v29 = vsel %vm7885_vm7, %v6515_v32, %v3476_v39  ;;  %v6595_v3 = vrot.slane %v6587_v18, 10 }
  0xe3   : > { %7288 = vmatprep.subr.bf16.mxu0 %v7632_v45  ;;  %v6524_v30 = vcombine.low %v3473_v43, %v3477_v29  ;;  %v3918_v6 = vrot.slane %v8965_v26, 6  ;;  %v3375_v47 = vshrl.u32 %v6494_v55, 16  ;;  %v3378_v48 = vshll.u32 %v6494_v55, 16 }
  0xe4   : > { %v3799_v42 = vsel %vm7869_vm4, %v3790_v27, %v3798_v28  ;;  %v3386_v57 = vrot.slane %v3384_v37, 5  ;;  %v3389_v56 = vshrl.u32 %v6496_v10, 16  ;;  %v3915_v40 = vsel %vm8165_vm11, %v6594_v4, %v3914_v59 }
  0xe5   : > { %v6599_v35 = vcombine.low %v3781_v60, %v3799_v42  ;;  %3695 = vmatprep.mubr.bf16.mxu0 %v6524_v30  ;;  %v3919_v45 = vsel %vm8165_vm11, %v6595_v3, %v3918_v6  ;;  %v3392_v0 = vshll.u32 %v6496_v10, 16  ;;  %v3398_v24 = vshll.u32 %v6497_v54, 16  ;;  %v7642_v42 = vld [vmem:[%s9621_s1 + $0x528] sm:$0xff]   ;;  %v7644_v30 = vld [vmem:[%s9621_s1 + $0x570] sm:$0xff]  }
  0xe6   : > { %7289 = vmatpush3.bf16.msra.mxu0 %v7634_v21  ;;  %v6604_v61 = vcombine.low %v3915_v40, %v3919_v45  ;;  %v3377_v13 = vrot.slane %v3375_v47, 4  ;;  %v3380_v1 = vrot.slane %v3378_v48, 5  ;;  %v3391_v16 = vrot.slane %v3389_v56, 4  ;;  %v7639_v21 = vld [vmem:[%s9621_s1 + $0x5a0] sm:$0xff]   ;;  %v6499_v10 = vld [vmem:[%s7835_s6 + $0x4c] sm:$0x1] }
  0xe7   : > { %4130 = vmatmul.mubr.bf16.gmra.mrb[68].mxu1 %v6599_v35  ;;  %7290 = vmatprep.subr.bf16.mxu0 %v7636_v50  ;;  %v3394_v49 = vrot.slane %v3392_v0, 5  ;;  %v3400_v12 = vrot.slane %v3398_v24, 5  ;;  %v3801_v15 = vshrl.u32 %v6506_v33, 16  ;;  %v3804_v7 = vshll.u32 %v6506_v33, 16  ;;  %v6501_v50 = vld [vmem:[%s7835_s6 + $0x54] sm:$0x1] }
  0xe8   : > { %4137 = vmatprep.mubr.bf16.mxu1 %v6604_v61  ;;  %v3381_v46 = vor.u32 %v3380_v1, %v3377_v13  ;;  %v3810_v14 = vshrl.u32 %v6578_v51, 16  ;;  %v3813_v5 = vshll.u32 %v6578_v51, 16  ;;  %v3819_v11 = vshrl.u32 %v8958_v38, 16  ;;  %7331 = vmatpush3.bf16.msra.mxu1 %v7639_v21  ;;  %v6508_v6 = vld [vmem:[%s7835_s6 + $0x48] sm:$0xe] }
  0xe9   : > { %v3395_v25 = vor.u32 %v3394_v49, %v3391_v16  ;;  %v3803_v63 = vrot.slane %v3801_v15, 5  ;;  %v3806_v9 = vrot.slane %v3804_v7, 6  ;;  %v3822_v53 = vshll.u32 %v8958_v38, 16  ;;  %v7641_v38 = vld [vmem:[%s9621_s1 + $0x5e8] sm:$0xff]   ;;  %v9026_v45 = vld [vmem:[%s7835_s6 + $0x54] sm:$0x3] }
  0xea   : > { %7291 = vmatpush3.bf16.msra.mxu0 %v7638_v22  ;;  %v3382_v54 = vrot.slane %v3381_v46, 4  ;;  %v3812_v60 = vrot.slane %v3810_v14, 5  ;;  %v3815_v27 = vrot.slane %v3813_v5, 6  ;;  %v3821_v28 = vrot.slane %v3819_v11, 5  ;;  %7332 = vmatprep.subr.bf16.mxu1 %v7641_v38  ;;  %v6580_v40 = vld [vmem:[%s7835_s6 + $0x4c] sm:$0x3] }
  0xeb   : > { %v3396_v33 = vrot.slane %v3395_v25, 4  ;;  %v3807_v41 = vor.u32 %v3806_v9, %v3803_v63  ;;  %v3824_v23 = vrot.slane %v3822_v53, 6  ;;  %v3828_v32 = vshrl.u32 %v8965_v26, 16  ;;  %7292 = vmatprep.subr.bf16.mxu0 %v7640_v34  ;;  %v6588_v24 = vld [vmem:[%s7835_s6 + $0x48] sm:$0xc]  ;;  %v7645_v46 = vld [vmem:[%s9621_s1 + $0x5f0] sm:$0xff]  }
  0xec   : > { %v3387_v39 = vsel %vm7891_vm8, %v3382_v54, %v3386_v57  ;;  %v3816_v51 = vor.u32 %v3815_v27, %v3812_v60  ;;  %v3831_v37 = vshll.u32 %v8965_v26, 16  ;;  %v7643_v26 = vld [vmem:[%s9621_s1 + $0x5a8] sm:$0xff]   ;;  %v3480_v47 = vrot.slane %v6499_v10, 5  ;;  %v6589_v61 = vld [vmem:[%s7835_s6 + $0x50] sm:$0xc] }
  0xed   : > { %v3401_v17 = vsel %vm7891_vm8, %v3396_v33, %v3400_v12  ;;  %v3808_v18 = vrot.slane %v3807_v41, 4  ;;  %v3825_v35 = vor.u32 %v3824_v23, %v3821_v28  ;;  %v3830_v43 = vrot.slane %v3828_v32, 5  ;;  %7333 = vmatpush3.bf16.msra.mxu1 %v7643_v26  ;;  %v6498_v15 = vld [vmem:[%s7835_s6 + $0x48] sm:$0xf]  ;;  %v6500_v7 = vld [vmem:[%s7835_s6 + $0x50] sm:$0xf] }
  0xee   : > { %v6520_v29 = vcombine.low %v3387_v39, %v3401_v17  ;;  %v3833_v4 = vrot.slane %v3831_v37, 6  ;;  %7293 = vmatpush3.bf16.msra.mxu0 %v7642_v42  ;;  %v3484_v48 = vrot.slane %v6501_v50, 5  ;;  %v6516_v57 = vrot.slane %v6508_v6, 9  ;;  %v7646_v25 = vld [vmem:[%s9621_s1 + $0x530] sm:$0xff]   ;;  %7334 = vmatprep.subr.bf16.mxu1 %v7645_v46  ;;  %v7648_v41 = vld [vmem:[%s9621_s1 + $0x578] sm:$0xff]  }
  0xef   : > { %v3826_v55 = vrot.slane %v3825_v35, 4  ;;  %v3817_v59 = vsel %vm7869_vm4, %v3808_v18, %v3816_v51  ;;  %v6517_v56 = vrot.slane %v9021_v44, 9  ;;  %7294 = vmatprep.subr.bf16.mxu0 %v7644_v30  ;;  %v3922_v13 = vrot.slane %v6580_v40, 6  ;;  %v7647_v54 = vld [vmem:[%s9621_s1 + $0x5b0] sm:$0xff]   ;;  %v7649_v51 = vld [vmem:[%s9621_s1 + $0x5f8] sm:$0xff]  }
  0xf0   : > { %3696 = vmatmul.mubr.bf16.gmra.mrb[72].mxu0 %v6520_v29  ;;  %v3834_v3 = vor.u32 %v3833_v4, %v3830_v43  ;;  %v3926_v1 = vrot.slane %v9026_v45, 6  ;;  %v3481_v22 = vsel %vm7885_vm7, %v6516_v57, %v3480_v47  ;;  %v6596_v12 = vrot.slane %v6588_v24, 10  ;;  %v7650_v35 = vld [vmem:[%s9621_s1 + $0x538] sm:$0xff]   ;;  %v9078_v46 = vld [vmem:[%s7835_s6 + $0x20] sm:$0xf] }
  0xf1   : > { %v3485_v49 = vsel %vm7885_vm7, %v6517_v56, %v3484_v48  ;;  %v6597_v5 = vrot.slane %v6589_v61, 10  ;;  %v3403_v11 = vshrl.u32 %v6498_v15, 16  ;;  %v3406_v21 = vshll.u32 %v6498_v15, 16  ;;  %7335 = vmatpush3.bf16.msra.mxu1 %v7647_v54 }
  0xf2   : > { %v3835_v0 = vsel %vm7869_vm4, %v3826_v55, %v3834_v3  ;;  %v6525_v14 = vcombine.low %v3481_v22, %v3485_v49  ;;  %v3923_v63 = vsel %vm8165_vm11, %v6596_v12, %v3922_v13  ;;  %v3412_v9 = vshll.u32 %v6499_v10, 16  ;;  %7295 = vmatpush3.bf16.msra.mxu0 %v7646_v25  ;;  %7336 = vmatprep.subr.bf16.mxu1 %v7649_v51  ;;  %v7651_v55 = vld [vmem:[%s9621_s1 + $0x5b8] sm:$0xff]   ;;  %v7653_v13 = vld [vmem:[%s9621_s1 + $0x640] sm:$0xff]  }
  0xf3   : > { %v6600_v16 = vcombine.low %v3817_v59, %v3835_v0  ;;  %v3417_v53 = vshrl.u32 %v6500_v7, 16  ;;  %v3420_v34 = vshll.u32 %v6500_v7, 16  ;;  %v3927_v60 = vsel %vm8165_vm11, %v6597_v5, %v3926_v1  ;;  %7296 = vmatprep.subr.bf16.mxu0 %v7648_v41  ;;  %v6662_v5 = vld [vmem:[%s7835_s6 + $0x24] sm:$0x1] }
  0xf4   : > { %3703 = vmatprep.mubr.bf16.mxu0 %v6525_v14  ;;  %v3405_v27 = vrot.slane %v3403_v11, 4  ;;  %v3408_v28 = vrot.slane %v3406_v21, 5  ;;  %v3426_v33 = vshll.u32 %v6501_v50, 16  ;;  %v6605_v23 = vcombine.low %v3923_v63, %v3927_v60  ;;  %v6663_v11 = vld [vmem:[%s7835_s6 + $0x2c] sm:$0x1] }
  0xf5   : > { %4138 = vmatmul.mubr.bf16.gmra.mrb[72].mxu1 %v6600_v16  ;;  %v3414_v32 = vrot.slane %v3412_v9, 5  ;;  %v3419_v38 = vrot.slane %v3417_v53, 4  ;;  %v3422_v39 = vrot.slane %v3420_v34, 5  ;;  %v3837_v17 = vshrl.u32 %v6508_v6, 16  ;;  %v6726_v60 = vld [vmem:[%s7835_s6 + $0x20] sm:$0xe] }
  0xf6   : > { %v3409_v37 = vor.u32 %v3408_v28, %v3405_v27  ;;  %v3428_v42 = vrot.slane %v3426_v33, 5  ;;  %v3840_v18 = vshll.u32 %v6508_v6, 16  ;;  %4145 = vmatprep.mubr.bf16.mxu1 %v6605_v23  ;;  %v3846_v29 = vshrl.u32 %v6580_v40, 16  ;;  %7297 = vmatpush3.bf16.msra.mxu0 %v7650_v35  ;;  %v6727_v23 = vld [vmem:[%s7835_s6 + $0x28] sm:$0xe] }
  0xf7   : > { %v3423_v43 = vor.u32 %v3422_v39, %v3419_v38  ;;  %v3849_v4 = vshll.u32 %v6580_v40, 16  ;;  %v3855_v26 = vshrl.u32 %v9021_v44, 16  ;;  %v3839_v50 = vrot.slane %v3837_v17, 5  ;;  %7337 = vmatpush3.bf16.msra.mxu1 %v7651_v55  ;;  %7362 = vmatprep.subr.bf16.mxu0 %v7653_v13 }
  0xf8   : > { %v3410_v10 = vrot.slane %v3409_v37, 4  ;;  %v3842_v30 = vrot.slane %v3840_v18, 6  ;;  %v3858_v59 = vshll.u32 %v9021_v44, 16  ;;  %v3848_v6 = vrot.slane %v3846_v29, 5  ;;  %7402 = vmatprep.subr.bf16.mxu1 %v7653_v13  ;;  %v9096_v37 = vld [vmem:[%s7835_s6 + $0x24] sm:$0x3] }
  0xf9   : > { %v3424_v3 = vrot.slane %v3423_v43, 4  ;;  %v3851_v47 = vrot.slane %v3849_v4, 6  ;;  %v3857_v48 = vrot.slane %v3855_v26, 5  ;;  %v3864_v0 = vshrl.u32 %v9026_v45, 16  ;;  %v9099_v43 = vld [vmem:[%s7835_s6 + $0x2c] sm:$0x3] }
  0xfa   : > { %v3415_v57 = vsel %vm7891_vm8, %v3410_v10, %v3414_v32  ;;  %v3843_v56 = vor.u32 %v3842_v30, %v3839_v50  ;;  %v3860_v40 = vrot.slane %v3858_v59, 6  ;;  %v3867_v44 = vshll.u32 %v9026_v45, 16  ;;  %v9081_v45 = vld [vmem:[%s7835_s6 + $0x28] sm:$0xf] }
  0xfb   : > { %v8877_v2 = vpop.f32.mrb[0].mxu0  ;;  %v3429_v24 = vsel %vm7891_vm8, %v3424_v3, %v3428_v42  ;;  %v3852_v61 = vor.u32 %v3851_v47, %v3848_v6  ;;  %v3866_v49 = vrot.slane %v3864_v0, 5  ;;  %v4183_v21 = vshrl.u32 %v9078_v46, 16 }
  0xfc   : > { %v6521_v1 = vcombine.low %v3415_v57, %v3429_v24  ;;  %v3844_v16 = vrot.slane %v3843_v56, 4  ;;  %v3861_v22 = vor.u32 %v3860_v40, %v3857_v48  ;;  %v3869_v12 = vrot.slane %v3867_v44, 6 }
  0xfd   : > { %v4186_v25 = vshll.u32 %v9078_v46, 16  ;;  %v6670_v63 = vcombine.low %v9078_v46, %v9081_v45  ;;  %v4192_v9 = vshll.u32 %v6662_v5, 16  ;;  %v4197_v53 = vshrl.u32 %v9081_v45, 16 }
  0xfe   : > { %3704 = vmatmul.mubr.bf16.gmra.mrb[76].mxu0 %v6521_v1  ;;  %v3853_v15 = vsel %vm7869_vm4, %v3844_v16, %v3852_v61  ;;  %v3862_v7 = vrot.slane %v3861_v22, 4  ;;  %v3870_v14 = vor.u32 %v3869_v12, %v3866_v49  ;;  %v4200_v34 = vshll.u32 %v9081_v45, 16  ;;  %v7654_v49 = vld [vmem:[%s9621_s1 + $0x600] sm:$0xff]   ;;  %v7655_v45 = vld [vmem:[%s9621_s1 + $0x648] sm:$0xff]  }
  0xff   : > { %v4206_v54 = vshll.u32 %v6663_v11, 16  ;;  %v4185_v28 = vrot.slane %v4183_v21, 4  ;;  %v4188_v33 = vrot.slane %v4186_v25, 5  ;;  %v4562_v41 = vrot.slane %v6662_v5, 5  ;;  %v9126_v25 = vld [vmem:[%s9621_s1 + $0x608] sm:$0xff]  }
 0x100   : > { %v3871_v27 = vsel %vm7869_vm4, %v3862_v7, %v3870_v14  ;;  %v4194_v38 = vrot.slane %v4192_v9, 5  ;;  %v4199_v39 = vrot.slane %v4197_v53, 4  ;;  %v4202_v51 = vrot.slane %v4200_v34, 5  ;;  %v9117_v14 = vld [vmem:[%s7835_s6 + $0x30] sm:$0xf] }
 0x101   : > { %v6601_v32 = vcombine.low %v3853_v15, %v3871_v27  ;;  %v4189_v42 = vor.u32 %v4188_v33, %v4185_v28  ;;  %v4208_v17 = vrot.slane %v4206_v54, 5  ;;  %v4566_v18 = vrot.slane %v6663_v11, 5  ;;  %v9129_v9 = vld [vmem:[%s7835_s6 + $0x38] sm:$0xf]  ;;  %v9132_v53 = vld [vmem:[%s7835_s6 + $0x34] sm:$0x1] }
 0x102   : > { %v6734_v35 = vrot.slane %v6726_v60, 9  ;;  %v4203_v29 = vor.u32 %v4202_v51, %v4199_v39  ;;  %v6735_v4 = vrot.slane %v6727_v23, 9  ;;  %v4601_v26 = vshrl.u32 %v6726_v60, 16  ;;  %v9138_v28 = vld [vmem:[%s7835_s6 + $0x3c] sm:$0x1] }
 0x103   : > { %4146 = vmatmul.mubr.bf16.gmra.mrb[76].mxu1 %v6601_v32  ;;  %v4604_v55 = vshll.u32 %v6726_v60, 16  ;;  %v4190_v10 = vrot.slane %v4189_v42, 4  ;;  %v4610_v50 = vshrl.u32 %v9096_v37, 16  ;;  %v4613_v30 = vshll.u32 %v9096_v37, 16  ;;  %v9147_v51 = vld [vmem:[%s7835_s6 + $0x38] sm:$0xe] }
 0x104   : > { %v4619_v59 = vshrl.u32 %v6727_v23, 16  ;;  %v4204_v3 = vrot.slane %v4203_v29, 4  ;;  %v4603_v6 = vrot.slane %v4601_v26, 5  ;;  %v4622_v48 = vshll.u32 %v6727_v23, 16 }
 0x105   : > { %v4606_v47 = vrot.slane %v4604_v55, 6  ;;  %v4195_v57 = vsel %vm7891_vm8, %v4190_v10, %v4194_v38  ;;  %v4612_v56 = vrot.slane %v4610_v50, 5  ;;  %v4615_v40 = vrot.slane %v4613_v30, 6  ;;  %v9163_v10 = vld [vmem:[%s7835_s6 + $0x3c] sm:$0x3]  ;;  %v9169_v30 = vld [vmem:[%s9621_s1 + $0x610] sm:$0xff]  }
 0x106   : > { %v4621_v0 = vrot.slane %v4619_v59, 5  ;;  %v4209_v24 = vsel %vm7891_vm8, %v4204_v3, %v4208_v17  ;;  %v4624_v44 = vrot.slane %v4622_v48, 6  ;;  %v4628_v13 = vshrl.u32 %v9099_v43, 16 }
 0x107   : > { %v4607_v61 = vor.u32 %v4606_v47, %v4603_v6  ;;  %v6674_v1 = vcombine.low %v4195_v57, %v4209_v24  ;;  %v4616_v16 = vor.u32 %v4615_v40, %v4612_v56  ;;  %v4631_v22 = vshll.u32 %v9099_v43, 16 }
 0x108   : > { %v4625_v15 = vor.u32 %v4624_v44, %v4621_v0  ;;  %v4630_v7 = vrot.slane %v4628_v13, 5  ;;  %v5004_v46 = vrot.slane %v9096_v37, 6  ;;  %v4563_v11 = vsel %vm7885_vm7, %v6734_v35, %v4562_v41  ;;  %v9142_v41 = vld [vmem:[%s7835_s6 + $0x30] sm:$0xe]  ;;  %v9157_v35 = vld [vmem:[%s7835_s6 + $0x34] sm:$0x3] }
 0x109   : > { %v4608_v12 = vrot.slane %v4607_v61, 4  ;;  %4495 = vmatprep.mubr.bf16.mxu0 %v6674_v1  ;;  %v4633_v5 = vrot.slane %v4631_v22, 6  ;;  %v4567_v21 = vsel %vm7885_vm7, %v6735_v4, %v4566_v18  ;;  %v4211_v34 = vshrl.u32 %v9117_v14, 16  ;;  %v9180_v13 = vld [vmem:[%s9621_s1 + $0x658] sm:$0xff]  }
 0x10a   : > { %v4626_v60 = vrot.slane %v4625_v15, 4  ;;  %4496 = vmatmul.mubr.bf16.vlgmr.msra.gmra.mrb[80].mxu0 %v6670_v63  ;;  %v6750_v27 = vcombine.low %v4563_v11, %v4567_v21  ;;  %v4214_v33 = vshll.u32 %v9117_v14, 16  ;;  %v4220_v38 = vshll.u32 %v9132_v53, 16  ;;  %v9152_v63 = vld [vmem:[%s9621_s1 + $0x650] sm:$0xff]  }
 0x10b   : > { %v4617_v54 = vsel %vm7869_vm4, %v4608_v12, %v4616_v16  ;;  %v4634_v23 = vor.u32 %v4633_v5, %v4630_v7  ;;  %7363 = vmatpush3.bf16.msra.mxu0 %v7654_v49  ;;  %v4213_v32 = vrot.slane %v4211_v34, 4  ;;  %v4225_v39 = vshrl.u32 %v9129_v9, 16 }
 0x10c   : > { %7364 = vmatprep.subr.bf16.mxu0 %v7655_v45  ;;  %v4216_v42 = vrot.slane %v4214_v33, 5  ;;  %v4228_v17 = vshll.u32 %v9129_v9, 16  ;;  %v4234_v18 = vshll.u32 %v9138_v28, 16  ;;  %v4637_v29 = vshrl.u32 %v9142_v41, 16 }
 0x10d   : > { %v4635_v4 = vsel %vm7869_vm4, %v4626_v60, %v4634_v23  ;;  %v4222_v26 = vrot.slane %v4220_v38, 5  ;;  %v4227_v55 = vrot.slane %v4225_v39, 4  ;;  %v4640_v50 = vshll.u32 %v9142_v41, 16 }
 0x10e   : > { %v6754_v59 = vcombine.low %v4617_v54, %v4635_v4  ;;  %v4217_v3 = vor.u32 %v4216_v42, %v4213_v32  ;;  %v4230_v6 = vrot.slane %v4228_v17, 5  ;;  %v4236_v47 = vrot.slane %v4234_v18, 5  ;;  %v9199_v32 = vld [vmem:[%s7835_s6 + $0x40] sm:$0xf] }
 0x10f   : > { %7365 = vmatpush3.bf16.msra.mxu0 %v9126_v25  ;;  %v4639_v48 = vrot.slane %v4637_v29, 5  ;;  %v4642_v57 = vrot.slane %v4640_v50, 6  ;;  %v4646_v56 = vshrl.u32 %v9157_v35, 16  ;;  %v4649_v40 = vshll.u32 %v9157_v35, 16  ;;  %v9226_v50 = vld [vmem:[%s7835_s6 + $0x40] sm:$0xe] }
 0x110   : > { %4937 = vmatprep.mubr.bf16.mxu1 %v6754_v59  ;;  %v4218_v0 = vrot.slane %v4217_v3, 4  ;;  %v4231_v24 = vor.u32 %v4230_v6, %v4227_v55  ;;  %v4655_v61 = vshrl.u32 %v9147_v51, 16  ;;  %v4658_v44 = vshll.u32 %v9147_v51, 16  ;;  %7366 = vmatprep.subr.bf16.mxu0 %v9152_v63  ;;  %v9231_v59 = vld [vmem:[%s9621_s1 + $0x620] sm:$0xff]  }
 0x111   : > { %4938 = vmatmul.mubr.bf16.vlgmr.msra.gmra.mrb[80].mxu1 %v6750_v27  ;;  %v4643_v1 = vor.u32 %v4642_v57, %v4639_v48  ;;  %v4648_v16 = vrot.slane %v4646_v56, 5  ;;  %v4651_v22 = vrot.slane %v4649_v40, 6  ;;  %v4664_v12 = vshrl.u32 %v9163_v10, 16  ;;  %v9238_v48 = vld [vmem:[%s7835_s6 + $0x44] sm:$0x3]  ;;  %v9243_v57 = vld [vmem:[%s9621_s1 + $0x668] sm:$0xff]  }
 0x112   : > { %7410 = vmatpush3.bf16.msra.mxu1 %v7654_v49  ;;  %v4223_v15 = vsel %vm7891_vm8, %v4218_v0, %v4222_v26  ;;  %v4232_v7 = vrot.slane %v4231_v24, 4  ;;  %v4657_v5 = vrot.slane %v4655_v61, 5  ;;  %v4660_v11 = vrot.slane %v4658_v44, 6  ;;  %v7663_v26 = vld [vmem:[%s9621_s1 + $0x660] sm:$0xff]   ;;  %v9245_v56 = vpop.f32.mrb[0].mxu1 }
 0x113   : > { %7403 = vmatprep.subr.bf16.mxu1 %v7655_v45  ;;  %v4644_v21 = vrot.slane %v4643_v1, 4  ;;  %v4652_v34 = vor.u32 %v4651_v22, %v4648_v16  ;;  %v4666_v54 = vrot.slane %v4664_v12, 5  ;;  %v4667_v60 = vshll.u32 %v9163_v10, 16  ;;  %7367 = vmatpush3.bf16.msra.mxu0 %v9169_v30  ;;  %v9196_v45 = vld [vmem:[%s9621_s1 + $0x618] sm:$0xff]   ;;  %v9251_v44 = vld [vmem:[%s7835_s6 + $0x48] sm:$0xe] }
 0x114   : > { %v4237_v49 = vsel %vm7891_vm8, %v4232_v7, %v4236_v47  ;;  %v4661_v27 = vor.u32 %v4660_v11, %v4657_v5  ;;  %v6671_v33 = vcombine.low %v9117_v14, %v9129_v9  ;;  %v6736_v23 = vrot.slane %v9142_v41, 9  ;;  %7368 = vmatprep.subr.bf16.mxu0 %v9180_v13  ;;  %v9205_v14 = vld [vmem:[%s7835_s6 + $0x48] sm:$0xf]  ;;  %v9208_v9 = vld [vmem:[%s7835_s6 + $0x44] sm:$0x1]  ;;  %v9258_v7 = vpop.f32.mrb[1].mxu0 }
 0x115   : > { %v6675_v38 = vcombine.low %v4223_v15, %v4237_v49  ;;  %v4653_v39 = vsel %vm7869_vm4, %v4644_v21, %v4652_v34  ;;  %v4669_v42 = vrot.slane %v4667_v60, 6  ;;  %v4570_v17 = vrot.slane %v9132_v53, 5  ;;  %v9256_v15 = vld [vmem:[%s7835_s6 + $0x4c] sm:$0x3] }
 0x116   : > { %7411 = vmatpush3.bf16.msra.mxu1 %v9126_v25  ;;  %v4662_v41 = vrot.slane %v4661_v27, 4  ;;  %v6737_v18 = vrot.slane %v9147_v51, 9  ;;  %v4574_v29 = vrot.slane %v9138_v28, 5  ;;  %v4239_v4 = vshrl.u32 %v9199_v32, 16  ;;  %v9221_v25 = vld [vmem:[%s7835_s6 + $0x4c] sm:$0x1] }
 0x117   : > { %4503 = vmatprep.mubr.bf16.mxu0 %v6675_v38  ;;  %v4670_v53 = vor.u32 %v4669_v42, %v4666_v54  ;;  %v4571_v55 = vsel %vm7885_vm7, %v6736_v23, %v4570_v17  ;;  %7404 = vmatprep.subr.bf16.mxu1 %v9152_v63  ;;  %v4242_v51 = vshll.u32 %v9199_v32, 16  ;;  %v4248_v28 = vshll.u32 %v9208_v9, 16  ;;  %v9269_v54 = vpop.f32.mrb[1].mxu1  ;;  %v9278_v23 = vpop.f32.mrb[2].mxu0 }
 0x118   : > { %4504 = vmatmul.mubr.bf16.gmra.mrb[84].mxu0 %v6671_v33  ;;  %v4575_v3 = vsel %vm7885_vm7, %v6737_v18, %v4574_v29  ;;  %v4241_v6 = vrot.slane %v4239_v4, 4  ;;  %v4253_v63 = vshrl.u32 %v9205_v14, 16  ;;  %v4256_v47 = vshll.u32 %v9205_v14, 16  ;;  %v9276_v33 = vld [vmem:[%s9621_s1 + $0x670] sm:$0xff]  }
 0x119   : > { %v4671_v40 = vsel %vm7869_vm4, %v4662_v41, %v4670_v53  ;;  %v6751_v0 = vcombine.low %v4571_v55, %v4575_v3  ;;  %7369 = vmatpush3.bf16.msra.mxu0 %v9196_v45  ;;  %v4244_v24 = vrot.slane %v4242_v51, 5  ;;  %v4250_v61 = vrot.slane %v4248_v28, 5 }
 0x11a   : > { %v6755_v1 = vcombine.low %v4653_v39, %v4671_v40  ;;  %7412 = vmatpush3.bf16.msra.mxu1 %v9169_v30  ;;  %v4255_v16 = vrot.slane %v4253_v63, 4  ;;  %v4258_v22 = vrot.slane %v4256_v47, 5  ;;  %v4262_v12 = vshll.u32 %v9221_v25, 16  ;;  %7370 = vmatprep.subr.bf16.mxu0 %v7663_v26  ;;  %v9267_v30 = vld [vmem:[%s9621_s1 + $0x628] sm:$0xff]   ;;  %v9294_v47 = vld [vmem:[%s9621_s1 + $0x630] sm:$0xff]   ;;  %v9299_v40 = vld [vmem:[%s9621_s1 + $0x678] sm:$0xff]  }
 0x11b   : > { %7405 = vmatprep.subr.bf16.mxu1 %v9180_v13  ;;  %v4245_v5 = vor.u32 %v4244_v24, %v4241_v6  ;;  %v4673_v11 = vshrl.u32 %v9226_v50, 16  ;;  %v4676_v21 = vshll.u32 %v9226_v50, 16  ;;  %v4682_v34 = vshrl.u32 %v9238_v48, 16 }
 0x11c   : > { %4945 = vmatprep.mubr.bf16.mxu1 %v6755_v1  ;;  %v4259_v60 = vor.u32 %v4258_v22, %v4255_v16  ;;  %v4264_v49 = vrot.slane %v4262_v12, 5  ;;  %v4685_v27 = vshll.u32 %v9238_v48, 16  ;;  %v4691_v13 = vshrl.u32 %v9251_v44, 16  ;;  %v9303_v1 = vld [vmem:[%s7835_s6 + $0x50] sm:$0xf]  ;;  %v9305_v16 = vpop.f32.mrb[2].mxu1 }
 0x11d   : > { %4946 = vmatmul.mubr.bf16.gmra.mrb[84].mxu1 %v6751_v0  ;;  %v4246_v38 = vrot.slane %v4245_v5, 4  ;;  %v4675_v39 = vrot.slane %v4673_v11, 5  ;;  %v4678_v42 = vrot.slane %v4676_v21, 6  ;;  %v4684_v17 = vrot.slane %v4682_v34, 5  ;;  %7371 = vmatpush3.bf16.msra.mxu0 %v9231_v59  ;;  %v9313_v21 = vld [vmem:[%s7835_s6 + $0x58] sm:$0xf] }
 0x11e   : > { %7413 = vmatpush3.bf16.msra.mxu1 %v9196_v45  ;;  %v4260_v41 = vrot.slane %v4259_v60, 4  ;;  %v4687_v18 = vrot.slane %v4685_v27, 6  ;;  %v4693_v29 = vrot.slane %v4691_v13, 5  ;;  %v4694_v4 = vshll.u32 %v9251_v44, 16  ;;  %7372 = vmatprep.subr.bf16.mxu0 %v9243_v57  ;;  %v9316_v34 = vld [vmem:[%s7835_s6 + $0x54] sm:$0x1] }
 0x11f   : > { %v4251_v53 = vsel %vm7891_vm8, %v4246_v38, %v4250_v61  ;;  %v4679_v55 = vor.u32 %v4678_v42, %v4675_v39  ;;  %v4700_v51 = vshrl.u32 %v9256_v15, 16  ;;  %v4703_v28 = vshll.u32 %v9256_v15, 16  ;;  %7406 = vmatprep.subr.bf16.mxu1 %v7663_v26 }
 0x120   : > { %v5008_v3 = vrot.slane %v9099_v43, 6  ;;  %v4265_v45 = vsel %vm7891_vm8, %v4260_v41, %v4264_v49  ;;  %v4688_v6 = vor.u32 %v4687_v18, %v4684_v17  ;;  %v4696_v63 = vrot.slane %v4694_v4, 6 }
 0x121   : > { %v6676_v26 = vcombine.low %v4251_v53, %v4265_v45  ;;  %v4680_v0 = vrot.slane %v4679_v55, 4  ;;  %v4702_v24 = vrot.slane %v4700_v51, 5  ;;  %v4705_v61 = vrot.slane %v4703_v28, 6  ;;  %7373 = vmatpush3.bf16.msra.mxu0 %v9267_v30 }
 0x122   : > { %v4697_v22 = vor.u32 %v4696_v63, %v4693_v29  ;;  %v5020_v12 = vrot.slane %v9238_v48, 6  ;;  %v6672_v5 = vcombine.low %v9199_v32, %v9205_v14  ;;  %v6738_v11 = vrot.slane %v9226_v50, 9  ;;  %7414 = vmatpush3.bf16.msra.mxu1 %v9231_v59  ;;  %7374 = vmatprep.subr.bf16.mxu0 %v9276_v33  ;;  %v9325_v14 = vld [vmem:[%s7835_s6 + $0x5c] sm:$0x1]  ;;  %v9328_v50 = vld [vmem:[%s7835_s6 + $0x50] sm:$0xe] }
 0x123   : > { %4511 = vmatprep.mubr.bf16.mxu0 %v6676_v26  ;;  %v4689_v60 = vsel %vm7869_vm4, %v4680_v0, %v4688_v6  ;;  %v4706_v49 = vor.u32 %v4705_v61, %v4702_v24  ;;  %v4578_v27 = vrot.slane %v9208_v9, 5  ;;  %v6739_v32 = vrot.slane %v9251_v44, 9  ;;  %7407 = vmatprep.subr.bf16.mxu1 %v9243_v57  ;;  %v9333_v59 = vld [vmem:[%s9621_s1 + $0x638] sm:$0xff]   ;;  %v9342_v57 = vld [vmem:[%s7835_s6 + $0x54] sm:$0x3] }
 0x124   : > { %v4698_v13 = vrot.slane %v4697_v22, 4  ;;  %4512 = vmatmul.mubr.bf16.gmra.mrb[88].mxu0 %v6672_v5  ;;  %v4582_v38 = vrot.slane %v9221_v25, 5  ;;  %v4267_v39 = vshrl.u32 %v9303_v1, 16  ;;  %v4270_v9 = vshll.u32 %v9303_v1, 16  ;;  %v9339_v44 = vld [vmem:[%s7835_s6 + $0x58] sm:$0xe] }
 0x125   : > { %v4579_v42 = vsel %vm7885_vm7, %v6738_v11, %v4578_v27  ;;  %v4276_v17 = vshll.u32 %v9316_v34, 16  ;;  %v4281_v41 = vshrl.u32 %v9313_v21, 16  ;;  %v4284_v18 = vshll.u32 %v9313_v21, 16  ;;  %7375 = vmatpush3.bf16.msra.mxu0 %v9294_v47  ;;  %v9350_v25 = vpop.f32.mrb[3].mxu0  ;;  %v9359_v63 = vld [vmem:[%s7835_s6 + $0x5c] sm:$0x3] }
 0x126   : > { %v4707_v29 = vsel %vm7869_vm4, %v4698_v13, %v4706_v49  ;;  %v4583_v4 = vsel %vm7885_vm7, %v6739_v32, %v4582_v38  ;;  %7415 = vmatpush3.bf16.msra.mxu1 %v9267_v30  ;;  %v4269_v53 = vrot.slane %v4267_v39, 4  ;;  %v4272_v55 = vrot.slane %v4270_v9, 5  ;;  %7376 = vmatprep.subr.bf16.mxu0 %v9299_v40  ;;  %v9364_v22 = vpop.f32.mrb[3].mxu1  ;;  %v9371_v13 = vpop.f32.mrb[4].mxu0 }
 0x127   : > { %v6756_v51 = vcombine.low %v4689_v60, %v4707_v29  ;;  %v6752_v28 = vcombine.low %v4579_v42, %v4583_v4  ;;  %v4278_v45 = vrot.slane %v4276_v17, 5  ;;  %v4283_v6 = vrot.slane %v4281_v41, 4  ;;  %7408 = vmatprep.subr.bf16.mxu1 %v9276_v33  ;;  %v9379_v4 = vpop.f32.mrb[4].mxu1 }
 0x128   : > { %v4273_v26 = vor.u32 %v4272_v55, %v4269_v53  ;;  %v4286_v0 = vrot.slane %v4284_v18, 5  ;;  %v4290_v24 = vshll.u32 %v9325_v14, 16  ;;  %v4709_v61 = vshrl.u32 %v9328_v50, 16 }
 0x129   : > { %4953 = vmatprep.mubr.bf16.mxu1 %v6756_v51  ;;  %v4712_v30 = vshll.u32 %v9328_v50, 16  ;;  %v4718_v5 = vshrl.u32 %v9342_v57, 16  ;;  %v4721_v11 = vshll.u32 %v9342_v57, 16  ;;  %v4727_v60 = vshrl.u32 %v9339_v44, 16  ;;  %7377 = vmatpush3.bf16.msra.mxu0 %v9333_v59 }
 0x12a   : > { %4954 = vmatmul.mubr.bf16.gmra.mrb[88].mxu1 %v6752_v28  ;;  %v4274_v33 = vrot.slane %v4273_v26, 4  ;;  %v4287_v49 = vor.u32 %v4286_v0, %v4283_v6  ;;  %v4292_v27 = vrot.slane %v4290_v24, 5  ;;  %v4711_v32 = vrot.slane %v4709_v61, 5  ;;  %v6806_v28 = vld [vmem:[%s7835_s6 + $0x20] sm:$0xc]  ;;  %v9386_v6 = vpop.f32.mrb[5].mxu0 }
 0x12b   : > { %v4714_v38 = vrot.slane %v4712_v30, 6  ;;  %v4720_v39 = vrot.slane %v4718_v5, 5  ;;  %v4723_v9 = vrot.slane %v4721_v11, 6  ;;  %v4729_v42 = vrot.slane %v4727_v60, 5  ;;  %7416 = vmatpush3.bf16.msra.mxu1 %v9294_v47  ;;  %v6810_v61 = vld [vmem:[%s7835_s6 + $0x40] sm:$0xc] }
 0x12c   : > { %v4279_v17 = vsel %vm7891_vm8, %v4274_v33, %v4278_v45  ;;  %v4288_v41 = vrot.slane %v4287_v49, 4  ;;  %v4730_v18 = vshll.u32 %v9339_v44, 16  ;;  %v4736_v29 = vshrl.u32 %v9359_v63, 16  ;;  %7409 = vmatprep.subr.bf16.mxu1 %v9299_v40  ;;  %v6807_v45 = vld [vmem:[%s7835_s6 + $0x28] sm:$0xc]  ;;  %v9392_v30 = vpop.f32.mrb[5].mxu1 }
 0x12d   : > { %v4715_v53 = vor.u32 %v4714_v38, %v4711_v32  ;;  %v4724_v55 = vor.u32 %v4723_v9, %v4720_v39  ;;  %v4739_v51 = vshll.u32 %v9359_v63, 16  ;;  %v6673_v47 = vcombine.low %v9303_v1, %v9313_v21  ;;  %v6811_v21 = vld [vmem:[%s7835_s6 + $0x48] sm:$0xc]  ;;  %v9397_v33 = vpop.f32.mrb[6].mxu0  ;;  %v6808_v32 = vld [vmem:[%s7835_s6 + $0x30] sm:$0xc] }
 0x12e   : > { %v4293_v26 = vsel %vm7891_vm8, %v4288_v41, %v4292_v27  ;;  %v4732_v0 = vrot.slane %v4730_v18, 6  ;;  %v4738_v40 = vrot.slane %v4736_v29, 5  ;;  %v6740_v24 = vrot.slane %v9328_v50, 9  ;;  %v9402_v38 = vpop.f32.mrb[6].mxu1  ;;  %v6809_v29 = vld [vmem:[%s7835_s6 + $0x38] sm:$0xc] }
 0x12f   : > { %v6677_v5 = vcombine.low %v4279_v17, %v4293_v26  ;;  %v4716_v11 = vrot.slane %v4715_v53, 4  ;;  %v4741_v60 = vrot.slane %v4739_v51, 6  ;;  %v4586_v1 = vrot.slane %v9316_v34, 5  ;;  %7417 = vmatpush3.bf16.msra.mxu1 %v9333_v59  ;;  %v6908_v17 = vpop.f32.mrb[7].mxu0 }
 0x130   : > { %v4733_v20 = vor.u32 %v4732_v0, %v4729_v42  ;;  %v6741_v49 = vrot.slane %v9339_v44, 9  ;;  %v4590_v27 = vrot.slane %v9325_v14, 5  ;;  %v6814_v50 = vrot.slane %v6806_v28, 10  ;;  %v6948_v42 = vpop.f32.mrb[7].mxu1  ;;  %v6812_v28 = vld [vmem:[%s7835_s6 + $0x50] sm:$0xc] }
 0x131   : > { %v5024_v39 = vrot.slane %v9256_v15, 6  ;;  %4519 = vmatprep.mubr.bf16.mxu0 %v6677_v5  ;;  %v4742_v9 = vor.u32 %v4741_v60, %v4738_v40  ;;  %v4587_v34 = vsel %vm7885_vm7, %v6740_v24, %v4586_v1  ;;  %v6815_v59 = vrot.slane %v6807_v45, 10  ;;  %v6910_v15 = vpop.f32.mrb[8].mxu0  ;;  %v6950_v53 = vpop.f32.mrb[8].mxu1  ;;  %v9437_v5 = vld [vmem:[%s7835_s6 + $0x58] sm:$0xc] }
 0x132   : > { %v4725_v44 = vsel %vm7869_vm4, %v4716_v11, %v4724_v55  ;;  %v4734_v14 = vrot.slane %v4733_v20, 4  ;;  %4520 = vmatmul.mubr.bf16.gmra.mrb[92].mxu0 %v6673_v47  ;;  %v4591_v41 = vsel %vm7885_vm7, %v6741_v49, %v4590_v27  ;;  %v6818_v18 = vrot.slane %v6810_v61, 10  ;;  %v6911_v45 = vpop.f32.mrb[9].mxu0  ;;  %v6951_v26 = vpop.f32.mrb[9].mxu1 }
 0x133   : > { %5211 = vmatprep.mubr.bf16.mxu0 %v7914_v36  ;;  %v5005_v51 = vsel %vm8165_vm11, %v6814_v50, %v5004_v46  ;;  %v5009_v55 = vsel %vm8165_vm11, %v6815_v59, %v5008_v3  ;;  %v6819_v47 = vrot.slane %v6811_v21, 10  ;;  %v6816_v19 = vrot.slane %v6808_v32, 10  ;;  %v6913_v46 = vpop.f32.mrb[10].mxu0  ;;  %v6953_v3 = vpop.f32.mrb[10].mxu1 }
 0x134   : > { %v4743_v0 = vsel %vm7869_vm4, %v4734_v14, %v4742_v9  ;;  %v6753_v36 = vcombine.low %v4587_v34, %v4591_v41  ;;  %v9428_v37 = vsel %vm8165_vm11, %v6818_v18, %v5020_v12  ;;  %v5012_v43 = vrot.slane %v9157_v35, 6  ;;  %v6914_v11 = vpop.f32.mrb[11].mxu0  ;;  %v6954_v48 = vpop.f32.mrb[11].mxu1 }
 0x135   : > { %v6757_v40 = vcombine.low %v4725_v44, %v4743_v0  ;;  %v9433_v24 = vsel %vm8165_vm11, %v6819_v47, %v5024_v39  ;;  %v6817_v61 = vrot.slane %v6809_v29, 10  ;;  %v5016_v58 = vrot.slane %v9163_v10, 6  ;;  %v6916_v21 = vpop.f32.mrb[12].mxu0  ;;  %v6956_v20 = vpop.f32.mrb[12].mxu1 }
 0x136   : > { %v6822_v60 = vcombine.low %v5005_v51, %v5009_v55  ;;  %v9441_v12 = vsel %vm8165_vm11, %v6816_v19, %v5012_v43  ;;  %v6820_v35 = vrot.slane %v6812_v28, 10  ;;  %v5028_v1 = vrot.slane %v9342_v57, 6  ;;  %v6917_v50 = vpop.f32.mrb[13].mxu0  ;;  %v6957_v32 = vpop.f32.mrb[13].mxu1 }
 0x137   : > { %4961 = vmatprep.mubr.bf16.mxu1 %v6757_v40  ;;  %v6824_v49 = vcombine.low %v9428_v37, %v9433_v24  ;;  %v9448_v10 = vsel %vm8165_vm11, %v6817_v61, %v5016_v58  ;;  %v6900_v27 = vadd.f32 %v9258_v7, %v8877_v2  ;;  %v6821_v39 = vrot.slane %v9437_v5, 10  ;;  %v6919_v59 = vpop.f32.mrb[14].mxu0  ;;  %v6959_v44 = vpop.f32.mrb[14].mxu1 }
 0x138   : > { %4962 = vmatmul.mubr.bf16.gmra.mrb[92].mxu1 %v6753_v36  ;;  %v5032_v57 = vrot.slane %v9359_v63, 6  ;;  %v6940_v9 = vadd.f32 %v9269_v54, %v9245_v56  ;;  %v6903_v34 = vadd.f32 %v9350_v25, %v9278_v23  ;;  %v6823_v2 = vcombine.low %v9441_v12, %v9448_v10  ;;  %v6920_v56 = vpop.f32.mrb[15].mxu0  ;;  %v6960_v54 = vpop.f32.mrb[15].mxu1 }
 0x139   : > { %5227 = vmatprep.mubr.bf16.mxu1 %v8073_v8  ;;  %v6943_v7 = vadd.f32 %v9364_v22, %v9305_v16  ;;  %v6906_v14 = vadd.f32 %v9386_v6, %v9371_v13  ;;  %v6946_v63 = vadd.f32 %v9392_v30, %v9379_v4  ;;  %v9469_v23 = vsel %vm8165_vm11, %v6820_v35, %v5028_v1  ;;  %v6978_v18 = vpop.f32.mrb[16].mxu0  ;;  %v7018_v16 = vpop.f32.mrb[16].mxu1 }
 0x13a   : > { %5212 = vmatmul.mubr.bf16.vlgmr.msra.gmra.mrb[96].mxu0 %v6822_v60  ;;  %v973_v8 = vadd.f32 %v6940_v9, %v6900_v27  ;;  %v6909_v25 = vadd.f32 %v6908_v17, %v9397_v33  ;;  %v6949_v41 = vadd.f32 %v6948_v42, %v9402_v38  ;;  %v6912_v6 = vadd.f32 %v6911_v45, %v6910_v15  ;;  %v6979_v30 = vpop.f32.mrb[17].mxu0  ;;  %v7019_v29 = vpop.f32.mrb[17].mxu1 }
 0x13b   : > { %5219 = vmatprep.mubr.bf16.mxu0 %v7998_v52  ;;  %v976_v22 = vadd.f32 %v6943_v7, %v6903_v34  ;;  %v981_v13 = vadd.f32 %v6946_v63, %v6906_v14  ;;  %v6952_v4 = vadd.f32 %v6951_v26, %v6950_v53  ;;  %v6915_v55 = vadd.f32 %v6914_v11, %v6913_v46  ;;  %v6981_v28 = vpop.f32.mrb[18].mxu0  ;;  %v7021_v0 = vpop.f32.mrb[18].mxu1 }
 0x13c   : > { %v984_v51 = vadd.f32 %v6949_v41, %v6909_v25  ;;  %v6955_v47 = vadd.f32 %v6954_v48, %v6953_v3  ;;  %v6918_v19 = vadd.f32 %v6917_v50, %v6916_v21  ;;  %v6958_v33 = vadd.f32 %v6957_v32, %v6956_v20  ;;  %v6982_v42 = vpop.f32.mrb[19].mxu0  ;;  %v7022_v37 = vpop.f32.mrb[19].mxu1 }
 0x13d   : > { %v989_v36 = vadd.f32 %v6952_v4, %v6912_v6  ;;  %v6921_v17 = vadd.f32 %v6920_v56, %v6919_v59  ;;  %v6961_v38 = vadd.f32 %v6960_v54, %v6959_v44  ;;  %v6980_v52 = vadd.f32 %v6979_v30, %v6978_v18  ;;  %v6984_v15 = vpop.f32.mrb[20].mxu0  ;;  %v7024_v53 = vpop.f32.mrb[20].mxu1 }
 0x13e   : > { %v992_v43 = vadd.f32 %v6955_v47, %v6915_v55  ;;  %v7020_v40 = vadd.f32 %v7019_v29, %v7018_v16  ;;  %v6983_v24 = vadd.f32 %v6982_v42, %v6981_v28  ;;  %v5033_v45 = vsel %vm8165_vm11, %v6821_v39, %v5032_v57  ;;  %v6985_v61 = vpop.f32.mrb[21].mxu0  ;;  %v7025_v58 = vpop.f32.mrb[21].mxu1 }
 0x13f   : > { %v997_v26 = vadd.f32 %v6958_v33, %v6918_v19  ;;  %v1000_v46 = vadd.f32 %v6961_v38, %v6921_v17  ;;  %v7023_v3 = vadd.f32 %v7022_v37, %v7021_v0  ;;  %v1308_v5 = vadd.f32 %v6980_v52, %v973_v8  ;;  %v6987_v12 = vpop.f32.mrb[22].mxu0  ;;  %v7027_v35 = vpop.f32.mrb[22].mxu1 }
 0x140   : > { %5228 = vmatmul.mubr.bf16.vlgmr.msra.gmra.mrb[96].mxu1 %v6824_v49  ;;  %v1309_v11 = vadd.f32 %v6983_v24, %v976_v22  ;;  %v6986_v48 = vadd.f32 %v6985_v61, %v6984_v15  ;;  %v7026_v60 = vadd.f32 %v7025_v58, %v7024_v53  ;;  %v6988_v1 = vpop.f32.mrb[23].mxu0  ;;  %v7028_v21 = vpop.f32.mrb[23].mxu1  ;;  %v6825_v39 = vcombine.low %v9469_v23, %v5033_v45 }
 0x141   : > { %5235 = vmatprep.mubr.bf16.mxu1 %v8147_v31  ;;  %v1726_v20 = vadd.f32 %v7020_v40, %v1308_v5  ;;  %v6989_v27 = vadd.f32 %v6988_v1, %v6987_v12  ;;  %v6990_v50 = vpop.f32.mrb[24].mxu0  ;;  %v7030_v32 = vpop.f32.mrb[24].mxu1  ;;  %v7029_v49 = vadd.f32 %v7028_v21, %v7027_v35 }
 0x142   : > { %5220 = vmatmul.mubr.bf16.gmra.mrb[100].mxu0 %v6823_v2  ;;  %v1727_v62 = vadd.f32 %v7023_v3, %v1309_v11  ;;  %v1310_v10 = vadd.f32 %v6986_v48, %v981_v13  ;;  %v6991_v57 = vpop.f32.mrb[25].mxu0  ;;  %v7031_v9 = vpop.f32.mrb[25].mxu1 }
 0x143   : > { %v1311_v59 = vadd.f32 %v6989_v27, %v984_v51  ;;  %v6992_v44 = vadd.f32 %v6991_v57, %v6990_v50  ;;  %v7032_v7 = vadd.f32 %v7031_v9, %v7030_v32  ;;  %v6993_v14 = vpop.f32.mrb[26].mxu0  ;;  %v7033_v31 = vpop.f32.mrb[26].mxu1 }
 0x144   : > { %v1728_v34 = vadd.f32 %v7026_v60, %v1310_v10  ;;  %v6994_v63 = vpop.f32.mrb[27].mxu0  ;;  %v7034_v56 = vpop.f32.mrb[27].mxu1 }
 0x145   : > { %v1729_v2 = vadd.f32 %v7029_v49, %v1311_v59  ;;  %v1312_v54 = vadd.f32 %v6992_v44, %v989_v36  ;;  %v6995_v8 = vadd.f32 %v6994_v63, %v6993_v14  ;;  %v7035_v25 = vadd.f32 %v7034_v56, %v7033_v31  ;;  %v6996_v41 = vpop.f32.mrb[28].mxu0 }
 0x146   : > { %v6997_v16 = vpop.f32.mrb[29].mxu0 }
 0x147   : > { %v7036_v18 = vpop.f32.mrb[28].mxu1  ;;  %v1730_v23 = vadd.f32 %v7032_v7, %v1312_v54  ;;  %v1313_v13 = vadd.f32 %v6995_v8, %v992_v43  ;;  %v6998_v6 = vadd.f32 %v6997_v16, %v6996_v41  ;;  %v6999_v30 = vpop.f32.mrb[30].mxu0 }
 0x148   : > { %v7037_v22 = vpop.f32.mrb[29].mxu1  ;;  %5236 = vmatmul.mubr.bf16.gmra.mrb[100].mxu1 %v6825_v39  ;;  %v7000_v51 = vpop.f32.mrb[31].mxu0 }
 0x149   : > { %v7038_v4 = vadd.f32 %v7037_v22, %v7036_v18  ;;  %v7039_v29 = vpop.f32.mrb[30].mxu1  ;;  %v1731_v47 = vadd.f32 %v7035_v25, %v1313_v13  ;;  %v1314_v19 = vadd.f32 %v6998_v6, %v997_v26  ;;  %v7001_v28 = vadd.f32 %v7000_v51, %v6999_v30 }
 0x14a   : > { %v7040_v55 = vpop.f32.mrb[31].mxu1 }
 0x14b   : > { %v7041_v0 = vadd.f32 %v7040_v55, %v7039_v29  ;;  %v7058_v36 = vpop.f32.mrb[32].mxu0  ;;  %v1732_v42 = vadd.f32 %v7038_v4, %v1314_v19  ;;  %v1315_v37 = vadd.f32 %v7001_v28, %v1000_v46 }
 0x14c   : > { %v7059_v17 = vpop.f32.mrb[33].mxu0 }
 0x14d   : > { %v7060_v52 = vadd.f32 %v7059_v17, %v7058_v36  ;;  %v7061_v24 = vpop.f32.mrb[34].mxu0  ;;  %v1733_v45 = vadd.f32 %v7041_v0, %v1315_v37 }
 0x14e   : > { %v7062_v15 = vpop.f32.mrb[35].mxu0 }
 0x14f   : > { %v2168_v3 = vadd.f32 %v7060_v52, %v1726_v20  ;;  %v7063_v61 = vadd.f32 %v7062_v15, %v7061_v24 }
 0x151   : > { %v7098_v33 = vpop.f32.mrb[32].mxu1  ;;  %v2169_v12 = vadd.f32 %v7063_v61, %v1727_v62 }
 0x152   : > { %v7099_v38 = vpop.f32.mrb[33].mxu1 }
 0x153   : > { %v7100_v40 = vadd.f32 %v7099_v38, %v7098_v33  ;;  %v7101_v43 = vpop.f32.mrb[34].mxu1 }
 0x154   : > { %v7102_v53 = vpop.f32.mrb[35].mxu1 }
 0x155   : > { %v7103_v58 = vadd.f32 %v7102_v53, %v7101_v43  ;;  %v2542_v60 = vadd.f32 %v7100_v40, %v2168_v3 }
 0x157   : > { %v2543_v50 = vadd.f32 %v7103_v58, %v2169_v12 }
 0x159   : > { %v7104_v26 = vpop.f32.mrb[36].mxu1 }
 0x15a   : > { %v7105_v48 = vpop.f32.mrb[37].mxu1 }
 0x15b   : > { %v7106_v1 = vadd.f32 %v7105_v48, %v7104_v26  ;;  %v7107_v46 = vpop.f32.mrb[38].mxu1 }
 0x15c   : > { %v7064_v5 = vpop.f32.mrb[36].mxu0  ;;  %v7108_v27 = vpop.f32.mrb[39].mxu1 }
 0x15d   : > { %v7065_v11 = vpop.f32.mrb[37].mxu0  ;;  %v7109_v49 = vadd.f32 %v7108_v27, %v7107_v46 }
 0x15e   : > { %v7066_v35 = vadd.f32 %v7065_v11, %v7064_v5  ;;  %v7067_v21 = vpop.f32.mrb[38].mxu0 }
 0x15f   : > { %v7068_v10 = vpop.f32.mrb[39].mxu0 }
 0x160   : > { %v2170_v32 = vadd.f32 %v7066_v35, %v1728_v34  ;;  %v7069_v39 = vadd.f32 %v7068_v10, %v7067_v21 }
 0x162   : > { %v2544_v44 = vadd.f32 %v7106_v1, %v2170_v32  ;;  %v2171_v7 = vadd.f32 %v7069_v39, %v1729_v2 }
 0x164   : > { %v2545_v8 = vadd.f32 %v7109_v49, %v2171_v7 }
 0x165   : > { %v7110_v20 = vpop.f32.mrb[40].mxu1 }
 0x166   : > { %v7111_v59 = vpop.f32.mrb[41].mxu1 }
 0x167   : > { %v7112_v31 = vadd.f32 %v7111_v59, %v7110_v20  ;;  %v7113_v62 = vpop.f32.mrb[42].mxu1 }
 0x168   : > { %v7114_v54 = vpop.f32.mrb[43].mxu1 }
 0x169   : > { %v7070_v57 = vpop.f32.mrb[40].mxu0  ;;  %v7115_v18 = vadd.f32 %v7114_v54, %v7113_v62 }
 0x16a   : > { %v7071_v9 = vpop.f32.mrb[41].mxu0 }
 0x16b   : > { %v7072_v14 = vadd.f32 %v7071_v9, %v7070_v57  ;;  %v7073_v63 = vpop.f32.mrb[42].mxu0 }
 0x16c   : > { %v7074_v56 = vpop.f32.mrb[43].mxu0 }
 0x16d   : > { %v2172_v25 = vadd.f32 %v7072_v14, %v1730_v23  ;;  %v7075_v41 = vadd.f32 %v7074_v56, %v7073_v63 }
 0x16f   : > { %v2546_v13 = vadd.f32 %v7112_v31, %v2172_v25  ;;  %v2173_v6 = vadd.f32 %v7075_v41, %v1731_v47 }
 0x171   : > { %v2547_v19 = vadd.f32 %v7115_v18, %v2173_v6 }
 0x172   : > { %v7116_v16 = vpop.f32.mrb[44].mxu1 }
 0x173   : > { %v7117_v22 = vpop.f32.mrb[45].mxu1 }
 0x174   : > { %v7118_v30 = vadd.f32 %v7117_v22, %v7116_v16  ;;  %v7119_v29 = vpop.f32.mrb[46].mxu1 }
 0x175   : > { %v7120_v55 = vpop.f32.mrb[47].mxu1 }
 0x176   : > { %v7076_v34 = vpop.f32.mrb[44].mxu0  ;;  %v7121_v0 = vadd.f32 %v7120_v55, %v7119_v29 }
 0x177   : > { %v7077_v4 = vpop.f32.mrb[45].mxu0 }
 0x178   : > { %v7078_v51 = vadd.f32 %v7077_v4, %v7076_v34  ;;  %v7079_v2 = vpop.f32.mrb[46].mxu0 }
 0x179   : > { %v7080_v28 = vpop.f32.mrb[47].mxu0 }
 0x17a   : > { %v2174_v36 = vadd.f32 %v7078_v51, %v1732_v42  ;;  %v7081_v33 = vadd.f32 %v7080_v28, %v7079_v2 }
 0x17c   : > { %v2548_v17 = vadd.f32 %v7118_v30, %v2174_v36  ;;  %v2175_v23 = vadd.f32 %v7081_v33, %v1733_v45  ;;  %v7178_v37 = vpop.f32.mrb[48].mxu1 }
 0x17d   : > { %v7179_v52 = vpop.f32.mrb[49].mxu1 }
 0x17e   : > { %v9478_v38 = vadd.f32 %v7121_v0, %v2175_v23  ;;  %v7138_v40 = vpop.f32.mrb[48].mxu0  ;;  %v7180_v24 = vadd.f32 %v7179_v52, %v7178_v37  ;;  %v7181_v47 = vpop.f32.mrb[50].mxu1 }
 0x17f   : > { %v7139_v43 = vpop.f32.mrb[49].mxu0  ;;  %v7182_v15 = vpop.f32.mrb[51].mxu1 }
 0x180   : > { %v7140_v53 = vadd.f32 %v7139_v43, %v7138_v40  ;;  %v7141_v3 = vpop.f32.mrb[50].mxu0  ;;  %v7183_v61 = vadd.f32 %v7182_v15, %v7181_v47 }
 0x181   : > { %v7142_v58 = vpop.f32.mrb[51].mxu0 }
 0x182   : > { %v2984_v5 = vadd.f32 %v7140_v53, %v2542_v60  ;;  %v7143_v26 = vadd.f32 %v7142_v58, %v7141_v3 }
 0x184   : > { %v3294_v11 = vadd.f32 %v7180_v24, %v2984_v5  ;;  %v2985_v42 = vadd.f32 %v7143_v26, %v2543_v50 }
 0x186   : > { %v9480_v48 = vadd.f32 %v7183_v61, %v2985_v42  ;;  %v7184_v45 = vpop.f32.mrb[52].mxu1 }
 0x187   : > { %v7185_v35 = vpop.f32.mrb[53].mxu1 }
 0x188   : > { %v7144_v12 = vpop.f32.mrb[52].mxu0  ;;  %v7186_v21 = vadd.f32 %v7185_v35, %v7184_v45  ;;  %v7187_v46 = vpop.f32.mrb[54].mxu1 }
 0x189   : > { %v7145_v1 = vpop.f32.mrb[53].mxu0  ;;  %v7188_v32 = vpop.f32.mrb[55].mxu1 }
 0x18a   : > { %v7146_v10 = vadd.f32 %v7145_v1, %v7144_v12  ;;  %v7147_v27 = vpop.f32.mrb[54].mxu0  ;;  %v7189_v49 = vadd.f32 %v7188_v32, %v7187_v46 }
 0x18b   : > { %v7148_v39 = vpop.f32.mrb[55].mxu0 }
 0x18c   : > { %v2986_v57 = vadd.f32 %v7146_v10, %v2544_v44  ;;  %v7149_v20 = vadd.f32 %v7148_v39, %v7147_v27 }
 0x18e   : > { %v3296_v9 = vadd.f32 %v7186_v21, %v2986_v57  ;;  %v2987_v60 = vadd.f32 %v7149_v20, %v2545_v8 }
 0x190   : > { %v3297_v59 = vadd.f32 %v7189_v49, %v2987_v60  ;;  %v7190_v7 = vpop.f32.mrb[56].mxu1 }
 0x191   : > { %v7150_v50 = vpop.f32.mrb[56].mxu0  ;;  %v7191_v14 = vpop.f32.mrb[57].mxu1 }
 0x192   : > { %v7151_v31 = vpop.f32.mrb[57].mxu0  ;;  %v7192_v63 = vadd.f32 %v7191_v14, %v7190_v7  ;;  %v7193_v62 = vpop.f32.mrb[58].mxu1 }
 0x193   : > { %v7152_v56 = vadd.f32 %v7151_v31, %v7150_v50  ;;  %v7153_v54 = vpop.f32.mrb[58].mxu0  ;;  %v7194_v25 = vpop.f32.mrb[59].mxu1 }
 0x194   : > { %v7154_v41 = vpop.f32.mrb[59].mxu0  ;;  %v7195_v18 = vadd.f32 %v7194_v25, %v7193_v62 }
 0x195   : > { %v2988_v16 = vadd.f32 %v7152_v56, %v2546_v13  ;;  %v7155_v34 = vadd.f32 %v7154_v41, %v7153_v54 }
 0x197   : > { %v3298_v22 = vadd.f32 %v7192_v63, %v2988_v16  ;;  %v2989_v6 = vadd.f32 %v7155_v34, %v2547_v19 }
 0x199   : > { %v3299_v44 = vadd.f32 %v7195_v18, %v2989_v6  ;;  %v7196_v4 = vpop.f32.mrb[60].mxu1 }
 0x19a   : > { %v7197_v8 = vpop.f32.mrb[61].mxu1 }
 0x19b   : > { %v7156_v30 = vpop.f32.mrb[60].mxu0  ;;  %v7198_v51 = vadd.f32 %v7197_v8, %v7196_v4  ;;  %v7199_v2 = vpop.f32.mrb[62].mxu1 }
 0x19c   : > { %v7157_v29 = vpop.f32.mrb[61].mxu0  ;;  %v7200_v0 = vpop.f32.mrb[63].mxu1 }
 0x19d   : > { %v7158_v55 = vadd.f32 %v7157_v29, %v7156_v30  ;;  %v7159_v28 = vpop.f32.mrb[62].mxu0  ;;  %v7201_v33 = vadd.f32 %v7200_v0, %v7199_v2 }
 0x19e   : > { %v7160_v36 = vpop.f32.mrb[63].mxu0 }
 0x19f   : > { %v2990_v23 = vadd.f32 %v7158_v55, %v2548_v17  ;;  %v7161_v37 = vadd.f32 %v7160_v36, %v7159_v28 }
 0x1a1   : > { %v3300_v52 = vadd.f32 %v7198_v51, %v2990_v23  ;;  %v2991_v13 = vadd.f32 %v7161_v37, %v9478_v38 }
 0x1a3   : > { %v3301_v40 = vadd.f32 %v7201_v33, %v2991_v13 }
 0x1a5   : > { %v7258_v24 = vpop.f32.mrb[64].mxu1 }
 0x1a6   : > { %v7259_v19 = vpop.f32.mrb[65].mxu1 }
 0x1a7   : > { %v7260_v47 = vadd.f32 %v7259_v19, %v7258_v24  ;;  %v7261_v43 = vpop.f32.mrb[66].mxu1 }
 0x1a8   : > { %v7262_v15 = vpop.f32.mrb[67].mxu1 }
 0x1a9   : > { %v7263_v53 = vadd.f32 %v7262_v15, %v7261_v43 }
 0x1ac   : > { %v7218_v3 = vpop.f32.mrb[64].mxu0 }
 0x1ad   : > { %v7219_v61 = vpop.f32.mrb[65].mxu0 }
 0x1ae   : > { %v7220_v58 = vadd.f32 %v7219_v61, %v7218_v3  ;;  %v7221_v5 = vpop.f32.mrb[66].mxu0 }
 0x1af   : > { %v7222_v26 = vpop.f32.mrb[67].mxu0 }
 0x1b0   : > { %v3712_v42 = vadd.f32 %v7220_v58, %v3294_v11  ;;  %v7223_v45 = vadd.f32 %v7222_v26, %v7221_v5 }
 0x1b2   : > { %v4154_v12 = vadd.f32 %v7260_v47, %v3712_v42  ;;  %v3713_v17 = vadd.f32 %v7223_v45, %v9480_v48 }
 0x1b4   : > { %v4155_v35 = vadd.f32 %v7263_v53, %v3713_v17  ;;  %v7224_v1 = vpop.f32.mrb[68].mxu0 }
 0x1b5   : > { %v7225_v38 = vpop.f32.mrb[69].mxu0 }
 0x1b6   : > { %v7226_v21 = vadd.f32 %v7225_v38, %v7224_v1  ;;  %v7227_v46 = vpop.f32.mrb[70].mxu0 }
 0x1b7   : > { %v7228_v10 = vpop.f32.mrb[71].mxu0 }
 0x1b8   : > { %v3714_v27 = vadd.f32 %v7226_v21, %v3296_v9  ;;  %v7229_v32 = vadd.f32 %v7228_v10, %v7227_v46 }
 0x1ba   : > { %v7264_v39 = vpop.f32.mrb[68].mxu1  ;;  %v3715_v57 = vadd.f32 %v7229_v32, %v3297_v59 }
 0x1bb   : > { %v7265_v49 = vpop.f32.mrb[69].mxu1 }
 0x1bc   : > { %v7266_v20 = vadd.f32 %v7265_v49, %v7264_v39  ;;  %v7267_v60 = vpop.f32.mrb[70].mxu1 }
 0x1bd   : > { %v7268_v7 = vpop.f32.mrb[71].mxu1 }
 0x1be   : > { %v4156_v50 = vadd.f32 %v7266_v20, %v3714_v27  ;;  %v7269_v11 = vadd.f32 %v7268_v7, %v7267_v60 }
 0x1c0   : > { %v4157_v14 = vadd.f32 %v7269_v11, %v3715_v57 }
 0x1c3   : > { %v7230_v31 = vpop.f32.mrb[72].mxu0 }
 0x1c4   : > { %v7231_v63 = vpop.f32.mrb[73].mxu0 }
 0x1c5   : > { %v7232_v48 = vadd.f32 %v7231_v63, %v7230_v31  ;;  %v7233_v62 = vpop.f32.mrb[74].mxu0 }
 0x1c6   : > { %v7234_v56 = vpop.f32.mrb[75].mxu0 }
 0x1c7   : > { %v3716_v54 = vadd.f32 %v7232_v48, %v3298_v22  ;;  %v7235_v25 = vadd.f32 %v7234_v56, %v7233_v62 }
 0x1c8   : > { %v7270_v41 = vpop.f32.mrb[72].mxu1 }
 0x1c9   : > { %v7271_v18 = vpop.f32.mrb[73].mxu1  ;;  %v3717_v9 = vadd.f32 %v7235_v25, %v3299_v44 }
 0x1ca   : > { %v7272_v16 = vadd.f32 %v7271_v18, %v7270_v41  ;;  %v7273_v34 = vpop.f32.mrb[74].mxu1 }
 0x1cb   : > { %v7274_v6 = vpop.f32.mrb[75].mxu1 }
 0x1cc   : > { %v4158_v59 = vadd.f32 %v7272_v16, %v3716_v54  ;;  %v7275_v4 = vadd.f32 %v7274_v6, %v7273_v34 }
 0x1ce   : > { %v4159_v30 = vadd.f32 %v7275_v4, %v3717_v9 }
 0x1d1   : > { %v7236_v8 = vpop.f32.mrb[76].mxu0 }
 0x1d2   : > { %v7237_v29 = vpop.f32.mrb[77].mxu0 }
 0x1d3   : > { %v7238_v51 = vadd.f32 %v7237_v29, %v7236_v8  ;;  %v7239_v2 = vpop.f32.mrb[78].mxu0 }
 0x1d4   : > { %v7240_v55 = vpop.f32.mrb[79].mxu0 }
 0x1d5   : > { %v3718_v28 = vadd.f32 %v7238_v51, %v3300_v52  ;;  %v7241_v0 = vadd.f32 %v7240_v55, %v7239_v2 }
 0x1d6   : > { %v7276_v36 = vpop.f32.mrb[76].mxu1 }
 0x1d7   : > { %v3719_v33 = vadd.f32 %v7241_v0, %v3301_v40  ;;  %v7277_v22 = vpop.f32.mrb[77].mxu1 }
 0x1d8   : > { %v7278_v23 = vadd.f32 %v7277_v22, %v7276_v36  ;;  %v7279_v37 = vpop.f32.mrb[78].mxu1 }
 0x1d9   : > { %v7280_v13 = vpop.f32.mrb[79].mxu1 }
 0x1da   : > { %v4160_v44 = vadd.f32 %v7278_v23, %v3718_v28  ;;  %v7281_v24 = vadd.f32 %v7280_v13, %v7279_v37 }
 0x1dc   : > { %v4161_v19 = vadd.f32 %v7281_v24, %v3719_v33 }
 0x1dd   : > { %v7298_v47 = vpop.f32.mrb[80].mxu0 }
 0x1de   : > { %v7299_v43 = vpop.f32.mrb[81].mxu0 }
 0x1df   : > { %v7300_v15 = vadd.f32 %v7299_v43, %v7298_v47  ;;  %v7301_v53 = vpop.f32.mrb[82].mxu0  ;;  %v7696_v43 = vmov 1983009808  }
 0x1e0   : > { %v7302_v3 = vpop.f32.mrb[83].mxu0 }
 0x1e1   : > { %v4528_v61 = vadd.f32 %v7300_v15, %v4154_v12  ;;  %v7303_v58 = vadd.f32 %v7302_v3, %v7301_v53  ;;  %v5285_v15 = vunpack.c.l.s4 %v7696_v43  ;;  %v5287_v53 = vlaneseq }
 0x1e3   : > { %v4529_v5 = vadd.f32 %v7303_v58, %v4155_v35 }
 0x1e4   : > { %v7338_v26 = vpop.f32.mrb[80].mxu1 }
 0x1e5   : > { %v7339_v52 = vpop.f32.mrb[81].mxu1 }
 0x1e6   : > { %v7340_v42 = vadd.f32 %v7339_v52, %v7338_v26  ;;  %v7341_v45 = vpop.f32.mrb[82].mxu1 }
 0x1e7   : > { %v7342_v40 = vpop.f32.mrb[83].mxu1 }
 0x1e8   : > { %v4970_v17 = vadd.f32 %v7340_v42, %v4528_v61  ;;  %v7343_v1 = vadd.f32 %v7342_v40, %v7341_v45  ;;  %v5286_v45 = vunpack.c.0.s8 %v5285_v15  ;;  %v5288_v40 = vshrl.u32 %v5287_v53, 7 }
 0x1ea   : > { %v9484_v38 = vadd.f32 %v7343_v1, %v4529_v5 }
 0x1eb   : > { %v7304_v21 = vpop.f32.mrb[84].mxu0 }
 0x1ec   : > { %v7305_v46 = vpop.f32.mrb[85].mxu0 }
 0x1ed   : > { %v7306_v10 = vadd.f32 %v7305_v46, %v7304_v21  ;;  %v7307_v27 = vpop.f32.mrb[86].mxu0 }
 0x1ee   : > { %v7308_v32 = vpop.f32.mrb[87].mxu0 }
 0x1ef   : > { %v4530_v39 = vadd.f32 %v7306_v10, %v4156_v50  ;;  %v7309_v49 = vadd.f32 %v7308_v32, %v7307_v27 }
 0x1f0   : > { %v7344_v57 = vpop.f32.mrb[84].mxu1 }
 0x1f1   : > { %v7345_v12 = vpop.f32.mrb[85].mxu1  ;;  %v4531_v20 = vadd.f32 %v7309_v49, %v4157_v14 }
 0x1f2   : > { %v7346_v35 = vadd.f32 %v7345_v12, %v7344_v57  ;;  %v7347_v60 = vpop.f32.mrb[86].mxu1  ;;  %v9500_v12 = vsub.s32 %v5286_v45, %v5288_v40 }
 0x1f3   : > { %v7348_v7 = vpop.f32.mrb[87].mxu1 }
 0x1f4   : > { %v9486_v11 = vadd.f32 %v7346_v35, %v4530_v39  ;;  %v7349_v31 = vadd.f32 %v7348_v7, %v7347_v60 }
 0x1f6   : > { %v9488_v63 = vadd.f32 %v7349_v31, %v4531_v20 }
 0x1f7   : > { %v7310_v48 = vpop.f32.mrb[88].mxu0 }
 0x1f8   : > { %v7311_v62 = vpop.f32.mrb[89].mxu0 }
 0x1f9   : > { %v7312_v56 = vadd.f32 %v7311_v62, %v7310_v48  ;;  %v7313_v54 = vpop.f32.mrb[90].mxu0 }
 0x1fa   : > { %v7314_v25 = vpop.f32.mrb[91].mxu0 }
 0x1fb   : > { %v4532_v41 = vadd.f32 %v7312_v56, %v4158_v59  ;;  %v7315_v18 = vadd.f32 %v7314_v25, %v7313_v54 }
 0x1fd   : > { %v7350_v50 = vpop.f32.mrb[88].mxu1  ;;  %v4533_v9 = vadd.f32 %v7315_v18, %v4159_v30 }
 0x1fe   : > { %v7351_v16 = vpop.f32.mrb[89].mxu1 }
 0x1ff   : > { %v7352_v34 = vadd.f32 %v7351_v16, %v7350_v50  ;;  %v7353_v14 = vpop.f32.mrb[90].mxu1 }
 0x200   : > { %v7354_v6 = vpop.f32.mrb[91].mxu1 }
 0x201   : > { %v4974_v4 = vadd.f32 %v7352_v34, %v4532_v41  ;;  %v7355_v8 = vadd.f32 %v7354_v6, %v7353_v14 }
 0x203   : > { %v4975_v29 = vadd.f32 %v7355_v8, %v4533_v9 }
 0x205   : > { %v7316_v51 = vpop.f32.mrb[92].mxu0 }
 0x206   : > { %v7317_v2 = vpop.f32.mrb[93].mxu0 }
 0x207   : > { %v7318_v55 = vadd.f32 %v7317_v2, %v7316_v51  ;;  %v7319_v28 = vpop.f32.mrb[94].mxu0 }
 0x208   : > { %v7320_v0 = vpop.f32.mrb[95].mxu0 }
 0x209   : > { %v4534_v36 = vadd.f32 %v7318_v55, %v4160_v44  ;;  %v7321_v33 = vadd.f32 %v7320_v0, %v7319_v28  ;;  %v9493_v44 = vld [vmem:[%s9622_s2] ss:$0 sm:$0xff] }
 0x20b   : > { %v7356_v22 = vpop.f32.mrb[92].mxu1  ;;  %v4535_v23 = vadd.f32 %v7321_v33, %v4161_v19 }
 0x20c   : > { %v7357_v59 = vpop.f32.mrb[93].mxu1 }
 0x20d   : > { %v7358_v37 = vadd.f32 %v7357_v59, %v7356_v22  ;;  %v7359_v13 = vpop.f32.mrb[94].mxu1  ;;  %v7378_v30 = vpop.f32.mrb[96].mxu0 }
 0x20e   : > { %v7360_v24 = vpop.f32.mrb[95].mxu1  ;;  %v7379_v47 = vpop.f32.mrb[97].mxu0 }
 0x20f   : > { %v4976_v3 = vadd.f32 %v7358_v37, %v4534_v36  ;;  %v7361_v61 = vadd.f32 %v7360_v24, %v7359_v13  ;;  %v7380_v58 = vadd.f32 %v7379_v47, %v7378_v30  ;;  %v7381_v5 = vpop.f32.mrb[98].mxu0 }
 0x210   : > { %v7382_v26 = vpop.f32.mrb[99].mxu0 }
 0x211   : > { %v9495_v19 = vadd.f32 %v7361_v61, %v4535_v23  ;;  %v5244_v52 = vadd.f32 %v7380_v58, %v4970_v17  ;;  %v7383_v42 = vadd.f32 %v7382_v26, %v7381_v5 }
 0x213   : > { %v7390_v1 = vpop.f32.mrb[96].mxu1  ;;  %v5259_v21 = vadd.f32 %v9493_v44, %v5244_v52  ;;  %v5245_v46 = vadd.f32 %v7383_v42, %v9484_v38 }
 0x214   : > { %v7391_v10 = vpop.f32.mrb[97].mxu1 }
 0x215   : > { %v7392_v27 = vadd.f32 %v7391_v10, %v7390_v1  ;;  %v7393_v32 = vpop.f32.mrb[98].mxu1  ;;  %v5260_v39 = vadd.f32 %v9493_v44, %v5245_v46  ;;  %v7384_v49 = vpop.f32.mrb[100].mxu0  ;;  %v5267_v57 = vmax.f32 %v5259_v21, 0.0 }
 0x216   : > { %v7394_v20 = vpop.f32.mrb[99].mxu1  ;;  %v7385_v35 = vpop.f32.mrb[101].mxu0 }
 0x217   : > { %v5248_v17 = vadd.f32 %v7392_v27, %v4974_v4  ;;  %v5268_v60 = vmax.f32 %v5260_v39, 0.0  ;;  %v7395_v7 = vadd.f32 %v7394_v20, %v7393_v32  ;;  %v7386_v31 = vadd.f32 %v7385_v35, %v7384_v49  ;;  %v7387_v48 = vpop.f32.mrb[102].mxu0 }
 0x218   : > { %v7388_v62 = vpop.f32.mrb[103].mxu0 }
 0x219   : > { %v5263_v56 = vadd.f32 %v9493_v44, %v5248_v17  ;;  %v5275_v38 = vmax.f32 %v5267_v57, %v5268_v60  ;;  %v5249_v54 = vadd.f32 %v7395_v7, %v4975_v29  ;;  %v5246_v25 = vadd.f32 %v7386_v31, %v9486_v11 }
 0x21a   : > { %v7389_v41 = vadd.f32 %v7388_v62, %v7387_v48 }
 0x21b   : > { %v5283_v18 = vcombine.high %v5275_v38, %v5275_v38  ;;  %v5290_v50 = vrot.slane %v5275_v38, %v9500_v12  ;;  %v5264_v9 = vadd.f32 %v9493_v44, %v5249_v54  ;;  %v7396_v16 = vpop.f32.mrb[100].mxu1  ;;  %v5271_v34 = vmax.f32 %v5263_v56, 0.0 }
 0x21c   : > { %v9507_v14 = vadd.f32 %v9493_v44, %v5246_v25  ;;  %v7397_v6 = vpop.f32.mrb[101].mxu1  ;;  %v5247_v4 = vadd.f32 %v7389_v41, %v9488_v63 }
 0x21d   : > { %v5297_v8 = vrot.slane %v5283_v18, %v9500_v12  ;;  %v5298_v51 = vcombine.high %v5290_v50, %v5290_v50  ;;  %v5368_v29 = vsel %vm1027_vm9, %v5290_v50, -inf  ;;  %v5272_v11 = vmax.f32 %v5264_v9, 0.0  ;;  %v9512_v2 = vpop.f32.mrb[102].mxu1 }
 0x21e   : > { %v5369_v55 = vrot.slane %v5368_v29, 4  ;;  %v7398_v28 = vadd.f32 %v7397_v6, %v7396_v16  ;;  %v9515_v0 = vadd.f32 %v9493_v44, %v5247_v4  ;;  %v9517_v36 = vpop.f32.mrb[103].mxu1  ;;  %v5269_v15 = vmax.f32 %v9507_v14, 0.0 }
 0x21f   : > { %v5299_v33 = vcombine.high %v5297_v8, %v5297_v8  ;;  %v5375_v22 = vsel %vm1027_vm9, %v5298_v51, -inf  ;;  %v5382_v63 = vsel %vm1027_vm9, %v5297_v8, -inf  ;;  %v5277_v23 = vmax.f32 %v5271_v34, %v5272_v11 }
 0x220   : > { %v5370_v59 = vmax.f32 %v5368_v29, %v5369_v55  ;;  %v5376_v37 = vrot.slane %v5375_v22, 4  ;;  %v5383_v13 = vrot.slane %v5382_v63, 4  ;;  %v9521_v30 = vadd.f32 %v7398_v28, %v4976_v3 }
 0x221   : > { %v5389_v24 = vsel %vm1027_vm9, %v5299_v33, -inf  ;;  %v5317_v47 = vcombine.high %v5277_v23, %v5277_v23  ;;  %v5324_v43 = vrot.slane %v5277_v23, %v9500_v12  ;;  %v5270_v45 = vmax.f32 %v9515_v0, 0.0 }
 0x222   : > { %v5371_v53 = vrot.slane %v5370_v59, 2  ;;  %v5377_v61 = vmax.f32 %v5375_v22, %v5376_v37  ;;  %v5384_v58 = vmax.f32 %v5382_v63, %v5383_v13  ;;  %v5390_v5 = vrot.slane %v5389_v24, 4 }
 0x223   : > { %v5331_v26 = vrot.slane %v5317_v47, %v9500_v12  ;;  %v5332_v52 = vcombine.high %v5324_v43, %v5324_v43  ;;  %v5424_v42 = vsel %vm1027_vm9, %v5324_v43, -inf }
 0x224   : > { %v5372_v3 = vmax.f32 %v5370_v59, %v5371_v53  ;;  %v5378_v40 = vrot.slane %v5377_v61, 2  ;;  %v5385_v1 = vrot.slane %v5384_v58, 2  ;;  %v5391_v21 = vmax.f32 %v5389_v24, %v5390_v5 }
 0x225   : > { %v5333_v46 = vcombine.high %v5331_v26, %v5331_v26  ;;  %v5425_v10 = vrot.slane %v5424_v42, 4  ;;  %v5431_v27 = vsel %vm1027_vm9, %v5332_v52, -inf  ;;  %v5438_v32 = vsel %vm1027_vm9, %v5331_v26, -inf }
 0x226   : > { %v5373_v39 = vrot.slane %v5372_v3, 1  ;;  %v5379_v49 = vmax.f32 %v5377_v61, %v5378_v40  ;;  %v5386_v57 = vmax.f32 %v5384_v58, %v5385_v1  ;;  %v5392_v20 = vrot.slane %v5391_v21, 2 }
 0x227   : > { %v5426_v35 = vmax.f32 %v5424_v42, %v5425_v10  ;;  %v5432_v17 = vrot.slane %v5431_v27, 4  ;;  %v5439_v60 = vrot.slane %v5438_v32, 4  ;;  %v5445_v7 = vsel %vm1027_vm9, %v5333_v46, -inf }
 0x228   : > { %v5374_v31 = vmax.f32 %v5372_v3, %v5373_v39  ;;  %v5380_v48 = vrot.slane %v5379_v49, 1  ;;  %v5387_v62 = vrot.slane %v5386_v57, 1  ;;  %v5393_v56 = vmax.f32 %v5391_v21, %v5392_v20 }
 0x229   : > { %v5427_v38 = vrot.slane %v5426_v35, 2  ;;  %v5433_v54 = vmax.f32 %v5431_v27, %v5432_v17  ;;  %v5440_v25 = vmax.f32 %v5438_v32, %v5439_v60  ;;  %v5446_v41 = vrot.slane %v5445_v7, 4 }
 0x22a   : > { %v5381_v18 = vmax.f32 %v5379_v49, %v5380_v48  ;;  %v5388_v50 = vmax.f32 %v5386_v57, %v5387_v62  ;;  %v5394_v9 = vrot.slane %v5393_v56, 1  ;;  %v5480_v16 = vpack.c.bf16 %v5374_v31, %v5374_v31 }
 0x22b   : > { %v5428_v34 = vmax.f32 %v5426_v35, %v5427_v38  ;;  %v5434_v6 = vrot.slane %v5433_v54, 2  ;;  %v5441_v4 = vrot.slane %v5440_v25, 2  ;;  %v5447_v8 = vmax.f32 %v5445_v7, %v5446_v41 }
 0x22c   : > { %v5395_v51 = vmax.f32 %v5393_v56, %v5394_v9  ;;  %v5481_v29 = vpack.c.bf16 %v5381_v18, %v5381_v18  ;;  %v5482_v11 = vpack.c.bf16 %v5388_v50, %v5388_v50  ;;  %v5518_v55 = vrot.slane %v5480_v16, %v9500_v12 }
 0x22d   : > { %v5429_v28 = vrot.slane %v5428_v34, 1  ;;  %v5435_v33 = vmax.f32 %v5433_v54, %v5434_v6  ;;  %v5442_v22 = vmax.f32 %v5440_v25, %v5441_v4  ;;  %v5448_v63 = vrot.slane %v5447_v8, 2 }
 0x22e   : > { %v5483_v23 = vpack.c.bf16 %v5395_v51, %v5395_v51  ;;  %v5525_v59 = vrot.slane %v5481_v29, %v9500_v12  ;;  %v5532_v37 = vrot.slane %v5482_v11, %v9500_v12  ;;  %v5630_v13 = vrot.slane %v5518_v55, %v9500_v12 }
 0x22f   : > { %v5430_v24 = vmax.f32 %v5428_v34, %v5429_v28  ;;  %v5436_v47 = vrot.slane %v5435_v33, 1  ;;  %v5443_v43 = vrot.slane %v5442_v22, 1  ;;  %v5449_v53 = vmax.f32 %v5447_v8, %v5448_v63 }
 0x230   : > { %v5539_v61 = vrot.slane %v5483_v23, %v9500_v12  ;;  %v5637_v58 = vrot.slane %v5525_v59, %v9500_v12  ;;  %v5644_v5 = vrot.slane %v5532_v37, %v9500_v12  ;;  %v9541_v26 = vadd.f32 %v9493_v44, %v9521_v30 }
 0x231   : > { %v5437_v52 = vmax.f32 %v5435_v33, %v5436_v47  ;;  %v5444_v42 = vmax.f32 %v5442_v22, %v5443_v43  ;;  %v5450_v3 = vrot.slane %v5449_v53, 1  ;;  %v5488_v40 = vpack.c.bf16 %v5430_v24, %v5430_v24 }
 0x232   : > { %v5651_v1 = vrot.slane %v5539_v61, %v9500_v12  ;;  %v5736_v21 = vunpack.c.l.b16 %v5630_v13  ;;  %v5737_v46 = vunpack.c.l.b16 %v5637_v58  ;;  %v5738_v10 = vunpack.c.l.b16 %v5644_v5 }
 0x233   : > { %v5451_v27 = vmax.f32 %v5449_v53, %v5450_v3  ;;  %v5489_v32 = vpack.c.bf16 %v5437_v52, %v5437_v52  ;;  %v5490_v39 = vpack.c.bf16 %v5444_v42, %v5444_v42  ;;  %v5574_v49 = vrot.slane %v5488_v40, %v9500_v12 }
 0x234   : > { %v5739_v57 = vunpack.c.l.b16 %v5651_v1  ;;  %v5752_v20 = vrot.slane %v5737_v46, 7  ;;  %v5755_v35 = vrot.slane %v5738_v10, 6  ;;  %v5276_v30 = vmax.f32 %v5269_v15, %v5270_v45 }
 0x235   : > { %v5491_v17 = vpack.c.bf16 %v5451_v27, %v5451_v27  ;;  %v5581_v60 = vrot.slane %v5489_v32, %v9500_v12  ;;  %v5588_v7 = vrot.slane %v5490_v39, %v9500_v12  ;;  %v5686_v31 = vrot.slane %v5574_v49, %v9500_v12 }
 0x236   : > { %v5754_v48 = vsel %vm5753_vm12, %v5752_v20, %v5736_v21  ;;  %v5758_v62 = vrot.slane %v5739_v57, 5  ;;  %v5300_v56 = vcombine.high %v5276_v30, %v5276_v30  ;;  %v5307_v38 = vrot.slane %v5276_v30, %v9500_v12 }
 0x237   : > { %v5757_v54 = vsel %vm5756_vm13, %v5755_v35, %v5754_v48  ;;  %v5595_v0 = vrot.slane %v5491_v17, %v9500_v12  ;;  %v5693_v14 = vrot.slane %v5581_v60, %v9500_v12  ;;  %v5700_v15 = vrot.slane %v5588_v7, %v9500_v12 }
 0x238   : > { %v5760_v45 = vsel %vm5759_vm14, %v5758_v62, %v5757_v54  ;;  %v5744_v25 = vunpack.c.l.b16 %v5686_v31  ;;  %v5314_v41 = vrot.slane %v5300_v56, %v9500_v12  ;;  %v5315_v18 = vcombine.high %v5307_v38, %v5307_v38 }
 0x239   : > { %v5779_v50 = vpack.c.b16 %v5760_v45, %v5760_v45  ;;  %v5707_v9 = vrot.slane %v5595_v0, %v9500_v12  ;;  %v5745_v16 = vunpack.c.l.b16 %v5693_v14  ;;  %v5746_v34 = vunpack.c.l.b16 %v5700_v15 }
 0x23a   : > { %v5316_v6 = vcombine.high %v5314_v41, %v5314_v41  ;;  %v5396_v4 = vsel %vm1027_vm9, %v5307_v38, -inf  ;;  %v5403_v8 = vsel %vm1027_vm9, %v5315_v18, -inf  ;;  %v5410_v51 = vsel %vm1027_vm9, %v5314_v41, -inf }
 0x23b   : > { %6875 = vst.sshfl [vmem:[%s9562_s18] sm:$0x3 pattern:$0x76325410] %v5779_v50  ;;  %v5747_v29 = vunpack.c.l.b16 %v5707_v9  ;;  %v5767_v11 = vrot.slane %v5745_v16, 7  ;;  %v5769_v55 = vrot.slane %v5746_v34, 6  ;;  %v5397_v28 = vrot.slane %v5396_v4, 4 }
 0x23c   : > { %v5404_v33 = vrot.slane %v5403_v8, 4  ;;  %v5411_v22 = vrot.slane %v5410_v51, 4  ;;  %v5417_v63 = vsel %vm1027_vm9, %v5316_v6, -inf  ;;  %v7401_v23 = vadd.f32 %v9517_v36, %v9512_v2 }
 0x23d   : > { %v5768_v59 = vsel %vm5753_vm12, %v5767_v11, %v5744_v25  ;;  %v5771_v37 = vrot.slane %v5747_v29, 5  ;;  %v5398_v13 = vmax.f32 %v5396_v4, %v5397_v28  ;;  %v5418_v24 = vrot.slane %v5417_v63, 4 }
 0x23e   : > { %v5770_v47 = vsel %vm5756_vm13, %v5769_v55, %v5768_v59  ;;  %v5405_v43 = vmax.f32 %v5403_v8, %v5404_v33  ;;  %v5412_v53 = vmax.f32 %v5410_v51, %v5411_v22  ;;  %v5251_v61 = vadd.f32 %v7401_v23, %v9495_v19 }
 0x23f   : > { %v5772_v58 = vsel %vm5759_vm14, %v5771_v37, %v5770_v47  ;;  %v5399_v5 = vrot.slane %v5398_v13, 2  ;;  %v5419_v52 = vmax.f32 %v5417_v63, %v5418_v24  ;;  %v5273_v21 = vmax.f32 %v9541_v26, 0.0 }
 0x240   : > { %v5781_v42 = vpack.c.b16 %v5772_v58, %v5772_v58  ;;  %v5406_v3 = vrot.slane %v5405_v43, 2  ;;  %v5413_v40 = vrot.slane %v5412_v53, 2  ;;  %v5266_v2 = vadd.f32 %v9493_v44, %v5251_v61 }
 0x241   : > { %v5400_v36 = vmax.f32 %v5398_v13, %v5399_v5  ;;  %v5420_v1 = vrot.slane %v5419_v52, 2 }
 0x242   : > { %6877 = vst.sshfl [vmem:[%s9562_s18 + $0x4] sm:$0x3 pattern:$0x76325410] %v5781_v42  ;;  %v5407_v46 = vmax.f32 %v5405_v43, %v5406_v3  ;;  %v5414_v10 = vmax.f32 %v5412_v53, %v5413_v40  ;;  %v5274_v27 = vmax.f32 %v5266_v2, 0.0 }
 0x243   : > { %v5401_v32 = vrot.slane %v5400_v36, 1  ;;  %v5421_v39 = vmax.f32 %v5419_v52, %v5420_v1 }
 0x244   : > { %v5408_v19 = vrot.slane %v5407_v46, 1  ;;  %v5415_v49 = vrot.slane %v5414_v10, 1  ;;  %v5278_v57 = vmax.f32 %v5273_v21, %v5274_v27 }
 0x245   : > { %v5402_v20 = vmax.f32 %v5400_v36, %v5401_v32  ;;  %v5422_v35 = vrot.slane %v5421_v39, 1 }
 0x246   : > { %v5409_v30 = vmax.f32 %v5407_v46, %v5408_v19  ;;  %v5416_v17 = vmax.f32 %v5414_v10, %v5415_v49  ;;  %v5334_v60 = vcombine.high %v5278_v57, %v5278_v57  ;;  %v5341_v44 = vrot.slane %v5278_v57, %v9500_v12 }
 0x247   : > { %v5423_v7 = vmax.f32 %v5421_v39, %v5422_v35  ;;  %v5484_v31 = vpack.c.bf16 %v5402_v20, %v5402_v20 }
 0x248   : > { %v5485_v48 = vpack.c.bf16 %v5409_v30, %v5409_v30  ;;  %v5486_v62 = vpack.c.bf16 %v5416_v17, %v5416_v17  ;;  %v5348_v26 = vrot.slane %v5334_v60, %v9500_v12  ;;  %v5349_v56 = vcombine.high %v5341_v44, %v5341_v44 }
 0x249   : > { %v5487_v38 = vpack.c.bf16 %v5423_v7, %v5423_v7  ;;  %v5546_v54 = vrot.slane %v5484_v31, %v9500_v12  ;;  %v5452_v0 = vsel %vm1027_vm9, %v5341_v44, -inf }
 0x24a   : > { %v5553_v14 = vrot.slane %v5485_v48, %v9500_v12  ;;  %v5560_v15 = vrot.slane %v5486_v62, %v9500_v12  ;;  %v5350_v45 = vcombine.high %v5348_v26, %v5348_v26  ;;  %v5453_v25 = vrot.slane %v5452_v0, 4 }
 0x24b   : > { %v5567_v41 = vrot.slane %v5487_v38, %v9500_v12  ;;  %v5658_v18 = vrot.slane %v5546_v54, %v9500_v12  ;;  %v5459_v50 = vsel %vm1027_vm9, %v5349_v56, -inf  ;;  %v5466_v9 = vsel %vm1027_vm9, %v5348_v26, -inf }
 0x24c   : > { %v5665_v16 = vrot.slane %v5553_v14, %v9500_v12  ;;  %v5672_v34 = vrot.slane %v5560_v15, %v9500_v12  ;;  %v5454_v6 = vmax.f32 %v5452_v0, %v5453_v25  ;;  %v5460_v4 = vrot.slane %v5459_v50, 4 }
 0x24d   : > { %v5679_v8 = vrot.slane %v5567_v41, %v9500_v12  ;;  %v5467_v51 = vrot.slane %v5466_v9, 4  ;;  %v5473_v29 = vsel %vm1027_vm9, %v5350_v45, -inf  ;;  %v5740_v22 = vunpack.c.l.b16 %v5658_v18 }
 0x24e   : > { %v5741_v11 = vunpack.c.l.b16 %v5665_v16  ;;  %v5742_v55 = vunpack.c.l.b16 %v5672_v34  ;;  %v5455_v28 = vrot.slane %v5454_v6, 2  ;;  %v5461_v33 = vmax.f32 %v5459_v50, %v5460_v4 }
 0x24f   : > { %v5743_v63 = vunpack.c.l.b16 %v5679_v8  ;;  %v5468_v23 = vmax.f32 %v5466_v9, %v5467_v51  ;;  %v5474_v59 = vrot.slane %v5473_v29, 4 }
 0x250   : > { %v5761_v37 = vrot.slane %v5741_v11, 7  ;;  %v5763_v13 = vrot.slane %v5742_v55, 6  ;;  %v5456_v24 = vmax.f32 %v5454_v6, %v5455_v28  ;;  %v5462_v47 = vrot.slane %v5461_v33, 2 }
 0x251   : > { %v5765_v43 = vrot.slane %v5743_v63, 5  ;;  %v5469_v53 = vrot.slane %v5468_v23, 2  ;;  %v5475_v61 = vmax.f32 %v5473_v29, %v5474_v59 }
 0x252   : > { %v5762_v58 = vsel %vm5753_vm12, %v5761_v37, %v5740_v22  ;;  %v5457_v5 = vrot.slane %v5456_v24, 1  ;;  %v5463_v52 = vmax.f32 %v5461_v33, %v5462_v47 }
 0x253   : > { %v5764_v42 = vsel %vm5756_vm13, %v5763_v13, %v5762_v58  ;;  %v5470_v3 = vmax.f32 %v5468_v23, %v5469_v53  ;;  %v5476_v40 = vrot.slane %v5475_v61, 2 }
 0x254   : > { %v5766_v2 = vsel %vm5759_vm14, %v5765_v43, %v5764_v42  ;;  %v5458_v36 = vmax.f32 %v5456_v24, %v5457_v5  ;;  %v5464_v1 = vrot.slane %v5463_v52, 1 }
 0x255   : > { %v5780_v21 = vpack.c.b16 %v5766_v2, %v5766_v2  ;;  %v5471_v46 = vrot.slane %v5470_v3, 1  ;;  %v5477_v10 = vmax.f32 %v5475_v61, %v5476_v40 }
 0x256   : > { %v5465_v27 = vmax.f32 %v5463_v52, %v5464_v1  ;;  %v5492_v32 = vpack.c.bf16 %v5458_v36, %v5458_v36 }
 0x257   : > { %6876 = vst.sshfl [vmem:[%s9562_s18 + $0x2] sm:$0x3 pattern:$0x76325410] %v5780_v21  ;;  %v5472_v39 = vmax.f32 %v5470_v3, %v5471_v46  ;;  %v5478_v19 = vrot.slane %v5477_v10, 1 }
 0x258   : > { %v5493_v49 = vpack.c.bf16 %v5465_v27, %v5465_v27  ;;  %v5602_v57 = vrot.slane %v5492_v32, %v9500_v12 }
 0x259   : > { %v5479_v20 = vmax.f32 %v5477_v10, %v5478_v19  ;;  %v5494_v35 = vpack.c.bf16 %v5472_v39, %v5472_v39 }
 0x25a   : > { %v5609_v30 = vrot.slane %v5493_v49, %v9500_v12  ;;  %v5714_v44 = vrot.slane %v5602_v57, %v9500_v12 }
 0x25b   : > { %v5495_v17 = vpack.c.bf16 %v5479_v20, %v5479_v20  ;;  %v5616_v60 = vrot.slane %v5494_v35, %v9500_v12 }
 0x25c   : > { %v5721_v7 = vrot.slane %v5609_v30, %v9500_v12  ;;  %v5748_v38 = vunpack.c.l.b16 %v5714_v44 }
 0x25d   : > { %v5623_v31 = vrot.slane %v5495_v17, %v9500_v12  ;;  %v5728_v48 = vrot.slane %v5616_v60, %v9500_v12 }
 0x25e   : > { %v5749_v62 = vunpack.c.l.b16 %v5721_v7 }
 0x25f   : > { %v5735_v26 = vrot.slane %v5623_v31, %v9500_v12  ;;  %v5750_v56 = vunpack.c.l.b16 %v5728_v48 }
 0x260   : > { %v5773_v54 = vrot.slane %v5749_v62, 7 }
 0x261   : > { %v5751_v0 = vunpack.c.l.b16 %v5735_v26  ;;  %v5775_v14 = vrot.slane %v5750_v56, 6 }
 0x262   : > { %v5774_v15 = vsel %vm5753_vm12, %v5773_v54, %v5748_v38 }
 0x263   : > { %v5776_v45 = vsel %vm5756_vm13, %v5775_v14, %v5774_v15  ;;  %v5777_v25 = vrot.slane %v5751_v0, 5 }
 0x265   : > { %v5778_v41 = vsel %vm5759_vm14, %v5777_v25, %v5776_v45 }
 0x266   : > { %v5782_v18 = vpack.c.b16 %v5778_v41, %v5778_v41 }
 0x268   : > { %6878 = vst.sshfl [vmem:[%s9562_s18 + $0x6] sm:$0x3 pattern:$0x76325410] %v5782_v18 }
 0x269 PF: > { %s13_s14 = sadd.s32 1, %s7694_s14   ;;  %s9632_s12 = smov %s7690_s13 }
 0x26a   : > { %p10_p5 = scmp.ge.s32.totalorder %s13_s14, 4   ;;  %s9633_s13 = smov %s9635_s15 }
 0x26c   :  { %12 = sbr.rel (!%p10_p5) target bundleno = 2 (0x2), region = 79 }

</bundles_post_ra>
